<compile_context>
chip_gen: v7x
topology: tpu7x:2x2x1
jax: 0.10.0
libtpu: 0.0.40
codegen_flags: <defaults>
</compile_context>

<pallas_src>
import math
from functools import partial

import jax
import jax.numpy as jnp
from jax import lax
from jax.experimental import pallas as pl
from jax.experimental.pallas import tpu as pltpu


def _round_up(v, m):
    return ((v + m - 1) // m) * m


def _itemsize(dt):
    return jnp.dtype(dt).itemsize


def _tensorcores_per_device():
    """Best-effort TensorCores-per-chip (v5e/v6e: 1, v7x: 2). Defaults to 1."""
    try:
        d = jax.devices()[0]
        for attr in ("num_cores", "core_count"):
            v = getattr(d, attr, None)
            if isinstance(v, int) and v > 0:
                return int(v)
    except Exception:
        pass
    return 1


# ----------------------------------------------------------------------------
# Pallas kernel factory: fused input projection + sequential recurrence.
# ----------------------------------------------------------------------------
def _make_lstm_kernel(chunk, Hp, t_valid, tail_mask, use_hmask, use_cmask):
    """Build the recurrence kernel with static configuration baked in."""

    def kernel(*refs):
        x_ref, wih_ref, b_ref, whh_ref, h0_ref, c0_ref = refs[:6]
        n = 6
        hmask_ref = cmask_ref = None
        if use_hmask:
            hmask_ref = refs[n]
            n += 1
        if use_cmask:
            cmask_ref = refs[n]
            n += 1
        out_ref, hy_ref, cy_ref = refs[n:n + 3]
        xg_sc, h_sc, c_sc = refs[n + 3:n + 6]

        t = pl.program_id(1)

        @pl.when(t == 0)
        def _():
            h_sc[...] = h0_ref[0]
            c_sc[...] = c0_ref[0]

        B_blk = x_ref.shape[1]
        Ip = x_ref.shape[2]

        # Time-parallel input projection for the whole chunk: one MXU matmul
        # with chunk*B_blk rows.  Gate order along 4*Hp is [i | f | o | g];
        # the fused bias is b_ih + b_hh (added in f32).
        xg = jnp.dot(x_ref[...].reshape(chunk * B_blk, Ip), wih_ref[...],
                     preferred_element_type=jnp.float32)
        xg = xg + b_ref[...]
        xg_sc[...] = xg.reshape(chunk, B_blk, 4 * Hp)

        # Hoist loop-invariant loads out of the unrolled recurrence.
        w_hh = whh_ref[...]
        hmask = hmask_ref[0].astype(w_hh.dtype) if use_hmask else None
        cmask = cmask_ref[0] if use_cmask else None

        def sigmoid(v):          # 0.5*(tanh(v/2)+1): stays on the EUP slot
            return 0.5 * jnp.tanh(0.5 * v) + 0.5

        def step(s, carry):
            h, c = carry                          # h: compute dtype, c: f32
            h_in = h * hmask if use_hmask else h  # tied recurrent dropout
            gates = xg_sc[s] + jnp.dot(h_in, w_hh,
                                       preferred_element_type=jnp.float32)
            sig = sigmoid(gates[:, :3 * Hp])      # contiguous (B, 3*Hp) slab
            g = jnp.tanh(gates[:, 3 * Hp:])
            if use_cmask:
                g = g * cmask                     # drC (training only)
            i = sig[:, 0 * Hp:1 * Hp]
            f = sig[:, 1 * Hp:2 * Hp]
            o = sig[:, 2 * Hp:3 * Hp]
            c_new = f * c + i * g
            h_new = (o * jnp.tanh(c_new)).astype(h.dtype)   # one cast, reused
            if tail_mask:                         # freeze state past real T
                valid = (t * chunk + s) < t_valid
                c_new = jnp.where(valid, c_new, c)
                h_new = jnp.where(valid, h_new, h)
            out_ref[s] = h_new.astype(out_ref.dtype)
            return (h_new, c_new)

        h_init = h_sc[...].astype(w_hh.dtype)
        h, c = lax.fori_loop(0, chunk, step, (h_init, c_sc[...]), unroll=True)
        h_sc[...] = h.astype(jnp.float32)
        c_sc[...] = c

        @pl.when(t == pl.num_programs(1) - 1)
        def _():
            hy_ref[0] = h.astype(hy_ref.dtype)
            cy_ref[0] = c.astype(cy_ref.dtype)

    return kernel


# ----------------------------------------------------------------------------
# Host-side weight packing (gate reorder + padding).
# ----------------------------------------------------------------------------
def _reorder_pad_weights(w_ih, w_hh, b_ih, b_hh, H, I, Hp, Ip, compute_dtype):
    # Original gate order along 4H is [i, f, g, o]; reorder to [i, f, o, g].
    idx = jnp.concatenate([jnp.arange(0, H), jnp.arange(H, 2 * H),
                           jnp.arange(3 * H, 4 * H), jnp.arange(2 * H, 3 * H)])
    w_ih_r, w_hh_r, b_r = w_ih[idx], w_hh[idx], (b_ih + b_hh)[idx]

    def _pack(w, K, Kp):
        # (4H, K) -> transposed, padded (Kp, 4*Hp), columns grouped per gate.
        wg = jnp.transpose(w.reshape(4, H, K), (0, 2, 1))      # (gate, in, out)
        wg = jnp.pad(wg, ((0, 0), (0, Kp - K), (0, Hp - H)))
        return jnp.transpose(wg, (1, 0, 2)).reshape(Kp, 4 * Hp)

    w_ih_t = _pack(w_ih_r, I, Ip).astype(compute_dtype)
    w_hh_t = _pack(w_hh_r, H, Hp).astype(compute_dtype)
    b_pad = jnp.pad(b_r.reshape(4, H), ((0, 0), (0, Hp - H))
                    ).reshape(1, 4 * Hp).astype(jnp.float32)
    return w_ih_t, w_hh_t, b_pad


# ----------------------------------------------------------------------------
# Public wrappers.
# ----------------------------------------------------------------------------
@partial(jax.jit, static_argnames=("dr", "dr_method", "training", "do_drop_mc",
                                   "compute_dtype", "max_chunk"))
def lstm_tied_sequence(x, w_ih, w_hh, b_ih, b_hh, h0=None, c0=None, *,
                       dr=0.5, dr_method='drX+drW+drC', training=False,
                       do_drop_mc=False, mask_key=None,
                       compute_dtype=jnp.bfloat16, max_chunk=32):
    """Apply the LstmCellTied recurrence over a (T, B, input_size) sequence.

    Returns (output (T,B,H), (h_T (B,H), c_T (B,H))).
    """
    T, B, I = x.shape
    H = w_ih.shape[0] // 4
    dtype = x.dtype

    if h0 is None:
        h0 = jnp.zeros((B, H), dtype)
    if c0 is None:
        c0 = jnp.zeros((B, H), dtype)

    # Tied (variational) dropout.  One mask per call (DropMask semantics with
    # do_reset_mask on the first step); drH / drC are applied per timestep
    # INSIDE the kernel, drX / drW are folded into the inputs here.
    methods = dr_method.split('+')
    do_drop = (dr > 0) and (do_drop_mc or training)
    use_hmask = bool(do_drop and 'drH' in methods)
    use_cmask = bool((dr > 0) and training and 'drC' in methods)
    hmask = cmask = None
    if do_drop or use_cmask:
        if mask_key is None:
            mask_key = jax.random.PRNGKey(0)
        keep = 1.0 - dr
        kx, kh, kc, k1, k2 = jax.random.split(mask_key, 5)
        if do_drop and 'drX' in methods:
            mx = jax.random.bernoulli(kx, keep, (B, I)).astype(dtype) / keep
            x = x * mx[None]                 # same mask at every timestep
        if use_hmask:
            hmask = jax.random.bernoulli(kh, keep, (B, H)).astype(jnp.float32) / keep
        if use_cmask:
            cmask = jax.random.bernoulli(kc, keep, (B, H)).astype(jnp.float32) / keep
        if do_drop and 'drW' in methods:
            m1 = jax.random.bernoulli(k1, keep, w_ih.shape).astype(w_ih.dtype) / keep
            m2 = jax.random.bernoulli(k2, keep, w_hh.shape).astype(w_hh.dtype) / keep
            w_ih = w_ih * m1
            w_hh = w_hh * m2

    # Padded / tiled sizes.
    Hp = _round_up(H, 128)                       # lane-aligned hidden
    Ip = _round_up(I, 128)                       # lane-aligned input features
    is_bf16 = (jnp.dtype(compute_dtype) == jnp.dtype(jnp.bfloat16)
               or jnp.dtype(dtype) == jnp.dtype(jnp.bfloat16))
    b_align = 16 if is_bf16 else 8               # bf16 tiles are (16,128)
    B_pad = _round_up(B, b_align)

    # Split the batch across TensorCores only when the chip actually has >1 TC
    # and each half is still big enough to matter (v5e/v6e are single-TC: the
    # "parallel" axis would just serialize the whole recurrence twice).
    cores = _tensorcores_per_device()
    nb = 2 if (cores >= 2 and B_pad >= 64 and B_pad % (2 * b_align) == 0) else 1
    B_blk = B_pad // nb

    cd_size = _itemsize(compute_dtype)
    out_size = _itemsize(dtype)
    w_bytes = (Ip + Hp) * 4 * Hp * cd_size
    single_buffer_weights = w_bytes > (4 << 20)  # constant-index blocks: drop
    wbuf = 1 if single_buffer_weights else 2     # the useless double buffer

    def _vmem_need(ch):
        return (ch * B_blk * Ip * cd_size * 2                      # x
                + w_bytes * wbuf                                   # W_ih^T, W_hh^T
                + 8 * 4 * Hp * 4 * 2                               # bias
                + B_blk * Hp * 4 * 2 * (2 + int(use_hmask) + int(use_cmask))
                + ch * B_blk * Hp * out_size * 2                   # out
                + B_blk * Hp * out_size * 2 * 2                    # h_T, c_T
                + ch * B_blk * 4 * Hp * 4                          # x-proj scratch
                + B_blk * Hp * 4 * 2)                              # h/c scratch

    chunk = max(1, min(max_chunk, T))
    while chunk > 8 and _vmem_need(chunk) > (40 << 20):
        chunk = max(8, chunk // 2)               # keep VMEM bounded for huge H
    Tp = _round_up(T, chunk)                     # pad T instead of collapsing
    nt = Tp // chunk                             # chunk=1 for odd/prime T
    tail_mask = Tp != T
    vmem_limit = min(max(int(_vmem_need(chunk) * 1.25) + (2 << 20), 32 << 20),
                     64 << 20)

    # Host-side packing / padding.  Zero pre-activations keep the padded
    # hidden units exactly 0 through the recurrence.
    w_ih_t, w_hh_t, b_pad = _reorder_pad_weights(w_ih, w_hh, b_ih, b_hh,
                                                 H, I, Hp, Ip, compute_dtype)
    x_k = jnp.pad(x.astype(compute_dtype),
                  ((0, Tp - T), (0, B_pad - B), (0, Ip - I)))
    h0p = jnp.pad(h0.astype(jnp.float32), ((0, B_pad - B), (0, Hp - H)))[None]
    c0p = jnp.pad(c0.astype(jnp.float32), ((0, B_pad - B), (0, Hp - H)))[None]

    def _wspec(shape):
        if single_buffer_weights:
            return pl.BlockSpec(shape, lambda b, t: (0, 0),
                                pipeline_mode=pl.Buffered(1))
        return pl.BlockSpec(shape, lambda b, t: (0, 0))

    in_specs = [
        pl.BlockSpec((chunk, B_blk, Ip), lambda b, t: (t, b, 0)),   # x
        _wspec((Ip, 4 * Hp)),                                       # W_ih^T
        pl.BlockSpec((1, 4 * Hp), lambda b, t: (0, 0)),             # fused bias
        _wspec((Hp, 4 * Hp)),                                       # W_hh^T
        pl.BlockSpec((1, B_blk, Hp), lambda b, t: (0, b, 0)),       # h0
        pl.BlockSpec((1, B_blk, Hp), lambda b, t: (0, b, 0)),       # c0
    ]
    args = [x_k, w_ih_t, b_pad, w_hh_t, h0p, c0p]
    if use_hmask:
        in_specs.append(pl.BlockSpec((1, B_blk, Hp), lambda b, t: (0, b, 0)))
        args.append(jnp.pad(hmask, ((0, B_pad - B), (0, Hp - H)))[None])
    if use_cmask:
        in_specs.append(pl.BlockSpec((1, B_blk, Hp), lambda b, t: (0, b, 0)))
        args.append(jnp.pad(cmask, ((0, B_pad - B), (0, Hp - H)))[None])

    kernel = _make_lstm_kernel(chunk, Hp, T, tail_mask, use_hmask, use_cmask)

    out, hy, cy = pl.pallas_call(
        kernel,
        out_shape=(jax.ShapeDtypeStruct((Tp, B_pad, Hp), dtype),
                   jax.ShapeDtypeStruct((1, B_pad, Hp), dtype),
                   jax.ShapeDtypeStruct((1, B_pad, Hp), dtype)),
        grid_spec=pltpu.PrefetchScalarGridSpec(
            num_scalar_prefetch=0,
            grid=(nb, nt),
            in_specs=in_specs,
            out_specs=(
                pl.BlockSpec((chunk, B_blk, Hp), lambda b, t: (t, b, 0)),  # out
                pl.BlockSpec((1, B_blk, Hp), lambda b, t: (0, b, 0)),      # h_T
                pl.BlockSpec((1, B_blk, Hp), lambda b, t: (0, b, 0)),      # c_T
            ),
            scratch_shapes=[
                pltpu.VMEM((chunk, B_blk, 4 * Hp), jnp.float32),  # x-projection
                pltpu.VMEM((B_blk, Hp), jnp.float32),             # h state
                pltpu.VMEM((B_blk, Hp), jnp.float32),             # c state
            ]),
        compiler_params=pltpu.CompilerParams(
            dimension_semantics=("parallel", "arbitrary"),
            vmem_limit_bytes=vmem_limit),
    )(*args)

    return out[:T, :B, :H], (hy[0, :B, :H], cy[0, :B, :H])


def lstm_cell_tied_forward(x, hidden, w_ih, w_hh, b_ih, b_hh, *,
                           dr=0.5, dr_method='drX+drW+drC', training=False,
                           do_drop_mc=False, mask_key=None,
                           compute_dtype=jnp.float32):
    """Exact equivalent of LstmCellTied.forward(x, hidden): one step.

    x: (B, input_size); hidden = (h0, c0) each (B, hidden_size) or None.
    Returns (h1, c1).
    """
    h0, c0 = hidden
    _, (h1, c1) = lstm_tied_sequence(
        x[None], w_ih, w_hh, b_ih, b_hh, h0, c0, dr=dr, dr_method=dr_method,
        training=training, do_drop_mc=do_drop_mc, mask_key=mask_key,
        compute_dtype=compute_dtype)
    return h1, c1


# ----------------------------------------------------------------------------
# Pure-JAX reference (same math as the PyTorch module applied over time).
# ----------------------------------------------------------------------------
def _ref_lstm_sequence(x, w_ih, w_hh, b_ih, b_hh, h0, c0):
    def step(carry, x_t):
        h, c = carry
        g = x_t @ w_ih.T + b_ih + h @ w_hh.T + b_hh
        i, f, gg, o = jnp.split(g, 4, axis=-1)
        i, f, o = jax.nn.sigmoid(i), jax.nn.sigmoid(f), jax.nn.sigmoid(o)
        gg = jnp.tanh(gg)
        c = f * c + i * gg
        h = o * jnp.tanh(c)
        return (h, c), h

    (h, c), ys = lax.scan(step, (h0, c0), x)
    return ys, h, c


if __name__ == "__main__":
    # Small shapes consistent with the module: seq=32, batch=12, input=16,
    # hidden=32 (internally padded to B=16, Hp=Ip=128).
    T, B, input_size, hidden_size = 32, 12, 16, 32

    key = jax.random.PRNGKey(0)
    kx, k1, k2, k3, k4 = jax.random.split(key, 5)

    # reset_parameters(): uniform(-stdv, stdv), stdv = 1/sqrt(hidden_size)
    stdv = 1.0 / math.sqrt(hidden_size)
    w_ih = jax.random.uniform(k1, (4 * hidden_size, input_size),
                              jnp.float32, -stdv, stdv)
    w_hh = jax.random.uniform(k2, (4 * hidden_size, hidden_size),
                              jnp.float32, -stdv, stdv)
    b_ih = jax.random.uniform(k3, (4 * hidden_size,), jnp.float32, -stdv, stdv)
    b_hh = jax.random.uniform(k4, (4 * hidden_size,), jnp.float32, -stdv, stdv)

    x = jax.random.normal(kx, (T, B, input_size), jnp.float32)

    h0 = jnp.zeros((B, hidden_size), jnp.float32)
    c0 = jnp.zeros((B, hidden_size), jnp.float32)
    ref_out, ref_h, ref_c = _ref_lstm_sequence(x, w_ih, w_hh, b_ih, b_hh, h0, c0)

    # 1) f32 compute path (eval mode: no dropout) -- tight numerical check.
    out, (hy, cy) = lstm_tied_sequence(x, w_ih, w_hh, b_ih, b_hh, dr=0.5,
                                       training=False,
                                       compute_dtype=jnp.float32)
    jax.block_until_ready(out)
    assert out.shape == (T, B, hidden_size)
    assert hy.shape == (B, hidden_size) and cy.shape == (B, hidden_size)
    assert jnp.allclose(out, ref_out, rtol=1e-4, atol=1e-4)
    assert jnp.allclose(hy, ref_h, rtol=1e-4, atol=1e-4)
    assert jnp.allclose(cy, ref_c, rtol=1e-4, atol=1e-4)

    # 2) bf16 MXU path (f32 accumulation + f32 c state) -- loose check.
    out_bf, (hy_bf, cy_bf) = lstm_tied_sequence(x, w_ih, w_hh, b_ih, b_hh,
                                                dr=0.5, training=False,
                                                compute_dtype=jnp.bfloat16)
    jax.block_until_ready(out_bf)
    assert jnp.allclose(out_bf, ref_out, rtol=0.0, atol=0.15)
    assert jnp.allclose(hy_bf, ref_h, rtol=0.0, atol=0.15)

    # 3) Odd sequence length (exercises T padding + tail state masking).
    T2 = 37
    x2 = jax.random.normal(jax.random.PRNGKey(7), (T2, B, input_size), jnp.float32)
    ref2_out, ref2_h, ref2_c = _ref_lstm_sequence(x2, w_ih, w_hh, b_ih, b_hh, h0, c0)
    out2, (hy2, cy2) = lstm_tied_sequence(x2, w_ih, w_hh, b_ih, b_hh, dr=0.5,
                                          training=False,
                                          compute_dtype=jnp.float32)
    jax.block_until_ready(out2)
    assert out2.shape == (T2, B, hidden_size)
    assert jnp.allclose(out2, ref2_out, rtol=1e-4, atol=1e-4)
    assert jnp.allclose(hy2, ref2_h, rtol=1e-4, atol=1e-4)
    assert jnp.allclose(cy2, ref2_c, rtol=1e-4, atol=1e-4)

    # 4) Training-mode dropout smoke test (drX/drW in wrapper, drH/drC in
    #    kernel) -- stochastic, so only compile/shape/finiteness is checked.
    out_tr, (hy_tr, cy_tr) = lstm_tied_sequence(
        x, w_ih, w_hh, b_ih, b_hh, dr=0.5, dr_method='drX+drH+drW+drC',
        training=True, mask_key=jax.random.PRNGKey(42),
        compute_dtype=jnp.float32)
    jax.block_until_ready(out_tr)
    assert out_tr.shape == (T, B, hidden_size)
    assert bool(jnp.isfinite(out_tr).all()) and bool(jnp.isfinite(cy_tr).all())

    # 5) Single-cell forward matching LstmCellTied.forward(x, (None, None)).
    h1, c1 = lstm_cell_tied_forward(x[0], (None, None), w_ih, w_hh, b_ih, b_hh,
                                    compute_dtype=jnp.float32)
    jax.block_until_ready(h1)
    assert jnp.allclose(h1, ref_out[0], rtol=1e-4, atol=1e-4)

    print("KERNEL_OK")
</pallas_src>

<mosaic_0001>
module attributes {stable_mosaic.version = 11 : i64} {
  func.func @kernel(%arg0: i32, %arg1: i32, %arg2: memref<32x16x128xf32, #tpu.memory_space<vmem>>, %arg3: memref<128x512xf32, #tpu.memory_space<vmem>>, %arg4: memref<1x512xf32, #tpu.memory_space<vmem>>, %arg5: memref<128x512xf32, #tpu.memory_space<vmem>>, %arg6: memref<1x16x128xf32, #tpu.memory_space<vmem>>, %arg7: memref<1x16x128xf32, #tpu.memory_space<vmem>>, %arg8: memref<32x16x128xf32, #tpu.memory_space<vmem>>, %arg9: memref<1x16x128xf32, #tpu.memory_space<vmem>>, %arg10: memref<1x16x128xf32, #tpu.memory_space<vmem>>, %arg11: memref<32x16x512xf32, #tpu.memory_space<vmem>>, %arg12: memref<16x128xf32, #tpu.memory_space<vmem>>, %arg13: memref<16x128xf32, #tpu.memory_space<vmem>>) attributes {dimension_semantics = [#tpu.dimension_semantics<parallel>, #tpu.dimension_semantics<arbitrary>], iteration_bounds = array<i64: 1, 1>, scalar_prefetch = 0 : i64, scratch_operands = 3 : i64, tpu.core_type = #tpu.core_type<tc>, window_params = [{transform_indices = @transform_0, window_bounds = array<i64: 32, 16, 128>}, {pipeline_mode = #tpu.pipeline_mode<synchronous>, transform_indices = @transform_1, window_bounds = array<i64: 128, 512>}, {pipeline_mode = #tpu.pipeline_mode<synchronous>, transform_indices = @transform_2, window_bounds = array<i64: 1, 512>}, {pipeline_mode = #tpu.pipeline_mode<synchronous>, transform_indices = @transform_3, window_bounds = array<i64: 128, 512>}, {transform_indices = @transform_4, window_bounds = array<i64: 1, 16, 128>}, {transform_indices = @transform_5, window_bounds = array<i64: 1, 16, 128>}, {transform_indices = @transform_6, window_bounds = array<i64: 32, 16, 128>}, {transform_indices = @transform_7, window_bounds = array<i64: 1, 16, 128>}, {transform_indices = @transform_8, window_bounds = array<i64: 1, 16, 128>}]} {
    %c0_i32 = arith.constant 0 : i32
    %0 = arith.cmpi eq, %arg1, %c0_i32 : i32
    %1 = arith.extui %0 : i1 to i32
    %c0_i32_0 = arith.constant 0 : i32
    %2 = arith.cmpi ne, %1, %c0_i32_0 : i32
    scf.if %2 {
      %c0_279 = arith.constant 0 : index
      %c0_280 = arith.constant 0 : index
      %c0_281 = arith.constant 0 : index
      %884 = vector.load %arg6[%c0_279, %c0_280, %c0_281] : memref<1x16x128xf32, #tpu.memory_space<vmem>>, vector<1x16x128xf32>
      %885 = vector.shape_cast %884 : vector<1x16x128xf32> to vector<16x128xf32>
      %c0_282 = arith.constant 0 : index
      %c0_283 = arith.constant 0 : index
      %886 = vector.load %arg12[%c0_282, %c0_283] : memref<16x128xf32, #tpu.memory_space<vmem>>, vector<16x128xf32>
      tpu.vector_store %arg12[%c0_282, %c0_283], %885 {strides = array<i32>} : memref<16x128xf32, #tpu.memory_space<vmem>>, vector<16x128xf32>,
      %c0_284 = arith.constant 0 : index
      %c0_285 = arith.constant 0 : index
      %c0_286 = arith.constant 0 : index
      %887 = vector.load %arg7[%c0_284, %c0_285, %c0_286] : memref<1x16x128xf32, #tpu.memory_space<vmem>>, vector<1x16x128xf32>
      %888 = vector.shape_cast %887 : vector<1x16x128xf32> to vector<16x128xf32>
      %c0_287 = arith.constant 0 : index
      %c0_288 = arith.constant 0 : index
      %889 = vector.load %arg13[%c0_287, %c0_288] : memref<16x128xf32, #tpu.memory_space<vmem>>, vector<16x128xf32>
      tpu.vector_store %arg13[%c0_287, %c0_288], %888 {strides = array<i32>} : memref<16x128xf32, #tpu.memory_space<vmem>>, vector<16x128xf32>,
    } else {
    }
    %c0 = arith.constant 0 : index
    %c0_1 = arith.constant 0 : index
    %c0_2 = arith.constant 0 : index
    %3 = vector.load %arg2[%c0, %c0_1, %c0_2] : memref<32x16x128xf32, #tpu.memory_space<vmem>>, vector<32x16x128xf32>
    %4 = vector.shape_cast %3 : vector<32x16x128xf32> to vector<512x128xf32>
    %c0_3 = arith.constant 0 : index
    %c0_4 = arith.constant 0 : index
    %5 = vector.load %arg3[%c0_3, %c0_4] : memref<128x512xf32, #tpu.memory_space<vmem>>, vector<128x512xf32>
    %cst = arith.constant dense<0.000000e+00> : vector<512x512xf32>
    %6 = tpu.matmul %4, %5, %cst {dimension_numbers = #tpu.dot_dimension_numbers<[1], [0], [0], [1], [0, 0, 1, 1], [], []>} : vector<512x128xf32>, vector<128x512xf32>, vector<512x512xf32> -> vector<512x512xf32>
    %c0_5 = arith.constant 0 : index
    %c0_6 = arith.constant 0 : index
    %7 = vector.load %arg4[%c0_5, %c0_6] : memref<1x512xf32, #tpu.memory_space<vmem>>, vector<1x512xf32>
    %8 = vector.broadcast %7 : vector<1x512xf32> to vector<512x512xf32>
    %9 = arith.addf %6, %8 : vector<512x512xf32>
    %10 = vector.shape_cast %9 : vector<512x512xf32> to vector<32x16x512xf32>
    %c0_7 = arith.constant 0 : index
    %c0_8 = arith.constant 0 : index
    %c0_9 = arith.constant 0 : index
    %11 = vector.load %arg11[%c0_7, %c0_8, %c0_9] : memref<32x16x512xf32, #tpu.memory_space<vmem>>, vector<32x16x512xf32>
    tpu.vector_store %arg11[%c0_7, %c0_8, %c0_9], %10 {strides = array<i32>} : memref<32x16x512xf32, #tpu.memory_space<vmem>>, vector<32x16x512xf32>,
    %c0_10 = arith.constant 0 : index
    %c0_11 = arith.constant 0 : index
    %12 = vector.load %arg5[%c0_10, %c0_11] : memref<128x512xf32, #tpu.memory_space<vmem>>, vector<128x512xf32>
    %c0_12 = arith.constant 0 : index
    %c0_13 = arith.constant 0 : index
    %13 = vector.load %arg12[%c0_12, %c0_13] : memref<16x128xf32, #tpu.memory_space<vmem>>, vector<16x128xf32>
    %c0_14 = arith.constant 0 : index
    %c0_15 = arith.constant 0 : index
    %14 = vector.load %arg13[%c0_14, %c0_15] : memref<16x128xf32, #tpu.memory_space<vmem>>, vector<16x128xf32>
    %c0_i32_16 = arith.constant 0 : i32
    %15 = arith.index_cast %c0_i32_16 : i32 to index
    %c0_17 = arith.constant 0 : index
    %c0_18 = arith.constant 0 : index
    %16 = vector.load %arg11[%15, %c0_17, %c0_18] : memref<32x16x512xf32, #tpu.memory_space<vmem>>, vector<1x16x512xf32>
    %17 = vector.shape_cast %16 : vector<1x16x512xf32> to vector<16x512xf32>
    %cst_19 = arith.constant dense<0.000000e+00> : vector<16x512xf32>
    %18 = tpu.matmul %13, %12, %cst_19 {dimension_numbers = #tpu.dot_dimension_numbers<[1], [0], [0], [1], [0, 0, 1, 1], [], []>} : vector<16x128xf32>, vector<128x512xf32>, vector<16x512xf32> -> vector<16x512xf32>
    %19 = arith.addf %17, %18 : vector<16x512xf32>
    %20 = vector.extract_strided_slice %19 {offsets = [0, 0], sizes = [16, 384], strides = [1, 1]} : vector<16x512xf32> to vector<16x384xf32>
    %cst_20 = arith.constant 5.000000e-01 : f32
    %21 = vector.broadcast %cst_20 : f32 to vector<16x384xf32>
    %22 = arith.mulf %21, %20 : vector<16x384xf32>
    %23 = math.tanh %22 : vector<16x384xf32>
    %cst_21 = arith.constant 5.000000e-01 : f32
    %24 = vector.broadcast %cst_21 : f32 to vector<16x384xf32>
    %25 = arith.mulf %24, %23 : vector<16x384xf32>
    %cst_22 = arith.constant 5.000000e-01 : f32
    %26 = vector.broadcast %cst_22 : f32 to vector<16x384xf32>
    %27 = arith.addf %25, %26 : vector<16x384xf32>
    %28 = vector.extract_strided_slice %19 {offsets = [0, 384], sizes = [16, 128], strides = [1, 1]} : vector<16x512xf32> to vector<16x128xf32>
    %29 = math.tanh %28 : vector<16x128xf32>
    %30 = vector.extract_strided_slice %27 {offsets = [0, 0], sizes = [16, 128], strides = [1, 1]} : vector<16x384xf32> to vector<16x128xf32>
    %31 = vector.extract_strided_slice %27 {offsets = [0, 128], sizes = [16, 128], strides = [1, 1]} : vector<16x384xf32> to vector<16x128xf32>
    %32 = vector.extract_strided_slice %27 {offsets = [0, 256], sizes = [16, 128], strides = [1, 1]} : vector<16x384xf32> to vector<16x128xf32>
    %33 = arith.mulf %31, %14 : vector<16x128xf32>
    %34 = arith.mulf %30, %29 : vector<16x128xf32>
    %35 = arith.addf %33, %34 : vector<16x128xf32>
    %36 = math.tanh %35 : vector<16x128xf32>
    %37 = arith.mulf %32, %36 : vector<16x128xf32>
    %38 = arith.index_cast %c0_i32_16 : i32 to index
    %c0_23 = arith.constant 0 : index
    %c0_24 = arith.constant 0 : index
    %39 = vector.load %arg8[%38, %c0_23, %c0_24] : memref<32x16x128xf32, #tpu.memory_space<vmem>>, vector<1x16x128xf32>
    %40 = vector.shape_cast %39 : vector<1x16x128xf32> to vector<16x128xf32>
    %41 = vector.shape_cast %37 : vector<16x128xf32> to vector<1x16x128xf32>
    tpu.vector_store %arg8[%38, %c0_23, %c0_24], %41 {strides = array<i32>} : memref<32x16x128xf32, #tpu.memory_space<vmem>>, vector<1x16x128xf32>,
    %c1_i32 = arith.constant 1 : i32
    %42 = arith.index_cast %c1_i32 : i32 to index
    %c0_25 = arith.constant 0 : index
    %c0_26 = arith.constant 0 : index
    %43 = vector.load %arg11[%42, %c0_25, %c0_26] : memref<32x16x512xf32, #tpu.memory_space<vmem>>, vector<1x16x512xf32>
    %44 = vector.shape_cast %43 : vector<1x16x512xf32> to vector<16x512xf32>
    %cst_27 = arith.constant dense<0.000000e+00> : vector<16x512xf32>
    %45 = tpu.matmul %37, %12, %cst_27 {dimension_numbers = #tpu.dot_dimension_numbers<[1], [0], [0], [1], [0, 0, 1, 1], [], []>} : vector<16x128xf32>, vector<128x512xf32>, vector<16x512xf32> -> vector<16x512xf32>
    %46 = arith.addf %44, %45 : vector<16x512xf32>
    %47 = vector.extract_strided_slice %46 {offsets = [0, 0], sizes = [16, 384], strides = [1, 1]} : vector<16x512xf32> to vector<16x384xf32>
    %cst_28 = arith.constant 5.000000e-01 : f32
    %48 = vector.broadcast %cst_28 : f32 to vector<16x384xf32>
    %49 = arith.mulf %48, %47 : vector<16x384xf32>
    %50 = math.tanh %49 : vector<16x384xf32>
    %cst_29 = arith.constant 5.000000e-01 : f32
    %51 = vector.broadcast %cst_29 : f32 to vector<16x384xf32>
    %52 = arith.mulf %51, %50 : vector<16x384xf32>
    %cst_30 = arith.constant 5.000000e-01 : f32
    %53 = vector.broadcast %cst_30 : f32 to vector<16x384xf32>
    %54 = arith.addf %52, %53 : vector<16x384xf32>
    %55 = vector.extract_strided_slice %46 {offsets = [0, 384], sizes = [16, 128], strides = [1, 1]} : vector<16x512xf32> to vector<16x128xf32>
    %56 = math.tanh %55 : vector<16x128xf32>
    %57 = vector.extract_strided_slice %54 {offsets = [0, 0], sizes = [16, 128], strides = [1, 1]} : vector<16x384xf32> to vector<16x128xf32>
    %58 = vector.extract_strided_slice %54 {offsets = [0, 128], sizes = [16, 128], strides = [1, 1]} : vector<16x384xf32> to vector<16x128xf32>
    %59 = vector.extract_strided_slice %54 {offsets = [0, 256], sizes = [16, 128], strides = [1, 1]} : vector<16x384xf32> to vector<16x128xf32>
    %60 = arith.mulf %58, %35 : vector<16x128xf32>
    %61 = arith.mulf %57, %56 : vector<16x128xf32>
    %62 = arith.addf %60, %61 : vector<16x128xf32>
    %63 = math.tanh %62 : vector<16x128xf32>
    %64 = arith.mulf %59, %63 : vector<16x128xf32>
    %65 = arith.index_cast %c1_i32 : i32 to index
    %c0_31 = arith.constant 0 : index
    %c0_32 = arith.constant 0 : index
    %66 = vector.load %arg8[%65, %c0_31, %c0_32] : memref<32x16x128xf32, #tpu.memory_space<vmem>>, vector<1x16x128xf32>
    %67 = vector.shape_cast %66 : vector<1x16x128xf32> to vector<16x128xf32>
    %68 = vector.shape_cast %64 : vector<16x128xf32> to vector<1x16x128xf32>
    tpu.vector_store %arg8[%65, %c0_31, %c0_32], %68 {strides = array<i32>} : memref<32x16x128xf32, #tpu.memory_space<vmem>>, vector<1x16x128xf32>,
    %c2_i32 = arith.constant 2 : i32
    %69 = arith.index_cast %c2_i32 : i32 to index
    %c0_33 = arith.constant 0 : index
    %c0_34 = arith.constant 0 : index
    %70 = vector.load %arg11[%69, %c0_33, %c0_34] : memref<32x16x512xf32, #tpu.memory_space<vmem>>, vector<1x16x512xf32>
    %71 = vector.shape_cast %70 : vector<1x16x512xf32> to vector<16x512xf32>
    %cst_35 = arith.constant dense<0.000000e+00> : vector<16x512xf32>
    %72 = tpu.matmul %64, %12, %cst_35 {dimension_numbers = #tpu.dot_dimension_numbers<[1], [0], [0], [1], [0, 0, 1, 1], [], []>} : vector<16x128xf32>, vector<128x512xf32>, vector<16x512xf32> -> vector<16x512xf32>
    %73 = arith.addf %71, %72 : vector<16x512xf32>
    %74 = vector.extract_strided_slice %73 {offsets = [0, 0], sizes = [16, 384], strides = [1, 1]} : vector<16x512xf32> to vector<16x384xf32>
    %cst_36 = arith.constant 5.000000e-01 : f32
    %75 = vector.broadcast %cst_36 : f32 to vector<16x384xf32>
    %76 = arith.mulf %75, %74 : vector<16x384xf32>
    %77 = math.tanh %76 : vector<16x384xf32>
    %cst_37 = arith.constant 5.000000e-01 : f32
    %78 = vector.broadcast %cst_37 : f32 to vector<16x384xf32>
    %79 = arith.mulf %78, %77 : vector<16x384xf32>
    %cst_38 = arith.constant 5.000000e-01 : f32
    %80 = vector.broadcast %cst_38 : f32 to vector<16x384xf32>
    %81 = arith.addf %79, %80 : vector<16x384xf32>
    %82 = vector.extract_strided_slice %73 {offsets = [0, 384], sizes = [16, 128], strides = [1, 1]} : vector<16x512xf32> to vector<16x128xf32>
    %83 = math.tanh %82 : vector<16x128xf32>
    %84 = vector.extract_strided_slice %81 {offsets = [0, 0], sizes = [16, 128], strides = [1, 1]} : vector<16x384xf32> to vector<16x128xf32>
    %85 = vector.extract_strided_slice %81 {offsets = [0, 128], sizes = [16, 128], strides = [1, 1]} : vector<16x384xf32> to vector<16x128xf32>
    %86 = vector.extract_strided_slice %81 {offsets = [0, 256], sizes = [16, 128], strides = [1, 1]} : vector<16x384xf32> to vector<16x128xf32>
    %87 = arith.mulf %85, %62 : vector<16x128xf32>
    %88 = arith.mulf %84, %83 : vector<16x128xf32>
    %89 = arith.addf %87, %88 : vector<16x128xf32>
    %90 = math.tanh %89 : vector<16x128xf32>
    %91 = arith.mulf %86, %90 : vector<16x128xf32>
    %92 = arith.index_cast %c2_i32 : i32 to index
    %c0_39 = arith.constant 0 : index
    %c0_40 = arith.constant 0 : index
    %93 = vector.load %arg8[%92, %c0_39, %c0_40] : memref<32x16x128xf32, #tpu.memory_space<vmem>>, vector<1x16x128xf32>
    %94 = vector.shape_cast %93 : vector<1x16x128xf32> to vector<16x128xf32>
    %95 = vector.shape_cast %91 : vector<16x128xf32> to vector<1x16x128xf32>
    tpu.vector_store %arg8[%92, %c0_39, %c0_40], %95 {strides = array<i32>} : memref<32x16x128xf32, #tpu.memory_space<vmem>>, vector<1x16x128xf32>,
    %c3_i32 = arith.constant 3 : i32
    %96 = arith.index_cast %c3_i32 : i32 to index
    %c0_41 = arith.constant 0 : index
    %c0_42 = arith.constant 0 : index
    %97 = vector.load %arg11[%96, %c0_41, %c0_42] : memref<32x16x512xf32, #tpu.memory_space<vmem>>, vector<1x16x512xf32>
    %98 = vector.shape_cast %97 : vector<1x16x512xf32> to vector<16x512xf32>
    %cst_43 = arith.constant dense<0.000000e+00> : vector<16x512xf32>
    %99 = tpu.matmul %91, %12, %cst_43 {dimension_numbers = #tpu.dot_dimension_numbers<[1], [0], [0], [1], [0, 0, 1, 1], [], []>} : vector<16x128xf32>, vector<128x512xf32>, vector<16x512xf32> -> vector<16x512xf32>
    %100 = arith.addf %98, %99 : vector<16x512xf32>
    %101 = vector.extract_strided_slice %100 {offsets = [0, 0], sizes = [16, 384], strides = [1, 1]} : vector<16x512xf32> to vector<16x384xf32>
    %cst_44 = arith.constant 5.000000e-01 : f32
    %102 = vector.broadcast %cst_44 : f32 to vector<16x384xf32>
    %103 = arith.mulf %102, %101 : vector<16x384xf32>
    %104 = math.tanh %103 : vector<16x384xf32>
    %cst_45 = arith.constant 5.000000e-01 : f32
    %105 = vector.broadcast %cst_45 : f32 to vector<16x384xf32>
    %106 = arith.mulf %105, %104 : vector<16x384xf32>
    %cst_46 = arith.constant 5.000000e-01 : f32
    %107 = vector.broadcast %cst_46 : f32 to vector<16x384xf32>
    %108 = arith.addf %106, %107 : vector<16x384xf32>
    %109 = vector.extract_strided_slice %100 {offsets = [0, 384], sizes = [16, 128], strides = [1, 1]} : vector<16x512xf32> to vector<16x128xf32>
    %110 = math.tanh %109 : vector<16x128xf32>
    %111 = vector.extract_strided_slice %108 {offsets = [0, 0], sizes = [16, 128], strides = [1, 1]} : vector<16x384xf32> to vector<16x128xf32>
    %112 = vector.extract_strided_slice %108 {offsets = [0, 128], sizes = [16, 128], strides = [1, 1]} : vector<16x384xf32> to vector<16x128xf32>
    %113 = vector.extract_strided_slice %108 {offsets = [0, 256], sizes = [16, 128], strides = [1, 1]} : vector<16x384xf32> to vector<16x128xf32>
    %114 = arith.mulf %112, %89 : vector<16x128xf32>
    %115 = arith.mulf %111, %110 : vector<16x128xf32>
    %116 = arith.addf %114, %115 : vector<16x128xf32>
    %117 = math.tanh %116 : vector<16x128xf32>
    %118 = arith.mulf %113, %117 : vector<16x128xf32>
    %119 = arith.index_cast %c3_i32 : i32 to index
    %c0_47 = arith.constant 0 : index
    %c0_48 = arith.constant 0 : index
    %120 = vector.load %arg8[%119, %c0_47, %c0_48] : memref<32x16x128xf32, #tpu.memory_space<vmem>>, vector<1x16x128xf32>
    %121 = vector.shape_cast %120 : vector<1x16x128xf32> to vector<16x128xf32>
    %122 = vector.shape_cast %118 : vector<16x128xf32> to vector<1x16x128xf32>
    tpu.vector_store %arg8[%119, %c0_47, %c0_48], %122 {strides = array<i32>} : memref<32x16x128xf32, #tpu.memory_space<vmem>>, vector<1x16x128xf32>,
    %c4_i32 = arith.constant 4 : i32
    %123 = arith.index_cast %c4_i32 : i32 to index
    %c0_49 = arith.constant 0 : index
    %c0_50 = arith.constant 0 : index
    %124 = vector.load %arg11[%123, %c0_49, %c0_50] : memref<32x16x512xf32, #tpu.memory_space<vmem>>, vector<1x16x512xf32>
    %125 = vector.shape_cast %124 : vector<1x16x512xf32> to vector<16x512xf32>
    %cst_51 = arith.constant dense<0.000000e+00> : vector<16x512xf32>
    %126 = tpu.matmul %118, %12, %cst_51 {dimension_numbers = #tpu.dot_dimension_numbers<[1], [0], [0], [1], [0, 0, 1, 1], [], []>} : vector<16x128xf32>, vector<128x512xf32>, vector<16x512xf32> -> vector<16x512xf32>
    %127 = arith.addf %125, %126 : vector<16x512xf32>
    %128 = vector.extract_strided_slice %127 {offsets = [0, 0], sizes = [16, 384], strides = [1, 1]} : vector<16x512xf32> to vector<16x384xf32>
    %cst_52 = arith.constant 5.000000e-01 : f32
    %129 = vector.broadcast %cst_52 : f32 to vector<16x384xf32>
    %130 = arith.mulf %129, %128 : vector<16x384xf32>
    %131 = math.tanh %130 : vector<16x384xf32>
    %cst_53 = arith.constant 5.000000e-01 : f32
    %132 = vector.broadcast %cst_53 : f32 to vector<16x384xf32>
    %133 = arith.mulf %132, %131 : vector<16x384xf32>
    %cst_54 = arith.constant 5.000000e-01 : f32
    %134 = vector.broadcast %cst_54 : f32 to vector<16x384xf32>
    %135 = arith.addf %133, %134 : vector<16x384xf32>
    %136 = vector.extract_strided_slice %127 {offsets = [0, 384], sizes = [16, 128], strides = [1, 1]} : vector<16x512xf32> to vector<16x128xf32>
    %137 = math.tanh %136 : vector<16x128xf32>
    %138 = vector.extract_strided_slice %135 {offsets = [0, 0], sizes = [16, 128], strides = [1, 1]} : vector<16x384xf32> to vector<16x128xf32>
    %139 = vector.extract_strided_slice %135 {offsets = [0, 128], sizes = [16, 128], strides = [1, 1]} : vector<16x384xf32> to vector<16x128xf32>
    %140 = vector.extract_strided_slice %135 {offsets = [0, 256], sizes = [16, 128], strides = [1, 1]} : vector<16x384xf32> to vector<16x128xf32>
    %141 = arith.mulf %139, %116 : vector<16x128xf32>
    %142 = arith.mulf %138, %137 : vector<16x128xf32>
    %143 = arith.addf %141, %142 : vector<16x128xf32>
    %144 = math.tanh %143 : vector<16x128xf32>
    %145 = arith.mulf %140, %144 : vector<16x128xf32>
    %146 = arith.index_cast %c4_i32 : i32 to index
    %c0_55 = arith.constant 0 : index
    %c0_56 = arith.constant 0 : index
    %147 = vector.load %arg8[%146, %c0_55, %c0_56] : memref<32x16x128xf32, #tpu.memory_space<vmem>>, vector<1x16x128xf32>
    %148 = vector.shape_cast %147 : vector<1x16x128xf32> to vector<16x128xf32>
    %149 = vector.shape_cast %145 : vector<16x128xf32> to vector<1x16x128xf32>
    tpu.vector_store %arg8[%146, %c0_55, %c0_56], %149 {strides = array<i32>} : memref<32x16x128xf32, #tpu.memory_space<vmem>>, vector<1x16x128xf32>,
    %c5_i32 = arith.constant 5 : i32
    %150 = arith.index_cast %c5_i32 : i32 to index
    %c0_57 = arith.constant 0 : index
    %c0_58 = arith.constant 0 : index
    %151 = vector.load %arg11[%150, %c0_57, %c0_58] : memref<32x16x512xf32, #tpu.memory_space<vmem>>, vector<1x16x512xf32>
    %152 = vector.shape_cast %151 : vector<1x16x512xf32> to vector<16x512xf32>
    %cst_59 = arith.constant dense<0.000000e+00> : vector<16x512xf32>
    %153 = tpu.matmul %145, %12, %cst_59 {dimension_numbers = #tpu.dot_dimension_numbers<[1], [0], [0], [1], [0, 0, 1, 1], [], []>} : vector<16x128xf32>, vector<128x512xf32>, vector<16x512xf32> -> vector<16x512xf32>
    %154 = arith.addf %152, %153 : vector<16x512xf32>
    %155 = vector.extract_strided_slice %154 {offsets = [0, 0], sizes = [16, 384], strides = [1, 1]} : vector<16x512xf32> to vector<16x384xf32>
    %cst_60 = arith.constant 5.000000e-01 : f32
    %156 = vector.broadcast %cst_60 : f32 to vector<16x384xf32>
    %157 = arith.mulf %156, %155 : vector<16x384xf32>
    %158 = math.tanh %157 : vector<16x384xf32>
    %cst_61 = arith.constant 5.000000e-01 : f32
    %159 = vector.broadcast %cst_61 : f32 to vector<16x384xf32>
    %160 = arith.mulf %159, %158 : vector<16x384xf32>
    %cst_62 = arith.constant 5.000000e-01 : f32
    %161 = vector.broadcast %cst_62 : f32 to vector<16x384xf32>
    %162 = arith.addf %160, %161 : vector<16x384xf32>
    %163 = vector.extract_strided_slice %154 {offsets = [0, 384], sizes = [16, 128], strides = [1, 1]} : vector<16x512xf32> to vector<16x128xf32>
    %164 = math.tanh %163 : vector<16x128xf32>
    %165 = vector.extract_strided_slice %162 {offsets = [0, 0], sizes = [16, 128], strides = [1, 1]} : vector<16x384xf32> to vector<16x128xf32>
    %166 = vector.extract_strided_slice %162 {offsets = [0, 128], sizes = [16, 128], strides = [1, 1]} : vector<16x384xf32> to vector<16x128xf32>
    %167 = vector.extract_strided_slice %162 {offsets = [0, 256], sizes = [16, 128], strides = [1, 1]} : vector<16x384xf32> to vector<16x128xf32>
    %168 = arith.mulf %166, %143 : vector<16x128xf32>
    %169 = arith.mulf %165, %164 : vector<16x128xf32>
    %170 = arith.addf %168, %169 : vector<16x128xf32>
    %171 = math.tanh %170 : vector<16x128xf32>
    %172 = arith.mulf %167, %171 : vector<16x128xf32>
    %173 = arith.index_cast %c5_i32 : i32 to index
    %c0_63 = arith.constant 0 : index
    %c0_64 = arith.constant 0 : index
    %174 = vector.load %arg8[%173, %c0_63, %c0_64] : memref<32x16x128xf32, #tpu.memory_space<vmem>>, vector<1x16x128xf32>
    %175 = vector.shape_cast %174 : vector<1x16x128xf32> to vector<16x128xf32>
    %176 = vector.shape_cast %172 : vector<16x128xf32> to vector<1x16x128xf32>
    tpu.vector_store %arg8[%173, %c0_63, %c0_64], %176 {strides = array<i32>} : memref<32x16x128xf32, #tpu.memory_space<vmem>>, vector<1x16x128xf32>,
    %c6_i32 = arith.constant 6 : i32
    %177 = arith.index_cast %c6_i32 : i32 to index
    %c0_65 = arith.constant 0 : index
    %c0_66 = arith.constant 0 : index
    %178 = vector.load %arg11[%177, %c0_65, %c0_66] : memref<32x16x512xf32, #tpu.memory_space<vmem>>, vector<1x16x512xf32>
    %179 = vector.shape_cast %178 : vector<1x16x512xf32> to vector<16x512xf32>
    %cst_67 = arith.constant dense<0.000000e+00> : vector<16x512xf32>
    %180 = tpu.matmul %172, %12, %cst_67 {dimension_numbers = #tpu.dot_dimension_numbers<[1], [0], [0], [1], [0, 0, 1, 1], [], []>} : vector<16x128xf32>, vector<128x512xf32>, vector<16x512xf32> -> vector<16x512xf32>
    %181 = arith.addf %179, %180 : vector<16x512xf32>
    %182 = vector.extract_strided_slice %181 {offsets = [0, 0], sizes = [16, 384], strides = [1, 1]} : vector<16x512xf32> to vector<16x384xf32>
    %cst_68 = arith.constant 5.000000e-01 : f32
    %183 = vector.broadcast %cst_68 : f32 to vector<16x384xf32>
    %184 = arith.mulf %183, %182 : vector<16x384xf32>
    %185 = math.tanh %184 : vector<16x384xf32>
    %cst_69 = arith.constant 5.000000e-01 : f32
    %186 = vector.broadcast %cst_69 : f32 to vector<16x384xf32>
    %187 = arith.mulf %186, %185 : vector<16x384xf32>
    %cst_70 = arith.constant 5.000000e-01 : f32
    %188 = vector.broadcast %cst_70 : f32 to vector<16x384xf32>
    %189 = arith.addf %187, %188 : vector<16x384xf32>
    %190 = vector.extract_strided_slice %181 {offsets = [0, 384], sizes = [16, 128], strides = [1, 1]} : vector<16x512xf32> to vector<16x128xf32>
    %191 = math.tanh %190 : vector<16x128xf32>
    %192 = vector.extract_strided_slice %189 {offsets = [0, 0], sizes = [16, 128], strides = [1, 1]} : vector<16x384xf32> to vector<16x128xf32>
    %193 = vector.extract_strided_slice %189 {offsets = [0, 128], sizes = [16, 128], strides = [1, 1]} : vector<16x384xf32> to vector<16x128xf32>
    %194 = vector.extract_strided_slice %189 {offsets = [0, 256], sizes = [16, 128], strides = [1, 1]} : vector<16x384xf32> to vector<16x128xf32>
    %195 = arith.mulf %193, %170 : vector<16x128xf32>
    %196 = arith.mulf %192, %191 : vector<16x128xf32>
    %197 = arith.addf %195, %196 : vector<16x128xf32>
    %198 = math.tanh %197 : vector<16x128xf32>
    %199 = arith.mulf %194, %198 : vector<16x128xf32>
    %200 = arith.index_cast %c6_i32 : i32 to index
    %c0_71 = arith.constant 0 : index
    %c0_72 = arith.constant 0 : index
    %201 = vector.load %arg8[%200, %c0_71, %c0_72] : memref<32x16x128xf32, #tpu.memory_space<vmem>>, vector<1x16x128xf32>
    %202 = vector.shape_cast %201 : vector<1x16x128xf32> to vector<16x128xf32>
    %203 = vector.shape_cast %199 : vector<16x128xf32> to vector<1x16x128xf32>
    tpu.vector_store %arg8[%200, %c0_71, %c0_72], %203 {strides = array<i32>} : memref<32x16x128xf32, #tpu.memory_space<vmem>>, vector<1x16x128xf32>,
    %c7_i32 = arith.constant 7 : i32
    %204 = arith.index_cast %c7_i32 : i32 to index
    %c0_73 = arith.constant 0 : index
    %c0_74 = arith.constant 0 : index
    %205 = vector.load %arg11[%204, %c0_73, %c0_74] : memref<32x16x512xf32, #tpu.memory_space<vmem>>, vector<1x16x512xf32>
    %206 = vector.shape_cast %205 : vector<1x16x512xf32> to vector<16x512xf32>
    %cst_75 = arith.constant dense<0.000000e+00> : vector<16x512xf32>
    %207 = tpu.matmul %199, %12, %cst_75 {dimension_numbers = #tpu.dot_dimension_numbers<[1], [0], [0], [1], [0, 0, 1, 1], [], []>} : vector<16x128xf32>, vector<128x512xf32>, vector<16x512xf32> -> vector<16x512xf32>
    %208 = arith.addf %206, %207 : vector<16x512xf32>
    %209 = vector.extract_strided_slice %208 {offsets = [0, 0], sizes = [16, 384], strides = [1, 1]} : vector<16x512xf32> to vector<16x384xf32>
    %cst_76 = arith.constant 5.000000e-01 : f32
    %210 = vector.broadcast %cst_76 : f32 to vector<16x384xf32>
    %211 = arith.mulf %210, %209 : vector<16x384xf32>
    %212 = math.tanh %211 : vector<16x384xf32>
    %cst_77 = arith.constant 5.000000e-01 : f32
    %213 = vector.broadcast %cst_77 : f32 to vector<16x384xf32>
    %214 = arith.mulf %213, %212 : vector<16x384xf32>
    %cst_78 = arith.constant 5.000000e-01 : f32
    %215 = vector.broadcast %cst_78 : f32 to vector<16x384xf32>
    %216 = arith.addf %214, %215 : vector<16x384xf32>
    %217 = vector.extract_strided_slice %208 {offsets = [0, 384], sizes = [16, 128], strides = [1, 1]} : vector<16x512xf32> to vector<16x128xf32>
    %218 = math.tanh %217 : vector<16x128xf32>
    %219 = vector.extract_strided_slice %216 {offsets = [0, 0], sizes = [16, 128], strides = [1, 1]} : vector<16x384xf32> to vector<16x128xf32>
    %220 = vector.extract_strided_slice %216 {offsets = [0, 128], sizes = [16, 128], strides = [1, 1]} : vector<16x384xf32> to vector<16x128xf32>
    %221 = vector.extract_strided_slice %216 {offsets = [0, 256], sizes = [16, 128], strides = [1, 1]} : vector<16x384xf32> to vector<16x128xf32>
    %222 = arith.mulf %220, %197 : vector<16x128xf32>
    %223 = arith.mulf %219, %218 : vector<16x128xf32>
    %224 = arith.addf %222, %223 : vector<16x128xf32>
    %225 = math.tanh %224 : vector<16x128xf32>
    %226 = arith.mulf %221, %225 : vector<16x128xf32>
    %227 = arith.index_cast %c7_i32 : i32 to index
    %c0_79 = arith.constant 0 : index
    %c0_80 = arith.constant 0 : index
    %228 = vector.load %arg8[%227, %c0_79, %c0_80] : memref<32x16x128xf32, #tpu.memory_space<vmem>>, vector<1x16x128xf32>
    %229 = vector.shape_cast %228 : vector<1x16x128xf32> to vector<16x128xf32>
    %230 = vector.shape_cast %226 : vector<16x128xf32> to vector<1x16x128xf32>
    tpu.vector_store %arg8[%227, %c0_79, %c0_80], %230 {strides = array<i32>} : memref<32x16x128xf32, #tpu.memory_space<vmem>>, vector<1x16x128xf32>,
    %c8_i32 = arith.constant 8 : i32
    %231 = arith.index_cast %c8_i32 : i32 to index
    %c0_81 = arith.constant 0 : index
    %c0_82 = arith.constant 0 : index
    %232 = vector.load %arg11[%231, %c0_81, %c0_82] : memref<32x16x512xf32, #tpu.memory_space<vmem>>, vector<1x16x512xf32>
    %233 = vector.shape_cast %232 : vector<1x16x512xf32> to vector<16x512xf32>
    %cst_83 = arith.constant dense<0.000000e+00> : vector<16x512xf32>
    %234 = tpu.matmul %226, %12, %cst_83 {dimension_numbers = #tpu.dot_dimension_numbers<[1], [0], [0], [1], [0, 0, 1, 1], [], []>} : vector<16x128xf32>, vector<128x512xf32>, vector<16x512xf32> -> vector<16x512xf32>
    %235 = arith.addf %233, %234 : vector<16x512xf32>
    %236 = vector.extract_strided_slice %235 {offsets = [0, 0], sizes = [16, 384], strides = [1, 1]} : vector<16x512xf32> to vector<16x384xf32>
    %cst_84 = arith.constant 5.000000e-01 : f32
    %237 = vector.broadcast %cst_84 : f32 to vector<16x384xf32>
    %238 = arith.mulf %237, %236 : vector<16x384xf32>
    %239 = math.tanh %238 : vector<16x384xf32>
    %cst_85 = arith.constant 5.000000e-01 : f32
    %240 = vector.broadcast %cst_85 : f32 to vector<16x384xf32>
    %241 = arith.mulf %240, %239 : vector<16x384xf32>
    %cst_86 = arith.constant 5.000000e-01 : f32
    %242 = vector.broadcast %cst_86 : f32 to vector<16x384xf32>
    %243 = arith.addf %241, %242 : vector<16x384xf32>
    %244 = vector.extract_strided_slice %235 {offsets = [0, 384], sizes = [16, 128], strides = [1, 1]} : vector<16x512xf32> to vector<16x128xf32>
    %245 = math.tanh %244 : vector<16x128xf32>
    %246 = vector.extract_strided_slice %243 {offsets = [0, 0], sizes = [16, 128], strides = [1, 1]} : vector<16x384xf32> to vector<16x128xf32>
    %247 = vector.extract_strided_slice %243 {offsets = [0, 128], sizes = [16, 128], strides = [1, 1]} : vector<16x384xf32> to vector<16x128xf32>
    %248 = vector.extract_strided_slice %243 {offsets = [0, 256], sizes = [16, 128], strides = [1, 1]} : vector<16x384xf32> to vector<16x128xf32>
    %249 = arith.mulf %247, %224 : vector<16x128xf32>
    %250 = arith.mulf %246, %245 : vector<16x128xf32>
    %251 = arith.addf %249, %250 : vector<16x128xf32>
    %252 = math.tanh %251 : vector<16x128xf32>
    %253 = arith.mulf %248, %252 : vector<16x128xf32>
    %254 = arith.index_cast %c8_i32 : i32 to index
    %c0_87 = arith.constant 0 : index
    %c0_88 = arith.constant 0 : index
    %255 = vector.load %arg8[%254, %c0_87, %c0_88] : memref<32x16x128xf32, #tpu.memory_space<vmem>>, vector<1x16x128xf32>
    %256 = vector.shape_cast %255 : vector<1x16x128xf32> to vector<16x128xf32>
    %257 = vector.shape_cast %253 : vector<16x128xf32> to vector<1x16x128xf32>
    tpu.vector_store %arg8[%254, %c0_87, %c0_88], %257 {strides = array<i32>} : memref<32x16x128xf32, #tpu.memory_space<vmem>>, vector<1x16x128xf32>,
    %c9_i32 = arith.constant 9 : i32
    %258 = arith.index_cast %c9_i32 : i32 to index
    %c0_89 = arith.constant 0 : index
    %c0_90 = arith.constant 0 : index
    %259 = vector.load %arg11[%258, %c0_89, %c0_90] : memref<32x16x512xf32, #tpu.memory_space<vmem>>, vector<1x16x512xf32>
    %260 = vector.shape_cast %259 : vector<1x16x512xf32> to vector<16x512xf32>
    %cst_91 = arith.constant dense<0.000000e+00> : vector<16x512xf32>
    %261 = tpu.matmul %253, %12, %cst_91 {dimension_numbers = #tpu.dot_dimension_numbers<[1], [0], [0], [1], [0, 0, 1, 1], [], []>} : vector<16x128xf32>, vector<128x512xf32>, vector<16x512xf32> -> vector<16x512xf32>
    %262 = arith.addf %260, %261 : vector<16x512xf32>
    %263 = vector.extract_strided_slice %262 {offsets = [0, 0], sizes = [16, 384], strides = [1, 1]} : vector<16x512xf32> to vector<16x384xf32>
    %cst_92 = arith.constant 5.000000e-01 : f32
    %264 = vector.broadcast %cst_92 : f32 to vector<16x384xf32>
    %265 = arith.mulf %264, %263 : vector<16x384xf32>
    %266 = math.tanh %265 : vector<16x384xf32>
    %cst_93 = arith.constant 5.000000e-01 : f32
    %267 = vector.broadcast %cst_93 : f32 to vector<16x384xf32>
    %268 = arith.mulf %267, %266 : vector<16x384xf32>
    %cst_94 = arith.constant 5.000000e-01 : f32
    %269 = vector.broadcast %cst_94 : f32 to vector<16x384xf32>
    %270 = arith.addf %268, %269 : vector<16x384xf32>
    %271 = vector.extract_strided_slice %262 {offsets = [0, 384], sizes = [16, 128], strides = [1, 1]} : vector<16x512xf32> to vector<16x128xf32>
    %272 = math.tanh %271 : vector<16x128xf32>
    %273 = vector.extract_strided_slice %270 {offsets = [0, 0], sizes = [16, 128], strides = [1, 1]} : vector<16x384xf32> to vector<16x128xf32>
    %274 = vector.extract_strided_slice %270 {offsets = [0, 128], sizes = [16, 128], strides = [1, 1]} : vector<16x384xf32> to vector<16x128xf32>
    %275 = vector.extract_strided_slice %270 {offsets = [0, 256], sizes = [16, 128], strides = [1, 1]} : vector<16x384xf32> to vector<16x128xf32>
    %276 = arith.mulf %274, %251 : vector<16x128xf32>
    %277 = arith.mulf %273, %272 : vector<16x128xf32>
    %278 = arith.addf %276, %277 : vector<16x128xf32>
    %279 = math.tanh %278 : vector<16x128xf32>
    %280 = arith.mulf %275, %279 : vector<16x128xf32>
    %281 = arith.index_cast %c9_i32 : i32 to index
    %c0_95 = arith.constant 0 : index
    %c0_96 = arith.constant 0 : index
    %282 = vector.load %arg8[%281, %c0_95, %c0_96] : memref<32x16x128xf32, #tpu.memory_space<vmem>>, vector<1x16x128xf32>
    %283 = vector.shape_cast %282 : vector<1x16x128xf32> to vector<16x128xf32>
    %284 = vector.shape_cast %280 : vector<16x128xf32> to vector<1x16x128xf32>
    tpu.vector_store %arg8[%281, %c0_95, %c0_96], %284 {strides = array<i32>} : memref<32x16x128xf32, #tpu.memory_space<vmem>>, vector<1x16x128xf32>,
    %c10_i32 = arith.constant 10 : i32
    %285 = arith.index_cast %c10_i32 : i32 to index
    %c0_97 = arith.constant 0 : index
    %c0_98 = arith.constant 0 : index
    %286 = vector.load %arg11[%285, %c0_97, %c0_98] : memref<32x16x512xf32, #tpu.memory_space<vmem>>, vector<1x16x512xf32>
    %287 = vector.shape_cast %286 : vector<1x16x512xf32> to vector<16x512xf32>
    %cst_99 = arith.constant dense<0.000000e+00> : vector<16x512xf32>
    %288 = tpu.matmul %280, %12, %cst_99 {dimension_numbers = #tpu.dot_dimension_numbers<[1], [0], [0], [1], [0, 0, 1, 1], [], []>} : vector<16x128xf32>, vector<128x512xf32>, vector<16x512xf32> -> vector<16x512xf32>
    %289 = arith.addf %287, %288 : vector<16x512xf32>
    %290 = vector.extract_strided_slice %289 {offsets = [0, 0], sizes = [16, 384], strides = [1, 1]} : vector<16x512xf32> to vector<16x384xf32>
    %cst_100 = arith.constant 5.000000e-01 : f32
    %291 = vector.broadcast %cst_100 : f32 to vector<16x384xf32>
    %292 = arith.mulf %291, %290 : vector<16x384xf32>
    %293 = math.tanh %292 : vector<16x384xf32>
    %cst_101 = arith.constant 5.000000e-01 : f32
    %294 = vector.broadcast %cst_101 : f32 to vector<16x384xf32>
    %295 = arith.mulf %294, %293 : vector<16x384xf32>
    %cst_102 = arith.constant 5.000000e-01 : f32
    %296 = vector.broadcast %cst_102 : f32 to vector<16x384xf32>
    %297 = arith.addf %295, %296 : vector<16x384xf32>
    %298 = vector.extract_strided_slice %289 {offsets = [0, 384], sizes = [16, 128], strides = [1, 1]} : vector<16x512xf32> to vector<16x128xf32>
    %299 = math.tanh %298 : vector<16x128xf32>
    %300 = vector.extract_strided_slice %297 {offsets = [0, 0], sizes = [16, 128], strides = [1, 1]} : vector<16x384xf32> to vector<16x128xf32>
    %301 = vector.extract_strided_slice %297 {offsets = [0, 128], sizes = [16, 128], strides = [1, 1]} : vector<16x384xf32> to vector<16x128xf32>
    %302 = vector.extract_strided_slice %297 {offsets = [0, 256], sizes = [16, 128], strides = [1, 1]} : vector<16x384xf32> to vector<16x128xf32>
    %303 = arith.mulf %301, %278 : vector<16x128xf32>
    %304 = arith.mulf %300, %299 : vector<16x128xf32>
    %305 = arith.addf %303, %304 : vector<16x128xf32>
    %306 = math.tanh %305 : vector<16x128xf32>
    %307 = arith.mulf %302, %306 : vector<16x128xf32>
    %308 = arith.index_cast %c10_i32 : i32 to index
    %c0_103 = arith.constant 0 : index
    %c0_104 = arith.constant 0 : index
    %309 = vector.load %arg8[%308, %c0_103, %c0_104] : memref<32x16x128xf32, #tpu.memory_space<vmem>>, vector<1x16x128xf32>
    %310 = vector.shape_cast %309 : vector<1x16x128xf32> to vector<16x128xf32>
    %311 = vector.shape_cast %307 : vector<16x128xf32> to vector<1x16x128xf32>
    tpu.vector_store %arg8[%308, %c0_103, %c0_104], %311 {strides = array<i32>} : memref<32x16x128xf32, #tpu.memory_space<vmem>>, vector<1x16x128xf32>,
    %c11_i32 = arith.constant 11 : i32
    %312 = arith.index_cast %c11_i32 : i32 to index
    %c0_105 = arith.constant 0 : index
    %c0_106 = arith.constant 0 : index
    %313 = vector.load %arg11[%312, %c0_105, %c0_106] : memref<32x16x512xf32, #tpu.memory_space<vmem>>, vector<1x16x512xf32>
    %314 = vector.shape_cast %313 : vector<1x16x512xf32> to vector<16x512xf32>
    %cst_107 = arith.constant dense<0.000000e+00> : vector<16x512xf32>
    %315 = tpu.matmul %307, %12, %cst_107 {dimension_numbers = #tpu.dot_dimension_numbers<[1], [0], [0], [1], [0, 0, 1, 1], [], []>} : vector<16x128xf32>, vector<128x512xf32>, vector<16x512xf32> -> vector<16x512xf32>
    %316 = arith.addf %314, %315 : vector<16x512xf32>
    %317 = vector.extract_strided_slice %316 {offsets = [0, 0], sizes = [16, 384], strides = [1, 1]} : vector<16x512xf32> to vector<16x384xf32>
    %cst_108 = arith.constant 5.000000e-01 : f32
    %318 = vector.broadcast %cst_108 : f32 to vector<16x384xf32>
    %319 = arith.mulf %318, %317 : vector<16x384xf32>
    %320 = math.tanh %319 : vector<16x384xf32>
    %cst_109 = arith.constant 5.000000e-01 : f32
    %321 = vector.broadcast %cst_109 : f32 to vector<16x384xf32>
    %322 = arith.mulf %321, %320 : vector<16x384xf32>
    %cst_110 = arith.constant 5.000000e-01 : f32
    %323 = vector.broadcast %cst_110 : f32 to vector<16x384xf32>
    %324 = arith.addf %322, %323 : vector<16x384xf32>
    %325 = vector.extract_strided_slice %316 {offsets = [0, 384], sizes = [16, 128], strides = [1, 1]} : vector<16x512xf32> to vector<16x128xf32>
    %326 = math.tanh %325 : vector<16x128xf32>
    %327 = vector.extract_strided_slice %324 {offsets = [0, 0], sizes = [16, 128], strides = [1, 1]} : vector<16x384xf32> to vector<16x128xf32>
    %328 = vector.extract_strided_slice %324 {offsets = [0, 128], sizes = [16, 128], strides = [1, 1]} : vector<16x384xf32> to vector<16x128xf32>
    %329 = vector.extract_strided_slice %324 {offsets = [0, 256], sizes = [16, 128], strides = [1, 1]} : vector<16x384xf32> to vector<16x128xf32>
    %330 = arith.mulf %328, %305 : vector<16x128xf32>
    %331 = arith.mulf %327, %326 : vector<16x128xf32>
    %332 = arith.addf %330, %331 : vector<16x128xf32>
    %333 = math.tanh %332 : vector<16x128xf32>
    %334 = arith.mulf %329, %333 : vector<16x128xf32>
    %335 = arith.index_cast %c11_i32 : i32 to index
    %c0_111 = arith.constant 0 : index
    %c0_112 = arith.constant 0 : index
    %336 = vector.load %arg8[%335, %c0_111, %c0_112] : memref<32x16x128xf32, #tpu.memory_space<vmem>>, vector<1x16x128xf32>
    %337 = vector.shape_cast %336 : vector<1x16x128xf32> to vector<16x128xf32>
    %338 = vector.shape_cast %334 : vector<16x128xf32> to vector<1x16x128xf32>
    tpu.vector_store %arg8[%335, %c0_111, %c0_112], %338 {strides = array<i32>} : memref<32x16x128xf32, #tpu.memory_space<vmem>>, vector<1x16x128xf32>,
    %c12_i32 = arith.constant 12 : i32
    %339 = arith.index_cast %c12_i32 : i32 to index
    %c0_113 = arith.constant 0 : index
    %c0_114 = arith.constant 0 : index
    %340 = vector.load %arg11[%339, %c0_113, %c0_114] : memref<32x16x512xf32, #tpu.memory_space<vmem>>, vector<1x16x512xf32>
    %341 = vector.shape_cast %340 : vector<1x16x512xf32> to vector<16x512xf32>
    %cst_115 = arith.constant dense<0.000000e+00> : vector<16x512xf32>
    %342 = tpu.matmul %334, %12, %cst_115 {dimension_numbers = #tpu.dot_dimension_numbers<[1], [0], [0], [1], [0, 0, 1, 1], [], []>} : vector<16x128xf32>, vector<128x512xf32>, vector<16x512xf32> -> vector<16x512xf32>
    %343 = arith.addf %341, %342 : vector<16x512xf32>
    %344 = vector.extract_strided_slice %343 {offsets = [0, 0], sizes = [16, 384], strides = [1, 1]} : vector<16x512xf32> to vector<16x384xf32>
    %cst_116 = arith.constant 5.000000e-01 : f32
    %345 = vector.broadcast %cst_116 : f32 to vector<16x384xf32>
    %346 = arith.mulf %345, %344 : vector<16x384xf32>
    %347 = math.tanh %346 : vector<16x384xf32>
    %cst_117 = arith.constant 5.000000e-01 : f32
    %348 = vector.broadcast %cst_117 : f32 to vector<16x384xf32>
    %349 = arith.mulf %348, %347 : vector<16x384xf32>
    %cst_118 = arith.constant 5.000000e-01 : f32
    %350 = vector.broadcast %cst_118 : f32 to vector<16x384xf32>
    %351 = arith.addf %349, %350 : vector<16x384xf32>
    %352 = vector.extract_strided_slice %343 {offsets = [0, 384], sizes = [16, 128], strides = [1, 1]} : vector<16x512xf32> to vector<16x128xf32>
    %353 = math.tanh %352 : vector<16x128xf32>
    %354 = vector.extract_strided_slice %351 {offsets = [0, 0], sizes = [16, 128], strides = [1, 1]} : vector<16x384xf32> to vector<16x128xf32>
    %355 = vector.extract_strided_slice %351 {offsets = [0, 128], sizes = [16, 128], strides = [1, 1]} : vector<16x384xf32> to vector<16x128xf32>
    %356 = vector.extract_strided_slice %351 {offsets = [0, 256], sizes = [16, 128], strides = [1, 1]} : vector<16x384xf32> to vector<16x128xf32>
    %357 = arith.mulf %355, %332 : vector<16x128xf32>
    %358 = arith.mulf %354, %353 : vector<16x128xf32>
    %359 = arith.addf %357, %358 : vector<16x128xf32>
    %360 = math.tanh %359 : vector<16x128xf32>
    %361 = arith.mulf %356, %360 : vector<16x128xf32>
    %362 = arith.index_cast %c12_i32 : i32 to index
    %c0_119 = arith.constant 0 : index
    %c0_120 = arith.constant 0 : index
    %363 = vector.load %arg8[%362, %c0_119, %c0_120] : memref<32x16x128xf32, #tpu.memory_space<vmem>>, vector<1x16x128xf32>
    %364 = vector.shape_cast %363 : vector<1x16x128xf32> to vector<16x128xf32>
    %365 = vector.shape_cast %361 : vector<16x128xf32> to vector<1x16x128xf32>
    tpu.vector_store %arg8[%362, %c0_119, %c0_120], %365 {strides = array<i32>} : memref<32x16x128xf32, #tpu.memory_space<vmem>>, vector<1x16x128xf32>,
    %c13_i32 = arith.constant 13 : i32
    %366 = arith.index_cast %c13_i32 : i32 to index
    %c0_121 = arith.constant 0 : index
    %c0_122 = arith.constant 0 : index
    %367 = vector.load %arg11[%366, %c0_121, %c0_122] : memref<32x16x512xf32, #tpu.memory_space<vmem>>, vector<1x16x512xf32>
    %368 = vector.shape_cast %367 : vector<1x16x512xf32> to vector<16x512xf32>
    %cst_123 = arith.constant dense<0.000000e+00> : vector<16x512xf32>
    %369 = tpu.matmul %361, %12, %cst_123 {dimension_numbers = #tpu.dot_dimension_numbers<[1], [0], [0], [1], [0, 0, 1, 1], [], []>} : vector<16x128xf32>, vector<128x512xf32>, vector<16x512xf32> -> vector<16x512xf32>
    %370 = arith.addf %368, %369 : vector<16x512xf32>
    %371 = vector.extract_strided_slice %370 {offsets = [0, 0], sizes = [16, 384], strides = [1, 1]} : vector<16x512xf32> to vector<16x384xf32>
    %cst_124 = arith.constant 5.000000e-01 : f32
    %372 = vector.broadcast %cst_124 : f32 to vector<16x384xf32>
    %373 = arith.mulf %372, %371 : vector<16x384xf32>
    %374 = math.tanh %373 : vector<16x384xf32>
    %cst_125 = arith.constant 5.000000e-01 : f32
    %375 = vector.broadcast %cst_125 : f32 to vector<16x384xf32>
    %376 = arith.mulf %375, %374 : vector<16x384xf32>
    %cst_126 = arith.constant 5.000000e-01 : f32
    %377 = vector.broadcast %cst_126 : f32 to vector<16x384xf32>
    %378 = arith.addf %376, %377 : vector<16x384xf32>
    %379 = vector.extract_strided_slice %370 {offsets = [0, 384], sizes = [16, 128], strides = [1, 1]} : vector<16x512xf32> to vector<16x128xf32>
    %380 = math.tanh %379 : vector<16x128xf32>
    %381 = vector.extract_strided_slice %378 {offsets = [0, 0], sizes = [16, 128], strides = [1, 1]} : vector<16x384xf32> to vector<16x128xf32>
    %382 = vector.extract_strided_slice %378 {offsets = [0, 128], sizes = [16, 128], strides = [1, 1]} : vector<16x384xf32> to vector<16x128xf32>
    %383 = vector.extract_strided_slice %378 {offsets = [0, 256], sizes = [16, 128], strides = [1, 1]} : vector<16x384xf32> to vector<16x128xf32>
    %384 = arith.mulf %382, %359 : vector<16x128xf32>
    %385 = arith.mulf %381, %380 : vector<16x128xf32>
    %386 = arith.addf %384, %385 : vector<16x128xf32>
    %387 = math.tanh %386 : vector<16x128xf32>
    %388 = arith.mulf %383, %387 : vector<16x128xf32>
    %389 = arith.index_cast %c13_i32 : i32 to index
    %c0_127 = arith.constant 0 : index
    %c0_128 = arith.constant 0 : index
    %390 = vector.load %arg8[%389, %c0_127, %c0_128] : memref<32x16x128xf32, #tpu.memory_space<vmem>>, vector<1x16x128xf32>
    %391 = vector.shape_cast %390 : vector<1x16x128xf32> to vector<16x128xf32>
    %392 = vector.shape_cast %388 : vector<16x128xf32> to vector<1x16x128xf32>
    tpu.vector_store %arg8[%389, %c0_127, %c0_128], %392 {strides = array<i32>} : memref<32x16x128xf32, #tpu.memory_space<vmem>>, vector<1x16x128xf32>,
    %c14_i32 = arith.constant 14 : i32
    %393 = arith.index_cast %c14_i32 : i32 to index
    %c0_129 = arith.constant 0 : index
    %c0_130 = arith.constant 0 : index
    %394 = vector.load %arg11[%393, %c0_129, %c0_130] : memref<32x16x512xf32, #tpu.memory_space<vmem>>, vector<1x16x512xf32>
    %395 = vector.shape_cast %394 : vector<1x16x512xf32> to vector<16x512xf32>
    %cst_131 = arith.constant dense<0.000000e+00> : vector<16x512xf32>
    %396 = tpu.matmul %388, %12, %cst_131 {dimension_numbers = #tpu.dot_dimension_numbers<[1], [0], [0], [1], [0, 0, 1, 1], [], []>} : vector<16x128xf32>, vector<128x512xf32>, vector<16x512xf32> -> vector<16x512xf32>
    %397 = arith.addf %395, %396 : vector<16x512xf32>
    %398 = vector.extract_strided_slice %397 {offsets = [0, 0], sizes = [16, 384], strides = [1, 1]} : vector<16x512xf32> to vector<16x384xf32>
    %cst_132 = arith.constant 5.000000e-01 : f32
    %399 = vector.broadcast %cst_132 : f32 to vector<16x384xf32>
    %400 = arith.mulf %399, %398 : vector<16x384xf32>
    %401 = math.tanh %400 : vector<16x384xf32>
    %cst_133 = arith.constant 5.000000e-01 : f32
    %402 = vector.broadcast %cst_133 : f32 to vector<16x384xf32>
    %403 = arith.mulf %402, %401 : vector<16x384xf32>
    %cst_134 = arith.constant 5.000000e-01 : f32
    %404 = vector.broadcast %cst_134 : f32 to vector<16x384xf32>
    %405 = arith.addf %403, %404 : vector<16x384xf32>
    %406 = vector.extract_strided_slice %397 {offsets = [0, 384], sizes = [16, 128], strides = [1, 1]} : vector<16x512xf32> to vector<16x128xf32>
    %407 = math.tanh %406 : vector<16x128xf32>
    %408 = vector.extract_strided_slice %405 {offsets = [0, 0], sizes = [16, 128], strides = [1, 1]} : vector<16x384xf32> to vector<16x128xf32>
    %409 = vector.extract_strided_slice %405 {offsets = [0, 128], sizes = [16, 128], strides = [1, 1]} : vector<16x384xf32> to vector<16x128xf32>
    %410 = vector.extract_strided_slice %405 {offsets = [0, 256], sizes = [16, 128], strides = [1, 1]} : vector<16x384xf32> to vector<16x128xf32>
    %411 = arith.mulf %409, %386 : vector<16x128xf32>
    %412 = arith.mulf %408, %407 : vector<16x128xf32>
    %413 = arith.addf %411, %412 : vector<16x128xf32>
    %414 = math.tanh %413 : vector<16x128xf32>
    %415 = arith.mulf %410, %414 : vector<16x128xf32>
    %416 = arith.index_cast %c14_i32 : i32 to index
    %c0_135 = arith.constant 0 : index
    %c0_136 = arith.constant 0 : index
    %417 = vector.load %arg8[%416, %c0_135, %c0_136] : memref<32x16x128xf32, #tpu.memory_space<vmem>>, vector<1x16x128xf32>
    %418 = vector.shape_cast %417 : vector<1x16x128xf32> to vector<16x128xf32>
    %419 = vector.shape_cast %415 : vector<16x128xf32> to vector<1x16x128xf32>
    tpu.vector_store %arg8[%416, %c0_135, %c0_136], %419 {strides = array<i32>} : memref<32x16x128xf32, #tpu.memory_space<vmem>>, vector<1x16x128xf32>,
    %c15_i32 = arith.constant 15 : i32
    %420 = arith.index_cast %c15_i32 : i32 to index
    %c0_137 = arith.constant 0 : index
    %c0_138 = arith.constant 0 : index
    %421 = vector.load %arg11[%420, %c0_137, %c0_138] : memref<32x16x512xf32, #tpu.memory_space<vmem>>, vector<1x16x512xf32>
    %422 = vector.shape_cast %421 : vector<1x16x512xf32> to vector<16x512xf32>
    %cst_139 = arith.constant dense<0.000000e+00> : vector<16x512xf32>
    %423 = tpu.matmul %415, %12, %cst_139 {dimension_numbers = #tpu.dot_dimension_numbers<[1], [0], [0], [1], [0, 0, 1, 1], [], []>} : vector<16x128xf32>, vector<128x512xf32>, vector<16x512xf32> -> vector<16x512xf32>
    %424 = arith.addf %422, %423 : vector<16x512xf32>
    %425 = vector.extract_strided_slice %424 {offsets = [0, 0], sizes = [16, 384], strides = [1, 1]} : vector<16x512xf32> to vector<16x384xf32>
    %cst_140 = arith.constant 5.000000e-01 : f32
    %426 = vector.broadcast %cst_140 : f32 to vector<16x384xf32>
    %427 = arith.mulf %426, %425 : vector<16x384xf32>
    %428 = math.tanh %427 : vector<16x384xf32>
    %cst_141 = arith.constant 5.000000e-01 : f32
    %429 = vector.broadcast %cst_141 : f32 to vector<16x384xf32>
    %430 = arith.mulf %429, %428 : vector<16x384xf32>
    %cst_142 = arith.constant 5.000000e-01 : f32
    %431 = vector.broadcast %cst_142 : f32 to vector<16x384xf32>
    %432 = arith.addf %430, %431 : vector<16x384xf32>
    %433 = vector.extract_strided_slice %424 {offsets = [0, 384], sizes = [16, 128], strides = [1, 1]} : vector<16x512xf32> to vector<16x128xf32>
    %434 = math.tanh %433 : vector<16x128xf32>
    %435 = vector.extract_strided_slice %432 {offsets = [0, 0], sizes = [16, 128], strides = [1, 1]} : vector<16x384xf32> to vector<16x128xf32>
    %436 = vector.extract_strided_slice %432 {offsets = [0, 128], sizes = [16, 128], strides = [1, 1]} : vector<16x384xf32> to vector<16x128xf32>
    %437 = vector.extract_strided_slice %432 {offsets = [0, 256], sizes = [16, 128], strides = [1, 1]} : vector<16x384xf32> to vector<16x128xf32>
    %438 = arith.mulf %436, %413 : vector<16x128xf32>
    %439 = arith.mulf %435, %434 : vector<16x128xf32>
    %440 = arith.addf %438, %439 : vector<16x128xf32>
    %441 = math.tanh %440 : vector<16x128xf32>
    %442 = arith.mulf %437, %441 : vector<16x128xf32>
    %443 = arith.index_cast %c15_i32 : i32 to index
    %c0_143 = arith.constant 0 : index
    %c0_144 = arith.constant 0 : index
    %444 = vector.load %arg8[%443, %c0_143, %c0_144] : memref<32x16x128xf32, #tpu.memory_space<vmem>>, vector<1x16x128xf32>
    %445 = vector.shape_cast %444 : vector<1x16x128xf32> to vector<16x128xf32>
    %446 = vector.shape_cast %442 : vector<16x128xf32> to vector<1x16x128xf32>
    tpu.vector_store %arg8[%443, %c0_143, %c0_144], %446 {strides = array<i32>} : memref<32x16x128xf32, #tpu.memory_space<vmem>>, vector<1x16x128xf32>,
    %c16_i32 = arith.constant 16 : i32
    %447 = arith.index_cast %c16_i32 : i32 to index
    %c0_145 = arith.constant 0 : index
    %c0_146 = arith.constant 0 : index
    %448 = vector.load %arg11[%447, %c0_145, %c0_146] : memref<32x16x512xf32, #tpu.memory_space<vmem>>, vector<1x16x512xf32>
    %449 = vector.shape_cast %448 : vector<1x16x512xf32> to vector<16x512xf32>
    %cst_147 = arith.constant dense<0.000000e+00> : vector<16x512xf32>
    %450 = tpu.matmul %442, %12, %cst_147 {dimension_numbers = #tpu.dot_dimension_numbers<[1], [0], [0], [1], [0, 0, 1, 1], [], []>} : vector<16x128xf32>, vector<128x512xf32>, vector<16x512xf32> -> vector<16x512xf32>
    %451 = arith.addf %449, %450 : vector<16x512xf32>
    %452 = vector.extract_strided_slice %451 {offsets = [0, 0], sizes = [16, 384], strides = [1, 1]} : vector<16x512xf32> to vector<16x384xf32>
    %cst_148 = arith.constant 5.000000e-01 : f32
    %453 = vector.broadcast %cst_148 : f32 to vector<16x384xf32>
    %454 = arith.mulf %453, %452 : vector<16x384xf32>
    %455 = math.tanh %454 : vector<16x384xf32>
    %cst_149 = arith.constant 5.000000e-01 : f32
    %456 = vector.broadcast %cst_149 : f32 to vector<16x384xf32>
    %457 = arith.mulf %456, %455 : vector<16x384xf32>
    %cst_150 = arith.constant 5.000000e-01 : f32
    %458 = vector.broadcast %cst_150 : f32 to vector<16x384xf32>
    %459 = arith.addf %457, %458 : vector<16x384xf32>
    %460 = vector.extract_strided_slice %451 {offsets = [0, 384], sizes = [16, 128], strides = [1, 1]} : vector<16x512xf32> to vector<16x128xf32>
    %461 = math.tanh %460 : vector<16x128xf32>
    %462 = vector.extract_strided_slice %459 {offsets = [0, 0], sizes = [16, 128], strides = [1, 1]} : vector<16x384xf32> to vector<16x128xf32>
    %463 = vector.extract_strided_slice %459 {offsets = [0, 128], sizes = [16, 128], strides = [1, 1]} : vector<16x384xf32> to vector<16x128xf32>
    %464 = vector.extract_strided_slice %459 {offsets = [0, 256], sizes = [16, 128], strides = [1, 1]} : vector<16x384xf32> to vector<16x128xf32>
    %465 = arith.mulf %463, %440 : vector<16x128xf32>
    %466 = arith.mulf %462, %461 : vector<16x128xf32>
    %467 = arith.addf %465, %466 : vector<16x128xf32>
    %468 = math.tanh %467 : vector<16x128xf32>
    %469 = arith.mulf %464, %468 : vector<16x128xf32>
    %470 = arith.index_cast %c16_i32 : i32 to index
    %c0_151 = arith.constant 0 : index
    %c0_152 = arith.constant 0 : index
    %471 = vector.load %arg8[%470, %c0_151, %c0_152] : memref<32x16x128xf32, #tpu.memory_space<vmem>>, vector<1x16x128xf32>
    %472 = vector.shape_cast %471 : vector<1x16x128xf32> to vector<16x128xf32>
    %473 = vector.shape_cast %469 : vector<16x128xf32> to vector<1x16x128xf32>
    tpu.vector_store %arg8[%470, %c0_151, %c0_152], %473 {strides = array<i32>} : memref<32x16x128xf32, #tpu.memory_space<vmem>>, vector<1x16x128xf32>,
    %c17_i32 = arith.constant 17 : i32
    %474 = arith.index_cast %c17_i32 : i32 to index
    %c0_153 = arith.constant 0 : index
    %c0_154 = arith.constant 0 : index
    %475 = vector.load %arg11[%474, %c0_153, %c0_154] : memref<32x16x512xf32, #tpu.memory_space<vmem>>, vector<1x16x512xf32>
    %476 = vector.shape_cast %475 : vector<1x16x512xf32> to vector<16x512xf32>
    %cst_155 = arith.constant dense<0.000000e+00> : vector<16x512xf32>
    %477 = tpu.matmul %469, %12, %cst_155 {dimension_numbers = #tpu.dot_dimension_numbers<[1], [0], [0], [1], [0, 0, 1, 1], [], []>} : vector<16x128xf32>, vector<128x512xf32>, vector<16x512xf32> -> vector<16x512xf32>
    %478 = arith.addf %476, %477 : vector<16x512xf32>
    %479 = vector.extract_strided_slice %478 {offsets = [0, 0], sizes = [16, 384], strides = [1, 1]} : vector<16x512xf32> to vector<16x384xf32>
    %cst_156 = arith.constant 5.000000e-01 : f32
    %480 = vector.broadcast %cst_156 : f32 to vector<16x384xf32>
    %481 = arith.mulf %480, %479 : vector<16x384xf32>
    %482 = math.tanh %481 : vector<16x384xf32>
    %cst_157 = arith.constant 5.000000e-01 : f32
    %483 = vector.broadcast %cst_157 : f32 to vector<16x384xf32>
    %484 = arith.mulf %483, %482 : vector<16x384xf32>
    %cst_158 = arith.constant 5.000000e-01 : f32
    %485 = vector.broadcast %cst_158 : f32 to vector<16x384xf32>
    %486 = arith.addf %484, %485 : vector<16x384xf32>
    %487 = vector.extract_strided_slice %478 {offsets = [0, 384], sizes = [16, 128], strides = [1, 1]} : vector<16x512xf32> to vector<16x128xf32>
    %488 = math.tanh %487 : vector<16x128xf32>
    %489 = vector.extract_strided_slice %486 {offsets = [0, 0], sizes = [16, 128], strides = [1, 1]} : vector<16x384xf32> to vector<16x128xf32>
    %490 = vector.extract_strided_slice %486 {offsets = [0, 128], sizes = [16, 128], strides = [1, 1]} : vector<16x384xf32> to vector<16x128xf32>
    %491 = vector.extract_strided_slice %486 {offsets = [0, 256], sizes = [16, 128], strides = [1, 1]} : vector<16x384xf32> to vector<16x128xf32>
    %492 = arith.mulf %490, %467 : vector<16x128xf32>
    %493 = arith.mulf %489, %488 : vector<16x128xf32>
    %494 = arith.addf %492, %493 : vector<16x128xf32>
    %495 = math.tanh %494 : vector<16x128xf32>
    %496 = arith.mulf %491, %495 : vector<16x128xf32>
    %497 = arith.index_cast %c17_i32 : i32 to index
    %c0_159 = arith.constant 0 : index
    %c0_160 = arith.constant 0 : index
    %498 = vector.load %arg8[%497, %c0_159, %c0_160] : memref<32x16x128xf32, #tpu.memory_space<vmem>>, vector<1x16x128xf32>
    %499 = vector.shape_cast %498 : vector<1x16x128xf32> to vector<16x128xf32>
    %500 = vector.shape_cast %496 : vector<16x128xf32> to vector<1x16x128xf32>
    tpu.vector_store %arg8[%497, %c0_159, %c0_160], %500 {strides = array<i32>} : memref<32x16x128xf32, #tpu.memory_space<vmem>>, vector<1x16x128xf32>,
    %c18_i32 = arith.constant 18 : i32
    %501 = arith.index_cast %c18_i32 : i32 to index
    %c0_161 = arith.constant 0 : index
    %c0_162 = arith.constant 0 : index
    %502 = vector.load %arg11[%501, %c0_161, %c0_162] : memref<32x16x512xf32, #tpu.memory_space<vmem>>, vector<1x16x512xf32>
    %503 = vector.shape_cast %502 : vector<1x16x512xf32> to vector<16x512xf32>
    %cst_163 = arith.constant dense<0.000000e+00> : vector<16x512xf32>
    %504 = tpu.matmul %496, %12, %cst_163 {dimension_numbers = #tpu.dot_dimension_numbers<[1], [0], [0], [1], [0, 0, 1, 1], [], []>} : vector<16x128xf32>, vector<128x512xf32>, vector<16x512xf32> -> vector<16x512xf32>
    %505 = arith.addf %503, %504 : vector<16x512xf32>
    %506 = vector.extract_strided_slice %505 {offsets = [0, 0], sizes = [16, 384], strides = [1, 1]} : vector<16x512xf32> to vector<16x384xf32>
    %cst_164 = arith.constant 5.000000e-01 : f32
    %507 = vector.broadcast %cst_164 : f32 to vector<16x384xf32>
    %508 = arith.mulf %507, %506 : vector<16x384xf32>
    %509 = math.tanh %508 : vector<16x384xf32>
    %cst_165 = arith.constant 5.000000e-01 : f32
    %510 = vector.broadcast %cst_165 : f32 to vector<16x384xf32>
    %511 = arith.mulf %510, %509 : vector<16x384xf32>
    %cst_166 = arith.constant 5.000000e-01 : f32
    %512 = vector.broadcast %cst_166 : f32 to vector<16x384xf32>
    %513 = arith.addf %511, %512 : vector<16x384xf32>
    %514 = vector.extract_strided_slice %505 {offsets = [0, 384], sizes = [16, 128], strides = [1, 1]} : vector<16x512xf32> to vector<16x128xf32>
    %515 = math.tanh %514 : vector<16x128xf32>
    %516 = vector.extract_strided_slice %513 {offsets = [0, 0], sizes = [16, 128], strides = [1, 1]} : vector<16x384xf32> to vector<16x128xf32>
    %517 = vector.extract_strided_slice %513 {offsets = [0, 128], sizes = [16, 128], strides = [1, 1]} : vector<16x384xf32> to vector<16x128xf32>
    %518 = vector.extract_strided_slice %513 {offsets = [0, 256], sizes = [16, 128], strides = [1, 1]} : vector<16x384xf32> to vector<16x128xf32>
    %519 = arith.mulf %517, %494 : vector<16x128xf32>
    %520 = arith.mulf %516, %515 : vector<16x128xf32>
    %521 = arith.addf %519, %520 : vector<16x128xf32>
    %522 = math.tanh %521 : vector<16x128xf32>
    %523 = arith.mulf %518, %522 : vector<16x128xf32>
    %524 = arith.index_cast %c18_i32 : i32 to index
    %c0_167 = arith.constant 0 : index
    %c0_168 = arith.constant 0 : index
    %525 = vector.load %arg8[%524, %c0_167, %c0_168] : memref<32x16x128xf32, #tpu.memory_space<vmem>>, vector<1x16x128xf32>
    %526 = vector.shape_cast %525 : vector<1x16x128xf32> to vector<16x128xf32>
    %527 = vector.shape_cast %523 : vector<16x128xf32> to vector<1x16x128xf32>
    tpu.vector_store %arg8[%524, %c0_167, %c0_168], %527 {strides = array<i32>} : memref<32x16x128xf32, #tpu.memory_space<vmem>>, vector<1x16x128xf32>,
    %c19_i32 = arith.constant 19 : i32
    %528 = arith.index_cast %c19_i32 : i32 to index
    %c0_169 = arith.constant 0 : index
    %c0_170 = arith.constant 0 : index
    %529 = vector.load %arg11[%528, %c0_169, %c0_170] : memref<32x16x512xf32, #tpu.memory_space<vmem>>, vector<1x16x512xf32>
    %530 = vector.shape_cast %529 : vector<1x16x512xf32> to vector<16x512xf32>
    %cst_171 = arith.constant dense<0.000000e+00> : vector<16x512xf32>
    %531 = tpu.matmul %523, %12, %cst_171 {dimension_numbers = #tpu.dot_dimension_numbers<[1], [0], [0], [1], [0, 0, 1, 1], [], []>} : vector<16x128xf32>, vector<128x512xf32>, vector<16x512xf32> -> vector<16x512xf32>
    %532 = arith.addf %530, %531 : vector<16x512xf32>
    %533 = vector.extract_strided_slice %532 {offsets = [0, 0], sizes = [16, 384], strides = [1, 1]} : vector<16x512xf32> to vector<16x384xf32>
    %cst_172 = arith.constant 5.000000e-01 : f32
    %534 = vector.broadcast %cst_172 : f32 to vector<16x384xf32>
    %535 = arith.mulf %534, %533 : vector<16x384xf32>
    %536 = math.tanh %535 : vector<16x384xf32>
    %cst_173 = arith.constant 5.000000e-01 : f32
    %537 = vector.broadcast %cst_173 : f32 to vector<16x384xf32>
    %538 = arith.mulf %537, %536 : vector<16x384xf32>
    %cst_174 = arith.constant 5.000000e-01 : f32
    %539 = vector.broadcast %cst_174 : f32 to vector<16x384xf32>
    %540 = arith.addf %538, %539 : vector<16x384xf32>
    %541 = vector.extract_strided_slice %532 {offsets = [0, 384], sizes = [16, 128], strides = [1, 1]} : vector<16x512xf32> to vector<16x128xf32>
    %542 = math.tanh %541 : vector<16x128xf32>
    %543 = vector.extract_strided_slice %540 {offsets = [0, 0], sizes = [16, 128], strides = [1, 1]} : vector<16x384xf32> to vector<16x128xf32>
    %544 = vector.extract_strided_slice %540 {offsets = [0, 128], sizes = [16, 128], strides = [1, 1]} : vector<16x384xf32> to vector<16x128xf32>
    %545 = vector.extract_strided_slice %540 {offsets = [0, 256], sizes = [16, 128], strides = [1, 1]} : vector<16x384xf32> to vector<16x128xf32>
    %546 = arith.mulf %544, %521 : vector<16x128xf32>
    %547 = arith.mulf %543, %542 : vector<16x128xf32>
    %548 = arith.addf %546, %547 : vector<16x128xf32>
    %549 = math.tanh %548 : vector<16x128xf32>
    %550 = arith.mulf %545, %549 : vector<16x128xf32>
    %551 = arith.index_cast %c19_i32 : i32 to index
    %c0_175 = arith.constant 0 : index
    %c0_176 = arith.constant 0 : index
    %552 = vector.load %arg8[%551, %c0_175, %c0_176] : memref<32x16x128xf32, #tpu.memory_space<vmem>>, vector<1x16x128xf32>
    %553 = vector.shape_cast %552 : vector<1x16x128xf32> to vector<16x128xf32>
    %554 = vector.shape_cast %550 : vector<16x128xf32> to vector<1x16x128xf32>
    tpu.vector_store %arg8[%551, %c0_175, %c0_176], %554 {strides = array<i32>} : memref<32x16x128xf32, #tpu.memory_space<vmem>>, vector<1x16x128xf32>,
    %c20_i32 = arith.constant 20 : i32
    %555 = arith.index_cast %c20_i32 : i32 to index
    %c0_177 = arith.constant 0 : index
    %c0_178 = arith.constant 0 : index
    %556 = vector.load %arg11[%555, %c0_177, %c0_178] : memref<32x16x512xf32, #tpu.memory_space<vmem>>, vector<1x16x512xf32>
    %557 = vector.shape_cast %556 : vector<1x16x512xf32> to vector<16x512xf32>
    %cst_179 = arith.constant dense<0.000000e+00> : vector<16x512xf32>
    %558 = tpu.matmul %550, %12, %cst_179 {dimension_numbers = #tpu.dot_dimension_numbers<[1], [0], [0], [1], [0, 0, 1, 1], [], []>} : vector<16x128xf32>, vector<128x512xf32>, vector<16x512xf32> -> vector<16x512xf32>
    %559 = arith.addf %557, %558 : vector<16x512xf32>
    %560 = vector.extract_strided_slice %559 {offsets = [0, 0], sizes = [16, 384], strides = [1, 1]} : vector<16x512xf32> to vector<16x384xf32>
    %cst_180 = arith.constant 5.000000e-01 : f32
    %561 = vector.broadcast %cst_180 : f32 to vector<16x384xf32>
    %562 = arith.mulf %561, %560 : vector<16x384xf32>
    %563 = math.tanh %562 : vector<16x384xf32>
    %cst_181 = arith.constant 5.000000e-01 : f32
    %564 = vector.broadcast %cst_181 : f32 to vector<16x384xf32>
    %565 = arith.mulf %564, %563 : vector<16x384xf32>
    %cst_182 = arith.constant 5.000000e-01 : f32
    %566 = vector.broadcast %cst_182 : f32 to vector<16x384xf32>
    %567 = arith.addf %565, %566 : vector<16x384xf32>
    %568 = vector.extract_strided_slice %559 {offsets = [0, 384], sizes = [16, 128], strides = [1, 1]} : vector<16x512xf32> to vector<16x128xf32>
    %569 = math.tanh %568 : vector<16x128xf32>
    %570 = vector.extract_strided_slice %567 {offsets = [0, 0], sizes = [16, 128], strides = [1, 1]} : vector<16x384xf32> to vector<16x128xf32>
    %571 = vector.extract_strided_slice %567 {offsets = [0, 128], sizes = [16, 128], strides = [1, 1]} : vector<16x384xf32> to vector<16x128xf32>
    %572 = vector.extract_strided_slice %567 {offsets = [0, 256], sizes = [16, 128], strides = [1, 1]} : vector<16x384xf32> to vector<16x128xf32>
    %573 = arith.mulf %571, %548 : vector<16x128xf32>
    %574 = arith.mulf %570, %569 : vector<16x128xf32>
    %575 = arith.addf %573, %574 : vector<16x128xf32>
    %576 = math.tanh %575 : vector<16x128xf32>
    %577 = arith.mulf %572, %576 : vector<16x128xf32>
    %578 = arith.index_cast %c20_i32 : i32 to index
    %c0_183 = arith.constant 0 : index
    %c0_184 = arith.constant 0 : index
    %579 = vector.load %arg8[%578, %c0_183, %c0_184] : memref<32x16x128xf32, #tpu.memory_space<vmem>>, vector<1x16x128xf32>
    %580 = vector.shape_cast %579 : vector<1x16x128xf32> to vector<16x128xf32>
    %581 = vector.shape_cast %577 : vector<16x128xf32> to vector<1x16x128xf32>
    tpu.vector_store %arg8[%578, %c0_183, %c0_184], %581 {strides = array<i32>} : memref<32x16x128xf32, #tpu.memory_space<vmem>>, vector<1x16x128xf32>,
    %c21_i32 = arith.constant 21 : i32
    %582 = arith.index_cast %c21_i32 : i32 to index
    %c0_185 = arith.constant 0 : index
    %c0_186 = arith.constant 0 : index
    %583 = vector.load %arg11[%582, %c0_185, %c0_186] : memref<32x16x512xf32, #tpu.memory_space<vmem>>, vector<1x16x512xf32>
    %584 = vector.shape_cast %583 : vector<1x16x512xf32> to vector<16x512xf32>
    %cst_187 = arith.constant dense<0.000000e+00> : vector<16x512xf32>
    %585 = tpu.matmul %577, %12, %cst_187 {dimension_numbers = #tpu.dot_dimension_numbers<[1], [0], [0], [1], [0, 0, 1, 1], [], []>} : vector<16x128xf32>, vector<128x512xf32>, vector<16x512xf32> -> vector<16x512xf32>
    %586 = arith.addf %584, %585 : vector<16x512xf32>
    %587 = vector.extract_strided_slice %586 {offsets = [0, 0], sizes = [16, 384], strides = [1, 1]} : vector<16x512xf32> to vector<16x384xf32>
    %cst_188 = arith.constant 5.000000e-01 : f32
    %588 = vector.broadcast %cst_188 : f32 to vector<16x384xf32>
    %589 = arith.mulf %588, %587 : vector<16x384xf32>
    %590 = math.tanh %589 : vector<16x384xf32>
    %cst_189 = arith.constant 5.000000e-01 : f32
    %591 = vector.broadcast %cst_189 : f32 to vector<16x384xf32>
    %592 = arith.mulf %591, %590 : vector<16x384xf32>
    %cst_190 = arith.constant 5.000000e-01 : f32
    %593 = vector.broadcast %cst_190 : f32 to vector<16x384xf32>
    %594 = arith.addf %592, %593 : vector<16x384xf32>
    %595 = vector.extract_strided_slice %586 {offsets = [0, 384], sizes = [16, 128], strides = [1, 1]} : vector<16x512xf32> to vector<16x128xf32>
    %596 = math.tanh %595 : vector<16x128xf32>
    %597 = vector.extract_strided_slice %594 {offsets = [0, 0], sizes = [16, 128], strides = [1, 1]} : vector<16x384xf32> to vector<16x128xf32>
    %598 = vector.extract_strided_slice %594 {offsets = [0, 128], sizes = [16, 128], strides = [1, 1]} : vector<16x384xf32> to vector<16x128xf32>
    %599 = vector.extract_strided_slice %594 {offsets = [0, 256], sizes = [16, 128], strides = [1, 1]} : vector<16x384xf32> to vector<16x128xf32>
    %600 = arith.mulf %598, %575 : vector<16x128xf32>
    %601 = arith.mulf %597, %596 : vector<16x128xf32>
    %602 = arith.addf %600, %601 : vector<16x128xf32>
    %603 = math.tanh %602 : vector<16x128xf32>
    %604 = arith.mulf %599, %603 : vector<16x128xf32>
    %605 = arith.index_cast %c21_i32 : i32 to index
    %c0_191 = arith.constant 0 : index
    %c0_192 = arith.constant 0 : index
    %606 = vector.load %arg8[%605, %c0_191, %c0_192] : memref<32x16x128xf32, #tpu.memory_space<vmem>>, vector<1x16x128xf32>
    %607 = vector.shape_cast %606 : vector<1x16x128xf32> to vector<16x128xf32>
    %608 = vector.shape_cast %604 : vector<16x128xf32> to vector<1x16x128xf32>
    tpu.vector_store %arg8[%605, %c0_191, %c0_192], %608 {strides = array<i32>} : memref<32x16x128xf32, #tpu.memory_space<vmem>>, vector<1x16x128xf32>,
    %c22_i32 = arith.constant 22 : i32
    %609 = arith.index_cast %c22_i32 : i32 to index
    %c0_193 = arith.constant 0 : index
    %c0_194 = arith.constant 0 : index
    %610 = vector.load %arg11[%609, %c0_193, %c0_194] : memref<32x16x512xf32, #tpu.memory_space<vmem>>, vector<1x16x512xf32>
    %611 = vector.shape_cast %610 : vector<1x16x512xf32> to vector<16x512xf32>
    %cst_195 = arith.constant dense<0.000000e+00> : vector<16x512xf32>
    %612 = tpu.matmul %604, %12, %cst_195 {dimension_numbers = #tpu.dot_dimension_numbers<[1], [0], [0], [1], [0, 0, 1, 1], [], []>} : vector<16x128xf32>, vector<128x512xf32>, vector<16x512xf32> -> vector<16x512xf32>
    %613 = arith.addf %611, %612 : vector<16x512xf32>
    %614 = vector.extract_strided_slice %613 {offsets = [0, 0], sizes = [16, 384], strides = [1, 1]} : vector<16x512xf32> to vector<16x384xf32>
    %cst_196 = arith.constant 5.000000e-01 : f32
    %615 = vector.broadcast %cst_196 : f32 to vector<16x384xf32>
    %616 = arith.mulf %615, %614 : vector<16x384xf32>
    %617 = math.tanh %616 : vector<16x384xf32>
    %cst_197 = arith.constant 5.000000e-01 : f32
    %618 = vector.broadcast %cst_197 : f32 to vector<16x384xf32>
    %619 = arith.mulf %618, %617 : vector<16x384xf32>
    %cst_198 = arith.constant 5.000000e-01 : f32
    %620 = vector.broadcast %cst_198 : f32 to vector<16x384xf32>
    %621 = arith.addf %619, %620 : vector<16x384xf32>
    %622 = vector.extract_strided_slice %613 {offsets = [0, 384], sizes = [16, 128], strides = [1, 1]} : vector<16x512xf32> to vector<16x128xf32>
    %623 = math.tanh %622 : vector<16x128xf32>
    %624 = vector.extract_strided_slice %621 {offsets = [0, 0], sizes = [16, 128], strides = [1, 1]} : vector<16x384xf32> to vector<16x128xf32>
    %625 = vector.extract_strided_slice %621 {offsets = [0, 128], sizes = [16, 128], strides = [1, 1]} : vector<16x384xf32> to vector<16x128xf32>
    %626 = vector.extract_strided_slice %621 {offsets = [0, 256], sizes = [16, 128], strides = [1, 1]} : vector<16x384xf32> to vector<16x128xf32>
    %627 = arith.mulf %625, %602 : vector<16x128xf32>
    %628 = arith.mulf %624, %623 : vector<16x128xf32>
    %629 = arith.addf %627, %628 : vector<16x128xf32>
    %630 = math.tanh %629 : vector<16x128xf32>
    %631 = arith.mulf %626, %630 : vector<16x128xf32>
    %632 = arith.index_cast %c22_i32 : i32 to index
    %c0_199 = arith.constant 0 : index
    %c0_200 = arith.constant 0 : index
    %633 = vector.load %arg8[%632, %c0_199, %c0_200] : memref<32x16x128xf32, #tpu.memory_space<vmem>>, vector<1x16x128xf32>
    %634 = vector.shape_cast %633 : vector<1x16x128xf32> to vector<16x128xf32>
    %635 = vector.shape_cast %631 : vector<16x128xf32> to vector<1x16x128xf32>
    tpu.vector_store %arg8[%632, %c0_199, %c0_200], %635 {strides = array<i32>} : memref<32x16x128xf32, #tpu.memory_space<vmem>>, vector<1x16x128xf32>,
    %c23_i32 = arith.constant 23 : i32
    %636 = arith.index_cast %c23_i32 : i32 to index
    %c0_201 = arith.constant 0 : index
    %c0_202 = arith.constant 0 : index
    %637 = vector.load %arg11[%636, %c0_201, %c0_202] : memref<32x16x512xf32, #tpu.memory_space<vmem>>, vector<1x16x512xf32>
    %638 = vector.shape_cast %637 : vector<1x16x512xf32> to vector<16x512xf32>
    %cst_203 = arith.constant dense<0.000000e+00> : vector<16x512xf32>
    %639 = tpu.matmul %631, %12, %cst_203 {dimension_numbers = #tpu.dot_dimension_numbers<[1], [0], [0], [1], [0, 0, 1, 1], [], []>} : vector<16x128xf32>, vector<128x512xf32>, vector<16x512xf32> -> vector<16x512xf32>
    %640 = arith.addf %638, %639 : vector<16x512xf32>
    %641 = vector.extract_strided_slice %640 {offsets = [0, 0], sizes = [16, 384], strides = [1, 1]} : vector<16x512xf32> to vector<16x384xf32>
    %cst_204 = arith.constant 5.000000e-01 : f32
    %642 = vector.broadcast %cst_204 : f32 to vector<16x384xf32>
    %643 = arith.mulf %642, %641 : vector<16x384xf32>
    %644 = math.tanh %643 : vector<16x384xf32>
    %cst_205 = arith.constant 5.000000e-01 : f32
    %645 = vector.broadcast %cst_205 : f32 to vector<16x384xf32>
    %646 = arith.mulf %645, %644 : vector<16x384xf32>
    %cst_206 = arith.constant 5.000000e-01 : f32
    %647 = vector.broadcast %cst_206 : f32 to vector<16x384xf32>
    %648 = arith.addf %646, %647 : vector<16x384xf32>
    %649 = vector.extract_strided_slice %640 {offsets = [0, 384], sizes = [16, 128], strides = [1, 1]} : vector<16x512xf32> to vector<16x128xf32>
    %650 = math.tanh %649 : vector<16x128xf32>
    %651 = vector.extract_strided_slice %648 {offsets = [0, 0], sizes = [16, 128], strides = [1, 1]} : vector<16x384xf32> to vector<16x128xf32>
    %652 = vector.extract_strided_slice %648 {offsets = [0, 128], sizes = [16, 128], strides = [1, 1]} : vector<16x384xf32> to vector<16x128xf32>
    %653 = vector.extract_strided_slice %648 {offsets = [0, 256], sizes = [16, 128], strides = [1, 1]} : vector<16x384xf32> to vector<16x128xf32>
    %654 = arith.mulf %652, %629 : vector<16x128xf32>
    %655 = arith.mulf %651, %650 : vector<16x128xf32>
    %656 = arith.addf %654, %655 : vector<16x128xf32>
    %657 = math.tanh %656 : vector<16x128xf32>
    %658 = arith.mulf %653, %657 : vector<16x128xf32>
    %659 = arith.index_cast %c23_i32 : i32 to index
    %c0_207 = arith.constant 0 : index
    %c0_208 = arith.constant 0 : index
    %660 = vector.load %arg8[%659, %c0_207, %c0_208] : memref<32x16x128xf32, #tpu.memory_space<vmem>>, vector<1x16x128xf32>
    %661 = vector.shape_cast %660 : vector<1x16x128xf32> to vector<16x128xf32>
    %662 = vector.shape_cast %658 : vector<16x128xf32> to vector<1x16x128xf32>
    tpu.vector_store %arg8[%659, %c0_207, %c0_208], %662 {strides = array<i32>} : memref<32x16x128xf32, #tpu.memory_space<vmem>>, vector<1x16x128xf32>,
    %c24_i32 = arith.constant 24 : i32
    %663 = arith.index_cast %c24_i32 : i32 to index
    %c0_209 = arith.constant 0 : index
    %c0_210 = arith.constant 0 : index
    %664 = vector.load %arg11[%663, %c0_209, %c0_210] : memref<32x16x512xf32, #tpu.memory_space<vmem>>, vector<1x16x512xf32>
    %665 = vector.shape_cast %664 : vector<1x16x512xf32> to vector<16x512xf32>
    %cst_211 = arith.constant dense<0.000000e+00> : vector<16x512xf32>
    %666 = tpu.matmul %658, %12, %cst_211 {dimension_numbers = #tpu.dot_dimension_numbers<[1], [0], [0], [1], [0, 0, 1, 1], [], []>} : vector<16x128xf32>, vector<128x512xf32>, vector<16x512xf32> -> vector<16x512xf32>
    %667 = arith.addf %665, %666 : vector<16x512xf32>
    %668 = vector.extract_strided_slice %667 {offsets = [0, 0], sizes = [16, 384], strides = [1, 1]} : vector<16x512xf32> to vector<16x384xf32>
    %cst_212 = arith.constant 5.000000e-01 : f32
    %669 = vector.broadcast %cst_212 : f32 to vector<16x384xf32>
    %670 = arith.mulf %669, %668 : vector<16x384xf32>
    %671 = math.tanh %670 : vector<16x384xf32>
    %cst_213 = arith.constant 5.000000e-01 : f32
    %672 = vector.broadcast %cst_213 : f32 to vector<16x384xf32>
    %673 = arith.mulf %672, %671 : vector<16x384xf32>
    %cst_214 = arith.constant 5.000000e-01 : f32
    %674 = vector.broadcast %cst_214 : f32 to vector<16x384xf32>
    %675 = arith.addf %673, %674 : vector<16x384xf32>
    %676 = vector.extract_strided_slice %667 {offsets = [0, 384], sizes = [16, 128], strides = [1, 1]} : vector<16x512xf32> to vector<16x128xf32>
    %677 = math.tanh %676 : vector<16x128xf32>
    %678 = vector.extract_strided_slice %675 {offsets = [0, 0], sizes = [16, 128], strides = [1, 1]} : vector<16x384xf32> to vector<16x128xf32>
    %679 = vector.extract_strided_slice %675 {offsets = [0, 128], sizes = [16, 128], strides = [1, 1]} : vector<16x384xf32> to vector<16x128xf32>
    %680 = vector.extract_strided_slice %675 {offsets = [0, 256], sizes = [16, 128], strides = [1, 1]} : vector<16x384xf32> to vector<16x128xf32>
    %681 = arith.mulf %679, %656 : vector<16x128xf32>
    %682 = arith.mulf %678, %677 : vector<16x128xf32>
    %683 = arith.addf %681, %682 : vector<16x128xf32>
    %684 = math.tanh %683 : vector<16x128xf32>
    %685 = arith.mulf %680, %684 : vector<16x128xf32>
    %686 = arith.index_cast %c24_i32 : i32 to index
    %c0_215 = arith.constant 0 : index
    %c0_216 = arith.constant 0 : index
    %687 = vector.load %arg8[%686, %c0_215, %c0_216] : memref<32x16x128xf32, #tpu.memory_space<vmem>>, vector<1x16x128xf32>
    %688 = vector.shape_cast %687 : vector<1x16x128xf32> to vector<16x128xf32>
    %689 = vector.shape_cast %685 : vector<16x128xf32> to vector<1x16x128xf32>
    tpu.vector_store %arg8[%686, %c0_215, %c0_216], %689 {strides = array<i32>} : memref<32x16x128xf32, #tpu.memory_space<vmem>>, vector<1x16x128xf32>,
    %c25_i32 = arith.constant 25 : i32
    %690 = arith.index_cast %c25_i32 : i32 to index
    %c0_217 = arith.constant 0 : index
    %c0_218 = arith.constant 0 : index
    %691 = vector.load %arg11[%690, %c0_217, %c0_218] : memref<32x16x512xf32, #tpu.memory_space<vmem>>, vector<1x16x512xf32>
    %692 = vector.shape_cast %691 : vector<1x16x512xf32> to vector<16x512xf32>
    %cst_219 = arith.constant dense<0.000000e+00> : vector<16x512xf32>
    %693 = tpu.matmul %685, %12, %cst_219 {dimension_numbers = #tpu.dot_dimension_numbers<[1], [0], [0], [1], [0, 0, 1, 1], [], []>} : vector<16x128xf32>, vector<128x512xf32>, vector<16x512xf32> -> vector<16x512xf32>
    %694 = arith.addf %692, %693 : vector<16x512xf32>
    %695 = vector.extract_strided_slice %694 {offsets = [0, 0], sizes = [16, 384], strides = [1, 1]} : vector<16x512xf32> to vector<16x384xf32>
    %cst_220 = arith.constant 5.000000e-01 : f32
    %696 = vector.broadcast %cst_220 : f32 to vector<16x384xf32>
    %697 = arith.mulf %696, %695 : vector<16x384xf32>
    %698 = math.tanh %697 : vector<16x384xf32>
    %cst_221 = arith.constant 5.000000e-01 : f32
    %699 = vector.broadcast %cst_221 : f32 to vector<16x384xf32>
    %700 = arith.mulf %699, %698 : vector<16x384xf32>
    %cst_222 = arith.constant 5.000000e-01 : f32
    %701 = vector.broadcast %cst_222 : f32 to vector<16x384xf32>
    %702 = arith.addf %700, %701 : vector<16x384xf32>
    %703 = vector.extract_strided_slice %694 {offsets = [0, 384], sizes = [16, 128], strides = [1, 1]} : vector<16x512xf32> to vector<16x128xf32>
    %704 = math.tanh %703 : vector<16x128xf32>
    %705 = vector.extract_strided_slice %702 {offsets = [0, 0], sizes = [16, 128], strides = [1, 1]} : vector<16x384xf32> to vector<16x128xf32>
    %706 = vector.extract_strided_slice %702 {offsets = [0, 128], sizes = [16, 128], strides = [1, 1]} : vector<16x384xf32> to vector<16x128xf32>
    %707 = vector.extract_strided_slice %702 {offsets = [0, 256], sizes = [16, 128], strides = [1, 1]} : vector<16x384xf32> to vector<16x128xf32>
    %708 = arith.mulf %706, %683 : vector<16x128xf32>
    %709 = arith.mulf %705, %704 : vector<16x128xf32>
    %710 = arith.addf %708, %709 : vector<16x128xf32>
    %711 = math.tanh %710 : vector<16x128xf32>
    %712 = arith.mulf %707, %711 : vector<16x128xf32>
    %713 = arith.index_cast %c25_i32 : i32 to index
    %c0_223 = arith.constant 0 : index
    %c0_224 = arith.constant 0 : index
    %714 = vector.load %arg8[%713, %c0_223, %c0_224] : memref<32x16x128xf32, #tpu.memory_space<vmem>>, vector<1x16x128xf32>
    %715 = vector.shape_cast %714 : vector<1x16x128xf32> to vector<16x128xf32>
    %716 = vector.shape_cast %712 : vector<16x128xf32> to vector<1x16x128xf32>
    tpu.vector_store %arg8[%713, %c0_223, %c0_224], %716 {strides = array<i32>} : memref<32x16x128xf32, #tpu.memory_space<vmem>>, vector<1x16x128xf32>,
    %c26_i32 = arith.constant 26 : i32
    %717 = arith.index_cast %c26_i32 : i32 to index
    %c0_225 = arith.constant 0 : index
    %c0_226 = arith.constant 0 : index
    %718 = vector.load %arg11[%717, %c0_225, %c0_226] : memref<32x16x512xf32, #tpu.memory_space<vmem>>, vector<1x16x512xf32>
    %719 = vector.shape_cast %718 : vector<1x16x512xf32> to vector<16x512xf32>
    %cst_227 = arith.constant dense<0.000000e+00> : vector<16x512xf32>
    %720 = tpu.matmul %712, %12, %cst_227 {dimension_numbers = #tpu.dot_dimension_numbers<[1], [0], [0], [1], [0, 0, 1, 1], [], []>} : vector<16x128xf32>, vector<128x512xf32>, vector<16x512xf32> -> vector<16x512xf32>
    %721 = arith.addf %719, %720 : vector<16x512xf32>
    %722 = vector.extract_strided_slice %721 {offsets = [0, 0], sizes = [16, 384], strides = [1, 1]} : vector<16x512xf32> to vector<16x384xf32>
    %cst_228 = arith.constant 5.000000e-01 : f32
    %723 = vector.broadcast %cst_228 : f32 to vector<16x384xf32>
    %724 = arith.mulf %723, %722 : vector<16x384xf32>
    %725 = math.tanh %724 : vector<16x384xf32>
    %cst_229 = arith.constant 5.000000e-01 : f32
    %726 = vector.broadcast %cst_229 : f32 to vector<16x384xf32>
    %727 = arith.mulf %726, %725 : vector<16x384xf32>
    %cst_230 = arith.constant 5.000000e-01 : f32
    %728 = vector.broadcast %cst_230 : f32 to vector<16x384xf32>
    %729 = arith.addf %727, %728 : vector<16x384xf32>
    %730 = vector.extract_strided_slice %721 {offsets = [0, 384], sizes = [16, 128], strides = [1, 1]} : vector<16x512xf32> to vector<16x128xf32>
    %731 = math.tanh %730 : vector<16x128xf32>
    %732 = vector.extract_strided_slice %729 {offsets = [0, 0], sizes = [16, 128], strides = [1, 1]} : vector<16x384xf32> to vector<16x128xf32>
    %733 = vector.extract_strided_slice %729 {offsets = [0, 128], sizes = [16, 128], strides = [1, 1]} : vector<16x384xf32> to vector<16x128xf32>
    %734 = vector.extract_strided_slice %729 {offsets = [0, 256], sizes = [16, 128], strides = [1, 1]} : vector<16x384xf32> to vector<16x128xf32>
    %735 = arith.mulf %733, %710 : vector<16x128xf32>
    %736 = arith.mulf %732, %731 : vector<16x128xf32>
    %737 = arith.addf %735, %736 : vector<16x128xf32>
    %738 = math.tanh %737 : vector<16x128xf32>
    %739 = arith.mulf %734, %738 : vector<16x128xf32>
    %740 = arith.index_cast %c26_i32 : i32 to index
    %c0_231 = arith.constant 0 : index
    %c0_232 = arith.constant 0 : index
    %741 = vector.load %arg8[%740, %c0_231, %c0_232] : memref<32x16x128xf32, #tpu.memory_space<vmem>>, vector<1x16x128xf32>
    %742 = vector.shape_cast %741 : vector<1x16x128xf32> to vector<16x128xf32>
    %743 = vector.shape_cast %739 : vector<16x128xf32> to vector<1x16x128xf32>
    tpu.vector_store %arg8[%740, %c0_231, %c0_232], %743 {strides = array<i32>} : memref<32x16x128xf32, #tpu.memory_space<vmem>>, vector<1x16x128xf32>,
    %c27_i32 = arith.constant 27 : i32
    %744 = arith.index_cast %c27_i32 : i32 to index
    %c0_233 = arith.constant 0 : index
    %c0_234 = arith.constant 0 : index
    %745 = vector.load %arg11[%744, %c0_233, %c0_234] : memref<32x16x512xf32, #tpu.memory_space<vmem>>, vector<1x16x512xf32>
    %746 = vector.shape_cast %745 : vector<1x16x512xf32> to vector<16x512xf32>
    %cst_235 = arith.constant dense<0.000000e+00> : vector<16x512xf32>
    %747 = tpu.matmul %739, %12, %cst_235 {dimension_numbers = #tpu.dot_dimension_numbers<[1], [0], [0], [1], [0, 0, 1, 1], [], []>} : vector<16x128xf32>, vector<128x512xf32>, vector<16x512xf32> -> vector<16x512xf32>
    %748 = arith.addf %746, %747 : vector<16x512xf32>
    %749 = vector.extract_strided_slice %748 {offsets = [0, 0], sizes = [16, 384], strides = [1, 1]} : vector<16x512xf32> to vector<16x384xf32>
    %cst_236 = arith.constant 5.000000e-01 : f32
    %750 = vector.broadcast %cst_236 : f32 to vector<16x384xf32>
    %751 = arith.mulf %750, %749 : vector<16x384xf32>
    %752 = math.tanh %751 : vector<16x384xf32>
    %cst_237 = arith.constant 5.000000e-01 : f32
    %753 = vector.broadcast %cst_237 : f32 to vector<16x384xf32>
    %754 = arith.mulf %753, %752 : vector<16x384xf32>
    %cst_238 = arith.constant 5.000000e-01 : f32
    %755 = vector.broadcast %cst_238 : f32 to vector<16x384xf32>
    %756 = arith.addf %754, %755 : vector<16x384xf32>
    %757 = vector.extract_strided_slice %748 {offsets = [0, 384], sizes = [16, 128], strides = [1, 1]} : vector<16x512xf32> to vector<16x128xf32>
    %758 = math.tanh %757 : vector<16x128xf32>
    %759 = vector.extract_strided_slice %756 {offsets = [0, 0], sizes = [16, 128], strides = [1, 1]} : vector<16x384xf32> to vector<16x128xf32>
    %760 = vector.extract_strided_slice %756 {offsets = [0, 128], sizes = [16, 128], strides = [1, 1]} : vector<16x384xf32> to vector<16x128xf32>
    %761 = vector.extract_strided_slice %756 {offsets = [0, 256], sizes = [16, 128], strides = [1, 1]} : vector<16x384xf32> to vector<16x128xf32>
    %762 = arith.mulf %760, %737 : vector<16x128xf32>
    %763 = arith.mulf %759, %758 : vector<16x128xf32>
    %764 = arith.addf %762, %763 : vector<16x128xf32>
    %765 = math.tanh %764 : vector<16x128xf32>
    %766 = arith.mulf %761, %765 : vector<16x128xf32>
    %767 = arith.index_cast %c27_i32 : i32 to index
    %c0_239 = arith.constant 0 : index
    %c0_240 = arith.constant 0 : index
    %768 = vector.load %arg8[%767, %c0_239, %c0_240] : memref<32x16x128xf32, #tpu.memory_space<vmem>>, vector<1x16x128xf32>
    %769 = vector.shape_cast %768 : vector<1x16x128xf32> to vector<16x128xf32>
    %770 = vector.shape_cast %766 : vector<16x128xf32> to vector<1x16x128xf32>
    tpu.vector_store %arg8[%767, %c0_239, %c0_240], %770 {strides = array<i32>} : memref<32x16x128xf32, #tpu.memory_space<vmem>>, vector<1x16x128xf32>,
    %c28_i32 = arith.constant 28 : i32
    %771 = arith.index_cast %c28_i32 : i32 to index
    %c0_241 = arith.constant 0 : index
    %c0_242 = arith.constant 0 : index
    %772 = vector.load %arg11[%771, %c0_241, %c0_242] : memref<32x16x512xf32, #tpu.memory_space<vmem>>, vector<1x16x512xf32>
    %773 = vector.shape_cast %772 : vector<1x16x512xf32> to vector<16x512xf32>
    %cst_243 = arith.constant dense<0.000000e+00> : vector<16x512xf32>
    %774 = tpu.matmul %766, %12, %cst_243 {dimension_numbers = #tpu.dot_dimension_numbers<[1], [0], [0], [1], [0, 0, 1, 1], [], []>} : vector<16x128xf32>, vector<128x512xf32>, vector<16x512xf32> -> vector<16x512xf32>
    %775 = arith.addf %773, %774 : vector<16x512xf32>
    %776 = vector.extract_strided_slice %775 {offsets = [0, 0], sizes = [16, 384], strides = [1, 1]} : vector<16x512xf32> to vector<16x384xf32>
    %cst_244 = arith.constant 5.000000e-01 : f32
    %777 = vector.broadcast %cst_244 : f32 to vector<16x384xf32>
    %778 = arith.mulf %777, %776 : vector<16x384xf32>
    %779 = math.tanh %778 : vector<16x384xf32>
    %cst_245 = arith.constant 5.000000e-01 : f32
    %780 = vector.broadcast %cst_245 : f32 to vector<16x384xf32>
    %781 = arith.mulf %780, %779 : vector<16x384xf32>
    %cst_246 = arith.constant 5.000000e-01 : f32
    %782 = vector.broadcast %cst_246 : f32 to vector<16x384xf32>
    %783 = arith.addf %781, %782 : vector<16x384xf32>
    %784 = vector.extract_strided_slice %775 {offsets = [0, 384], sizes = [16, 128], strides = [1, 1]} : vector<16x512xf32> to vector<16x128xf32>
    %785 = math.tanh %784 : vector<16x128xf32>
    %786 = vector.extract_strided_slice %783 {offsets = [0, 0], sizes = [16, 128], strides = [1, 1]} : vector<16x384xf32> to vector<16x128xf32>
    %787 = vector.extract_strided_slice %783 {offsets = [0, 128], sizes = [16, 128], strides = [1, 1]} : vector<16x384xf32> to vector<16x128xf32>
    %788 = vector.extract_strided_slice %783 {offsets = [0, 256], sizes = [16, 128], strides = [1, 1]} : vector<16x384xf32> to vector<16x128xf32>
    %789 = arith.mulf %787, %764 : vector<16x128xf32>
    %790 = arith.mulf %786, %785 : vector<16x128xf32>
    %791 = arith.addf %789, %790 : vector<16x128xf32>
    %792 = math.tanh %791 : vector<16x128xf32>
    %793 = arith.mulf %788, %792 : vector<16x128xf32>
    %794 = arith.index_cast %c28_i32 : i32 to index
    %c0_247 = arith.constant 0 : index
    %c0_248 = arith.constant 0 : index
    %795 = vector.load %arg8[%794, %c0_247, %c0_248] : memref<32x16x128xf32, #tpu.memory_space<vmem>>, vector<1x16x128xf32>
    %796 = vector.shape_cast %795 : vector<1x16x128xf32> to vector<16x128xf32>
    %797 = vector.shape_cast %793 : vector<16x128xf32> to vector<1x16x128xf32>
    tpu.vector_store %arg8[%794, %c0_247, %c0_248], %797 {strides = array<i32>} : memref<32x16x128xf32, #tpu.memory_space<vmem>>, vector<1x16x128xf32>,
    %c29_i32 = arith.constant 29 : i32
    %798 = arith.index_cast %c29_i32 : i32 to index
    %c0_249 = arith.constant 0 : index
    %c0_250 = arith.constant 0 : index
    %799 = vector.load %arg11[%798, %c0_249, %c0_250] : memref<32x16x512xf32, #tpu.memory_space<vmem>>, vector<1x16x512xf32>
    %800 = vector.shape_cast %799 : vector<1x16x512xf32> to vector<16x512xf32>
    %cst_251 = arith.constant dense<0.000000e+00> : vector<16x512xf32>
    %801 = tpu.matmul %793, %12, %cst_251 {dimension_numbers = #tpu.dot_dimension_numbers<[1], [0], [0], [1], [0, 0, 1, 1], [], []>} : vector<16x128xf32>, vector<128x512xf32>, vector<16x512xf32> -> vector<16x512xf32>
    %802 = arith.addf %800, %801 : vector<16x512xf32>
    %803 = vector.extract_strided_slice %802 {offsets = [0, 0], sizes = [16, 384], strides = [1, 1]} : vector<16x512xf32> to vector<16x384xf32>
    %cst_252 = arith.constant 5.000000e-01 : f32
    %804 = vector.broadcast %cst_252 : f32 to vector<16x384xf32>
    %805 = arith.mulf %804, %803 : vector<16x384xf32>
    %806 = math.tanh %805 : vector<16x384xf32>
    %cst_253 = arith.constant 5.000000e-01 : f32
    %807 = vector.broadcast %cst_253 : f32 to vector<16x384xf32>
    %808 = arith.mulf %807, %806 : vector<16x384xf32>
    %cst_254 = arith.constant 5.000000e-01 : f32
    %809 = vector.broadcast %cst_254 : f32 to vector<16x384xf32>
    %810 = arith.addf %808, %809 : vector<16x384xf32>
    %811 = vector.extract_strided_slice %802 {offsets = [0, 384], sizes = [16, 128], strides = [1, 1]} : vector<16x512xf32> to vector<16x128xf32>
    %812 = math.tanh %811 : vector<16x128xf32>
    %813 = vector.extract_strided_slice %810 {offsets = [0, 0], sizes = [16, 128], strides = [1, 1]} : vector<16x384xf32> to vector<16x128xf32>
    %814 = vector.extract_strided_slice %810 {offsets = [0, 128], sizes = [16, 128], strides = [1, 1]} : vector<16x384xf32> to vector<16x128xf32>
    %815 = vector.extract_strided_slice %810 {offsets = [0, 256], sizes = [16, 128], strides = [1, 1]} : vector<16x384xf32> to vector<16x128xf32>
    %816 = arith.mulf %814, %791 : vector<16x128xf32>
    %817 = arith.mulf %813, %812 : vector<16x128xf32>
    %818 = arith.addf %816, %817 : vector<16x128xf32>
    %819 = math.tanh %818 : vector<16x128xf32>
    %820 = arith.mulf %815, %819 : vector<16x128xf32>
    %821 = arith.index_cast %c29_i32 : i32 to index
    %c0_255 = arith.constant 0 : index
    %c0_256 = arith.constant 0 : index
    %822 = vector.load %arg8[%821, %c0_255, %c0_256] : memref<32x16x128xf32, #tpu.memory_space<vmem>>, vector<1x16x128xf32>
    %823 = vector.shape_cast %822 : vector<1x16x128xf32> to vector<16x128xf32>
    %824 = vector.shape_cast %820 : vector<16x128xf32> to vector<1x16x128xf32>
    tpu.vector_store %arg8[%821, %c0_255, %c0_256], %824 {strides = array<i32>} : memref<32x16x128xf32, #tpu.memory_space<vmem>>, vector<1x16x128xf32>,
    %c30_i32 = arith.constant 30 : i32
    %825 = arith.index_cast %c30_i32 : i32 to index
    %c0_257 = arith.constant 0 : index
    %c0_258 = arith.constant 0 : index
    %826 = vector.load %arg11[%825, %c0_257, %c0_258] : memref<32x16x512xf32, #tpu.memory_space<vmem>>, vector<1x16x512xf32>
    %827 = vector.shape_cast %826 : vector<1x16x512xf32> to vector<16x512xf32>
    %cst_259 = arith.constant dense<0.000000e+00> : vector<16x512xf32>
    %828 = tpu.matmul %820, %12, %cst_259 {dimension_numbers = #tpu.dot_dimension_numbers<[1], [0], [0], [1], [0, 0, 1, 1], [], []>} : vector<16x128xf32>, vector<128x512xf32>, vector<16x512xf32> -> vector<16x512xf32>
    %829 = arith.addf %827, %828 : vector<16x512xf32>
    %830 = vector.extract_strided_slice %829 {offsets = [0, 0], sizes = [16, 384], strides = [1, 1]} : vector<16x512xf32> to vector<16x384xf32>
    %cst_260 = arith.constant 5.000000e-01 : f32
    %831 = vector.broadcast %cst_260 : f32 to vector<16x384xf32>
    %832 = arith.mulf %831, %830 : vector<16x384xf32>
    %833 = math.tanh %832 : vector<16x384xf32>
    %cst_261 = arith.constant 5.000000e-01 : f32
    %834 = vector.broadcast %cst_261 : f32 to vector<16x384xf32>
    %835 = arith.mulf %834, %833 : vector<16x384xf32>
    %cst_262 = arith.constant 5.000000e-01 : f32
    %836 = vector.broadcast %cst_262 : f32 to vector<16x384xf32>
    %837 = arith.addf %835, %836 : vector<16x384xf32>
    %838 = vector.extract_strided_slice %829 {offsets = [0, 384], sizes = [16, 128], strides = [1, 1]} : vector<16x512xf32> to vector<16x128xf32>
    %839 = math.tanh %838 : vector<16x128xf32>
    %840 = vector.extract_strided_slice %837 {offsets = [0, 0], sizes = [16, 128], strides = [1, 1]} : vector<16x384xf32> to vector<16x128xf32>
    %841 = vector.extract_strided_slice %837 {offsets = [0, 128], sizes = [16, 128], strides = [1, 1]} : vector<16x384xf32> to vector<16x128xf32>
    %842 = vector.extract_strided_slice %837 {offsets = [0, 256], sizes = [16, 128], strides = [1, 1]} : vector<16x384xf32> to vector<16x128xf32>
    %843 = arith.mulf %841, %818 : vector<16x128xf32>
    %844 = arith.mulf %840, %839 : vector<16x128xf32>
    %845 = arith.addf %843, %844 : vector<16x128xf32>
    %846 = math.tanh %845 : vector<16x128xf32>
    %847 = arith.mulf %842, %846 : vector<16x128xf32>
    %848 = arith.index_cast %c30_i32 : i32 to index
    %c0_263 = arith.constant 0 : index
    %c0_264 = arith.constant 0 : index
    %849 = vector.load %arg8[%848, %c0_263, %c0_264] : memref<32x16x128xf32, #tpu.memory_space<vmem>>, vector<1x16x128xf32>
    %850 = vector.shape_cast %849 : vector<1x16x128xf32> to vector<16x128xf32>
    %851 = vector.shape_cast %847 : vector<16x128xf32> to vector<1x16x128xf32>
    tpu.vector_store %arg8[%848, %c0_263, %c0_264], %851 {strides = array<i32>} : memref<32x16x128xf32, #tpu.memory_space<vmem>>, vector<1x16x128xf32>,
    %c31_i32 = arith.constant 31 : i32
    %852 = arith.index_cast %c31_i32 : i32 to index
    %c0_265 = arith.constant 0 : index
    %c0_266 = arith.constant 0 : index
    %853 = vector.load %arg11[%852, %c0_265, %c0_266] : memref<32x16x512xf32, #tpu.memory_space<vmem>>, vector<1x16x512xf32>
    %854 = vector.shape_cast %853 : vector<1x16x512xf32> to vector<16x512xf32>
    %cst_267 = arith.constant dense<0.000000e+00> : vector<16x512xf32>
    %855 = tpu.matmul %847, %12, %cst_267 {dimension_numbers = #tpu.dot_dimension_numbers<[1], [0], [0], [1], [0, 0, 1, 1], [], []>} : vector<16x128xf32>, vector<128x512xf32>, vector<16x512xf32> -> vector<16x512xf32>
    %856 = arith.addf %854, %855 : vector<16x512xf32>
    %857 = vector.extract_strided_slice %856 {offsets = [0, 0], sizes = [16, 384], strides = [1, 1]} : vector<16x512xf32> to vector<16x384xf32>
    %cst_268 = arith.constant 5.000000e-01 : f32
    %858 = vector.broadcast %cst_268 : f32 to vector<16x384xf32>
    %859 = arith.mulf %858, %857 : vector<16x384xf32>
    %860 = math.tanh %859 : vector<16x384xf32>
    %cst_269 = arith.constant 5.000000e-01 : f32
    %861 = vector.broadcast %cst_269 : f32 to vector<16x384xf32>
    %862 = arith.mulf %861, %860 : vector<16x384xf32>
    %cst_270 = arith.constant 5.000000e-01 : f32
    %863 = vector.broadcast %cst_270 : f32 to vector<16x384xf32>
    %864 = arith.addf %862, %863 : vector<16x384xf32>
    %865 = vector.extract_strided_slice %856 {offsets = [0, 384], sizes = [16, 128], strides = [1, 1]} : vector<16x512xf32> to vector<16x128xf32>
    %866 = math.tanh %865 : vector<16x128xf32>
    %867 = vector.extract_strided_slice %864 {offsets = [0, 0], sizes = [16, 128], strides = [1, 1]} : vector<16x384xf32> to vector<16x128xf32>
    %868 = vector.extract_strided_slice %864 {offsets = [0, 128], sizes = [16, 128], strides = [1, 1]} : vector<16x384xf32> to vector<16x128xf32>
    %869 = vector.extract_strided_slice %864 {offsets = [0, 256], sizes = [16, 128], strides = [1, 1]} : vector<16x384xf32> to vector<16x128xf32>
    %870 = arith.mulf %868, %845 : vector<16x128xf32>
    %871 = arith.mulf %867, %866 : vector<16x128xf32>
    %872 = arith.addf %870, %871 : vector<16x128xf32>
    %873 = math.tanh %872 : vector<16x128xf32>
    %874 = arith.mulf %869, %873 : vector<16x128xf32>
    %875 = arith.index_cast %c31_i32 : i32 to index
    %c0_271 = arith.constant 0 : index
    %c0_272 = arith.constant 0 : index
    %876 = vector.load %arg8[%875, %c0_271, %c0_272] : memref<32x16x128xf32, #tpu.memory_space<vmem>>, vector<1x16x128xf32>
    %877 = vector.shape_cast %876 : vector<1x16x128xf32> to vector<16x128xf32>
    %878 = vector.shape_cast %874 : vector<16x128xf32> to vector<1x16x128xf32>
    tpu.vector_store %arg8[%875, %c0_271, %c0_272], %878 {strides = array<i32>} : memref<32x16x128xf32, #tpu.memory_space<vmem>>, vector<1x16x128xf32>,
    %c32_i32 = arith.constant 32 : i32
    %c0_273 = arith.constant 0 : index
    %c0_274 = arith.constant 0 : index
    %879 = vector.load %arg12[%c0_273, %c0_274] : memref<16x128xf32, #tpu.memory_space<vmem>>, vector<16x128xf32>
    tpu.vector_store %arg12[%c0_273, %c0_274], %874 {strides = array<i32>} : memref<16x128xf32, #tpu.memory_space<vmem>>, vector<16x128xf32>,
    %c0_275 = arith.constant 0 : index
    %c0_276 = arith.constant 0 : index
    %880 = vector.load %arg13[%c0_275, %c0_276] : memref<16x128xf32, #tpu.memory_space<vmem>>, vector<16x128xf32>
    tpu.vector_store %arg13[%c0_275, %c0_276], %872 {strides = array<i32>} : memref<16x128xf32, #tpu.memory_space<vmem>>, vector<16x128xf32>,
    %c0_i32_277 = arith.constant 0 : i32
    %881 = arith.cmpi eq, %arg1, %c0_i32_277 : i32
    %882 = arith.extui %881 : i1 to i32
    %c0_i32_278 = arith.constant 0 : i32
    %883 = arith.cmpi ne, %882, %c0_i32_278 : i32
    scf.if %883 {
      %c0_279 = arith.constant 0 : index
      %c0_280 = arith.constant 0 : index
      %c0_281 = arith.constant 0 : index
      %884 = vector.load %arg9[%c0_279, %c0_280, %c0_281] : memref<1x16x128xf32, #tpu.memory_space<vmem>>, vector<1x16x128xf32>
      %885 = vector.shape_cast %884 : vector<1x16x128xf32> to vector<16x128xf32>
      %886 = vector.shape_cast %874 : vector<16x128xf32> to vector<1x16x128xf32>
      tpu.vector_store %arg9[%c0_279, %c0_280, %c0_281], %886 {strides = array<i32>} : memref<1x16x128xf32, #tpu.memory_space<vmem>>, vector<1x16x128xf32>,
      %c0_282 = arith.constant 0 : index
      %c0_283 = arith.constant 0 : index
      %c0_284 = arith.constant 0 : index
      %887 = vector.load %arg10[%c0_282, %c0_283, %c0_284] : memref<1x16x128xf32, #tpu.memory_space<vmem>>, vector<1x16x128xf32>
      %888 = vector.shape_cast %887 : vector<1x16x128xf32> to vector<16x128xf32>
      %889 = vector.shape_cast %872 : vector<16x128xf32> to vector<1x16x128xf32>
      tpu.vector_store %arg10[%c0_282, %c0_283, %c0_284], %889 {strides = array<i32>} : memref<1x16x128xf32, #tpu.memory_space<vmem>>, vector<1x16x128xf32>,
    } else {
    }
    return
  }
  func.func @transform_0(%arg0: i32, %arg1: i32) -> (i32, i32, i32) {
    %c0_i32 = arith.constant 0 : i32
    %c0_i32_0 = arith.constant 0 : i32
    return %arg1, %arg0, %c0_i32 : i32, i32, i32
  }
  func.func @transform_1(%arg0: i32, %arg1: i32) -> (i32, i32) {
    %c0_i32 = arith.constant 0 : i32
    %c0_i32_0 = arith.constant 0 : i32
    %c0_i32_1 = arith.constant 0 : i32
    return %c0_i32, %c0_i32_0 : i32, i32
  }
  func.func @transform_2(%arg0: i32, %arg1: i32) -> (i32, i32) {
    %c0_i32 = arith.constant 0 : i32
    %c0_i32_0 = arith.constant 0 : i32
    %c0_i32_1 = arith.constant 0 : i32
    return %c0_i32, %c0_i32_0 : i32, i32
  }
  func.func @transform_3(%arg0: i32, %arg1: i32) -> (i32, i32) {
    %c0_i32 = arith.constant 0 : i32
    %c0_i32_0 = arith.constant 0 : i32
    %c0_i32_1 = arith.constant 0 : i32
    return %c0_i32, %c0_i32_0 : i32, i32
  }
  func.func @transform_4(%arg0: i32, %arg1: i32) -> (i32, i32, i32) {
    %c0_i32 = arith.constant 0 : i32
    %c0_i32_0 = arith.constant 0 : i32
    %c0_i32_1 = arith.constant 0 : i32
    return %c0_i32, %arg0, %c0_i32_0 : i32, i32, i32
  }
  func.func @transform_5(%arg0: i32, %arg1: i32) -> (i32, i32, i32) {
    %c0_i32 = arith.constant 0 : i32
    %c0_i32_0 = arith.constant 0 : i32
    %c0_i32_1 = arith.constant 0 : i32
    return %c0_i32, %arg0, %c0_i32_0 : i32, i32, i32
  }
  func.func @transform_6(%arg0: i32, %arg1: i32) -> (i32, i32, i32) {
    %c0_i32 = arith.constant 0 : i32
    %c0_i32_0 = arith.constant 0 : i32
    return %arg1, %arg0, %c0_i32 : i32, i32, i32
  }
  func.func @transform_7(%arg0: i32, %arg1: i32) -> (i32, i32, i32) {
    %c0_i32 = arith.constant 0 : i32
    %c0_i32_0 = arith.constant 0 : i32
    %c0_i32_1 = arith.constant 0 : i32
    return %c0_i32, %arg0, %c0_i32_0 : i32, i32, i32
  }
  func.func @transform_8(%arg0: i32, %arg1: i32) -> (i32, i32, i32) {
    %c0_i32 = arith.constant 0 : i32
    %c0_i32_0 = arith.constant 0 : i32
    %c0_i32_1 = arith.constant 0 : i32
    return %c0_i32, %arg0, %c0_i32_0 : i32, i32, i32
  }
}

</mosaic_0001>

<bundles_post_ra>
// kernel: lstm_tied_sequence.1
= control target key start
LH: loop header
LB: loop body
LE: loop exit
PB: predicated region body
PF: predicated region fallthrough
CT: control target
= control target key end

     0   :  { %v11478_v3 = vmov 0.0   ;;  %s14175_s1 = inlined_call_operand.vmem [shape: f32[128,512], index: 1, kind: input, shape index: {}]   ;;  %s14176_s3 = inlined_call_operand.vmem [shape: f32[128,512], index: 3, kind: input, shape index: {}]   ;;  %s14177_s0 = inlined_call_operand.vmem [shape: f32[32,16,128], index: 0, kind: input, shape index: {}]   ;;  %s14178_s4 = inlined_call_operand.vmem [shape: f32[1,16,128], index: 4, kind: input, shape index: {}, may-alias: {4,5}]   ;;  %s14179_s2 = inlined_call_operand.vmem [shape: f32[1,512], index: 2, kind: input, shape index: {}]   ;;  %s14180_s5 = inlined_call_operand.vmem [shape: f32[1,16,128], index: 5, kind: input, shape index: {}, may-alias: {4,5}]   ;;  %s14181_s6 = inlined_call_operand.vmem [shape: f32[32,16,128], index: 6, kind: output, shape index: {0}]   ;;  %s14182_s8 = inlined_call_operand.vmem [shape: f32[1,16,128], index: 8, kind: output, shape index: {2}]   ;;  %s14183_s7 = inlined_call_operand.vmem [shape: f32[1,16,128], index: 7, kind: output, shape index: {1}]  }
   0x1   :  { %v103_v0 = vld [vmem:[%s14175_s1 + $0x8] sm:$0xff]  ;;  %v105_v2 = vld [vmem:[%s14175_s1 + $0x18] sm:$0xff]  ;;  %252 = vmatprep.mubr.f32.mxu0 %v11478_v3  ;;  %701 = vmatprep.mubr.f32.mxu1 %v11478_v3  ;;  %v102_v6 = vld [vmem:[%s14175_s1] sm:$0xff] }
   0x2   :  { %v107_v1 = vld [vmem:[%s14175_s1 + $0x28] sm:$0xff]  ;;  %v109_v5 = vld [vmem:[%s14175_s1 + $0x38] sm:$0xff]  ;;  %v106_v7 = vld [vmem:[%s14175_s1 + $0x20] sm:$0xff] }
   0x3   :  { %v8213_v4 = vpack.c.bf16 %v107_v1, %v103_v0  ;;  %v8245_v8 = vpack.c.bf16 %v109_v5, %v105_v2  ;;  %v8215_v9 = vpack.c.bf16 %v106_v7, %v102_v6  ;;  %v104_v10 = vld [vmem:[%s14175_s1 + $0x10] sm:$0xff]  ;;  %v111_v12 = vld [vmem:[%s14175_s1 + $0x48] sm:$0xff]  ;;  %v113_v15 = vld [vmem:[%s14175_s1 + $0x58] sm:$0xff] }
   0x4   :  { %v108_v11 = vld [vmem:[%s14175_s1 + $0x30] sm:$0xff]  ;;  %v115_v14 = vld [vmem:[%s14175_s1 + $0x68] sm:$0xff]  ;;  %v117_v16 = vld [vmem:[%s14175_s1 + $0x78] sm:$0xff] }
   0x5   :  { %8214 = vmatprep.subr.bf16.mxu0 %v8213_v4  ;;  %v8247_v13 = vpack.c.bf16 %v108_v11, %v104_v10  ;;  %8246 = vmatprep.subr.bf16.mxu1 %v8245_v8  ;;  %v8217_v17 = vpack.c.bf16 %v115_v14, %v111_v12  ;;  %v8249_v18 = vpack.c.bf16 %v117_v16, %v113_v15  ;;  %v110_v19 = vld [vmem:[%s14175_s1 + $0x40] sm:$0xff]  ;;  %v112_v21 = vld [vmem:[%s14175_s1 + $0x50] sm:$0xff]  ;;  %v119_v24 = vld [vmem:[%s14175_s1 + $0x88] sm:$0xff] }
   0x6   :  { %8216 = vmatpush1.bf16.msra.mxu0 %v8215_v9  ;;  %v114_v20 = vld [vmem:[%s14175_s1 + $0x60] sm:$0xff]  ;;  %v116_v23 = vld [vmem:[%s14175_s1 + $0x70] sm:$0xff]  ;;  %v123_v25 = vld [vmem:[%s14175_s1 + $0xa8] sm:$0xff] }
   0x7   :  { %8248 = vmatpush1.bf16.msra.mxu1 %v8247_v13  ;;  %v8219_v22 = vpack.c.bf16 %v114_v20, %v110_v19  ;;  %8218 = vmatprep.subr.bf16.mxu0 %v8217_v17  ;;  %v8251_v26 = vpack.c.bf16 %v116_v23, %v112_v21  ;;  %v8221_v27 = vpack.c.bf16 %v123_v25, %v119_v24  ;;  %v121_v28 = vld [vmem:[%s14175_s1 + $0x98] sm:$0xff]  ;;  %v118_v30 = vld [vmem:[%s14175_s1 + $0x80] sm:$0xff]  ;;  %v120_v33 = vld [vmem:[%s14175_s1 + $0x90] sm:$0xff] }
   0x8   :  { %8250 = vmatprep.subr.bf16.mxu1 %v8249_v18  ;;  %v125_v29 = vld [vmem:[%s14175_s1 + $0xb8] sm:$0xff]  ;;  %v122_v32 = vld [vmem:[%s14175_s1 + $0xa0] sm:$0xff]  ;;  %v124_v34 = vld [vmem:[%s14175_s1 + $0xb0] sm:$0xff] }
   0x9   :  { %v8253_v31 = vpack.c.bf16 %v125_v29, %v121_v28  ;;  %v8223_v35 = vpack.c.bf16 %v122_v32, %v118_v30  ;;  %v127_v36 = vld [vmem:[%s14175_s1 + $0xc8] sm:$0xff]  ;;  %v129_v38 = vld [vmem:[%s14175_s1 + $0xd8] sm:$0xff]  ;;  %v8255_v39 = vpack.c.bf16 %v124_v34, %v120_v33  ;;  %v126_v42 = vld [vmem:[%s14175_s1 + $0xc0] sm:$0xff] }
   0xa   :  { %8220 = vmatpush1.bf16.msra.mxu0 %v8219_v22  ;;  %v131_v37 = vld [vmem:[%s14175_s1 + $0xe8] sm:$0xff]  ;;  %v133_v41 = vld [vmem:[%s14175_s1 + $0xf8] sm:$0xff]  ;;  %v130_v43 = vld [vmem:[%s14175_s1 + $0xe0] sm:$0xff] }
   0xb   :  { %8252 = vmatpush1.bf16.msra.mxu1 %v8251_v26  ;;  %8222 = vmatprep.subr.bf16.mxu0 %v8221_v27  ;;  %v8225_v40 = vpack.c.bf16 %v131_v37, %v127_v36  ;;  %v8257_v44 = vpack.c.bf16 %v133_v41, %v129_v38  ;;  %v128_v45 = vld [vmem:[%s14175_s1 + $0xd0] sm:$0xff]  ;;  %v135_v47 = vld [vmem:[%s14175_s1 + $0x108] sm:$0xff]  ;;  %v137_v49 = vld [vmem:[%s14175_s1 + $0x118] sm:$0xff]  ;;  %v8227_v51 = vpack.c.bf16 %v130_v43, %v126_v42 }
   0xc   :  { %8254 = vmatprep.subr.bf16.mxu1 %v8253_v31  ;;  %v132_v46 = vld [vmem:[%s14175_s1 + $0xf0] sm:$0xff]  ;;  %v139_v48 = vld [vmem:[%s14175_s1 + $0x128] sm:$0xff]  ;;  %v141_v50 = vld [vmem:[%s14175_s1 + $0x138] sm:$0xff] }
   0xd   :  { %v8259_v52 = vpack.c.bf16 %v132_v46, %v128_v45  ;;  %v8229_v53 = vpack.c.bf16 %v139_v48, %v135_v47  ;;  %v134_v54 = vld [vmem:[%s14175_s1 + $0x100] sm:$0xff]  ;;  %v136_v56 = vld [vmem:[%s14175_s1 + $0x110] sm:$0xff]  ;;  %v8261_v57 = vpack.c.bf16 %v141_v50, %v137_v49  ;;  %v143_v59 = vld [vmem:[%s14175_s1 + $0x148] sm:$0xff] }
   0xe   :  { %8224 = vmatpush1.bf16.msra.mxu0 %v8223_v35  ;;  %v138_v55 = vld [vmem:[%s14175_s1 + $0x120] sm:$0xff]  ;;  %v140_v58 = vld [vmem:[%s14175_s1 + $0x130] sm:$0xff]  ;;  %v147_v60 = vld [vmem:[%s14175_s1 + $0x168] sm:$0xff] }
   0xf   :  { %8256 = vmatpush1.bf16.msra.mxu1 %v8255_v39  ;;  %8226 = vmatprep.subr.bf16.mxu0 %v8225_v40  ;;  %v145_v61 = vld [vmem:[%s14175_s1 + $0x158] sm:$0xff]  ;;  %v8231_v63 = vpack.c.bf16 %v138_v55, %v134_v54  ;;  %v8263_v0 = vpack.c.bf16 %v140_v58, %v136_v56  ;;  %v8233_v1 = vpack.c.bf16 %v147_v60, %v143_v59  ;;  %v142_v2 = vld [vmem:[%s14175_s1 + $0x140] sm:$0xff]  ;;  %v144_v5 = vld [vmem:[%s14175_s1 + $0x150] sm:$0xff] }
  0x10   :  { %8258 = vmatprep.subr.bf16.mxu1 %v8257_v44  ;;  %v149_v62 = vld [vmem:[%s14175_s1 + $0x178] sm:$0xff]  ;;  %v146_v4 = vld [vmem:[%s14175_s1 + $0x160] sm:$0xff]  ;;  %v148_v7 = vld [vmem:[%s14175_s1 + $0x170] sm:$0xff] }
  0x11   :  { %v8265_v6 = vpack.c.bf16 %v149_v62, %v145_v61  ;;  %v151_v8 = vld [vmem:[%s14175_s1 + $0x188] sm:$0xff]  ;;  %v153_v10 = vld [vmem:[%s14175_s1 + $0x198] sm:$0xff]  ;;  %v8235_v12 = vpack.c.bf16 %v146_v4, %v142_v2  ;;  %v8267_v13 = vpack.c.bf16 %v148_v7, %v144_v5  ;;  %v150_v15 = vld [vmem:[%s14175_s1 + $0x180] sm:$0xff] }
  0x12   :  { %8228 = vmatpush1.bf16.msra.mxu0 %v8227_v51  ;;  %v155_v9 = vld [vmem:[%s14175_s1 + $0x1a8] sm:$0xff]  ;;  %v157_v11 = vld [vmem:[%s14175_s1 + $0x1b8] sm:$0xff]  ;;  %v154_v16 = vld [vmem:[%s14175_s1 + $0x1a0] sm:$0xff] }
  0x13   :  { %8260 = vmatpush1.bf16.msra.mxu1 %v8259_v52  ;;  %8230 = vmatprep.subr.bf16.mxu0 %v8229_v53  ;;  %v8237_v14 = vpack.c.bf16 %v155_v9, %v151_v8  ;;  %v152_v17 = vld [vmem:[%s14175_s1 + $0x190] sm:$0xff]  ;;  %v8269_v18 = vpack.c.bf16 %v157_v11, %v153_v10  ;;  %v159_v20 = vld [vmem:[%s14175_s1 + $0x1c8] sm:$0xff]  ;;  %v161_v22 = vld [vmem:[%s14175_s1 + $0x1d8] sm:$0xff]  ;;  %v8239_v24 = vpack.c.bf16 %v154_v16, %v150_v15 }
  0x14   :  { %8262 = vmatprep.subr.bf16.mxu1 %v8261_v57  ;;  %v156_v19 = vld [vmem:[%s14175_s1 + $0x1b0] sm:$0xff]  ;;  %v163_v21 = vld [vmem:[%s14175_s1 + $0x1e8] sm:$0xff]  ;;  %v165_v23 = vld [vmem:[%s14175_s1 + $0x1f8] sm:$0xff] }
  0x15   :  { %v8271_v25 = vpack.c.bf16 %v156_v19, %v152_v17  ;;  %v8241_v26 = vpack.c.bf16 %v163_v21, %v159_v20  ;;  %v158_v27 = vld [vmem:[%s14175_s1 + $0x1c0] sm:$0xff]  ;;  %v160_v29 = vld [vmem:[%s14175_s1 + $0x1d0] sm:$0xff]  ;;  %v8273_v30 = vpack.c.bf16 %v165_v23, %v161_v22  ;;  %v1343_v32 = vld [vmem:[%s14176_s3 + $0x8] sm:$0xff] }
  0x16   :  { %8232 = vmatpush1.bf16.msra.mxu0 %v8231_v63  ;;  %v162_v28 = vld [vmem:[%s14175_s1 + $0x1e0] sm:$0xff]  ;;  %v164_v31 = vld [vmem:[%s14175_s1 + $0x1f0] sm:$0xff]  ;;  %v1347_v33 = vld [vmem:[%s14176_s3 + $0x28] sm:$0xff] }
  0x17   :  { %8264 = vmatpush1.bf16.msra.mxu1 %v8263_v0  ;;  %8234 = vmatprep.subr.bf16.mxu0 %v8233_v1  ;;  %v1345_v34 = vld [vmem:[%s14176_s3 + $0x18] sm:$0xff]  ;;  %v8243_v36 = vpack.c.bf16 %v162_v28, %v158_v27  ;;  %v8275_v37 = vpack.c.bf16 %v164_v31, %v160_v29  ;;  %v11730_v38 = vpack.c.bf16 %v1347_v33, %v1343_v32  ;;  %v1342_v39 = vld [vmem:[%s14176_s3] sm:$0xff]  ;;  %v1344_v42 = vld [vmem:[%s14176_s3 + $0x10] sm:$0xff] }
  0x18   :  { %8266 = vmatprep.subr.bf16.mxu1 %v8265_v6  ;;  %v1349_v35 = vld [vmem:[%s14176_s3 + $0x38] sm:$0xff]  ;;  %v1346_v40 = vld [vmem:[%s14176_s3 + $0x20] sm:$0xff]  ;;  %v1348_v43 = vld [vmem:[%s14176_s3 + $0x30] sm:$0xff] }
  0x19   :  { %v11738_v41 = vpack.c.bf16 %v1349_v35, %v1345_v34  ;;  %v1351_v44 = vld [vmem:[%s14176_s3 + $0x48] sm:$0xff]  ;;  %v38_v46 = vld [vmem:[%s14177_s0] sm:$0xff]  ;;  %v11755_v47 = vpack.c.bf16 %v1346_v40, %v1342_v39  ;;  %v1353_v48 = vld [vmem:[%s14176_s3 + $0x58] sm:$0xff]  ;;  %v11765_v50 = vpack.c.bf16 %v1348_v43, %v1344_v42 }
  0x1a   :  { %8236 = vmatpush1.bf16.msra.mxu0 %v8235_v12  ;;  %v1355_v45 = vld [vmem:[%s14176_s3 + $0x68] sm:$0xff]  ;;  %v1357_v49 = vld [vmem:[%s14176_s3 + $0x78] sm:$0xff]  ;;  %v1350_v52 = vld [vmem:[%s14176_s3 + $0x40] sm:$0xff] }
  0x1b   :  { %8268 = vmatpush1.bf16.msra.mxu1 %v8267_v13  ;;  %8238 = vmatprep.subr.bf16.mxu0 %v8237_v14  ;;  %v11767_v51 = vpack.c.bf16 %v1355_v45, %v1351_v44  ;;  %v1354_v53 = vld [vmem:[%s14176_s3 + $0x60] sm:$0xff]  ;;  %v1352_v54 = vld [vmem:[%s14176_s3 + $0x50] sm:$0xff]  ;;  %v11778_v55 = vpack.c.bf16 %v1357_v49, %v1353_v48  ;;  %v1359_v57 = vld [vmem:[%s14176_s3 + $0x88] sm:$0xff] }
  0x1c   :  { %8270 = vmatprep.subr.bf16.mxu1 %v8269_v18  ;;  %v1356_v56 = vld [vmem:[%s14176_s3 + $0x70] sm:$0xff]  ;;  %v1363_v58 = vld [vmem:[%s14176_s3 + $0xa8] sm:$0xff]  ;;  %v1361_v60 = vld [vmem:[%s14176_s3 + $0x98] sm:$0xff]  ;;  %v11801_v62 = vpack.c.bf16 %v1354_v53, %v1350_v52 }
  0x1d   :  { %v39_v59 = vld [vmem:[%s14177_s0 + $0x8] sm:$0xff]  ;;  %v1365_v61 = vld [vmem:[%s14176_s3 + $0xb8] sm:$0xff]  ;;  %v11805_v63 = vpack.c.bf16 %v1356_v56, %v1352_v54  ;;  %v11807_v0 = vpack.c.bf16 %v1363_v58, %v1359_v57  ;;  %v1358_v1 = vld [vmem:[%s14176_s3 + $0x80] sm:$0xff] }
  0x1e   :  { %8240 = vmatpush1.bf16.msra.mxu0 %v8239_v24  ;;  %v1362_v2 = vld [vmem:[%s14176_s3 + $0xa0] sm:$0xff]  ;;  %v1360_v4 = vld [vmem:[%s14176_s3 + $0x90] sm:$0xff]  ;;  %v11819_v5 = vpack.c.bf16 %v1365_v61, %v1361_v60  ;;  %v1367_v7 = vld [vmem:[%s14176_s3 + $0xc8] sm:$0xff] }
  0x1f   :  { %8272 = vmatpush1.bf16.msra.mxu1 %v8271_v25  ;;  %8242 = vmatprep.subr.bf16.mxu0 %v8241_v26  ;;  %v1364_v6 = vld [vmem:[%s14176_s3 + $0xb0] sm:$0xff]  ;;  %v1371_v8 = vld [vmem:[%s14176_s3 + $0xe8] sm:$0xff]  ;;  %v1369_v10 = vld [vmem:[%s14176_s3 + $0xd8] sm:$0xff]  ;;  %v11842_v12 = vpack.c.bf16 %v1362_v2, %v1358_v1 }
  0x20   :  { %8274 = vmatprep.subr.bf16.mxu1 %v8273_v30  ;;  %v40_v9 = vld [vmem:[%s14177_s0 + $0x10] sm:$0xff]  ;;  %v1373_v11 = vld [vmem:[%s14176_s3 + $0xf8] sm:$0xff]  ;;  %v11846_v13 = vpack.c.bf16 %v1364_v6, %v1360_v4  ;;  %v11848_v14 = vpack.c.bf16 %v1371_v8, %v1367_v7  ;;  %v1366_v15 = vld [vmem:[%s14176_s3 + $0xc0] sm:$0xff] }
  0x21   :  { %v1370_v16 = vld [vmem:[%s14176_s3 + $0xe0] sm:$0xff]  ;;  %v1368_v17 = vld [vmem:[%s14176_s3 + $0xd0] sm:$0xff]  ;;  %v11860_v18 = vpack.c.bf16 %v1373_v11, %v1369_v10  ;;  %v1375_v20 = vld [vmem:[%s14176_s3 + $0x108] sm:$0xff] }
  0x22   :  { %8244 = vmatpush1.bf16.msra.mxu0 %v8243_v36  ;;  %v1372_v19 = vld [vmem:[%s14176_s3 + $0xf0] sm:$0xff]  ;;  %v1379_v21 = vld [vmem:[%s14176_s3 + $0x128] sm:$0xff]  ;;  %v41_v22 = vld [vmem:[%s14177_s0 + $0x18] sm:$0xff]  ;;  %v11880_v24 = vpack.c.bf16 %v1370_v16, %v1366_v15 }
  0x23   :  { %8276 = vmatpush1.bf16.msra.mxu1 %v8275_v37  ;;  %8278 = vmatprep.subr.bf16.mxu0 %v11730_v38  ;;  %v1377_v23 = vld [vmem:[%s14176_s3 + $0x118] sm:$0xff]  ;;  %v11887_v26 = vpack.c.bf16 %v1372_v19, %v1368_v17  ;;  %v11889_v27 = vpack.c.bf16 %v1379_v21, %v1375_v20  ;;  %v1374_v28 = vld [vmem:[%s14176_s3 + $0x100] sm:$0xff]  ;;  %v1376_v31 = vld [vmem:[%s14176_s3 + $0x110] sm:$0xff] }
  0x24   :  { %8310 = vmatprep.subr.bf16.mxu1 %v11738_v41  ;;  %v1381_v25 = vld [vmem:[%s14176_s3 + $0x138] sm:$0xff]  ;;  %v1378_v29 = vld [vmem:[%s14176_s3 + $0x120] sm:$0xff]  ;;  %v1380_v32 = vld [vmem:[%s14176_s3 + $0x130] sm:$0xff] }
  0x25   :  { %253 = vmatmul.mubr.f32.vlgmr.msra.gmra.mrb[0].mxu0 %v38_v46  ;;  %v11898_v30 = vpack.c.bf16 %v1381_v25, %v1377_v23  ;;  %v42_v33 = vld [vmem:[%s14177_s0 + $0x20] sm:$0xff]  ;;  %v11912_v34 = vpack.c.bf16 %v1378_v29, %v1374_v28  ;;  %v11916_v35 = vpack.c.bf16 %v1380_v32, %v1376_v31  ;;  %v43_v36 = vld [vmem:[%s14177_s0 + $0x28] sm:$0xff]  ;;  %v44_v37 = vld [vmem:[%s14177_s0 + $0x30] sm:$0xff] }
  0x26   :  { %702 = vmatmul.mubr.f32.vlgmr.msra.gmra.mrb[0].mxu1 %v38_v46  ;;  %8280 = vmatpush1.bf16.msra.mxu0 %v11755_v47  ;;  %v45_v39 = vld [vmem:[%s14177_s0 + $0x38] sm:$0xff]  ;;  %v46_v40 = vld [vmem:[%s14177_s0 + $0x40] sm:$0xff]  ;;  %v47_v42 = vld [vmem:[%s14177_s0 + $0x48] sm:$0xff] }
  0x27   :  { %258 = vmatprep.mubr.f32.mxu0 %v11478_v3  ;;  %707 = vmatprep.mubr.f32.mxu1 %v11478_v3  ;;  %v1383_v43 = vld [vmem:[%s14176_s3 + $0x148] sm:$0xff]  ;;  %v1382_v45 = vld [vmem:[%s14176_s3 + $0x140] sm:$0xff]  ;;  %v48_v52 = vld [vmem:[%s14177_s0 + $0x50] sm:$0xff] }
  0x28   :  { %8312 = vmatpush1.bf16.msra.mxu1 %v11765_v50  ;;  %8282 = vmatprep.subr.bf16.mxu0 %v11767_v51  ;;  %v1387_v44 = vld [vmem:[%s14176_s3 + $0x168] sm:$0xff]  ;;  %v1386_v48 = vld [vmem:[%s14176_s3 + $0x160] sm:$0xff]  ;;  %v1385_v53 = vld [vmem:[%s14176_s3 + $0x158] sm:$0xff] }
  0x29   :  { %259 = vmatmul.mubr.f32.gmra.mrb[2].mxu0 %v39_v59  ;;  %8314 = vmatprep.subr.bf16.mxu1 %v11778_v55  ;;  %v11955_v46 = vpack.c.bf16 %v1387_v44, %v1383_v43  ;;  %v11960_v49 = vpack.c.bf16 %v1386_v48, %v1382_v45  ;;  %v1389_v54 = vld [vmem:[%s14176_s3 + $0x178] sm:$0xff]  ;;  %v1384_v57 = vld [vmem:[%s14176_s3 + $0x150] sm:$0xff]  ;;  %v50_v61 = vld [vmem:[%s14177_s0 + $0x60] sm:$0xff] }
  0x2a   :  { %708 = vmatmul.mubr.f32.gmra.mrb[2].mxu1 %v39_v59  ;;  %264 = vmatprep.mubr.f32.mxu0 %v11478_v3  ;;  %v11975_v56 = vpack.c.bf16 %v1389_v54, %v1385_v53  ;;  %v1388_v58 = vld [vmem:[%s14176_s3 + $0x170] sm:$0xff]  ;;  %v49_v60 = vld [vmem:[%s14177_s0 + $0x58] sm:$0xff]  ;;  %v51_v1 = vld [vmem:[%s14177_s0 + $0x68] sm:$0xff] }
  0x2b   :  { %713 = vmatprep.mubr.f32.mxu1 %v11478_v3  ;;  %8284 = vmatpush1.bf16.msra.mxu0 %v11801_v62  ;;  %v11983_v59 = vpack.c.bf16 %v1388_v58, %v1384_v57  ;;  %v52_v2 = vld [vmem:[%s14177_s0 + $0x70] sm:$0xff]  ;;  %v53_v4 = vld [vmem:[%s14177_s0 + $0x78] sm:$0xff]  ;;  %v54_v6 = vld [vmem:[%s14177_s0 + $0x80] sm:$0xff] }
  0x2c   :  { %8316 = vmatpush1.bf16.msra.mxu1 %v11805_v63  ;;  %8286 = vmatprep.subr.bf16.mxu0 %v11807_v0  ;;  %v55_v7 = vld [vmem:[%s14177_s0 + $0x88] sm:$0xff]  ;;  %v1390_v10 = vld [vmem:[%s14176_s3 + $0x180] sm:$0xff]  ;;  %v56_v17 = vld [vmem:[%s14177_s0 + $0x90] sm:$0xff] }
  0x2d   :  { %265 = vmatmul.mubr.f32.gmra.mrb[4].mxu0 %v40_v9  ;;  %8318 = vmatprep.subr.bf16.mxu1 %v11819_v5  ;;  %v1391_v8 = vld [vmem:[%s14176_s3 + $0x188] sm:$0xff]  ;;  %v1394_v15 = vld [vmem:[%s14176_s3 + $0x1a0] sm:$0xff]  ;;  %v1393_v19 = vld [vmem:[%s14176_s3 + $0x198] sm:$0xff] }
  0x2e   :  { %714 = vmatmul.mubr.f32.gmra.mrb[4].mxu1 %v40_v9  ;;  %270 = vmatprep.mubr.f32.mxu0 %v11478_v3  ;;  %v1395_v9 = vld [vmem:[%s14176_s3 + $0x1a8] sm:$0xff]  ;;  %v12036_v16 = vpack.c.bf16 %v1394_v15, %v1390_v10  ;;  %v1397_v20 = vld [vmem:[%s14176_s3 + $0x1b8] sm:$0xff]  ;;  %v1396_v23 = vld [vmem:[%s14176_s3 + $0x1b0] sm:$0xff] }
  0x2f   :  { %719 = vmatprep.mubr.f32.mxu1 %v11478_v3  ;;  %8288 = vmatpush1.bf16.msra.mxu0 %v11842_v12  ;;  %v12031_v11 = vpack.c.bf16 %v1395_v9, %v1391_v8  ;;  %v12051_v21 = vpack.c.bf16 %v1397_v20, %v1393_v19  ;;  %v57_v28 = vld [vmem:[%s14177_s0 + $0x98] sm:$0xff]  ;;  %v58_v29 = vld [vmem:[%s14177_s0 + $0xa0] sm:$0xff]  ;;  %v59_v31 = vld [vmem:[%s14177_s0 + $0xa8] sm:$0xff] }
  0x30   :  { %8320 = vmatpush1.bf16.msra.mxu1 %v11846_v13  ;;  %8290 = vmatprep.subr.bf16.mxu0 %v11848_v14  ;;  %v60_v32 = vld [vmem:[%s14177_s0 + $0xb0] sm:$0xff]  ;;  %v1402_v44 = vld [vmem:[%s14176_s3 + $0x1e0] sm:$0xff]  ;;  %v1405_v53 = vld [vmem:[%s14176_s3 + $0x1f8] sm:$0xff] }
  0x31   :  { %271 = vmatmul.mubr.f32.gmra.mrb[6].mxu0 %v41_v22  ;;  %8322 = vmatprep.subr.bf16.mxu1 %v11860_v18  ;;  %v64_v48 = vld [vmem:[%s14177_s0 + $0xd0] sm:$0xff]  ;;  %v71_v8 = vld [vmem:[%s14177_s0 + $0x108] sm:$0xff]  ;;  %v73_v10 = vld [vmem:[%s14177_s0 + $0x118] sm:$0xff] }
  0x32   :  { %720 = vmatmul.mubr.f32.gmra.mrb[6].mxu1 %v41_v22  ;;  %276 = vmatprep.mubr.f32.mxu0 %v11478_v3  ;;  %v1392_v22 = vld [vmem:[%s14176_s3 + $0x190] sm:$0xff]  ;;  %v74_v15 = vld [vmem:[%s14177_s0 + $0x120] sm:$0xff]  ;;  %v77_v20 = vld [vmem:[%s14177_s0 + $0x138] sm:$0xff] }
  0x33   :  { %725 = vmatprep.mubr.f32.mxu1 %v11478_v3  ;;  %8292 = vmatpush1.bf16.msra.mxu0 %v11880_v24  ;;  %v12059_v25 = vpack.c.bf16 %v1396_v23, %v1392_v22  ;;  %v1400_v57 = vld [vmem:[%s14176_s3 + $0x1d0] sm:$0xff]  ;;  %v78_v22 = vld [vmem:[%s14177_s0 + $0x140] sm:$0xff]  ;;  %v79_v23 = vld [vmem:[%s14177_s0 + $0x148] sm:$0xff] }
  0x34   :  { %8324 = vmatpush1.bf16.msra.mxu1 %v11887_v26  ;;  %8294 = vmatprep.subr.bf16.mxu0 %v11889_v27  ;;  %v1404_v58 = vld [vmem:[%s14176_s3 + $0x1f0] sm:$0xff] }
  0x35   :  { %277 = vmatmul.mubr.f32.gmra.mrb[8].mxu0 %v42_v33  ;;  %8326 = vmatprep.subr.bf16.mxu1 %v11898_v30  ;;  %v72_v9 = vld [vmem:[%s14177_s0 + $0x110] sm:$0xff] }
  0x36   :  { %726 = vmatmul.mubr.f32.gmra.mrb[8].mxu1 %v42_v33  ;;  %282 = vmatprep.mubr.f32.mxu0 %v11478_v3  ;;  %v61_v33 = vld [vmem:[%s14177_s0 + $0xb8] sm:$0xff]  ;;  %v76_v19 = vld [vmem:[%s14177_s0 + $0x130] sm:$0xff] }
  0x37   :  { %731 = vmatprep.mubr.f32.mxu1 %v11478_v3  ;;  %8296 = vmatpush1.bf16.msra.mxu0 %v11912_v34 }
  0x38   :  { %8328 = vmatpush1.bf16.msra.mxu1 %v11916_v35  ;;  %8298 = vmatprep.subr.bf16.mxu0 %v11955_v46 }
  0x39   :  { %283 = vmatmul.mubr.f32.gmra.mrb[10].mxu0 %v43_v36  ;;  %8330 = vmatprep.subr.bf16.mxu1 %v11975_v56 }
  0x3a   :  { %732 = vmatmul.mubr.f32.gmra.mrb[10].mxu1 %v43_v36  ;;  %288 = vmatprep.mubr.f32.mxu0 %v11478_v3  ;;  %v62_v36 = vld [vmem:[%s14177_s0 + $0xc0] sm:$0xff] }
  0x3b   :  { %737 = vmatprep.mubr.f32.mxu1 %v11478_v3  ;;  %8300 = vmatpush1.bf16.msra.mxu0 %v11960_v49 }
  0x3c   :  { %8332 = vmatpush1.bf16.msra.mxu1 %v11983_v59  ;;  %8302 = vmatprep.subr.bf16.mxu0 %v12031_v11 }
  0x3d   :  { %289 = vmatmul.mubr.f32.gmra.mrb[12].mxu0 %v44_v37  ;;  %8334 = vmatprep.subr.bf16.mxu1 %v12051_v21 }
  0x3e   :  { %738 = vmatmul.mubr.f32.gmra.mrb[12].mxu1 %v44_v37  ;;  %294 = vmatprep.mubr.f32.mxu0 %v11478_v3  ;;  %v63_v37 = vld [vmem:[%s14177_s0 + $0xc8] sm:$0xff] }
  0x3f   :  { %743 = vmatprep.mubr.f32.mxu1 %v11478_v3  ;;  %8304 = vmatpush1.bf16.msra.mxu0 %v12036_v16 }
  0x40   :  { %8336 = vmatpush1.bf16.msra.mxu1 %v12059_v25 }
  0x41   :  { %295 = vmatmul.mubr.f32.gmra.mrb[14].mxu0 %v45_v39 }
  0x42   :  { %744 = vmatmul.mubr.f32.gmra.mrb[14].mxu1 %v45_v39  ;;  %300 = vmatprep.mubr.f32.mxu0 %v11478_v3  ;;  %v1399_v39 = vld [vmem:[%s14176_s3 + $0x1c8] sm:$0xff] }
  0x43   :  { %749 = vmatprep.mubr.f32.mxu1 %v11478_v3 }
  0x45   :  { %301 = vmatmul.mubr.f32.gmra.mrb[16].mxu0 %v46_v40 }
  0x46   :  { %750 = vmatmul.mubr.f32.gmra.mrb[16].mxu1 %v46_v40  ;;  %306 = vmatprep.mubr.f32.mxu0 %v11478_v3  ;;  %v1403_v40 = vld [vmem:[%s14176_s3 + $0x1e8] sm:$0xff] }
  0x47   :  { %755 = vmatprep.mubr.f32.mxu1 %v11478_v3  ;;  %v12107_v43 = vpack.c.bf16 %v1403_v40, %v1399_v39  ;;  %v87_v39 = vld [vmem:[%s14177_s0 + $0x188] sm:$0xff]  ;;  %v88_v40 = vld [vmem:[%s14177_s0 + $0x190] sm:$0xff] }
  0x49   :  { %307 = vmatmul.mubr.f32.gmra.mrb[18].mxu0 %v47_v42  ;;  %8306 = vmatprep.subr.bf16.mxu0 %v12107_v43 }
  0x4a   :  { %756 = vmatmul.mubr.f32.gmra.mrb[18].mxu1 %v47_v42  ;;  %312 = vmatprep.mubr.f32.mxu0 %v11478_v3  ;;  %v1398_v42 = vld [vmem:[%s14176_s3 + $0x1c0] sm:$0xff] }
  0x4b   :  { %761 = vmatprep.mubr.f32.mxu1 %v11478_v3  ;;  %v12112_v45 = vpack.c.bf16 %v1402_v44, %v1398_v42  ;;  %v89_v42 = vld [vmem:[%s14177_s0 + $0x198] sm:$0xff]  ;;  %v90_v44 = vld [vmem:[%s14177_s0 + $0x1a0] sm:$0xff] }
  0x4d   :  { %313 = vmatmul.mubr.f32.gmra.mrb[20].mxu0 %v48_v52 }
  0x4e   :  { %762 = vmatmul.mubr.f32.gmra.mrb[20].mxu1 %v48_v52  ;;  %318 = vmatprep.mubr.f32.mxu0 %v11478_v3  ;;  %v1401_v52 = vld [vmem:[%s14176_s3 + $0x1d8] sm:$0xff] }
  0x4f   :  { %767 = vmatprep.mubr.f32.mxu1 %v11478_v3  ;;  %8308 = vmatpush1.bf16.msra.mxu0 %v12112_v45  ;;  %v12127_v54 = vpack.c.bf16 %v1405_v53, %v1401_v52  ;;  %v92_v52 = vld [vmem:[%s14177_s0 + $0x1b0] sm:$0xff]  ;;  %v93_v53 = vld [vmem:[%s14177_s0 + $0x1b8] sm:$0xff] }
  0x50   :  { %8342 = vmatprep.subr.bf16.mxu0 %v11730_v38 }
  0x51   :  { %319 = vmatmul.mubr.f32.gmra.mrb[22].mxu0 %v49_v60  ;;  %8338 = vmatprep.subr.bf16.mxu1 %v12127_v54 }
  0x52   :  { %768 = vmatmul.mubr.f32.gmra.mrb[22].mxu1 %v49_v60  ;;  %324 = vmatprep.mubr.f32.mxu0 %v11478_v3  ;;  %v12135_v60 = vpack.c.bf16 %v1404_v58, %v1400_v57  ;;  %v94_v57 = vld [vmem:[%s14177_s0 + $0x1c0] sm:$0xff]  ;;  %v95_v58 = vld [vmem:[%s14177_s0 + $0x1c8] sm:$0xff] }
  0x53   :  { %773 = vmatprep.mubr.f32.mxu1 %v11478_v3 }
  0x54   :  { %8340 = vmatpush1.bf16.msra.mxu1 %v12135_v60 }
  0x55   :  { %325 = vmatmul.mubr.f32.gmra.mrb[24].mxu0 %v50_v61  ;;  %8374 = vmatprep.subr.bf16.mxu1 %v11738_v41 }
  0x56   :  { %774 = vmatmul.mubr.f32.gmra.mrb[24].mxu1 %v50_v61  ;;  %330 = vmatprep.mubr.f32.mxu0 %v11478_v3  ;;  %v65_v61 = vld [vmem:[%s14177_s0 + $0xd8] sm:$0xff] }
  0x57   :  { %779 = vmatprep.mubr.f32.mxu1 %v11478_v3 }
  0x59   :  { %331 = vmatmul.mubr.f32.gmra.mrb[26].mxu0 %v51_v1 }
  0x5a   :  { %780 = vmatmul.mubr.f32.gmra.mrb[26].mxu1 %v51_v1  ;;  %336 = vmatprep.mubr.f32.mxu0 %v11478_v3  ;;  %v66_v1 = vld [vmem:[%s14177_s0 + $0xe0] sm:$0xff] }
  0x5b   :  { %785 = vmatprep.mubr.f32.mxu1 %v11478_v3 }
  0x5d   :  { %337 = vmatmul.mubr.f32.gmra.mrb[28].mxu0 %v52_v2 }
  0x5e   :  { %786 = vmatmul.mubr.f32.gmra.mrb[28].mxu1 %v52_v2  ;;  %342 = vmatprep.mubr.f32.mxu0 %v11478_v3  ;;  %v67_v2 = vld [vmem:[%s14177_s0 + $0xe8] sm:$0xff] }
  0x5f   :  { %791 = vmatprep.mubr.f32.mxu1 %v11478_v3 }
  0x61   :  { %343 = vmatmul.mubr.f32.gmra.mrb[30].mxu0 %v53_v4 }
  0x62   :  { %792 = vmatmul.mubr.f32.gmra.mrb[30].mxu1 %v53_v4  ;;  %348 = vmatprep.mubr.f32.mxu0 %v11478_v3  ;;  %v68_v4 = vld [vmem:[%s14177_s0 + $0xf0] sm:$0xff] }
  0x63   :  { %797 = vmatprep.mubr.f32.mxu1 %v11478_v3 }
  0x65   :  { %349 = vmatmul.mubr.f32.gmra.mrb[32].mxu0 %v54_v6 }
  0x66   :  { %798 = vmatmul.mubr.f32.gmra.mrb[32].mxu1 %v54_v6  ;;  %354 = vmatprep.mubr.f32.mxu0 %v11478_v3  ;;  %v69_v6 = vld [vmem:[%s14177_s0 + $0xf8] sm:$0xff] }
  0x67   :  { %803 = vmatprep.mubr.f32.mxu1 %v11478_v3 }
  0x69   :  { %355 = vmatmul.mubr.f32.gmra.mrb[34].mxu0 %v55_v7 }
  0x6a   :  { %804 = vmatmul.mubr.f32.gmra.mrb[34].mxu1 %v55_v7  ;;  %360 = vmatprep.mubr.f32.mxu0 %v11478_v3  ;;  %v70_v7 = vld [vmem:[%s14177_s0 + $0x100] sm:$0xff] }
  0x6b   :  { %809 = vmatprep.mubr.f32.mxu1 %v11478_v3 }
  0x6d   :  { %361 = vmatmul.mubr.f32.gmra.mrb[36].mxu0 %v56_v17 }
  0x6e   :  { %810 = vmatmul.mubr.f32.gmra.mrb[36].mxu1 %v56_v17  ;;  %366 = vmatprep.mubr.f32.mxu0 %v11478_v3  ;;  %v75_v17 = vld [vmem:[%s14177_s0 + $0x128] sm:$0xff] }
  0x6f   :  { %815 = vmatprep.mubr.f32.mxu1 %v11478_v3 }
  0x71   :  { %367 = vmatmul.mubr.f32.gmra.mrb[38].mxu0 %v57_v28 }
  0x72   :  { %816 = vmatmul.mubr.f32.gmra.mrb[38].mxu1 %v57_v28  ;;  %372 = vmatprep.mubr.f32.mxu0 %v11478_v3  ;;  %v80_v28 = vld [vmem:[%s14177_s0 + $0x150] sm:$0xff] }
  0x73   :  { %821 = vmatprep.mubr.f32.mxu1 %v11478_v3 }
  0x75   :  { %373 = vmatmul.mubr.f32.gmra.mrb[40].mxu0 %v58_v29 }
  0x76   :  { %822 = vmatmul.mubr.f32.gmra.mrb[40].mxu1 %v58_v29  ;;  %378 = vmatprep.mubr.f32.mxu0 %v11478_v3  ;;  %v81_v29 = vld [vmem:[%s14177_s0 + $0x158] sm:$0xff] }
  0x77   :  { %827 = vmatprep.mubr.f32.mxu1 %v11478_v3 }
  0x79   :  { %379 = vmatmul.mubr.f32.gmra.mrb[42].mxu0 %v59_v31 }
  0x7a   :  { %828 = vmatmul.mubr.f32.gmra.mrb[42].mxu1 %v59_v31  ;;  %384 = vmatprep.mubr.f32.mxu0 %v11478_v3  ;;  %v82_v31 = vld [vmem:[%s14177_s0 + $0x160] sm:$0xff] }
  0x7b   :  { %833 = vmatprep.mubr.f32.mxu1 %v11478_v3 }
  0x7d   :  { %385 = vmatmul.mubr.f32.gmra.mrb[44].mxu0 %v60_v32 }
  0x7e   :  { %834 = vmatmul.mubr.f32.gmra.mrb[44].mxu1 %v60_v32  ;;  %390 = vmatprep.mubr.f32.mxu0 %v11478_v3  ;;  %v83_v32 = vld [vmem:[%s14177_s0 + $0x168] sm:$0xff] }
  0x7f   :  { %839 = vmatprep.mubr.f32.mxu1 %v11478_v3 }
  0x81   :  { %391 = vmatmul.mubr.f32.gmra.mrb[46].mxu0 %v61_v33 }
  0x82   :  { %840 = vmatmul.mubr.f32.gmra.mrb[46].mxu1 %v61_v33  ;;  %396 = vmatprep.mubr.f32.mxu0 %v11478_v3  ;;  %v84_v33 = vld [vmem:[%s14177_s0 + $0x170] sm:$0xff] }
  0x83   :  { %845 = vmatprep.mubr.f32.mxu1 %v11478_v3 }
  0x85   :  { %397 = vmatmul.mubr.f32.gmra.mrb[48].mxu0 %v62_v36 }
  0x86   :  { %846 = vmatmul.mubr.f32.gmra.mrb[48].mxu1 %v62_v36  ;;  %402 = vmatprep.mubr.f32.mxu0 %v11478_v3  ;;  %v85_v36 = vld [vmem:[%s14177_s0 + $0x178] sm:$0xff] }
  0x87   :  { %851 = vmatprep.mubr.f32.mxu1 %v11478_v3 }
  0x89   :  { %403 = vmatmul.mubr.f32.gmra.mrb[50].mxu0 %v63_v37 }
  0x8a   :  { %852 = vmatmul.mubr.f32.gmra.mrb[50].mxu1 %v63_v37  ;;  %408 = vmatprep.mubr.f32.mxu0 %v11478_v3  ;;  %v86_v37 = vld [vmem:[%s14177_s0 + $0x180] sm:$0xff] }
  0x8b   :  { %857 = vmatprep.mubr.f32.mxu1 %v11478_v3 }
  0x8d   :  { %409 = vmatmul.mubr.f32.gmra.mrb[52].mxu0 %v64_v48 }
  0x8e   :  { %858 = vmatmul.mubr.f32.gmra.mrb[52].mxu1 %v64_v48  ;;  %414 = vmatprep.mubr.f32.mxu0 %v11478_v3  ;;  %v91_v48 = vld [vmem:[%s14177_s0 + $0x1a8] sm:$0xff] }
  0x8f   :  { %863 = vmatprep.mubr.f32.mxu1 %v11478_v3 }
  0x91   :  { %415 = vmatmul.mubr.f32.gmra.mrb[54].mxu0 %v65_v61 }
  0x92   :  { %864 = vmatmul.mubr.f32.gmra.mrb[54].mxu1 %v65_v61  ;;  %420 = vmatprep.mubr.f32.mxu0 %v11478_v3  ;;  %v96_v61 = vld [vmem:[%s14177_s0 + $0x1d0] sm:$0xff] }
  0x93   :  { %869 = vmatprep.mubr.f32.mxu1 %v11478_v3 }
  0x95   :  { %421 = vmatmul.mubr.f32.gmra.mrb[56].mxu0 %v66_v1 }
  0x96   :  { %870 = vmatmul.mubr.f32.gmra.mrb[56].mxu1 %v66_v1  ;;  %426 = vmatprep.mubr.f32.mxu0 %v11478_v3  ;;  %v97_v1 = vld [vmem:[%s14177_s0 + $0x1d8] sm:$0xff] }
  0x97   :  { %875 = vmatprep.mubr.f32.mxu1 %v11478_v3 }
  0x99   :  { %427 = vmatmul.mubr.f32.gmra.mrb[58].mxu0 %v67_v2 }
  0x9a   :  { %876 = vmatmul.mubr.f32.gmra.mrb[58].mxu1 %v67_v2  ;;  %432 = vmatprep.mubr.f32.mxu0 %v11478_v3  ;;  %v98_v2 = vld [vmem:[%s14177_s0 + $0x1e0] sm:$0xff] }
  0x9b   :  { %881 = vmatprep.mubr.f32.mxu1 %v11478_v3 }
  0x9d   :  { %433 = vmatmul.mubr.f32.gmra.mrb[60].mxu0 %v68_v4 }
  0x9e   :  { %882 = vmatmul.mubr.f32.gmra.mrb[60].mxu1 %v68_v4  ;;  %438 = vmatprep.mubr.f32.mxu0 %v11478_v3  ;;  %v99_v4 = vld [vmem:[%s14177_s0 + $0x1e8] sm:$0xff] }
  0x9f   :  { %887 = vmatprep.mubr.f32.mxu1 %v11478_v3 }
  0xa1   :  { %439 = vmatmul.mubr.f32.gmra.mrb[62].mxu0 %v69_v6 }
  0xa2   :  { %888 = vmatmul.mubr.f32.gmra.mrb[62].mxu1 %v69_v6  ;;  %444 = vmatprep.mubr.f32.mxu0 %v11478_v3  ;;  %v100_v6 = vld [vmem:[%s14177_s0 + $0x1f0] sm:$0xff] }
  0xa3   :  { %893 = vmatprep.mubr.f32.mxu1 %v11478_v3 }
  0xa5   :  { %445 = vmatmul.mubr.f32.gmra.mrb[64].mxu0 %v70_v7 }
  0xa6   :  { %894 = vmatmul.mubr.f32.gmra.mrb[64].mxu1 %v70_v7  ;;  %450 = vmatprep.mubr.f32.mxu0 %v11478_v3  ;;  %v101_v7 = vld [vmem:[%s14177_s0 + $0x1f8] sm:$0xff] }
  0xa7   :  { %899 = vmatprep.mubr.f32.mxu1 %v11478_v3 }
  0xa9   :  { %451 = vmatmul.mubr.f32.gmra.mrb[66].mxu0 %v71_v8 }
  0xaa   :  { %900 = vmatmul.mubr.f32.gmra.mrb[66].mxu1 %v71_v8  ;;  %456 = vmatprep.mubr.f32.mxu0 %v11478_v3  ;;  %v30_v8 = vld [vmem:[%s14178_s4] sm:$0xff] }
  0xab   :  { %905 = vmatprep.mubr.f32.mxu1 %v11478_v3 }
  0xad   :  { %457 = vmatmul.mubr.f32.gmra.mrb[68].mxu0 %v72_v9 }
  0xae   :  { %906 = vmatmul.mubr.f32.gmra.mrb[68].mxu1 %v72_v9  ;;  %462 = vmatprep.mubr.f32.mxu0 %v11478_v3  ;;  %v31_v9 = vld [vmem:[%s14178_s4 + $0x8] sm:$0xff] }
  0xaf   :  { %911 = vmatprep.mubr.f32.mxu1 %v11478_v3 }
  0xb1   :  { %463 = vmatmul.mubr.f32.gmra.mrb[70].mxu0 %v73_v10 }
  0xb2   :  { %912 = vmatmul.mubr.f32.gmra.mrb[70].mxu1 %v73_v10  ;;  %468 = vmatprep.mubr.f32.mxu0 %v11478_v3  ;;  %v168_v10 = vlaneseq }
  0xb3   :  { %917 = vmatprep.mubr.f32.mxu1 %v11478_v3 }
  0xb5   :  { %469 = vmatmul.mubr.f32.gmra.mrb[72].mxu0 %v74_v15 }
  0xb6   :  { %918 = vmatmul.mubr.f32.gmra.mrb[72].mxu1 %v74_v15  ;;  %474 = vmatprep.mubr.f32.mxu0 %v11478_v3  ;;  %v169_v15 = vshrl.u32 %v168_v10, 7 }
  0xb7   :  { %923 = vmatprep.mubr.f32.mxu1 %v11478_v3 }
  0xb9   :  { %475 = vmatmul.mubr.f32.gmra.mrb[74].mxu0 %v75_v17 }
  0xba   :  { %924 = vmatmul.mubr.f32.gmra.mrb[74].mxu1 %v75_v17  ;;  %480 = vmatprep.mubr.f32.mxu0 %v11478_v3  ;;  %v170_v17 = vsub.s32 0, %v169_v15 }
  0xbb   :  { %929 = vmatprep.mubr.f32.mxu1 %v11478_v3 }
  0xbd   :  { %481 = vmatmul.mubr.f32.gmra.mrb[76].mxu0 %v76_v19 }
  0xbe   :  { %930 = vmatmul.mubr.f32.gmra.mrb[76].mxu1 %v76_v19  ;;  %486 = vmatprep.mubr.f32.mxu0 %v11478_v3  ;;  %v166_v19 = vld [vmem:[%s14179_s2] sm:$0xf] }
  0xbf   :  { %935 = vmatprep.mubr.f32.mxu1 %v11478_v3 }
  0xc1   :  { %487 = vmatmul.mubr.f32.gmra.mrb[78].mxu0 %v77_v20 }
  0xc2   :  { %936 = vmatmul.mubr.f32.gmra.mrb[78].mxu1 %v77_v20  ;;  %492 = vmatprep.mubr.f32.mxu0 %v11478_v3  ;;  %v174_v20 = vsub.s32 1, %v169_v15 }
  0xc3   :  { %941 = vmatprep.mubr.f32.mxu1 %v11478_v3 }
  0xc5   :  { %493 = vmatmul.mubr.f32.gmra.mrb[80].mxu0 %v78_v22 }
  0xc6   :  { %942 = vmatmul.mubr.f32.gmra.mrb[80].mxu1 %v78_v22  ;;  %498 = vmatprep.mubr.f32.mxu0 %v11478_v3  ;;  %v182_v22 = vsub.s32 3, %v169_v15 }
  0xc7   :  { %947 = vmatprep.mubr.f32.mxu1 %v11478_v3 }
  0xc9   :  { %499 = vmatmul.mubr.f32.gmra.mrb[82].mxu0 %v79_v23 }
  0xca   :  { %948 = vmatmul.mubr.f32.gmra.mrb[82].mxu1 %v79_v23  ;;  %504 = vmatprep.mubr.f32.mxu0 %v11478_v3  ;;  %v12373_v23 = vrot.slane %v166_v19, %v170_v17 }
  0xcb   :  { %953 = vmatprep.mubr.f32.mxu1 %v11478_v3 }
  0xcd   :  { %505 = vmatmul.mubr.f32.gmra.mrb[84].mxu0 %v80_v28 }
  0xce   :  { %954 = vmatmul.mubr.f32.gmra.mrb[84].mxu1 %v80_v28  ;;  %510 = vmatprep.mubr.f32.mxu0 %v11478_v3  ;;  %v12375_v28 = vrot.slane %v166_v19, %v174_v20 }
  0xcf   :  { %959 = vmatprep.mubr.f32.mxu1 %v11478_v3 }
  0xd1   :  { %511 = vmatmul.mubr.f32.gmra.mrb[86].mxu0 %v81_v29 }
  0xd2   :  { %960 = vmatmul.mubr.f32.gmra.mrb[86].mxu1 %v81_v29  ;;  %516 = vmatprep.mubr.f32.mxu0 %v11478_v3 }
  0xd3   :  { %965 = vmatprep.mubr.f32.mxu1 %v11478_v3 }
  0xd5   :  { %517 = vmatmul.mubr.f32.gmra.mrb[88].mxu0 %v82_v31 }
  0xd6   :  { %966 = vmatmul.mubr.f32.gmra.mrb[88].mxu1 %v82_v31  ;;  %522 = vmatprep.mubr.f32.mxu0 %v11478_v3  ;;  %v12377_v31 = vrot.slane %v166_v19, %v182_v22 }
  0xd7   :  { %971 = vmatprep.mubr.f32.mxu1 %v11478_v3 }
  0xd9   :  { %523 = vmatmul.mubr.f32.gmra.mrb[90].mxu0 %v83_v32 }
  0xda   :  { %972 = vmatmul.mubr.f32.gmra.mrb[90].mxu1 %v83_v32  ;;  %528 = vmatprep.mubr.f32.mxu0 %v11478_v3 }
  0xdb   :  { %977 = vmatprep.mubr.f32.mxu1 %v11478_v3 }
  0xdd   :  { %529 = vmatmul.mubr.f32.gmra.mrb[92].mxu0 %v84_v33 }
  0xde   :  { %978 = vmatmul.mubr.f32.gmra.mrb[92].mxu1 %v84_v33  ;;  %534 = vmatprep.mubr.f32.mxu0 %v11478_v3 }
  0xdf   :  { %983 = vmatprep.mubr.f32.mxu1 %v11478_v3 }
  0xe1   :  { %535 = vmatmul.mubr.f32.gmra.mrb[94].mxu0 %v85_v36 }
  0xe2   :  { %984 = vmatmul.mubr.f32.gmra.mrb[94].mxu1 %v85_v36  ;;  %540 = vmatprep.mubr.f32.mxu0 %v11478_v3 }
  0xe3   :  { %989 = vmatprep.mubr.f32.mxu1 %v11478_v3 }
  0xe5   :  { %541 = vmatmul.mubr.f32.gmra.mrb[96].mxu0 %v86_v37 }
  0xe6   :  { %990 = vmatmul.mubr.f32.gmra.mrb[96].mxu1 %v86_v37  ;;  %546 = vmatprep.mubr.f32.mxu0 %v11478_v3  ;;  %v178_v37 = vsub.s32 2, %v169_v15 }
  0xe7   :  { %995 = vmatprep.mubr.f32.mxu1 %v11478_v3 }
  0xe9   :  { %547 = vmatmul.mubr.f32.gmra.mrb[98].mxu0 %v87_v39 }
  0xea   :  { %996 = vmatmul.mubr.f32.gmra.mrb[98].mxu1 %v87_v39  ;;  %552 = vmatprep.mubr.f32.mxu0 %v11478_v3 }
  0xeb   :  { %1001 = vmatprep.mubr.f32.mxu1 %v11478_v3 }
  0xed   :  { %553 = vmatmul.mubr.f32.gmra.mrb[100].mxu0 %v88_v40 }
  0xee   :  { %1002 = vmatmul.mubr.f32.gmra.mrb[100].mxu1 %v88_v40  ;;  %558 = vmatprep.mubr.f32.mxu0 %v11478_v3 }
  0xef   :  { %1007 = vmatprep.mubr.f32.mxu1 %v11478_v3 }
  0xf1   :  { %559 = vmatmul.mubr.f32.gmra.mrb[102].mxu0 %v89_v42 }
  0xf2   :  { %1008 = vmatmul.mubr.f32.gmra.mrb[102].mxu1 %v89_v42  ;;  %564 = vmatprep.mubr.f32.mxu0 %v11478_v3 }
  0xf3   :  { %1013 = vmatprep.mubr.f32.mxu1 %v11478_v3 }
  0xf5   :  { %565 = vmatmul.mubr.f32.gmra.mrb[104].mxu0 %v90_v44 }
  0xf6   :  { %1014 = vmatmul.mubr.f32.gmra.mrb[104].mxu1 %v90_v44  ;;  %570 = vmatprep.mubr.f32.mxu0 %v11478_v3 }
  0xf7   :  { %1019 = vmatprep.mubr.f32.mxu1 %v11478_v3 }
  0xf9   :  { %571 = vmatmul.mubr.f32.gmra.mrb[106].mxu0 %v91_v48 }
  0xfa   :  { %1020 = vmatmul.mubr.f32.gmra.mrb[106].mxu1 %v91_v48  ;;  %576 = vmatprep.mubr.f32.mxu0 %v11478_v3 }
  0xfb   :  { %1025 = vmatprep.mubr.f32.mxu1 %v11478_v3 }
  0xfd   :  { %577 = vmatmul.mubr.f32.gmra.mrb[108].mxu0 %v92_v52 }
  0xfe   :  { %1026 = vmatmul.mubr.f32.gmra.mrb[108].mxu1 %v92_v52  ;;  %582 = vmatprep.mubr.f32.mxu0 %v11478_v3 }
  0xff   :  { %1031 = vmatprep.mubr.f32.mxu1 %v11478_v3 }
 0x101   :  { %583 = vmatmul.mubr.f32.gmra.mrb[110].mxu0 %v93_v53 }
 0x102   :  { %1032 = vmatmul.mubr.f32.gmra.mrb[110].mxu1 %v93_v53  ;;  %588 = vmatprep.mubr.f32.mxu0 %v11478_v3 }
 0x103   :  { %1037 = vmatprep.mubr.f32.mxu1 %v11478_v3 }
 0x105   :  { %589 = vmatmul.mubr.f32.gmra.mrb[112].mxu0 %v94_v57 }
 0x106   :  { %1038 = vmatmul.mubr.f32.gmra.mrb[112].mxu1 %v94_v57  ;;  %594 = vmatprep.mubr.f32.mxu0 %v11478_v3 }
 0x107   :  { %1043 = vmatprep.mubr.f32.mxu1 %v11478_v3 }
 0x109   :  { %595 = vmatmul.mubr.f32.gmra.mrb[114].mxu0 %v95_v58 }
 0x10a   :  { %1044 = vmatmul.mubr.f32.gmra.mrb[114].mxu1 %v95_v58  ;;  %600 = vmatprep.mubr.f32.mxu0 %v11478_v3 }
 0x10b   :  { %1049 = vmatprep.mubr.f32.mxu1 %v11478_v3 }
 0x10d   :  { %601 = vmatmul.mubr.f32.gmra.mrb[116].mxu0 %v96_v61 }
 0x10e   :  { %1050 = vmatmul.mubr.f32.gmra.mrb[116].mxu1 %v96_v61  ;;  %606 = vmatprep.mubr.f32.mxu0 %v11478_v3  ;;  %v12383_v61 = vrot.slane %v166_v19, %v178_v37  ;;  %v34_v37 = vld [vmem:[%s14180_s5] sm:$0xff] }
 0x10f   :  { %1055 = vmatprep.mubr.f32.mxu1 %v11478_v3 }
 0x111   :  { %607 = vmatmul.mubr.f32.gmra.mrb[118].mxu0 %v97_v1 }
 0x112   :  { %1056 = vmatmul.mubr.f32.gmra.mrb[118].mxu1 %v97_v1  ;;  %612 = vmatprep.mubr.f32.mxu0 %v11478_v3 }
 0x113   :  { %1061 = vmatprep.mubr.f32.mxu1 %v11478_v3 }
 0x115   :  { %613 = vmatmul.mubr.f32.gmra.mrb[120].mxu0 %v98_v2 }
 0x116   :  { %1062 = vmatmul.mubr.f32.gmra.mrb[120].mxu1 %v98_v2  ;;  %618 = vmatprep.mubr.f32.mxu0 %v11478_v3 }
 0x117   :  { %1067 = vmatprep.mubr.f32.mxu1 %v11478_v3 }
 0x119   :  { %619 = vmatmul.mubr.f32.gmra.mrb[122].mxu0 %v99_v4 }
 0x11a   :  { %1068 = vmatmul.mubr.f32.gmra.mrb[122].mxu1 %v99_v4  ;;  %624 = vmatprep.mubr.f32.mxu0 %v11478_v3 }
 0x11b   :  { %1073 = vmatprep.mubr.f32.mxu1 %v11478_v3 }
 0x11d   :  { %625 = vmatmul.mubr.f32.gmra.mrb[124].mxu0 %v100_v6 }
 0x11e   :  { %1074 = vmatmul.mubr.f32.gmra.mrb[124].mxu1 %v100_v6  ;;  %630 = vmatprep.mubr.f32.mxu0 %v11478_v3 }
 0x11f   :  { %1079 = vmatprep.mubr.f32.mxu1 %v11478_v3 }
 0x121   :  { %631 = vmatmul.mubr.f32.gmra.mrb[126].mxu0 %v101_v7 }
 0x122   :  { %1080 = vmatmul.mubr.f32.gmra.mrb[126].mxu1 %v101_v7  ;;  %1482 = vmatprep.mubr.f32.mxu0 %v11478_v3 }
 0x123   :  { %1559 = vmatprep.mubr.f32.mxu1 %v11478_v3 }
 0x125   :  { %1483 = vmatmul.mubr.f32.vlgmr.msra.gmra.mrb[0].mxu0 %v30_v8 }
 0x126   :  { %1560 = vmatmul.mubr.f32.vlgmr.msra.gmra.mrb[0].mxu1 %v30_v8  ;;  %1488 = vmatprep.mubr.f32.mxu0 %v11478_v3 }
 0x127   :  { %1565 = vmatprep.mubr.f32.mxu1 %v11478_v3  ;;  %8344 = vmatpush1.bf16.msra.mxu0 %v11755_v47 }
 0x128   :  { %8376 = vmatpush1.bf16.msra.mxu1 %v11765_v50  ;;  %8346 = vmatprep.subr.bf16.mxu0 %v11767_v51 }
 0x129   :  { %1489 = vmatmul.mubr.f32.gmra.mrb[2].mxu0 %v31_v9  ;;  %8378 = vmatprep.subr.bf16.mxu1 %v11778_v55 }
 0x12a   :  { %1566 = vmatmul.mubr.f32.gmra.mrb[2].mxu1 %v31_v9  ;;  %1691 = vmatprep.mubr.f32.mxu0 %v11478_v3 }
 0x12b   :  { %8348 = vmatpush1.bf16.msra.mxu0 %v11801_v62  ;;  %1768 = vmatprep.mubr.f32.mxu1 %v11478_v3 }
 0x12c   :  { %8380 = vmatpush1.bf16.msra.mxu1 %v11805_v63  ;;  %8350 = vmatprep.subr.bf16.mxu0 %v11807_v0 }
 0x12d   :  { %8382 = vmatprep.subr.bf16.mxu1 %v11819_v5 }
 0x12f   :  { %8352 = vmatpush1.bf16.msra.mxu0 %v11842_v12 }
 0x130   :  { %8384 = vmatpush1.bf16.msra.mxu1 %v11846_v13  ;;  %8354 = vmatprep.subr.bf16.mxu0 %v11848_v14 }
 0x131   :  { %8386 = vmatprep.subr.bf16.mxu1 %v11860_v18 }
 0x133   :  { %8356 = vmatpush1.bf16.msra.mxu0 %v11880_v24 }
 0x134   :  { %8388 = vmatpush1.bf16.msra.mxu1 %v11887_v26  ;;  %8358 = vmatprep.subr.bf16.mxu0 %v11889_v27 }
 0x135   :  { %8390 = vmatprep.subr.bf16.mxu1 %v11898_v30 }
 0x137   :  { %8360 = vmatpush1.bf16.msra.mxu0 %v11912_v34 }
 0x138   :  { %8392 = vmatpush1.bf16.msra.mxu1 %v11916_v35  ;;  %8362 = vmatprep.subr.bf16.mxu0 %v11955_v46 }
 0x139   :  { %8394 = vmatprep.subr.bf16.mxu1 %v11975_v56 }
 0x13b   :  { %8364 = vmatpush1.bf16.msra.mxu0 %v11960_v49 }
 0x13c   :  { %8396 = vmatpush1.bf16.msra.mxu1 %v11983_v59  ;;  %8366 = vmatprep.subr.bf16.mxu0 %v12031_v11 }
 0x13d   :  { %8398 = vmatprep.subr.bf16.mxu1 %v12051_v21 }
 0x13f   :  { %8368 = vmatpush1.bf16.msra.mxu0 %v12036_v16 }
 0x140   :  { %8400 = vmatpush1.bf16.msra.mxu1 %v12059_v25  ;;  %8370 = vmatprep.subr.bf16.mxu0 %v12107_v43 }
 0x141   :  { %8402 = vmatprep.subr.bf16.mxu1 %v12127_v54 }
 0x143   :  { %8372 = vmatpush1.bf16.msra.mxu0 %v12112_v45 }
 0x144   :  { %8404 = vmatpush1.bf16.msra.mxu1 %v12135_v60  ;;  %8406 = vmatprep.subr.bf16.mxu0 %v11730_v38 }
 0x145   :  { %8438 = vmatprep.subr.bf16.mxu1 %v11738_v41 }
 0x1f8   :  { %v1484_v29 = vpop.f32.mrb[0].mxu0 }
 0x1f9   :  { %v10325_v32 = vadd.f32 %v1484_v29, %v12373_v23  ;;  %v1561_v33 = vpop.f32.mrb[0].mxu1  ;;  %v1486_v36 = vpop.f32.mrb[1].mxu0 }
 0x1fa   :  { %v10326_v39 = vadd.f32 %v1486_v36, %v12375_v28  ;;  %v1563_v40 = vpop.f32.mrb[1].mxu1  ;;  %v10453_v8 = vadd.f32 %v1561_v33, %v12383_v61 }
 0x1fb   :  { %v1580_v42 = vmul.f32 0.5, %v10325_v32  ;;  %v10454_v48 = vadd.f32 %v1563_v40, %v12377_v31 }
 0x1fc   :  { %v1581_v44 = vmul.f32 0.5, %v10326_v39  ;;  %v1490_v52 = vpop.f32.mrb[2].mxu0  ;;  %v1582_v9 = vmul.f32 0.5, %v10453_v8 }
 0x1fd   :  { %10838 = vtanh.f32 %v1580_v42  ;;  %v10327_v53 = vadd.f32 %v1490_v52, %v12373_v23  ;;  %v1567_v57 = vpop.f32.mrb[2].mxu1  ;;  %v1492_v58 = vpop.f32.mrb[3].mxu0 }
 0x1fe   :  { %v10328_v1 = vadd.f32 %v1492_v58, %v12375_v28  ;;  %v1569_v2 = vpop.f32.mrb[3].mxu1  ;;  %10840 = vtanh.f32 %v1581_v44  ;;  %v10455_v10 = vadd.f32 %v1567_v57, %v12383_v61  ;;  %v35_v57 = vld [vmem:[%s14180_s5 + $0x8] sm:$0xff] }
 0x1ff   :  { %v1583_v4 = vmul.f32 0.5, %v10327_v53  ;;  %10842 = vtanh.f32 %v10454_v48  ;;  %v10456_v7 = vadd.f32 %v1569_v2, %v12377_v31 }
 0x200   :  { %v1584_v6 = vmul.f32 0.5, %v10328_v1  ;;  %v1585_v32 = vmul.f32 0.5, %v10455_v10 }
 0x201   :  { %10844 = vtanh.f32 %v1583_v4 }
 0x202   :  { %10846 = vtanh.f32 %v1584_v6 }
 0x203   :  { %10848 = vtanh.f32 %v10456_v7 }
 0x204   :  { %10850 = vtanh.f32 %v1582_v9 }
 0x205   :  { %10852 = vtanh.f32 %v1585_v32 }
 0x207   :  { %v10839_v15 = vpop.eup %10838 }
 0x208   :  { %v1592_v17 = vmul.f32 0.5, %v10839_v15  ;;  %v10841_v19 = vpop.eup %10840 }
 0x209   :  { %v10843_v20 = vpop.eup %10842  ;;  %v1593_v29 = vmul.f32 0.5, %v10841_v19 }
 0x20a   :  { %v1598_v22 = vadd.f32 0.5, %v1592_v17 }
 0x20b   :  { %v10845_v36 = vpop.eup %10844  ;;  %v1599_v39 = vadd.f32 0.5, %v1593_v29 }
 0x20c   :  { %v1608_v33 = vmul.f32 %v10843_v20, %v1598_v22  ;;  %v1595_v40 = vmul.f32 0.5, %v10845_v36  ;;  %v10847_v42 = vpop.eup %10846 }
 0x20d   :  { %v1606_v44 = vmul.f32 %v1599_v39, %v34_v37  ;;  %v1596_v52 = vmul.f32 0.5, %v10847_v42  ;;  %v10849_v53 = vpop.eup %10848 }
 0x20e   :  { %v1601_v48 = vadd.f32 0.5, %v1595_v40  ;;  %v10851_v6 = vpop.eup %10850 }
 0x20f   :  { %v12395_v58 = vadd.f32 %v1608_v33, %v1606_v44  ;;  %v1602_v1 = vadd.f32 0.5, %v1596_v52  ;;  %v1594_v8 = vmul.f32 0.5, %v10851_v6  ;;  %v10853_v9 = vpop.eup %10852 }
 0x210   :  { %v1609_v2 = vmul.f32 %v10849_v53, %v1601_v48  ;;  %v1597_v15 = vmul.f32 0.5, %v10853_v9 }
 0x211   :  { %10854 = vtanh.f32 %v12395_v58  ;;  %v1607_v4 = vmul.f32 %v1602_v1, %v35_v57  ;;  %v1600_v10 = vadd.f32 0.5, %v1594_v8 }
 0x212   :  { %v1603_v20 = vadd.f32 0.5, %v1597_v15 }
 0x213   :  { %v12398_v7 = vadd.f32 %v1609_v2, %v1607_v4 }
 0x215   :  { %10856 = vtanh.f32 %v12398_v7 }
 0x21b   :  { %v10855_v17 = vpop.eup %10854 }
 0x21c   :  { %v1614_v19 = vmul.f32 %v10855_v17, %v1600_v10 }
 0x21e   :  { %1616 = vst [vmem:[%s14181_s6] sm:$0xff] %v1614_v19  ;;  %1692 = vmatmul.mubr.f32.vlgmr.msra.gmra.mrb[4].mxu0 %v1614_v19  ;;  %1769 = vmatmul.mubr.f32.vlgmr.msra.gmra.mrb[4].mxu1 %v1614_v19 }
 0x21f   :  { %v10857_v22 = vpop.eup %10856  ;;  %1697 = vmatprep.mubr.f32.mxu0 %v11478_v3  ;;  %1774 = vmatprep.mubr.f32.mxu1 %v11478_v3 }
 0x220   :  { %v1615_v29 = vmul.f32 %v10857_v22, %v1603_v20  ;;  %8408 = vmatpush1.bf16.msra.mxu0 %v11755_v47  ;;  %8440 = vmatpush1.bf16.msra.mxu1 %v11765_v50 }
 0x221   :  { %8410 = vmatprep.subr.bf16.mxu0 %v11767_v51  ;;  %8442 = vmatprep.subr.bf16.mxu1 %v11778_v55 }
 0x222   :  { %1617 = vst [vmem:[%s14181_s6 + $0x8] sm:$0xff] %v1615_v29  ;;  %1698 = vmatmul.mubr.f32.gmra.mrb[6].mxu0 %v1615_v29  ;;  %1775 = vmatmul.mubr.f32.gmra.mrb[6].mxu1 %v1615_v29 }
 0x223   :  { %1901 = vmatprep.mubr.f32.mxu0 %v11478_v3  ;;  %1978 = vmatprep.mubr.f32.mxu1 %v11478_v3 }
 0x224   :  { %8412 = vmatpush1.bf16.msra.mxu0 %v11801_v62  ;;  %8444 = vmatpush1.bf16.msra.mxu1 %v11805_v63 }
 0x225   :  { %8414 = vmatprep.subr.bf16.mxu0 %v11807_v0  ;;  %8446 = vmatprep.subr.bf16.mxu1 %v11819_v5 }
 0x228   :  { %8416 = vmatpush1.bf16.msra.mxu0 %v11842_v12  ;;  %8448 = vmatpush1.bf16.msra.mxu1 %v11846_v13 }
 0x229   :  { %8418 = vmatprep.subr.bf16.mxu0 %v11848_v14  ;;  %8450 = vmatprep.subr.bf16.mxu1 %v11860_v18 }
 0x22c   :  { %8420 = vmatpush1.bf16.msra.mxu0 %v11880_v24  ;;  %8452 = vmatpush1.bf16.msra.mxu1 %v11887_v26 }
 0x22d   :  { %8422 = vmatprep.subr.bf16.mxu0 %v11889_v27  ;;  %8454 = vmatprep.subr.bf16.mxu1 %v11898_v30 }
 0x230   :  { %8424 = vmatpush1.bf16.msra.mxu0 %v11912_v34  ;;  %8456 = vmatpush1.bf16.msra.mxu1 %v11916_v35 }
 0x231   :  { %8426 = vmatprep.subr.bf16.mxu0 %v11955_v46  ;;  %8458 = vmatprep.subr.bf16.mxu1 %v11975_v56 }
 0x234   :  { %8428 = vmatpush1.bf16.msra.mxu0 %v11960_v49  ;;  %8460 = vmatpush1.bf16.msra.mxu1 %v11983_v59 }
 0x235   :  { %8430 = vmatprep.subr.bf16.mxu0 %v12031_v11  ;;  %8462 = vmatprep.subr.bf16.mxu1 %v12051_v21 }
 0x238   :  { %8432 = vmatpush1.bf16.msra.mxu0 %v12036_v16  ;;  %8464 = vmatpush1.bf16.msra.mxu1 %v12059_v25 }
 0x239   :  { %8434 = vmatprep.subr.bf16.mxu0 %v12107_v43  ;;  %8466 = vmatprep.subr.bf16.mxu1 %v12127_v54 }
 0x23c   :  { %8436 = vmatpush1.bf16.msra.mxu0 %v12112_v45  ;;  %8468 = vmatpush1.bf16.msra.mxu1 %v12135_v60 }
 0x23d   :  { %8470 = vmatprep.subr.bf16.mxu0 %v11730_v38  ;;  %8502 = vmatprep.subr.bf16.mxu1 %v11738_v41 }
 0x2f1   :  { %v1693_v32 = vpop.f32.mrb[4].mxu0  ;;  %v1770_v36 = vpop.f32.mrb[4].mxu1 }
 0x2f2   :  { %v10329_v37 = vadd.f32 %v1693_v32, %v12373_v23  ;;  %v1695_v39 = vpop.f32.mrb[5].mxu0  ;;  %v1772_v33 = vpop.f32.mrb[5].mxu1  ;;  %v10457_v10 = vadd.f32 %v1770_v36, %v12383_v61 }
 0x2f3   :  { %v10330_v40 = vadd.f32 %v1695_v39, %v12375_v28  ;;  %v10458_v48 = vadd.f32 %v1772_v33, %v12377_v31 }
 0x2f4   :  { %v1789_v42 = vmul.f32 0.5, %v10329_v37  ;;  %v1791_v15 = vmul.f32 0.5, %v10457_v10 }
 0x2f5   :  { %v1790_v44 = vmul.f32 0.5, %v10330_v40  ;;  %v1699_v52 = vpop.f32.mrb[6].mxu0  ;;  %v1776_v53 = vpop.f32.mrb[6].mxu1 }
 0x2f6   :  { %10858 = vtanh.f32 %v1789_v42  ;;  %v10331_v57 = vadd.f32 %v1699_v52, %v12373_v23  ;;  %v1701_v1 = vpop.f32.mrb[7].mxu0  ;;  %v1778_v2 = vpop.f32.mrb[7].mxu1  ;;  %v10459_v17 = vadd.f32 %v1776_v53, %v12383_v61 }
 0x2f7   :  { %v10332_v4 = vadd.f32 %v1701_v1, %v12375_v28  ;;  %10860 = vtanh.f32 %v1790_v44  ;;  %v10460_v9 = vadd.f32 %v1778_v2, %v12377_v31 }
 0x2f8   :  { %v1792_v6 = vmul.f32 0.5, %v10331_v57  ;;  %10862 = vtanh.f32 %v10458_v48  ;;  %v1794_v39 = vmul.f32 0.5, %v10459_v17 }
 0x2f9   :  { %v1793_v8 = vmul.f32 0.5, %v10332_v4 }
 0x2fa   :  { %10864 = vtanh.f32 %v1792_v6 }
 0x2fb   :  { %10866 = vtanh.f32 %v1793_v8 }
 0x2fc   :  { %10868 = vtanh.f32 %v10460_v9 }
 0x2fd   :  { %10870 = vtanh.f32 %v1791_v15 }
 0x2fe   :  { %10872 = vtanh.f32 %v1794_v39 }
 0x300   :  { %v10859_v19 = vpop.eup %10858 }
 0x301   :  { %v1801_v20 = vmul.f32 0.5, %v10859_v19  ;;  %v10861_v22 = vpop.eup %10860 }
 0x302   :  { %v10863_v29 = vpop.eup %10862  ;;  %v1802_v37 = vmul.f32 0.5, %v10861_v22 }
 0x303   :  { %v1807_v32 = vadd.f32 0.5, %v1801_v20 }
 0x304   :  { %v10865_v33 = vpop.eup %10864  ;;  %v1808_v40 = vadd.f32 0.5, %v1802_v37 }
 0x305   :  { %v1817_v42 = vmul.f32 %v10863_v29, %v1807_v32  ;;  %v1804_v44 = vmul.f32 0.5, %v10865_v33  ;;  %v10867_v48 = vpop.eup %10866 }
 0x306   :  { %v1815_v36 = vmul.f32 %v1808_v40, %v12395_v58  ;;  %v1805_v57 = vmul.f32 0.5, %v10867_v48  ;;  %v10869_v1 = vpop.eup %10868 }
 0x307   :  { %v1810_v52 = vadd.f32 0.5, %v1804_v44  ;;  %v10871_v8 = vpop.eup %10870 }
 0x308   :  { %v12452_v53 = vadd.f32 %v1817_v42, %v1815_v36  ;;  %v1811_v2 = vadd.f32 0.5, %v1805_v57  ;;  %v1803_v10 = vmul.f32 0.5, %v10871_v8  ;;  %v10873_v15 = vpop.eup %10872 }
 0x309   :  { %v1818_v4 = vmul.f32 %v10869_v1, %v1810_v52  ;;  %v1806_v17 = vmul.f32 0.5, %v10873_v15 }
 0x30a   :  { %10874 = vtanh.f32 %v12452_v53  ;;  %v1816_v6 = vmul.f32 %v1811_v2, %v12398_v7  ;;  %v1809_v58 = vadd.f32 0.5, %v1803_v10 }
 0x30b   :  { %v1812_v22 = vadd.f32 0.5, %v1806_v17 }
 0x30c   :  { %v12456_v9 = vadd.f32 %v1818_v4, %v1816_v6 }
 0x30e   :  { %10876 = vtanh.f32 %v12456_v9 }
 0x314   :  { %v10875_v19 = vpop.eup %10874 }
 0x315   :  { %v1823_v20 = vmul.f32 %v10875_v19, %v1809_v58 }
 0x317   :  { %8151 = vst [vmem:[%s14181_s6 + $0x10] sm:$0xff] %v1823_v20  ;;  %1902 = vmatmul.mubr.f32.vlgmr.msra.gmra.mrb[8].mxu0 %v1823_v20  ;;  %1979 = vmatmul.mubr.f32.vlgmr.msra.gmra.mrb[8].mxu1 %v1823_v20 }
 0x318   :  { %v10877_v29 = vpop.eup %10876  ;;  %1907 = vmatprep.mubr.f32.mxu0 %v11478_v3  ;;  %1984 = vmatprep.mubr.f32.mxu1 %v11478_v3 }
 0x319   :  { %v1824_v7 = vmul.f32 %v10877_v29, %v1812_v22  ;;  %8472 = vmatpush1.bf16.msra.mxu0 %v11755_v47  ;;  %8504 = vmatpush1.bf16.msra.mxu1 %v11765_v50 }
 0x31a   :  { %8474 = vmatprep.subr.bf16.mxu0 %v11767_v51  ;;  %8506 = vmatprep.subr.bf16.mxu1 %v11778_v55 }
 0x31b   :  { %8152 = vst [vmem:[%s14181_s6 + $0x18] sm:$0xff] %v1824_v7  ;;  %1908 = vmatmul.mubr.f32.gmra.mrb[10].mxu0 %v1824_v7  ;;  %1985 = vmatmul.mubr.f32.gmra.mrb[10].mxu1 %v1824_v7 }
 0x31c   :  { %2111 = vmatprep.mubr.f32.mxu0 %v11478_v3  ;;  %2188 = vmatprep.mubr.f32.mxu1 %v11478_v3 }
 0x31d   :  { %8476 = vmatpush1.bf16.msra.mxu0 %v11801_v62  ;;  %8508 = vmatpush1.bf16.msra.mxu1 %v11805_v63 }
 0x31e   :  { %8478 = vmatprep.subr.bf16.mxu0 %v11807_v0  ;;  %8510 = vmatprep.subr.bf16.mxu1 %v11819_v5 }
 0x321   :  { %8480 = vmatpush1.bf16.msra.mxu0 %v11842_v12  ;;  %8512 = vmatpush1.bf16.msra.mxu1 %v11846_v13 }
 0x322   :  { %8482 = vmatprep.subr.bf16.mxu0 %v11848_v14  ;;  %8514 = vmatprep.subr.bf16.mxu1 %v11860_v18 }
 0x325   :  { %8484 = vmatpush1.bf16.msra.mxu0 %v11880_v24  ;;  %8516 = vmatpush1.bf16.msra.mxu1 %v11887_v26 }
 0x326   :  { %8486 = vmatprep.subr.bf16.mxu0 %v11889_v27  ;;  %8518 = vmatprep.subr.bf16.mxu1 %v11898_v30 }
 0x329   :  { %8488 = vmatpush1.bf16.msra.mxu0 %v11912_v34  ;;  %8520 = vmatpush1.bf16.msra.mxu1 %v11916_v35 }
 0x32a   :  { %8490 = vmatprep.subr.bf16.mxu0 %v11955_v46  ;;  %8522 = vmatprep.subr.bf16.mxu1 %v11975_v56 }
 0x32d   :  { %8492 = vmatpush1.bf16.msra.mxu0 %v11960_v49  ;;  %8524 = vmatpush1.bf16.msra.mxu1 %v11983_v59 }
 0x32e   :  { %8494 = vmatprep.subr.bf16.mxu0 %v12031_v11  ;;  %8526 = vmatprep.subr.bf16.mxu1 %v12051_v21 }
 0x331   :  { %8496 = vmatpush1.bf16.msra.mxu0 %v12036_v16  ;;  %8528 = vmatpush1.bf16.msra.mxu1 %v12059_v25 }
 0x332   :  { %8498 = vmatprep.subr.bf16.mxu0 %v12107_v43  ;;  %8530 = vmatprep.subr.bf16.mxu1 %v12127_v54 }
 0x335   :  { %8500 = vmatpush1.bf16.msra.mxu0 %v12112_v45  ;;  %8532 = vmatpush1.bf16.msra.mxu1 %v12135_v60 }
 0x336   :  { %8534 = vmatprep.subr.bf16.mxu0 %v11730_v38  ;;  %8566 = vmatprep.subr.bf16.mxu1 %v11738_v41 }
 0x3ea   :  { %v1903_v32 = vpop.f32.mrb[8].mxu0  ;;  %v1980_v37 = vpop.f32.mrb[8].mxu1 }
 0x3eb   :  { %v10333_v39 = vadd.f32 %v1903_v32, %v12373_v23  ;;  %v1905_v33 = vpop.f32.mrb[9].mxu0  ;;  %v1982_v40 = vpop.f32.mrb[9].mxu1  ;;  %v10461_v58 = vadd.f32 %v1980_v37, %v12383_v61 }
 0x3ec   :  { %v10334_v42 = vadd.f32 %v1905_v33, %v12375_v28  ;;  %v10462_v36 = vadd.f32 %v1982_v40, %v12377_v31 }
 0x3ed   :  { %v1999_v44 = vmul.f32 0.5, %v10333_v39  ;;  %v2001_v17 = vmul.f32 0.5, %v10461_v58 }
 0x3ee   :  { %v2000_v48 = vmul.f32 0.5, %v10334_v42  ;;  %v1909_v52 = vpop.f32.mrb[10].mxu0  ;;  %v1986_v57 = vpop.f32.mrb[10].mxu1 }
 0x3ef   :  { %10878 = vtanh.f32 %v1999_v44  ;;  %v10335_v1 = vadd.f32 %v1909_v52, %v12373_v23  ;;  %v1911_v2 = vpop.f32.mrb[11].mxu0  ;;  %v1988_v4 = vpop.f32.mrb[11].mxu1  ;;  %v10463_v19 = vadd.f32 %v1986_v57, %v12383_v61 }
 0x3f0   :  { %v10336_v6 = vadd.f32 %v1911_v2, %v12375_v28  ;;  %10880 = vtanh.f32 %v2000_v48  ;;  %v10464_v15 = vadd.f32 %v1988_v4, %v12377_v31 }
 0x3f1   :  { %v2002_v8 = vmul.f32 0.5, %v10335_v1  ;;  %10882 = vtanh.f32 %v10462_v36  ;;  %v2004_v33 = vmul.f32 0.5, %v10463_v19 }
 0x3f2   :  { %v2003_v10 = vmul.f32 0.5, %v10336_v6 }
 0x3f3   :  { %10884 = vtanh.f32 %v2002_v8 }
 0x3f4   :  { %10886 = vtanh.f32 %v2003_v10 }
 0x3f5   :  { %10888 = vtanh.f32 %v10464_v15 }
 0x3f6   :  { %10890 = vtanh.f32 %v2001_v17 }
 0x3f7   :  { %10892 = vtanh.f32 %v2004_v33 }
 0x3f9   :  { %v10879_v20 = vpop.eup %10878 }
 0x3fa   :  { %v2011_v22 = vmul.f32 0.5, %v10879_v20  ;;  %v10881_v29 = vpop.eup %10880 }
 0x3fb   :  { %v10883_v7 = vpop.eup %10882  ;;  %v2012_v39 = vmul.f32 0.5, %v10881_v29 }
 0x3fc   :  { %v2017_v32 = vadd.f32 0.5, %v2011_v22 }
 0x3fd   :  { %v10885_v40 = vpop.eup %10884  ;;  %v2018_v42 = vadd.f32 0.5, %v2012_v39 }
 0x3fe   :  { %v2027_v44 = vmul.f32 %v10883_v7, %v2017_v32  ;;  %v2014_v48 = vmul.f32 0.5, %v10885_v40  ;;  %v10887_v36 = vpop.eup %10886 }
 0x3ff   :  { %v2025_v37 = vmul.f32 %v2018_v42, %v12452_v53  ;;  %v2015_v1 = vmul.f32 0.5, %v10887_v36  ;;  %v10889_v2 = vpop.eup %10888 }
 0x400   :  { %v2020_v52 = vadd.f32 0.5, %v2014_v48  ;;  %v10891_v10 = vpop.eup %10890 }
 0x401   :  { %v12510_v57 = vadd.f32 %v2027_v44, %v2025_v37  ;;  %v2021_v4 = vadd.f32 0.5, %v2015_v1  ;;  %v2013_v58 = vmul.f32 0.5, %v10891_v10  ;;  %v10893_v17 = vpop.eup %10892 }
 0x402   :  { %v2028_v6 = vmul.f32 %v10889_v2, %v2020_v52  ;;  %v2016_v19 = vmul.f32 0.5, %v10893_v17 }
 0x403   :  { %10894 = vtanh.f32 %v12510_v57  ;;  %v2026_v8 = vmul.f32 %v2021_v4, %v12456_v9  ;;  %v2019_v53 = vadd.f32 0.5, %v2013_v58 }
 0x404   :  { %v2022_v29 = vadd.f32 0.5, %v2016_v19 }
 0x405   :  { %v12514_v15 = vadd.f32 %v2028_v6, %v2026_v8 }
 0x407   :  { %10896 = vtanh.f32 %v12514_v15 }
 0x40d   :  { %v10895_v20 = vpop.eup %10894 }
 0x40e   :  { %v2033_v22 = vmul.f32 %v10895_v20, %v2019_v53 }
 0x410   :  { %8153 = vst [vmem:[%s14181_s6 + $0x20] sm:$0xff] %v2033_v22  ;;  %2112 = vmatmul.mubr.f32.vlgmr.msra.gmra.mrb[12].mxu0 %v2033_v22  ;;  %2189 = vmatmul.mubr.f32.vlgmr.msra.gmra.mrb[12].mxu1 %v2033_v22 }
 0x411   :  { %v10897_v7 = vpop.eup %10896  ;;  %2117 = vmatprep.mubr.f32.mxu0 %v11478_v3  ;;  %2194 = vmatprep.mubr.f32.mxu1 %v11478_v3 }
 0x412   :  { %v2034_v9 = vmul.f32 %v10897_v7, %v2022_v29  ;;  %8536 = vmatpush1.bf16.msra.mxu0 %v11755_v47  ;;  %8568 = vmatpush1.bf16.msra.mxu1 %v11765_v50 }
 0x413   :  { %8538 = vmatprep.subr.bf16.mxu0 %v11767_v51  ;;  %8570 = vmatprep.subr.bf16.mxu1 %v11778_v55 }
 0x414   :  { %8154 = vst [vmem:[%s14181_s6 + $0x28] sm:$0xff] %v2034_v9  ;;  %2118 = vmatmul.mubr.f32.gmra.mrb[14].mxu0 %v2034_v9  ;;  %2195 = vmatmul.mubr.f32.gmra.mrb[14].mxu1 %v2034_v9 }
 0x415   :  { %2321 = vmatprep.mubr.f32.mxu0 %v11478_v3  ;;  %2398 = vmatprep.mubr.f32.mxu1 %v11478_v3 }
 0x416   :  { %8540 = vmatpush1.bf16.msra.mxu0 %v11801_v62  ;;  %8572 = vmatpush1.bf16.msra.mxu1 %v11805_v63 }
 0x417   :  { %8542 = vmatprep.subr.bf16.mxu0 %v11807_v0  ;;  %8574 = vmatprep.subr.bf16.mxu1 %v11819_v5 }
 0x41a   :  { %8544 = vmatpush1.bf16.msra.mxu0 %v11842_v12  ;;  %8576 = vmatpush1.bf16.msra.mxu1 %v11846_v13 }
 0x41b   :  { %8546 = vmatprep.subr.bf16.mxu0 %v11848_v14  ;;  %8578 = vmatprep.subr.bf16.mxu1 %v11860_v18 }
 0x41e   :  { %8548 = vmatpush1.bf16.msra.mxu0 %v11880_v24  ;;  %8580 = vmatpush1.bf16.msra.mxu1 %v11887_v26 }
 0x41f   :  { %8550 = vmatprep.subr.bf16.mxu0 %v11889_v27  ;;  %8582 = vmatprep.subr.bf16.mxu1 %v11898_v30 }
 0x422   :  { %8552 = vmatpush1.bf16.msra.mxu0 %v11912_v34  ;;  %8584 = vmatpush1.bf16.msra.mxu1 %v11916_v35 }
 0x423   :  { %8554 = vmatprep.subr.bf16.mxu0 %v11955_v46  ;;  %8586 = vmatprep.subr.bf16.mxu1 %v11975_v56 }
 0x426   :  { %8556 = vmatpush1.bf16.msra.mxu0 %v11960_v49  ;;  %8588 = vmatpush1.bf16.msra.mxu1 %v11983_v59 }
 0x427   :  { %8558 = vmatprep.subr.bf16.mxu0 %v12031_v11  ;;  %8590 = vmatprep.subr.bf16.mxu1 %v12051_v21 }
 0x42a   :  { %8560 = vmatpush1.bf16.msra.mxu0 %v12036_v16  ;;  %8592 = vmatpush1.bf16.msra.mxu1 %v12059_v25 }
 0x42b   :  { %8562 = vmatprep.subr.bf16.mxu0 %v12107_v43  ;;  %8594 = vmatprep.subr.bf16.mxu1 %v12127_v54 }
 0x42e   :  { %8564 = vmatpush1.bf16.msra.mxu0 %v12112_v45  ;;  %8596 = vmatpush1.bf16.msra.mxu1 %v12135_v60 }
 0x42f   :  { %8598 = vmatprep.subr.bf16.mxu0 %v11730_v38  ;;  %8630 = vmatprep.subr.bf16.mxu1 %v11738_v41 }
 0x4e3   :  { %v2113_v32 = vpop.f32.mrb[12].mxu0  ;;  %v2190_v39 = vpop.f32.mrb[12].mxu1 }
 0x4e4   :  { %v10337_v33 = vadd.f32 %v2113_v32, %v12373_v23  ;;  %v2115_v40 = vpop.f32.mrb[13].mxu0  ;;  %v2192_v42 = vpop.f32.mrb[13].mxu1  ;;  %v10465_v53 = vadd.f32 %v2190_v39, %v12383_v61 }
 0x4e5   :  { %v10338_v44 = vadd.f32 %v2115_v40, %v12375_v28  ;;  %v10466_v37 = vadd.f32 %v2192_v42, %v12377_v31 }
 0x4e6   :  { %v2209_v48 = vmul.f32 0.5, %v10337_v33  ;;  %v2211_v19 = vmul.f32 0.5, %v10465_v53 }
 0x4e7   :  { %v2210_v36 = vmul.f32 0.5, %v10338_v44  ;;  %v2119_v52 = vpop.f32.mrb[14].mxu0  ;;  %v2196_v1 = vpop.f32.mrb[14].mxu1 }
 0x4e8   :  { %10898 = vtanh.f32 %v2209_v48  ;;  %v10339_v2 = vadd.f32 %v2119_v52, %v12373_v23  ;;  %v2121_v4 = vpop.f32.mrb[15].mxu0  ;;  %v2198_v6 = vpop.f32.mrb[15].mxu1  ;;  %v10467_v20 = vadd.f32 %v2196_v1, %v12383_v61 }
 0x4e9   :  { %v10340_v8 = vadd.f32 %v2121_v4, %v12375_v28  ;;  %10900 = vtanh.f32 %v2210_v36  ;;  %v10468_v17 = vadd.f32 %v2198_v6, %v12377_v31 }
 0x4ea   :  { %v2212_v10 = vmul.f32 0.5, %v10339_v2  ;;  %10902 = vtanh.f32 %v10466_v37  ;;  %v2214_v40 = vmul.f32 0.5, %v10467_v20 }
 0x4eb   :  { %v2213_v58 = vmul.f32 0.5, %v10340_v8 }
 0x4ec   :  { %10904 = vtanh.f32 %v2212_v10 }
 0x4ed   :  { %10906 = vtanh.f32 %v2213_v58 }
 0x4ee   :  { %10908 = vtanh.f32 %v10468_v17 }
 0x4ef   :  { %10910 = vtanh.f32 %v2211_v19 }
 0x4f0   :  { %10912 = vtanh.f32 %v2214_v40 }
 0x4f2   :  { %v10899_v22 = vpop.eup %10898 }
 0x4f3   :  { %v2221_v29 = vmul.f32 0.5, %v10899_v22  ;;  %v10901_v7 = vpop.eup %10900 }
 0x4f4   :  { %v10903_v9 = vpop.eup %10902  ;;  %v2222_v33 = vmul.f32 0.5, %v10901_v7 }
 0x4f5   :  { %v2227_v32 = vadd.f32 0.5, %v2221_v29 }
 0x4f6   :  { %v10905_v42 = vpop.eup %10904  ;;  %v2228_v44 = vadd.f32 0.5, %v2222_v33 }
 0x4f7   :  { %v2237_v48 = vmul.f32 %v10903_v9, %v2227_v32  ;;  %v2224_v36 = vmul.f32 0.5, %v10905_v42  ;;  %v10907_v37 = vpop.eup %10906 }
 0x4f8   :  { %v2235_v39 = vmul.f32 %v2228_v44, %v12510_v57  ;;  %v2225_v2 = vmul.f32 0.5, %v10907_v37  ;;  %v10909_v4 = vpop.eup %10908 }
 0x4f9   :  { %v2230_v52 = vadd.f32 0.5, %v2224_v36  ;;  %v10911_v58 = vpop.eup %10910 }
 0x4fa   :  { %v12568_v1 = vadd.f32 %v2237_v48, %v2235_v39  ;;  %v2231_v6 = vadd.f32 0.5, %v2225_v2  ;;  %v2223_v53 = vmul.f32 0.5, %v10911_v58  ;;  %v10913_v19 = vpop.eup %10912 }
 0x4fb   :  { %v2238_v8 = vmul.f32 %v10909_v4, %v2230_v52  ;;  %v2226_v20 = vmul.f32 0.5, %v10913_v19 }
 0x4fc   :  { %10914 = vtanh.f32 %v12568_v1  ;;  %v2236_v10 = vmul.f32 %v2231_v6, %v12514_v15  ;;  %v2229_v57 = vadd.f32 0.5, %v2223_v53 }
 0x4fd   :  { %v2232_v7 = vadd.f32 0.5, %v2226_v20 }
 0x4fe   :  { %v12572_v17 = vadd.f32 %v2238_v8, %v2236_v10 }
 0x500   :  { %10916 = vtanh.f32 %v12572_v17 }
 0x506   :  { %v10915_v22 = vpop.eup %10914 }
 0x507   :  { %v2243_v29 = vmul.f32 %v10915_v22, %v2229_v57 }
 0x509   :  { %8155 = vst [vmem:[%s14181_s6 + $0x30] sm:$0xff] %v2243_v29  ;;  %2322 = vmatmul.mubr.f32.vlgmr.msra.gmra.mrb[16].mxu0 %v2243_v29  ;;  %2399 = vmatmul.mubr.f32.vlgmr.msra.gmra.mrb[16].mxu1 %v2243_v29 }
 0x50a   :  { %v10917_v9 = vpop.eup %10916  ;;  %2327 = vmatprep.mubr.f32.mxu0 %v11478_v3  ;;  %2404 = vmatprep.mubr.f32.mxu1 %v11478_v3 }
 0x50b   :  { %v2244_v15 = vmul.f32 %v10917_v9, %v2232_v7  ;;  %8600 = vmatpush1.bf16.msra.mxu0 %v11755_v47  ;;  %8632 = vmatpush1.bf16.msra.mxu1 %v11765_v50 }
 0x50c   :  { %8602 = vmatprep.subr.bf16.mxu0 %v11767_v51  ;;  %8634 = vmatprep.subr.bf16.mxu1 %v11778_v55 }
 0x50d   :  { %8156 = vst [vmem:[%s14181_s6 + $0x38] sm:$0xff] %v2244_v15  ;;  %2328 = vmatmul.mubr.f32.gmra.mrb[18].mxu0 %v2244_v15  ;;  %2405 = vmatmul.mubr.f32.gmra.mrb[18].mxu1 %v2244_v15 }
 0x50e   :  { %2531 = vmatprep.mubr.f32.mxu0 %v11478_v3  ;;  %2608 = vmatprep.mubr.f32.mxu1 %v11478_v3 }
 0x50f   :  { %8604 = vmatpush1.bf16.msra.mxu0 %v11801_v62  ;;  %8636 = vmatpush1.bf16.msra.mxu1 %v11805_v63 }
 0x510   :  { %8606 = vmatprep.subr.bf16.mxu0 %v11807_v0  ;;  %8638 = vmatprep.subr.bf16.mxu1 %v11819_v5 }
 0x513   :  { %8608 = vmatpush1.bf16.msra.mxu0 %v11842_v12  ;;  %8640 = vmatpush1.bf16.msra.mxu1 %v11846_v13 }
 0x514   :  { %8610 = vmatprep.subr.bf16.mxu0 %v11848_v14  ;;  %8642 = vmatprep.subr.bf16.mxu1 %v11860_v18 }
 0x517   :  { %8612 = vmatpush1.bf16.msra.mxu0 %v11880_v24  ;;  %8644 = vmatpush1.bf16.msra.mxu1 %v11887_v26 }
 0x518   :  { %8614 = vmatprep.subr.bf16.mxu0 %v11889_v27  ;;  %8646 = vmatprep.subr.bf16.mxu1 %v11898_v30 }
 0x51b   :  { %8616 = vmatpush1.bf16.msra.mxu0 %v11912_v34  ;;  %8648 = vmatpush1.bf16.msra.mxu1 %v11916_v35 }
 0x51c   :  { %8618 = vmatprep.subr.bf16.mxu0 %v11955_v46  ;;  %8650 = vmatprep.subr.bf16.mxu1 %v11975_v56 }
 0x51f   :  { %8620 = vmatpush1.bf16.msra.mxu0 %v11960_v49  ;;  %8652 = vmatpush1.bf16.msra.mxu1 %v11983_v59 }
 0x520   :  { %8622 = vmatprep.subr.bf16.mxu0 %v12031_v11  ;;  %8654 = vmatprep.subr.bf16.mxu1 %v12051_v21 }
 0x523   :  { %8624 = vmatpush1.bf16.msra.mxu0 %v12036_v16  ;;  %8656 = vmatpush1.bf16.msra.mxu1 %v12059_v25 }
 0x524   :  { %8626 = vmatprep.subr.bf16.mxu0 %v12107_v43  ;;  %8658 = vmatprep.subr.bf16.mxu1 %v12127_v54 }
 0x527   :  { %8628 = vmatpush1.bf16.msra.mxu0 %v12112_v45  ;;  %8660 = vmatpush1.bf16.msra.mxu1 %v12135_v60 }
 0x528   :  { %8662 = vmatprep.subr.bf16.mxu0 %v11730_v38  ;;  %8694 = vmatprep.subr.bf16.mxu1 %v11738_v41 }
 0x5dc   :  { %v2323_v32 = vpop.f32.mrb[16].mxu0  ;;  %v2400_v33 = vpop.f32.mrb[16].mxu1 }
 0x5dd   :  { %v10341_v40 = vadd.f32 %v2323_v32, %v12373_v23  ;;  %v2325_v42 = vpop.f32.mrb[17].mxu0  ;;  %v2402_v44 = vpop.f32.mrb[17].mxu1  ;;  %v10469_v57 = vadd.f32 %v2400_v33, %v12383_v61 }
 0x5de   :  { %v10342_v48 = vadd.f32 %v2325_v42, %v12375_v28  ;;  %v10470_v39 = vadd.f32 %v2402_v44, %v12377_v31 }
 0x5df   :  { %v2419_v36 = vmul.f32 0.5, %v10341_v40  ;;  %v2421_v20 = vmul.f32 0.5, %v10469_v57 }
 0x5e0   :  { %v2420_v37 = vmul.f32 0.5, %v10342_v48  ;;  %v2329_v52 = vpop.f32.mrb[18].mxu0  ;;  %v2406_v2 = vpop.f32.mrb[18].mxu1 }
 0x5e1   :  { %10918 = vtanh.f32 %v2419_v36  ;;  %v10343_v4 = vadd.f32 %v2329_v52, %v12373_v23  ;;  %v2331_v6 = vpop.f32.mrb[19].mxu0  ;;  %v2408_v8 = vpop.f32.mrb[19].mxu1  ;;  %v10471_v22 = vadd.f32 %v2406_v2, %v12383_v61 }
 0x5e2   :  { %v10344_v10 = vadd.f32 %v2331_v6, %v12375_v28  ;;  %10920 = vtanh.f32 %v2420_v37  ;;  %v10472_v19 = vadd.f32 %v2408_v8, %v12377_v31 }
 0x5e3   :  { %v2422_v58 = vmul.f32 0.5, %v10343_v4  ;;  %10922 = vtanh.f32 %v10470_v39  ;;  %v2424_v42 = vmul.f32 0.5, %v10471_v22 }
 0x5e4   :  { %v2423_v53 = vmul.f32 0.5, %v10344_v10 }
 0x5e5   :  { %10924 = vtanh.f32 %v2422_v58 }
 0x5e6   :  { %10926 = vtanh.f32 %v2423_v53 }
 0x5e7   :  { %10928 = vtanh.f32 %v10472_v19 }
 0x5e8   :  { %10930 = vtanh.f32 %v2421_v20 }
 0x5e9   :  { %10932 = vtanh.f32 %v2424_v42 }
 0x5eb   :  { %v10919_v29 = vpop.eup %10918 }
 0x5ec   :  { %v2431_v7 = vmul.f32 0.5, %v10919_v29  ;;  %v10921_v9 = vpop.eup %10920 }
 0x5ed   :  { %v10923_v15 = vpop.eup %10922  ;;  %v2432_v40 = vmul.f32 0.5, %v10921_v9 }
 0x5ee   :  { %v2437_v32 = vadd.f32 0.5, %v2431_v7 }
 0x5ef   :  { %v10925_v44 = vpop.eup %10924  ;;  %v2438_v48 = vadd.f32 0.5, %v2432_v40 }
 0x5f0   :  { %v2447_v36 = vmul.f32 %v10923_v15, %v2437_v32  ;;  %v2434_v37 = vmul.f32 0.5, %v10925_v44  ;;  %v10927_v39 = vpop.eup %10926 }
 0x5f1   :  { %v2445_v33 = vmul.f32 %v2438_v48, %v12568_v1  ;;  %v2435_v4 = vmul.f32 0.5, %v10927_v39  ;;  %v10929_v6 = vpop.eup %10928 }
 0x5f2   :  { %v2440_v52 = vadd.f32 0.5, %v2434_v37  ;;  %v10931_v53 = vpop.eup %10930 }
 0x5f3   :  { %v12626_v2 = vadd.f32 %v2447_v36, %v2445_v33  ;;  %v2441_v8 = vadd.f32 0.5, %v2435_v4  ;;  %v2433_v57 = vmul.f32 0.5, %v10931_v53  ;;  %v10933_v20 = vpop.eup %10932 }
 0x5f4   :  { %v2448_v10 = vmul.f32 %v10929_v6, %v2440_v52  ;;  %v2436_v22 = vmul.f32 0.5, %v10933_v20 }
 0x5f5   :  { %10934 = vtanh.f32 %v12626_v2  ;;  %v2446_v58 = vmul.f32 %v2441_v8, %v12572_v17  ;;  %v2439_v1 = vadd.f32 0.5, %v2433_v57 }
 0x5f6   :  { %v2442_v9 = vadd.f32 0.5, %v2436_v22 }
 0x5f7   :  { %v12630_v19 = vadd.f32 %v2448_v10, %v2446_v58 }
 0x5f9   :  { %10936 = vtanh.f32 %v12630_v19 }
 0x5ff   :  { %v10935_v29 = vpop.eup %10934 }
 0x600   :  { %v2453_v7 = vmul.f32 %v10935_v29, %v2439_v1 }
 0x602   :  { %8157 = vst [vmem:[%s14181_s6 + $0x40] sm:$0xff] %v2453_v7  ;;  %2532 = vmatmul.mubr.f32.vlgmr.msra.gmra.mrb[20].mxu0 %v2453_v7  ;;  %2609 = vmatmul.mubr.f32.vlgmr.msra.gmra.mrb[20].mxu1 %v2453_v7 }
 0x603   :  { %v10937_v15 = vpop.eup %10936  ;;  %2537 = vmatprep.mubr.f32.mxu0 %v11478_v3  ;;  %2614 = vmatprep.mubr.f32.mxu1 %v11478_v3 }
 0x604   :  { %v2454_v17 = vmul.f32 %v10937_v15, %v2442_v9  ;;  %8664 = vmatpush1.bf16.msra.mxu0 %v11755_v47  ;;  %8696 = vmatpush1.bf16.msra.mxu1 %v11765_v50 }
 0x605   :  { %8666 = vmatprep.subr.bf16.mxu0 %v11767_v51  ;;  %8698 = vmatprep.subr.bf16.mxu1 %v11778_v55 }
 0x606   :  { %8158 = vst [vmem:[%s14181_s6 + $0x48] sm:$0xff] %v2454_v17  ;;  %2538 = vmatmul.mubr.f32.gmra.mrb[22].mxu0 %v2454_v17  ;;  %2615 = vmatmul.mubr.f32.gmra.mrb[22].mxu1 %v2454_v17 }
 0x607   :  { %2741 = vmatprep.mubr.f32.mxu0 %v11478_v3  ;;  %2818 = vmatprep.mubr.f32.mxu1 %v11478_v3 }
 0x608   :  { %8668 = vmatpush1.bf16.msra.mxu0 %v11801_v62  ;;  %8700 = vmatpush1.bf16.msra.mxu1 %v11805_v63 }
 0x609   :  { %8670 = vmatprep.subr.bf16.mxu0 %v11807_v0  ;;  %8702 = vmatprep.subr.bf16.mxu1 %v11819_v5 }
 0x60c   :  { %8672 = vmatpush1.bf16.msra.mxu0 %v11842_v12  ;;  %8704 = vmatpush1.bf16.msra.mxu1 %v11846_v13 }
 0x60d   :  { %8674 = vmatprep.subr.bf16.mxu0 %v11848_v14  ;;  %8706 = vmatprep.subr.bf16.mxu1 %v11860_v18 }
 0x610   :  { %8676 = vmatpush1.bf16.msra.mxu0 %v11880_v24  ;;  %8708 = vmatpush1.bf16.msra.mxu1 %v11887_v26 }
 0x611   :  { %8678 = vmatprep.subr.bf16.mxu0 %v11889_v27  ;;  %8710 = vmatprep.subr.bf16.mxu1 %v11898_v30 }
 0x614   :  { %8680 = vmatpush1.bf16.msra.mxu0 %v11912_v34  ;;  %8712 = vmatpush1.bf16.msra.mxu1 %v11916_v35 }
 0x615   :  { %8682 = vmatprep.subr.bf16.mxu0 %v11955_v46  ;;  %8714 = vmatprep.subr.bf16.mxu1 %v11975_v56 }
 0x618   :  { %8684 = vmatpush1.bf16.msra.mxu0 %v11960_v49  ;;  %8716 = vmatpush1.bf16.msra.mxu1 %v11983_v59 }
 0x619   :  { %8686 = vmatprep.subr.bf16.mxu0 %v12031_v11  ;;  %8718 = vmatprep.subr.bf16.mxu1 %v12051_v21 }
 0x61c   :  { %8688 = vmatpush1.bf16.msra.mxu0 %v12036_v16  ;;  %8720 = vmatpush1.bf16.msra.mxu1 %v12059_v25 }
 0x61d   :  { %8690 = vmatprep.subr.bf16.mxu0 %v12107_v43  ;;  %8722 = vmatprep.subr.bf16.mxu1 %v12127_v54 }
 0x620   :  { %8692 = vmatpush1.bf16.msra.mxu0 %v12112_v45  ;;  %8724 = vmatpush1.bf16.msra.mxu1 %v12135_v60 }
 0x621   :  { %8726 = vmatprep.subr.bf16.mxu0 %v11730_v38  ;;  %8758 = vmatprep.subr.bf16.mxu1 %v11738_v41 }
 0x6d5   :  { %v2533_v32 = vpop.f32.mrb[20].mxu0  ;;  %v2610_v40 = vpop.f32.mrb[20].mxu1 }
 0x6d6   :  { %v10345_v42 = vadd.f32 %v2533_v32, %v12373_v23  ;;  %v2535_v44 = vpop.f32.mrb[21].mxu0  ;;  %v2612_v48 = vpop.f32.mrb[21].mxu1  ;;  %v10473_v1 = vadd.f32 %v2610_v40, %v12383_v61 }
 0x6d7   :  { %v10346_v36 = vadd.f32 %v2535_v44, %v12375_v28  ;;  %v10474_v33 = vadd.f32 %v2612_v48, %v12377_v31 }
 0x6d8   :  { %v2629_v37 = vmul.f32 0.5, %v10345_v42  ;;  %v2631_v22 = vmul.f32 0.5, %v10473_v1 }
 0x6d9   :  { %v2630_v39 = vmul.f32 0.5, %v10346_v36  ;;  %v2539_v52 = vpop.f32.mrb[22].mxu0  ;;  %v2616_v4 = vpop.f32.mrb[22].mxu1 }
 0x6da   :  { %10938 = vtanh.f32 %v2629_v37  ;;  %v10347_v6 = vadd.f32 %v2539_v52, %v12373_v23  ;;  %v2541_v8 = vpop.f32.mrb[23].mxu0  ;;  %v2618_v10 = vpop.f32.mrb[23].mxu1  ;;  %v10475_v29 = vadd.f32 %v2616_v4, %v12383_v61 }
 0x6db   :  { %v10348_v58 = vadd.f32 %v2541_v8, %v12375_v28  ;;  %10940 = vtanh.f32 %v2630_v39  ;;  %v10476_v20 = vadd.f32 %v2618_v10, %v12377_v31 }
 0x6dc   :  { %v2632_v53 = vmul.f32 0.5, %v10347_v6  ;;  %10942 = vtanh.f32 %v10474_v33  ;;  %v2634_v44 = vmul.f32 0.5, %v10475_v29 }
 0x6dd   :  { %v2633_v57 = vmul.f32 0.5, %v10348_v58 }
 0x6de   :  { %10944 = vtanh.f32 %v2632_v53 }
 0x6df   :  { %10946 = vtanh.f32 %v2633_v57 }
 0x6e0   :  { %10948 = vtanh.f32 %v10476_v20 }
 0x6e1   :  { %10950 = vtanh.f32 %v2631_v22 }
 0x6e2   :  { %10952 = vtanh.f32 %v2634_v44 }
 0x6e4   :  { %v10939_v7 = vpop.eup %10938 }
 0x6e5   :  { %v2641_v9 = vmul.f32 0.5, %v10939_v7  ;;  %v10941_v15 = vpop.eup %10940 }
 0x6e6   :  { %v10943_v17 = vpop.eup %10942  ;;  %v2642_v42 = vmul.f32 0.5, %v10941_v15 }
 0x6e7   :  { %v2647_v32 = vadd.f32 0.5, %v2641_v9 }
 0x6e8   :  { %v10945_v48 = vpop.eup %10944  ;;  %v2648_v36 = vadd.f32 0.5, %v2642_v42 }
 0x6e9   :  { %v2657_v37 = vmul.f32 %v10943_v17, %v2647_v32  ;;  %v2644_v39 = vmul.f32 0.5, %v10945_v48  ;;  %v10947_v33 = vpop.eup %10946 }
 0x6ea   :  { %v2655_v40 = vmul.f32 %v2648_v36, %v12626_v2  ;;  %v2645_v6 = vmul.f32 0.5, %v10947_v33  ;;  %v10949_v8 = vpop.eup %10948 }
 0x6eb   :  { %v2650_v52 = vadd.f32 0.5, %v2644_v39  ;;  %v10951_v57 = vpop.eup %10950 }
 0x6ec   :  { %v12684_v4 = vadd.f32 %v2657_v37, %v2655_v40  ;;  %v2651_v10 = vadd.f32 0.5, %v2645_v6  ;;  %v2643_v1 = vmul.f32 0.5, %v10951_v57  ;;  %v10953_v22 = vpop.eup %10952 }
 0x6ed   :  { %v2658_v58 = vmul.f32 %v10949_v8, %v2650_v52  ;;  %v2646_v29 = vmul.f32 0.5, %v10953_v22 }
 0x6ee   :  { %10954 = vtanh.f32 %v12684_v4  ;;  %v2656_v53 = vmul.f32 %v2651_v10, %v12630_v19  ;;  %v2649_v2 = vadd.f32 0.5, %v2643_v1 }
 0x6ef   :  { %v2652_v15 = vadd.f32 0.5, %v2646_v29 }
 0x6f0   :  { %v12688_v20 = vadd.f32 %v2658_v58, %v2656_v53 }
 0x6f2   :  { %10956 = vtanh.f32 %v12688_v20 }
 0x6f8   :  { %v10955_v7 = vpop.eup %10954 }
 0x6f9   :  { %v2663_v9 = vmul.f32 %v10955_v7, %v2649_v2 }
 0x6fb   :  { %8159 = vst [vmem:[%s14181_s6 + $0x50] sm:$0xff] %v2663_v9  ;;  %2742 = vmatmul.mubr.f32.vlgmr.msra.gmra.mrb[24].mxu0 %v2663_v9  ;;  %2819 = vmatmul.mubr.f32.vlgmr.msra.gmra.mrb[24].mxu1 %v2663_v9 }
 0x6fc   :  { %v10957_v17 = vpop.eup %10956  ;;  %2747 = vmatprep.mubr.f32.mxu0 %v11478_v3  ;;  %2824 = vmatprep.mubr.f32.mxu1 %v11478_v3 }
 0x6fd   :  { %v2664_v19 = vmul.f32 %v10957_v17, %v2652_v15  ;;  %8728 = vmatpush1.bf16.msra.mxu0 %v11755_v47  ;;  %8760 = vmatpush1.bf16.msra.mxu1 %v11765_v50 }
 0x6fe   :  { %8730 = vmatprep.subr.bf16.mxu0 %v11767_v51  ;;  %8762 = vmatprep.subr.bf16.mxu1 %v11778_v55 }
 0x6ff   :  { %8160 = vst [vmem:[%s14181_s6 + $0x58] sm:$0xff] %v2664_v19  ;;  %2748 = vmatmul.mubr.f32.gmra.mrb[26].mxu0 %v2664_v19  ;;  %2825 = vmatmul.mubr.f32.gmra.mrb[26].mxu1 %v2664_v19 }
 0x700   :  { %2951 = vmatprep.mubr.f32.mxu0 %v11478_v3  ;;  %3028 = vmatprep.mubr.f32.mxu1 %v11478_v3 }
 0x701   :  { %8732 = vmatpush1.bf16.msra.mxu0 %v11801_v62  ;;  %8764 = vmatpush1.bf16.msra.mxu1 %v11805_v63 }
 0x702   :  { %8734 = vmatprep.subr.bf16.mxu0 %v11807_v0  ;;  %8766 = vmatprep.subr.bf16.mxu1 %v11819_v5 }
 0x705   :  { %8736 = vmatpush1.bf16.msra.mxu0 %v11842_v12  ;;  %8768 = vmatpush1.bf16.msra.mxu1 %v11846_v13 }
 0x706   :  { %8738 = vmatprep.subr.bf16.mxu0 %v11848_v14  ;;  %8770 = vmatprep.subr.bf16.mxu1 %v11860_v18 }
 0x709   :  { %8740 = vmatpush1.bf16.msra.mxu0 %v11880_v24  ;;  %8772 = vmatpush1.bf16.msra.mxu1 %v11887_v26 }
 0x70a   :  { %8742 = vmatprep.subr.bf16.mxu0 %v11889_v27  ;;  %8774 = vmatprep.subr.bf16.mxu1 %v11898_v30 }
 0x70d   :  { %8744 = vmatpush1.bf16.msra.mxu0 %v11912_v34  ;;  %8776 = vmatpush1.bf16.msra.mxu1 %v11916_v35 }
 0x70e   :  { %8746 = vmatprep.subr.bf16.mxu0 %v11955_v46  ;;  %8778 = vmatprep.subr.bf16.mxu1 %v11975_v56 }
 0x711   :  { %8748 = vmatpush1.bf16.msra.mxu0 %v11960_v49  ;;  %8780 = vmatpush1.bf16.msra.mxu1 %v11983_v59 }
 0x712   :  { %8750 = vmatprep.subr.bf16.mxu0 %v12031_v11  ;;  %8782 = vmatprep.subr.bf16.mxu1 %v12051_v21 }
 0x715   :  { %8752 = vmatpush1.bf16.msra.mxu0 %v12036_v16  ;;  %8784 = vmatpush1.bf16.msra.mxu1 %v12059_v25 }
 0x716   :  { %8754 = vmatprep.subr.bf16.mxu0 %v12107_v43  ;;  %8786 = vmatprep.subr.bf16.mxu1 %v12127_v54 }
 0x719   :  { %8756 = vmatpush1.bf16.msra.mxu0 %v12112_v45  ;;  %8788 = vmatpush1.bf16.msra.mxu1 %v12135_v60 }
 0x71a   :  { %8790 = vmatprep.subr.bf16.mxu0 %v11730_v38  ;;  %8822 = vmatprep.subr.bf16.mxu1 %v11738_v41 }
 0x7ce   :  { %v2743_v32 = vpop.f32.mrb[24].mxu0  ;;  %v2820_v42 = vpop.f32.mrb[24].mxu1 }
 0x7cf   :  { %v10349_v44 = vadd.f32 %v2743_v32, %v12373_v23  ;;  %v2745_v48 = vpop.f32.mrb[25].mxu0  ;;  %v2822_v36 = vpop.f32.mrb[25].mxu1  ;;  %v10477_v2 = vadd.f32 %v2820_v42, %v12383_v61 }
 0x7d0   :  { %v10350_v37 = vadd.f32 %v2745_v48, %v12375_v28  ;;  %v10478_v40 = vadd.f32 %v2822_v36, %v12377_v31 }
 0x7d1   :  { %v2839_v39 = vmul.f32 0.5, %v10349_v44  ;;  %v2841_v29 = vmul.f32 0.5, %v10477_v2 }
 0x7d2   :  { %v2840_v33 = vmul.f32 0.5, %v10350_v37  ;;  %v2749_v52 = vpop.f32.mrb[26].mxu0  ;;  %v2826_v6 = vpop.f32.mrb[26].mxu1 }
 0x7d3   :  { %10958 = vtanh.f32 %v2839_v39  ;;  %v10351_v8 = vadd.f32 %v2749_v52, %v12373_v23  ;;  %v2751_v10 = vpop.f32.mrb[27].mxu0  ;;  %v2828_v58 = vpop.f32.mrb[27].mxu1  ;;  %v10479_v7 = vadd.f32 %v2826_v6, %v12383_v61 }
 0x7d4   :  { %v10352_v53 = vadd.f32 %v2751_v10, %v12375_v28  ;;  %10960 = vtanh.f32 %v2840_v33  ;;  %v10480_v22 = vadd.f32 %v2828_v58, %v12377_v31 }
 0x7d5   :  { %v2842_v57 = vmul.f32 0.5, %v10351_v8  ;;  %10962 = vtanh.f32 %v10478_v40  ;;  %v2844_v48 = vmul.f32 0.5, %v10479_v7 }
 0x7d6   :  { %v2843_v1 = vmul.f32 0.5, %v10352_v53 }
 0x7d7   :  { %10964 = vtanh.f32 %v2842_v57 }
 0x7d8   :  { %10966 = vtanh.f32 %v2843_v1 }
 0x7d9   :  { %10968 = vtanh.f32 %v10480_v22 }
 0x7da   :  { %10970 = vtanh.f32 %v2841_v29 }
 0x7db   :  { %10972 = vtanh.f32 %v2844_v48 }
 0x7dd   :  { %v10959_v9 = vpop.eup %10958 }
 0x7de   :  { %v2851_v15 = vmul.f32 0.5, %v10959_v9  ;;  %v10961_v17 = vpop.eup %10960 }
 0x7df   :  { %v10963_v19 = vpop.eup %10962  ;;  %v2852_v44 = vmul.f32 0.5, %v10961_v17 }
 0x7e0   :  { %v2857_v32 = vadd.f32 0.5, %v2851_v15 }
 0x7e1   :  { %v10965_v36 = vpop.eup %10964  ;;  %v2858_v37 = vadd.f32 0.5, %v2852_v44 }
 0x7e2   :  { %v2867_v39 = vmul.f32 %v10963_v19, %v2857_v32  ;;  %v2854_v33 = vmul.f32 0.5, %v10965_v36  ;;  %v10967_v40 = vpop.eup %10966 }
 0x7e3   :  { %v2865_v42 = vmul.f32 %v2858_v37, %v12684_v4  ;;  %v2855_v8 = vmul.f32 0.5, %v10967_v40  ;;  %v10969_v10 = vpop.eup %10968 }
 0x7e4   :  { %v2860_v52 = vadd.f32 0.5, %v2854_v33  ;;  %v10971_v1 = vpop.eup %10970 }
 0x7e5   :  { %v12742_v6 = vadd.f32 %v2867_v39, %v2865_v42  ;;  %v2861_v58 = vadd.f32 0.5, %v2855_v8  ;;  %v2853_v2 = vmul.f32 0.5, %v10971_v1  ;;  %v10973_v29 = vpop.eup %10972 }
 0x7e6   :  { %v2868_v53 = vmul.f32 %v10969_v10, %v2860_v52  ;;  %v2856_v7 = vmul.f32 0.5, %v10973_v29 }
 0x7e7   :  { %10974 = vtanh.f32 %v12742_v6  ;;  %v2866_v57 = vmul.f32 %v2861_v58, %v12688_v20  ;;  %v2859_v4 = vadd.f32 0.5, %v2853_v2 }
 0x7e8   :  { %v2862_v17 = vadd.f32 0.5, %v2856_v7 }
 0x7e9   :  { %v12746_v22 = vadd.f32 %v2868_v53, %v2866_v57 }
 0x7eb   :  { %10976 = vtanh.f32 %v12746_v22 }
 0x7f1   :  { %v10975_v9 = vpop.eup %10974 }
 0x7f2   :  { %v2873_v15 = vmul.f32 %v10975_v9, %v2859_v4 }
 0x7f4   :  { %8161 = vst [vmem:[%s14181_s6 + $0x60] sm:$0xff] %v2873_v15  ;;  %2952 = vmatmul.mubr.f32.vlgmr.msra.gmra.mrb[28].mxu0 %v2873_v15  ;;  %3029 = vmatmul.mubr.f32.vlgmr.msra.gmra.mrb[28].mxu1 %v2873_v15 }
 0x7f5   :  { %v10977_v19 = vpop.eup %10976  ;;  %2957 = vmatprep.mubr.f32.mxu0 %v11478_v3  ;;  %3034 = vmatprep.mubr.f32.mxu1 %v11478_v3 }
 0x7f6   :  { %v2874_v20 = vmul.f32 %v10977_v19, %v2862_v17  ;;  %8792 = vmatpush1.bf16.msra.mxu0 %v11755_v47  ;;  %8824 = vmatpush1.bf16.msra.mxu1 %v11765_v50 }
 0x7f7   :  { %8794 = vmatprep.subr.bf16.mxu0 %v11767_v51  ;;  %8826 = vmatprep.subr.bf16.mxu1 %v11778_v55 }
 0x7f8   :  { %8162 = vst [vmem:[%s14181_s6 + $0x68] sm:$0xff] %v2874_v20  ;;  %2958 = vmatmul.mubr.f32.gmra.mrb[30].mxu0 %v2874_v20  ;;  %3035 = vmatmul.mubr.f32.gmra.mrb[30].mxu1 %v2874_v20 }
 0x7f9   :  { %3161 = vmatprep.mubr.f32.mxu0 %v11478_v3  ;;  %3238 = vmatprep.mubr.f32.mxu1 %v11478_v3 }
 0x7fa   :  { %8796 = vmatpush1.bf16.msra.mxu0 %v11801_v62  ;;  %8828 = vmatpush1.bf16.msra.mxu1 %v11805_v63 }
 0x7fb   :  { %8798 = vmatprep.subr.bf16.mxu0 %v11807_v0  ;;  %8830 = vmatprep.subr.bf16.mxu1 %v11819_v5 }
 0x7fe   :  { %8800 = vmatpush1.bf16.msra.mxu0 %v11842_v12  ;;  %8832 = vmatpush1.bf16.msra.mxu1 %v11846_v13 }
 0x7ff   :  { %8802 = vmatprep.subr.bf16.mxu0 %v11848_v14  ;;  %8834 = vmatprep.subr.bf16.mxu1 %v11860_v18 }
 0x802   :  { %8804 = vmatpush1.bf16.msra.mxu0 %v11880_v24  ;;  %8836 = vmatpush1.bf16.msra.mxu1 %v11887_v26 }
 0x803   :  { %8806 = vmatprep.subr.bf16.mxu0 %v11889_v27  ;;  %8838 = vmatprep.subr.bf16.mxu1 %v11898_v30 }
 0x806   :  { %8808 = vmatpush1.bf16.msra.mxu0 %v11912_v34  ;;  %8840 = vmatpush1.bf16.msra.mxu1 %v11916_v35 }
 0x807   :  { %8810 = vmatprep.subr.bf16.mxu0 %v11955_v46  ;;  %8842 = vmatprep.subr.bf16.mxu1 %v11975_v56 }
 0x80a   :  { %8812 = vmatpush1.bf16.msra.mxu0 %v11960_v49  ;;  %8844 = vmatpush1.bf16.msra.mxu1 %v11983_v59 }
 0x80b   :  { %8814 = vmatprep.subr.bf16.mxu0 %v12031_v11  ;;  %8846 = vmatprep.subr.bf16.mxu1 %v12051_v21 }
 0x80e   :  { %8816 = vmatpush1.bf16.msra.mxu0 %v12036_v16  ;;  %8848 = vmatpush1.bf16.msra.mxu1 %v12059_v25 }
 0x80f   :  { %8818 = vmatprep.subr.bf16.mxu0 %v12107_v43  ;;  %8850 = vmatprep.subr.bf16.mxu1 %v12127_v54 }
 0x812   :  { %8820 = vmatpush1.bf16.msra.mxu0 %v12112_v45  ;;  %8852 = vmatpush1.bf16.msra.mxu1 %v12135_v60 }
 0x813   :  { %8854 = vmatprep.subr.bf16.mxu0 %v11730_v38  ;;  %8886 = vmatprep.subr.bf16.mxu1 %v11738_v41 }
 0x8c7   :  { %v2953_v32 = vpop.f32.mrb[28].mxu0  ;;  %v3030_v44 = vpop.f32.mrb[28].mxu1 }
 0x8c8   :  { %v10353_v48 = vadd.f32 %v2953_v32, %v12373_v23  ;;  %v2955_v36 = vpop.f32.mrb[29].mxu0  ;;  %v3032_v37 = vpop.f32.mrb[29].mxu1  ;;  %v10481_v4 = vadd.f32 %v3030_v44, %v12383_v61 }
 0x8c9   :  { %v10354_v39 = vadd.f32 %v2955_v36, %v12375_v28  ;;  %v10482_v42 = vadd.f32 %v3032_v37, %v12377_v31 }
 0x8ca   :  { %v3049_v33 = vmul.f32 0.5, %v10353_v48  ;;  %v3051_v7 = vmul.f32 0.5, %v10481_v4 }
 0x8cb   :  { %v3050_v40 = vmul.f32 0.5, %v10354_v39  ;;  %v2959_v52 = vpop.f32.mrb[30].mxu0  ;;  %v3036_v8 = vpop.f32.mrb[30].mxu1 }
 0x8cc   :  { %10978 = vtanh.f32 %v3049_v33  ;;  %v10355_v10 = vadd.f32 %v2959_v52, %v12373_v23  ;;  %v2961_v58 = vpop.f32.mrb[31].mxu0  ;;  %v3038_v53 = vpop.f32.mrb[31].mxu1  ;;  %v10483_v9 = vadd.f32 %v3036_v8, %v12383_v61 }
 0x8cd   :  { %v10356_v57 = vadd.f32 %v2961_v58, %v12375_v28  ;;  %10980 = vtanh.f32 %v3050_v40  ;;  %v10484_v29 = vadd.f32 %v3038_v53, %v12377_v31 }
 0x8ce   :  { %v3052_v1 = vmul.f32 0.5, %v10355_v10  ;;  %10982 = vtanh.f32 %v10482_v42  ;;  %v3054_v36 = vmul.f32 0.5, %v10483_v9 }
 0x8cf   :  { %v3053_v2 = vmul.f32 0.5, %v10356_v57 }
 0x8d0   :  { %10984 = vtanh.f32 %v3052_v1 }
 0x8d1   :  { %10986 = vtanh.f32 %v3053_v2 }
 0x8d2   :  { %10988 = vtanh.f32 %v10484_v29 }
 0x8d3   :  { %10990 = vtanh.f32 %v3051_v7 }
 0x8d4   :  { %10992 = vtanh.f32 %v3054_v36 }
 0x8d6   :  { %v10979_v15 = vpop.eup %10978 }
 0x8d7   :  { %v3061_v17 = vmul.f32 0.5, %v10979_v15  ;;  %v10981_v19 = vpop.eup %10980 }
 0x8d8   :  { %v10983_v20 = vpop.eup %10982  ;;  %v3062_v48 = vmul.f32 0.5, %v10981_v19 }
 0x8d9   :  { %v3067_v32 = vadd.f32 0.5, %v3061_v17 }
 0x8da   :  { %v10985_v37 = vpop.eup %10984  ;;  %v3068_v39 = vadd.f32 0.5, %v3062_v48 }
 0x8db   :  { %v3077_v33 = vmul.f32 %v10983_v20, %v3067_v32  ;;  %v3064_v40 = vmul.f32 0.5, %v10985_v37  ;;  %v10987_v42 = vpop.eup %10986 }
 0x8dc   :  { %v3075_v44 = vmul.f32 %v3068_v39, %v12742_v6  ;;  %v3065_v10 = vmul.f32 0.5, %v10987_v42  ;;  %v10989_v58 = vpop.eup %10988 }
 0x8dd   :  { %v3070_v52 = vadd.f32 0.5, %v3064_v40  ;;  %v10991_v2 = vpop.eup %10990 }
 0x8de   :  { %v12800_v8 = vadd.f32 %v3077_v33, %v3075_v44  ;;  %v3071_v53 = vadd.f32 0.5, %v3065_v10  ;;  %v3063_v4 = vmul.f32 0.5, %v10991_v2  ;;  %v10993_v7 = vpop.eup %10992 }
 0x8df   :  { %v3078_v57 = vmul.f32 %v10989_v58, %v3070_v52  ;;  %v3066_v9 = vmul.f32 0.5, %v10993_v7 }
 0x8e0   :  { %10994 = vtanh.f32 %v12800_v8  ;;  %v3076_v1 = vmul.f32 %v3071_v53, %v12746_v22  ;;  %v3069_v6 = vadd.f32 0.5, %v3063_v4 }
 0x8e1   :  { %v3072_v19 = vadd.f32 0.5, %v3066_v9 }
 0x8e2   :  { %v12804_v29 = vadd.f32 %v3078_v57, %v3076_v1 }
 0x8e4   :  { %10996 = vtanh.f32 %v12804_v29 }
 0x8ea   :  { %v10995_v15 = vpop.eup %10994 }
 0x8eb   :  { %v3083_v17 = vmul.f32 %v10995_v15, %v3069_v6 }
 0x8ed   :  { %8163 = vst [vmem:[%s14181_s6 + $0x70] sm:$0xff] %v3083_v17  ;;  %3162 = vmatmul.mubr.f32.vlgmr.msra.gmra.mrb[32].mxu0 %v3083_v17  ;;  %3239 = vmatmul.mubr.f32.vlgmr.msra.gmra.mrb[32].mxu1 %v3083_v17 }
 0x8ee   :  { %v10997_v20 = vpop.eup %10996  ;;  %3167 = vmatprep.mubr.f32.mxu0 %v11478_v3  ;;  %3244 = vmatprep.mubr.f32.mxu1 %v11478_v3 }
 0x8ef   :  { %v3084_v22 = vmul.f32 %v10997_v20, %v3072_v19  ;;  %8856 = vmatpush1.bf16.msra.mxu0 %v11755_v47  ;;  %8888 = vmatpush1.bf16.msra.mxu1 %v11765_v50 }
 0x8f0   :  { %8858 = vmatprep.subr.bf16.mxu0 %v11767_v51  ;;  %8890 = vmatprep.subr.bf16.mxu1 %v11778_v55 }
 0x8f1   :  { %8164 = vst [vmem:[%s14181_s6 + $0x78] sm:$0xff] %v3084_v22  ;;  %3168 = vmatmul.mubr.f32.gmra.mrb[34].mxu0 %v3084_v22  ;;  %3245 = vmatmul.mubr.f32.gmra.mrb[34].mxu1 %v3084_v22 }
 0x8f2   :  { %3371 = vmatprep.mubr.f32.mxu0 %v11478_v3  ;;  %3448 = vmatprep.mubr.f32.mxu1 %v11478_v3 }
 0x8f3   :  { %8860 = vmatpush1.bf16.msra.mxu0 %v11801_v62  ;;  %8892 = vmatpush1.bf16.msra.mxu1 %v11805_v63 }
 0x8f4   :  { %8862 = vmatprep.subr.bf16.mxu0 %v11807_v0  ;;  %8894 = vmatprep.subr.bf16.mxu1 %v11819_v5 }
 0x8f7   :  { %8864 = vmatpush1.bf16.msra.mxu0 %v11842_v12  ;;  %8896 = vmatpush1.bf16.msra.mxu1 %v11846_v13 }
 0x8f8   :  { %8866 = vmatprep.subr.bf16.mxu0 %v11848_v14  ;;  %8898 = vmatprep.subr.bf16.mxu1 %v11860_v18 }
 0x8fb   :  { %8868 = vmatpush1.bf16.msra.mxu0 %v11880_v24  ;;  %8900 = vmatpush1.bf16.msra.mxu1 %v11887_v26 }
 0x8fc   :  { %8870 = vmatprep.subr.bf16.mxu0 %v11889_v27  ;;  %8902 = vmatprep.subr.bf16.mxu1 %v11898_v30 }
 0x8ff   :  { %8872 = vmatpush1.bf16.msra.mxu0 %v11912_v34  ;;  %8904 = vmatpush1.bf16.msra.mxu1 %v11916_v35 }
 0x900   :  { %8874 = vmatprep.subr.bf16.mxu0 %v11955_v46  ;;  %8906 = vmatprep.subr.bf16.mxu1 %v11975_v56 }
 0x903   :  { %8876 = vmatpush1.bf16.msra.mxu0 %v11960_v49  ;;  %8908 = vmatpush1.bf16.msra.mxu1 %v11983_v59 }
 0x904   :  { %8878 = vmatprep.subr.bf16.mxu0 %v12031_v11  ;;  %8910 = vmatprep.subr.bf16.mxu1 %v12051_v21 }
 0x907   :  { %8880 = vmatpush1.bf16.msra.mxu0 %v12036_v16  ;;  %8912 = vmatpush1.bf16.msra.mxu1 %v12059_v25 }
 0x908   :  { %8882 = vmatprep.subr.bf16.mxu0 %v12107_v43  ;;  %8914 = vmatprep.subr.bf16.mxu1 %v12127_v54 }
 0x90b   :  { %8884 = vmatpush1.bf16.msra.mxu0 %v12112_v45  ;;  %8916 = vmatpush1.bf16.msra.mxu1 %v12135_v60 }
 0x90c   :  { %8918 = vmatprep.subr.bf16.mxu0 %v11730_v38  ;;  %8950 = vmatprep.subr.bf16.mxu1 %v11738_v41 }
 0x9c0   :  { %v3163_v32 = vpop.f32.mrb[32].mxu0  ;;  %v3240_v48 = vpop.f32.mrb[32].mxu1 }
 0x9c1   :  { %v10357_v36 = vadd.f32 %v3163_v32, %v12373_v23  ;;  %v3165_v37 = vpop.f32.mrb[33].mxu0  ;;  %v3242_v39 = vpop.f32.mrb[33].mxu1  ;;  %v10485_v6 = vadd.f32 %v3240_v48, %v12383_v61 }
 0x9c2   :  { %v10358_v33 = vadd.f32 %v3165_v37, %v12375_v28  ;;  %v10486_v44 = vadd.f32 %v3242_v39, %v12377_v31 }
 0x9c3   :  { %v3259_v40 = vmul.f32 0.5, %v10357_v36  ;;  %v3261_v9 = vmul.f32 0.5, %v10485_v6 }
 0x9c4   :  { %v3260_v42 = vmul.f32 0.5, %v10358_v33  ;;  %v3169_v52 = vpop.f32.mrb[34].mxu0  ;;  %v3246_v10 = vpop.f32.mrb[34].mxu1 }
 0x9c5   :  { %10998 = vtanh.f32 %v3259_v40  ;;  %v10359_v58 = vadd.f32 %v3169_v52, %v12373_v23  ;;  %v3171_v53 = vpop.f32.mrb[35].mxu0  ;;  %v3248_v57 = vpop.f32.mrb[35].mxu1  ;;  %v10487_v15 = vadd.f32 %v3246_v10, %v12383_v61 }
 0x9c6   :  { %v10360_v1 = vadd.f32 %v3171_v53, %v12375_v28  ;;  %11000 = vtanh.f32 %v3260_v42  ;;  %v10488_v7 = vadd.f32 %v3248_v57, %v12377_v31 }
 0x9c7   :  { %v3262_v2 = vmul.f32 0.5, %v10359_v58  ;;  %11002 = vtanh.f32 %v10486_v44  ;;  %v3264_v37 = vmul.f32 0.5, %v10487_v15 }
 0x9c8   :  { %v3263_v4 = vmul.f32 0.5, %v10360_v1 }
 0x9c9   :  { %11004 = vtanh.f32 %v3262_v2 }
 0x9ca   :  { %11006 = vtanh.f32 %v3263_v4 }
 0x9cb   :  { %11008 = vtanh.f32 %v10488_v7 }
 0x9cc   :  { %11010 = vtanh.f32 %v3261_v9 }
 0x9cd   :  { %11012 = vtanh.f32 %v3264_v37 }
 0x9cf   :  { %v10999_v17 = vpop.eup %10998 }
 0x9d0   :  { %v3271_v19 = vmul.f32 0.5, %v10999_v17  ;;  %v11001_v20 = vpop.eup %11000 }
 0x9d1   :  { %v11003_v22 = vpop.eup %11002  ;;  %v3272_v36 = vmul.f32 0.5, %v11001_v20 }
 0x9d2   :  { %v3277_v32 = vadd.f32 0.5, %v3271_v19 }
 0x9d3   :  { %v11005_v39 = vpop.eup %11004  ;;  %v3278_v33 = vadd.f32 0.5, %v3272_v36 }
 0x9d4   :  { %v3287_v40 = vmul.f32 %v11003_v22, %v3277_v32  ;;  %v3274_v42 = vmul.f32 0.5, %v11005_v39  ;;  %v11007_v44 = vpop.eup %11006 }
 0x9d5   :  { %v3285_v48 = vmul.f32 %v3278_v33, %v12800_v8  ;;  %v3275_v58 = vmul.f32 0.5, %v11007_v44  ;;  %v11009_v53 = vpop.eup %11008 }
 0x9d6   :  { %v3280_v52 = vadd.f32 0.5, %v3274_v42  ;;  %v11011_v4 = vpop.eup %11010 }
 0x9d7   :  { %v12858_v10 = vadd.f32 %v3287_v40, %v3285_v48  ;;  %v3281_v57 = vadd.f32 0.5, %v3275_v58  ;;  %v3273_v6 = vmul.f32 0.5, %v11011_v4  ;;  %v11013_v9 = vpop.eup %11012 }
 0x9d8   :  { %v3288_v1 = vmul.f32 %v11009_v53, %v3280_v52  ;;  %v3276_v15 = vmul.f32 0.5, %v11013_v9 }
 0x9d9   :  { %11014 = vtanh.f32 %v12858_v10  ;;  %v3286_v2 = vmul.f32 %v3281_v57, %v12804_v29  ;;  %v3279_v8 = vadd.f32 0.5, %v3273_v6 }
 0x9da   :  { %v3282_v20 = vadd.f32 0.5, %v3276_v15 }
 0x9db   :  { %v12862_v7 = vadd.f32 %v3288_v1, %v3286_v2 }
 0x9dd   :  { %11016 = vtanh.f32 %v12862_v7 }
 0x9e3   :  { %v11015_v17 = vpop.eup %11014 }
 0x9e4   :  { %v3293_v19 = vmul.f32 %v11015_v17, %v3279_v8 }
 0x9e6   :  { %8165 = vst [vmem:[%s14181_s6 + $0x80] sm:$0xff] %v3293_v19  ;;  %3372 = vmatmul.mubr.f32.vlgmr.msra.gmra.mrb[36].mxu0 %v3293_v19  ;;  %3449 = vmatmul.mubr.f32.vlgmr.msra.gmra.mrb[36].mxu1 %v3293_v19 }
 0x9e7   :  { %v11017_v22 = vpop.eup %11016  ;;  %3377 = vmatprep.mubr.f32.mxu0 %v11478_v3  ;;  %3454 = vmatprep.mubr.f32.mxu1 %v11478_v3 }
 0x9e8   :  { %v3294_v29 = vmul.f32 %v11017_v22, %v3282_v20  ;;  %8920 = vmatpush1.bf16.msra.mxu0 %v11755_v47  ;;  %8952 = vmatpush1.bf16.msra.mxu1 %v11765_v50 }
 0x9e9   :  { %8922 = vmatprep.subr.bf16.mxu0 %v11767_v51  ;;  %8954 = vmatprep.subr.bf16.mxu1 %v11778_v55 }
 0x9ea   :  { %8166 = vst [vmem:[%s14181_s6 + $0x88] sm:$0xff] %v3294_v29  ;;  %3378 = vmatmul.mubr.f32.gmra.mrb[38].mxu0 %v3294_v29  ;;  %3455 = vmatmul.mubr.f32.gmra.mrb[38].mxu1 %v3294_v29 }
 0x9eb   :  { %3581 = vmatprep.mubr.f32.mxu0 %v11478_v3  ;;  %3658 = vmatprep.mubr.f32.mxu1 %v11478_v3 }
 0x9ec   :  { %8924 = vmatpush1.bf16.msra.mxu0 %v11801_v62  ;;  %8956 = vmatpush1.bf16.msra.mxu1 %v11805_v63 }
 0x9ed   :  { %8926 = vmatprep.subr.bf16.mxu0 %v11807_v0  ;;  %8958 = vmatprep.subr.bf16.mxu1 %v11819_v5 }
 0x9f0   :  { %8928 = vmatpush1.bf16.msra.mxu0 %v11842_v12  ;;  %8960 = vmatpush1.bf16.msra.mxu1 %v11846_v13 }
 0x9f1   :  { %8930 = vmatprep.subr.bf16.mxu0 %v11848_v14  ;;  %8962 = vmatprep.subr.bf16.mxu1 %v11860_v18 }
 0x9f4   :  { %8932 = vmatpush1.bf16.msra.mxu0 %v11880_v24  ;;  %8964 = vmatpush1.bf16.msra.mxu1 %v11887_v26 }
 0x9f5   :  { %8934 = vmatprep.subr.bf16.mxu0 %v11889_v27  ;;  %8966 = vmatprep.subr.bf16.mxu1 %v11898_v30 }
 0x9f8   :  { %8936 = vmatpush1.bf16.msra.mxu0 %v11912_v34  ;;  %8968 = vmatpush1.bf16.msra.mxu1 %v11916_v35 }
 0x9f9   :  { %8938 = vmatprep.subr.bf16.mxu0 %v11955_v46  ;;  %8970 = vmatprep.subr.bf16.mxu1 %v11975_v56 }
 0x9fc   :  { %8940 = vmatpush1.bf16.msra.mxu0 %v11960_v49  ;;  %8972 = vmatpush1.bf16.msra.mxu1 %v11983_v59 }
 0x9fd   :  { %8942 = vmatprep.subr.bf16.mxu0 %v12031_v11  ;;  %8974 = vmatprep.subr.bf16.mxu1 %v12051_v21 }
 0xa00   :  { %8944 = vmatpush1.bf16.msra.mxu0 %v12036_v16  ;;  %8976 = vmatpush1.bf16.msra.mxu1 %v12059_v25 }
 0xa01   :  { %8946 = vmatprep.subr.bf16.mxu0 %v12107_v43  ;;  %8978 = vmatprep.subr.bf16.mxu1 %v12127_v54 }
 0xa04   :  { %8948 = vmatpush1.bf16.msra.mxu0 %v12112_v45  ;;  %8980 = vmatpush1.bf16.msra.mxu1 %v12135_v60 }
 0xa05   :  { %8982 = vmatprep.subr.bf16.mxu0 %v11730_v38  ;;  %9014 = vmatprep.subr.bf16.mxu1 %v11738_v41 }
 0xab9   :  { %v3373_v32 = vpop.f32.mrb[36].mxu0  ;;  %v3450_v36 = vpop.f32.mrb[36].mxu1 }
 0xaba   :  { %v10361_v37 = vadd.f32 %v3373_v32, %v12373_v23  ;;  %v3375_v39 = vpop.f32.mrb[37].mxu0  ;;  %v3452_v33 = vpop.f32.mrb[37].mxu1  ;;  %v10489_v8 = vadd.f32 %v3450_v36, %v12383_v61 }
 0xabb   :  { %v10362_v40 = vadd.f32 %v3375_v39, %v12375_v28  ;;  %v10490_v48 = vadd.f32 %v3452_v33, %v12377_v31 }
 0xabc   :  { %v3469_v42 = vmul.f32 0.5, %v10361_v37  ;;  %v3471_v15 = vmul.f32 0.5, %v10489_v8 }
 0xabd   :  { %v3470_v44 = vmul.f32 0.5, %v10362_v40  ;;  %v3379_v52 = vpop.f32.mrb[38].mxu0  ;;  %v3456_v58 = vpop.f32.mrb[38].mxu1 }
 0xabe   :  { %11018 = vtanh.f32 %v3469_v42  ;;  %v10363_v53 = vadd.f32 %v3379_v52, %v12373_v23  ;;  %v3381_v57 = vpop.f32.mrb[39].mxu0  ;;  %v3458_v1 = vpop.f32.mrb[39].mxu1  ;;  %v10491_v17 = vadd.f32 %v3456_v58, %v12383_v61 }
 0xabf   :  { %v10364_v2 = vadd.f32 %v3381_v57, %v12375_v28  ;;  %11020 = vtanh.f32 %v3470_v44  ;;  %v10492_v9 = vadd.f32 %v3458_v1, %v12377_v31 }
 0xac0   :  { %v3472_v4 = vmul.f32 0.5, %v10363_v53  ;;  %11022 = vtanh.f32 %v10490_v48  ;;  %v3474_v39 = vmul.f32 0.5, %v10491_v17 }
 0xac1   :  { %v3473_v6 = vmul.f32 0.5, %v10364_v2 }
 0xac2   :  { %11024 = vtanh.f32 %v3472_v4 }
 0xac3   :  { %11026 = vtanh.f32 %v3473_v6 }
 0xac4   :  { %11028 = vtanh.f32 %v10492_v9 }
 0xac5   :  { %11030 = vtanh.f32 %v3471_v15 }
 0xac6   :  { %11032 = vtanh.f32 %v3474_v39 }
 0xac8   :  { %v11019_v19 = vpop.eup %11018 }
 0xac9   :  { %v3481_v20 = vmul.f32 0.5, %v11019_v19  ;;  %v11021_v22 = vpop.eup %11020 }
 0xaca   :  { %v11023_v29 = vpop.eup %11022  ;;  %v3482_v37 = vmul.f32 0.5, %v11021_v22 }
 0xacb   :  { %v3487_v32 = vadd.f32 0.5, %v3481_v20 }
 0xacc   :  { %v11025_v33 = vpop.eup %11024  ;;  %v3488_v40 = vadd.f32 0.5, %v3482_v37 }
 0xacd   :  { %v3497_v42 = vmul.f32 %v11023_v29, %v3487_v32  ;;  %v3484_v44 = vmul.f32 0.5, %v11025_v33  ;;  %v11027_v48 = vpop.eup %11026 }
 0xace   :  { %v3495_v36 = vmul.f32 %v3488_v40, %v12858_v10  ;;  %v3485_v53 = vmul.f32 0.5, %v11027_v48  ;;  %v11029_v57 = vpop.eup %11028 }
 0xacf   :  { %v3490_v52 = vadd.f32 0.5, %v3484_v44  ;;  %v11031_v6 = vpop.eup %11030 }
 0xad0   :  { %v12916_v58 = vadd.f32 %v3497_v42, %v3495_v36  ;;  %v3491_v1 = vadd.f32 0.5, %v3485_v53  ;;  %v3483_v8 = vmul.f32 0.5, %v11031_v6  ;;  %v11033_v15 = vpop.eup %11032 }
 0xad1   :  { %v3498_v2 = vmul.f32 %v11029_v57, %v3490_v52  ;;  %v3486_v17 = vmul.f32 0.5, %v11033_v15 }
 0xad2   :  { %11034 = vtanh.f32 %v12916_v58  ;;  %v3496_v4 = vmul.f32 %v3491_v1, %v12862_v7  ;;  %v3489_v10 = vadd.f32 0.5, %v3483_v8 }
 0xad3   :  { %v3492_v22 = vadd.f32 0.5, %v3486_v17 }
 0xad4   :  { %v12920_v9 = vadd.f32 %v3498_v2, %v3496_v4 }
 0xad6   :  { %11036 = vtanh.f32 %v12920_v9 }
 0xadc   :  { %v11035_v19 = vpop.eup %11034 }
 0xadd   :  { %v3503_v20 = vmul.f32 %v11035_v19, %v3489_v10 }
 0xadf   :  { %8167 = vst [vmem:[%s14181_s6 + $0x90] sm:$0xff] %v3503_v20  ;;  %3582 = vmatmul.mubr.f32.vlgmr.msra.gmra.mrb[40].mxu0 %v3503_v20  ;;  %3659 = vmatmul.mubr.f32.vlgmr.msra.gmra.mrb[40].mxu1 %v3503_v20 }
 0xae0   :  { %v11037_v29 = vpop.eup %11036  ;;  %3587 = vmatprep.mubr.f32.mxu0 %v11478_v3  ;;  %3664 = vmatprep.mubr.f32.mxu1 %v11478_v3 }
 0xae1   :  { %v3504_v7 = vmul.f32 %v11037_v29, %v3492_v22  ;;  %8984 = vmatpush1.bf16.msra.mxu0 %v11755_v47  ;;  %9016 = vmatpush1.bf16.msra.mxu1 %v11765_v50 }
 0xae2   :  { %8986 = vmatprep.subr.bf16.mxu0 %v11767_v51  ;;  %9018 = vmatprep.subr.bf16.mxu1 %v11778_v55 }
 0xae3   :  { %8168 = vst [vmem:[%s14181_s6 + $0x98] sm:$0xff] %v3504_v7  ;;  %3588 = vmatmul.mubr.f32.gmra.mrb[42].mxu0 %v3504_v7  ;;  %3665 = vmatmul.mubr.f32.gmra.mrb[42].mxu1 %v3504_v7 }
 0xae4   :  { %3791 = vmatprep.mubr.f32.mxu0 %v11478_v3  ;;  %3868 = vmatprep.mubr.f32.mxu1 %v11478_v3 }
 0xae5   :  { %8988 = vmatpush1.bf16.msra.mxu0 %v11801_v62  ;;  %9020 = vmatpush1.bf16.msra.mxu1 %v11805_v63 }
 0xae6   :  { %8990 = vmatprep.subr.bf16.mxu0 %v11807_v0  ;;  %9022 = vmatprep.subr.bf16.mxu1 %v11819_v5 }
 0xae9   :  { %8992 = vmatpush1.bf16.msra.mxu0 %v11842_v12  ;;  %9024 = vmatpush1.bf16.msra.mxu1 %v11846_v13 }
 0xaea   :  { %8994 = vmatprep.subr.bf16.mxu0 %v11848_v14  ;;  %9026 = vmatprep.subr.bf16.mxu1 %v11860_v18 }
 0xaed   :  { %8996 = vmatpush1.bf16.msra.mxu0 %v11880_v24  ;;  %9028 = vmatpush1.bf16.msra.mxu1 %v11887_v26 }
 0xaee   :  { %8998 = vmatprep.subr.bf16.mxu0 %v11889_v27  ;;  %9030 = vmatprep.subr.bf16.mxu1 %v11898_v30 }
 0xaf1   :  { %9000 = vmatpush1.bf16.msra.mxu0 %v11912_v34  ;;  %9032 = vmatpush1.bf16.msra.mxu1 %v11916_v35 }
 0xaf2   :  { %9002 = vmatprep.subr.bf16.mxu0 %v11955_v46  ;;  %9034 = vmatprep.subr.bf16.mxu1 %v11975_v56 }
 0xaf5   :  { %9004 = vmatpush1.bf16.msra.mxu0 %v11960_v49  ;;  %9036 = vmatpush1.bf16.msra.mxu1 %v11983_v59 }
 0xaf6   :  { %9006 = vmatprep.subr.bf16.mxu0 %v12031_v11  ;;  %9038 = vmatprep.subr.bf16.mxu1 %v12051_v21 }
 0xaf9   :  { %9008 = vmatpush1.bf16.msra.mxu0 %v12036_v16  ;;  %9040 = vmatpush1.bf16.msra.mxu1 %v12059_v25 }
 0xafa   :  { %9010 = vmatprep.subr.bf16.mxu0 %v12107_v43  ;;  %9042 = vmatprep.subr.bf16.mxu1 %v12127_v54 }
 0xafd   :  { %9012 = vmatpush1.bf16.msra.mxu0 %v12112_v45  ;;  %9044 = vmatpush1.bf16.msra.mxu1 %v12135_v60 }
 0xafe   :  { %9046 = vmatprep.subr.bf16.mxu0 %v11730_v38  ;;  %9078 = vmatprep.subr.bf16.mxu1 %v11738_v41 }
 0xbb2   :  { %v3583_v32 = vpop.f32.mrb[40].mxu0  ;;  %v3660_v37 = vpop.f32.mrb[40].mxu1 }
 0xbb3   :  { %v10365_v39 = vadd.f32 %v3583_v32, %v12373_v23  ;;  %v3585_v33 = vpop.f32.mrb[41].mxu0  ;;  %v3662_v40 = vpop.f32.mrb[41].mxu1  ;;  %v10493_v10 = vadd.f32 %v3660_v37, %v12383_v61 }
 0xbb4   :  { %v10366_v42 = vadd.f32 %v3585_v33, %v12375_v28  ;;  %v10494_v36 = vadd.f32 %v3662_v40, %v12377_v31 }
 0xbb5   :  { %v3679_v44 = vmul.f32 0.5, %v10365_v39  ;;  %v3681_v17 = vmul.f32 0.5, %v10493_v10 }
 0xbb6   :  { %v3680_v48 = vmul.f32 0.5, %v10366_v42  ;;  %v3589_v52 = vpop.f32.mrb[42].mxu0  ;;  %v3666_v53 = vpop.f32.mrb[42].mxu1 }
 0xbb7   :  { %11038 = vtanh.f32 %v3679_v44  ;;  %v10367_v57 = vadd.f32 %v3589_v52, %v12373_v23  ;;  %v3591_v1 = vpop.f32.mrb[43].mxu0  ;;  %v3668_v2 = vpop.f32.mrb[43].mxu1  ;;  %v10495_v19 = vadd.f32 %v3666_v53, %v12383_v61 }
 0xbb8   :  { %v10368_v4 = vadd.f32 %v3591_v1, %v12375_v28  ;;  %11040 = vtanh.f32 %v3680_v48  ;;  %v10496_v15 = vadd.f32 %v3668_v2, %v12377_v31 }
 0xbb9   :  { %v3682_v6 = vmul.f32 0.5, %v10367_v57  ;;  %11042 = vtanh.f32 %v10494_v36  ;;  %v3684_v33 = vmul.f32 0.5, %v10495_v19 }
 0xbba   :  { %v3683_v8 = vmul.f32 0.5, %v10368_v4 }
 0xbbb   :  { %11044 = vtanh.f32 %v3682_v6 }
 0xbbc   :  { %11046 = vtanh.f32 %v3683_v8 }
 0xbbd   :  { %11048 = vtanh.f32 %v10496_v15 }
 0xbbe   :  { %11050 = vtanh.f32 %v3681_v17 }
 0xbbf   :  { %11052 = vtanh.f32 %v3684_v33 }
 0xbc1   :  { %v11039_v20 = vpop.eup %11038 }
 0xbc2   :  { %v3691_v22 = vmul.f32 0.5, %v11039_v20  ;;  %v11041_v29 = vpop.eup %11040 }
 0xbc3   :  { %v11043_v7 = vpop.eup %11042  ;;  %v3692_v39 = vmul.f32 0.5, %v11041_v29 }
 0xbc4   :  { %v3697_v32 = vadd.f32 0.5, %v3691_v22 }
 0xbc5   :  { %v11045_v40 = vpop.eup %11044  ;;  %v3698_v42 = vadd.f32 0.5, %v3692_v39 }
 0xbc6   :  { %v3707_v44 = vmul.f32 %v11043_v7, %v3697_v32  ;;  %v3694_v48 = vmul.f32 0.5, %v11045_v40  ;;  %v11047_v36 = vpop.eup %11046 }
 0xbc7   :  { %v3705_v37 = vmul.f32 %v3698_v42, %v12916_v58  ;;  %v3695_v57 = vmul.f32 0.5, %v11047_v36  ;;  %v11049_v1 = vpop.eup %11048 }
 0xbc8   :  { %v3700_v52 = vadd.f32 0.5, %v3694_v48  ;;  %v11051_v8 = vpop.eup %11050 }
 0xbc9   :  { %v12974_v53 = vadd.f32 %v3707_v44, %v3705_v37  ;;  %v3701_v2 = vadd.f32 0.5, %v3695_v57  ;;  %v3693_v10 = vmul.f32 0.5, %v11051_v8  ;;  %v11053_v17 = vpop.eup %11052 }
 0xbca   :  { %v3708_v4 = vmul.f32 %v11049_v1, %v3700_v52  ;;  %v3696_v19 = vmul.f32 0.5, %v11053_v17 }
 0xbcb   :  { %11054 = vtanh.f32 %v12974_v53  ;;  %v3706_v6 = vmul.f32 %v3701_v2, %v12920_v9  ;;  %v3699_v58 = vadd.f32 0.5, %v3693_v10 }
 0xbcc   :  { %v3702_v29 = vadd.f32 0.5, %v3696_v19 }
 0xbcd   :  { %v12978_v15 = vadd.f32 %v3708_v4, %v3706_v6 }
 0xbcf   :  { %11056 = vtanh.f32 %v12978_v15 }
 0xbd5   :  { %v11055_v20 = vpop.eup %11054 }
 0xbd6   :  { %v3713_v22 = vmul.f32 %v11055_v20, %v3699_v58 }
 0xbd8   :  { %8169 = vst [vmem:[%s14181_s6 + $0xa0] sm:$0xff] %v3713_v22  ;;  %3792 = vmatmul.mubr.f32.vlgmr.msra.gmra.mrb[44].mxu0 %v3713_v22  ;;  %3869 = vmatmul.mubr.f32.vlgmr.msra.gmra.mrb[44].mxu1 %v3713_v22 }
 0xbd9   :  { %v11057_v7 = vpop.eup %11056  ;;  %3797 = vmatprep.mubr.f32.mxu0 %v11478_v3  ;;  %3874 = vmatprep.mubr.f32.mxu1 %v11478_v3 }
 0xbda   :  { %v3714_v9 = vmul.f32 %v11057_v7, %v3702_v29  ;;  %9048 = vmatpush1.bf16.msra.mxu0 %v11755_v47  ;;  %9080 = vmatpush1.bf16.msra.mxu1 %v11765_v50 }
 0xbdb   :  { %9050 = vmatprep.subr.bf16.mxu0 %v11767_v51  ;;  %9082 = vmatprep.subr.bf16.mxu1 %v11778_v55 }
 0xbdc   :  { %8170 = vst [vmem:[%s14181_s6 + $0xa8] sm:$0xff] %v3714_v9  ;;  %3798 = vmatmul.mubr.f32.gmra.mrb[46].mxu0 %v3714_v9  ;;  %3875 = vmatmul.mubr.f32.gmra.mrb[46].mxu1 %v3714_v9 }
 0xbdd   :  { %4001 = vmatprep.mubr.f32.mxu0 %v11478_v3  ;;  %4078 = vmatprep.mubr.f32.mxu1 %v11478_v3 }
 0xbde   :  { %9052 = vmatpush1.bf16.msra.mxu0 %v11801_v62  ;;  %9084 = vmatpush1.bf16.msra.mxu1 %v11805_v63 }
 0xbdf   :  { %9054 = vmatprep.subr.bf16.mxu0 %v11807_v0  ;;  %9086 = vmatprep.subr.bf16.mxu1 %v11819_v5 }
 0xbe2   :  { %9056 = vmatpush1.bf16.msra.mxu0 %v11842_v12  ;;  %9088 = vmatpush1.bf16.msra.mxu1 %v11846_v13 }
 0xbe3   :  { %9058 = vmatprep.subr.bf16.mxu0 %v11848_v14  ;;  %9090 = vmatprep.subr.bf16.mxu1 %v11860_v18 }
 0xbe6   :  { %9060 = vmatpush1.bf16.msra.mxu0 %v11880_v24  ;;  %9092 = vmatpush1.bf16.msra.mxu1 %v11887_v26 }
 0xbe7   :  { %9062 = vmatprep.subr.bf16.mxu0 %v11889_v27  ;;  %9094 = vmatprep.subr.bf16.mxu1 %v11898_v30 }
 0xbea   :  { %9064 = vmatpush1.bf16.msra.mxu0 %v11912_v34  ;;  %9096 = vmatpush1.bf16.msra.mxu1 %v11916_v35 }
 0xbeb   :  { %9066 = vmatprep.subr.bf16.mxu0 %v11955_v46  ;;  %9098 = vmatprep.subr.bf16.mxu1 %v11975_v56 }
 0xbee   :  { %9068 = vmatpush1.bf16.msra.mxu0 %v11960_v49  ;;  %9100 = vmatpush1.bf16.msra.mxu1 %v11983_v59 }
 0xbef   :  { %9070 = vmatprep.subr.bf16.mxu0 %v12031_v11  ;;  %9102 = vmatprep.subr.bf16.mxu1 %v12051_v21 }
 0xbf2   :  { %9072 = vmatpush1.bf16.msra.mxu0 %v12036_v16  ;;  %9104 = vmatpush1.bf16.msra.mxu1 %v12059_v25 }
 0xbf3   :  { %9074 = vmatprep.subr.bf16.mxu0 %v12107_v43  ;;  %9106 = vmatprep.subr.bf16.mxu1 %v12127_v54 }
 0xbf6   :  { %9076 = vmatpush1.bf16.msra.mxu0 %v12112_v45  ;;  %9108 = vmatpush1.bf16.msra.mxu1 %v12135_v60 }
 0xbf7   :  { %9110 = vmatprep.subr.bf16.mxu0 %v11730_v38  ;;  %9142 = vmatprep.subr.bf16.mxu1 %v11738_v41 }
 0xcab   :  { %v3793_v32 = vpop.f32.mrb[44].mxu0  ;;  %v3870_v39 = vpop.f32.mrb[44].mxu1 }
 0xcac   :  { %v10369_v33 = vadd.f32 %v3793_v32, %v12373_v23  ;;  %v3795_v40 = vpop.f32.mrb[45].mxu0  ;;  %v3872_v42 = vpop.f32.mrb[45].mxu1  ;;  %v10497_v58 = vadd.f32 %v3870_v39, %v12383_v61 }
 0xcad   :  { %v10370_v44 = vadd.f32 %v3795_v40, %v12375_v28  ;;  %v10498_v37 = vadd.f32 %v3872_v42, %v12377_v31 }
 0xcae   :  { %v3889_v48 = vmul.f32 0.5, %v10369_v33  ;;  %v3891_v19 = vmul.f32 0.5, %v10497_v58 }
 0xcaf   :  { %v3890_v36 = vmul.f32 0.5, %v10370_v44  ;;  %v3799_v52 = vpop.f32.mrb[46].mxu0  ;;  %v3876_v57 = vpop.f32.mrb[46].mxu1 }
 0xcb0   :  { %11058 = vtanh.f32 %v3889_v48  ;;  %v10371_v1 = vadd.f32 %v3799_v52, %v12373_v23  ;;  %v3801_v2 = vpop.f32.mrb[47].mxu0  ;;  %v3878_v4 = vpop.f32.mrb[47].mxu1  ;;  %v10499_v20 = vadd.f32 %v3876_v57, %v12383_v61 }
 0xcb1   :  { %v10372_v6 = vadd.f32 %v3801_v2, %v12375_v28  ;;  %11060 = vtanh.f32 %v3890_v36  ;;  %v10500_v17 = vadd.f32 %v3878_v4, %v12377_v31 }
 0xcb2   :  { %v3892_v8 = vmul.f32 0.5, %v10371_v1  ;;  %11062 = vtanh.f32 %v10498_v37  ;;  %v3894_v40 = vmul.f32 0.5, %v10499_v20 }
 0xcb3   :  { %v3893_v10 = vmul.f32 0.5, %v10372_v6 }
 0xcb4   :  { %11064 = vtanh.f32 %v3892_v8 }
 0xcb5   :  { %11066 = vtanh.f32 %v3893_v10 }
 0xcb6   :  { %11068 = vtanh.f32 %v10500_v17 }
 0xcb7   :  { %11070 = vtanh.f32 %v3891_v19 }
 0xcb8   :  { %11072 = vtanh.f32 %v3894_v40 }
 0xcba   :  { %v11059_v22 = vpop.eup %11058 }
 0xcbb   :  { %v3901_v29 = vmul.f32 0.5, %v11059_v22  ;;  %v11061_v7 = vpop.eup %11060 }
 0xcbc   :  { %v11063_v9 = vpop.eup %11062  ;;  %v3902_v33 = vmul.f32 0.5, %v11061_v7 }
 0xcbd   :  { %v3907_v32 = vadd.f32 0.5, %v3901_v29 }
 0xcbe   :  { %v11065_v42 = vpop.eup %11064  ;;  %v3908_v44 = vadd.f32 0.5, %v3902_v33 }
 0xcbf   :  { %v3917_v48 = vmul.f32 %v11063_v9, %v3907_v32  ;;  %v3904_v36 = vmul.f32 0.5, %v11065_v42  ;;  %v11067_v37 = vpop.eup %11066 }
 0xcc0   :  { %v3915_v39 = vmul.f32 %v3908_v44, %v12974_v53  ;;  %v3905_v1 = vmul.f32 0.5, %v11067_v37  ;;  %v11069_v2 = vpop.eup %11068 }
 0xcc1   :  { %v3910_v52 = vadd.f32 0.5, %v3904_v36  ;;  %v11071_v10 = vpop.eup %11070 }
 0xcc2   :  { %v13032_v57 = vadd.f32 %v3917_v48, %v3915_v39  ;;  %v3911_v4 = vadd.f32 0.5, %v3905_v1  ;;  %v3903_v58 = vmul.f32 0.5, %v11071_v10  ;;  %v11073_v19 = vpop.eup %11072 }
 0xcc3   :  { %v3918_v6 = vmul.f32 %v11069_v2, %v3910_v52  ;;  %v3906_v20 = vmul.f32 0.5, %v11073_v19 }
 0xcc4   :  { %11074 = vtanh.f32 %v13032_v57  ;;  %v3916_v8 = vmul.f32 %v3911_v4, %v12978_v15  ;;  %v3909_v53 = vadd.f32 0.5, %v3903_v58 }
 0xcc5   :  { %v3912_v7 = vadd.f32 0.5, %v3906_v20 }
 0xcc6   :  { %v13036_v17 = vadd.f32 %v3918_v6, %v3916_v8 }
 0xcc8   :  { %11076 = vtanh.f32 %v13036_v17 }
 0xcce   :  { %v11075_v22 = vpop.eup %11074 }
 0xccf   :  { %v3923_v29 = vmul.f32 %v11075_v22, %v3909_v53 }
 0xcd1   :  { %8171 = vst [vmem:[%s14181_s6 + $0xb0] sm:$0xff] %v3923_v29  ;;  %4002 = vmatmul.mubr.f32.vlgmr.msra.gmra.mrb[48].mxu0 %v3923_v29  ;;  %4079 = vmatmul.mubr.f32.vlgmr.msra.gmra.mrb[48].mxu1 %v3923_v29 }
 0xcd2   :  { %v11077_v9 = vpop.eup %11076  ;;  %4007 = vmatprep.mubr.f32.mxu0 %v11478_v3  ;;  %4084 = vmatprep.mubr.f32.mxu1 %v11478_v3 }
 0xcd3   :  { %v3924_v15 = vmul.f32 %v11077_v9, %v3912_v7  ;;  %9112 = vmatpush1.bf16.msra.mxu0 %v11755_v47  ;;  %9144 = vmatpush1.bf16.msra.mxu1 %v11765_v50 }
 0xcd4   :  { %9114 = vmatprep.subr.bf16.mxu0 %v11767_v51  ;;  %9146 = vmatprep.subr.bf16.mxu1 %v11778_v55 }
 0xcd5   :  { %8172 = vst [vmem:[%s14181_s6 + $0xb8] sm:$0xff] %v3924_v15  ;;  %4008 = vmatmul.mubr.f32.gmra.mrb[50].mxu0 %v3924_v15  ;;  %4085 = vmatmul.mubr.f32.gmra.mrb[50].mxu1 %v3924_v15 }
 0xcd6   :  { %4211 = vmatprep.mubr.f32.mxu0 %v11478_v3  ;;  %4288 = vmatprep.mubr.f32.mxu1 %v11478_v3 }
 0xcd7   :  { %9116 = vmatpush1.bf16.msra.mxu0 %v11801_v62  ;;  %9148 = vmatpush1.bf16.msra.mxu1 %v11805_v63 }
 0xcd8   :  { %9118 = vmatprep.subr.bf16.mxu0 %v11807_v0  ;;  %9150 = vmatprep.subr.bf16.mxu1 %v11819_v5 }
 0xcdb   :  { %9120 = vmatpush1.bf16.msra.mxu0 %v11842_v12  ;;  %9152 = vmatpush1.bf16.msra.mxu1 %v11846_v13 }
 0xcdc   :  { %9122 = vmatprep.subr.bf16.mxu0 %v11848_v14  ;;  %9154 = vmatprep.subr.bf16.mxu1 %v11860_v18 }
 0xcdf   :  { %9124 = vmatpush1.bf16.msra.mxu0 %v11880_v24  ;;  %9156 = vmatpush1.bf16.msra.mxu1 %v11887_v26 }
 0xce0   :  { %9126 = vmatprep.subr.bf16.mxu0 %v11889_v27  ;;  %9158 = vmatprep.subr.bf16.mxu1 %v11898_v30 }
 0xce3   :  { %9128 = vmatpush1.bf16.msra.mxu0 %v11912_v34  ;;  %9160 = vmatpush1.bf16.msra.mxu1 %v11916_v35 }
 0xce4   :  { %9130 = vmatprep.subr.bf16.mxu0 %v11955_v46  ;;  %9162 = vmatprep.subr.bf16.mxu1 %v11975_v56 }
 0xce7   :  { %9132 = vmatpush1.bf16.msra.mxu0 %v11960_v49  ;;  %9164 = vmatpush1.bf16.msra.mxu1 %v11983_v59 }
 0xce8   :  { %9134 = vmatprep.subr.bf16.mxu0 %v12031_v11  ;;  %9166 = vmatprep.subr.bf16.mxu1 %v12051_v21 }
 0xceb   :  { %9136 = vmatpush1.bf16.msra.mxu0 %v12036_v16  ;;  %9168 = vmatpush1.bf16.msra.mxu1 %v12059_v25 }
 0xcec   :  { %9138 = vmatprep.subr.bf16.mxu0 %v12107_v43  ;;  %9170 = vmatprep.subr.bf16.mxu1 %v12127_v54 }
 0xcef   :  { %9140 = vmatpush1.bf16.msra.mxu0 %v12112_v45  ;;  %9172 = vmatpush1.bf16.msra.mxu1 %v12135_v60 }
 0xcf0   :  { %9174 = vmatprep.subr.bf16.mxu0 %v11730_v38  ;;  %9206 = vmatprep.subr.bf16.mxu1 %v11738_v41 }
 0xda4   :  { %v4003_v32 = vpop.f32.mrb[48].mxu0  ;;  %v4080_v33 = vpop.f32.mrb[48].mxu1 }
 0xda5   :  { %v10373_v40 = vadd.f32 %v4003_v32, %v12373_v23  ;;  %v4005_v42 = vpop.f32.mrb[49].mxu0  ;;  %v4082_v44 = vpop.f32.mrb[49].mxu1  ;;  %v10501_v53 = vadd.f32 %v4080_v33, %v12383_v61 }
 0xda6   :  { %v10374_v48 = vadd.f32 %v4005_v42, %v12375_v28  ;;  %v10502_v39 = vadd.f32 %v4082_v44, %v12377_v31 }
 0xda7   :  { %v4099_v36 = vmul.f32 0.5, %v10373_v40  ;;  %v4101_v20 = vmul.f32 0.5, %v10501_v53 }
 0xda8   :  { %v4100_v37 = vmul.f32 0.5, %v10374_v48  ;;  %v4009_v52 = vpop.f32.mrb[50].mxu0  ;;  %v4086_v1 = vpop.f32.mrb[50].mxu1 }
 0xda9   :  { %11078 = vtanh.f32 %v4099_v36  ;;  %v10375_v2 = vadd.f32 %v4009_v52, %v12373_v23  ;;  %v4011_v4 = vpop.f32.mrb[51].mxu0  ;;  %v4088_v6 = vpop.f32.mrb[51].mxu1  ;;  %v10503_v22 = vadd.f32 %v4086_v1, %v12383_v61 }
 0xdaa   :  { %v10376_v8 = vadd.f32 %v4011_v4, %v12375_v28  ;;  %11080 = vtanh.f32 %v4100_v37  ;;  %v10504_v19 = vadd.f32 %v4088_v6, %v12377_v31 }
 0xdab   :  { %v4102_v10 = vmul.f32 0.5, %v10375_v2  ;;  %11082 = vtanh.f32 %v10502_v39  ;;  %v4104_v42 = vmul.f32 0.5, %v10503_v22 }
 0xdac   :  { %v4103_v58 = vmul.f32 0.5, %v10376_v8 }
 0xdad   :  { %11084 = vtanh.f32 %v4102_v10 }
 0xdae   :  { %11086 = vtanh.f32 %v4103_v58 }
 0xdaf   :  { %11088 = vtanh.f32 %v10504_v19 }
 0xdb0   :  { %11090 = vtanh.f32 %v4101_v20 }
 0xdb1   :  { %11092 = vtanh.f32 %v4104_v42 }
 0xdb3   :  { %v11079_v29 = vpop.eup %11078 }
 0xdb4   :  { %v4111_v7 = vmul.f32 0.5, %v11079_v29  ;;  %v11081_v9 = vpop.eup %11080 }
 0xdb5   :  { %v11083_v15 = vpop.eup %11082  ;;  %v4112_v40 = vmul.f32 0.5, %v11081_v9 }
 0xdb6   :  { %v4117_v32 = vadd.f32 0.5, %v4111_v7 }
 0xdb7   :  { %v11085_v44 = vpop.eup %11084  ;;  %v4118_v48 = vadd.f32 0.5, %v4112_v40 }
 0xdb8   :  { %v4127_v36 = vmul.f32 %v11083_v15, %v4117_v32  ;;  %v4114_v37 = vmul.f32 0.5, %v11085_v44  ;;  %v11087_v39 = vpop.eup %11086 }
 0xdb9   :  { %v4125_v33 = vmul.f32 %v4118_v48, %v13032_v57  ;;  %v4115_v2 = vmul.f32 0.5, %v11087_v39  ;;  %v11089_v4 = vpop.eup %11088 }
 0xdba   :  { %v4120_v52 = vadd.f32 0.5, %v4114_v37  ;;  %v11091_v58 = vpop.eup %11090 }
 0xdbb   :  { %v13090_v1 = vadd.f32 %v4127_v36, %v4125_v33  ;;  %v4121_v6 = vadd.f32 0.5, %v4115_v2  ;;  %v4113_v53 = vmul.f32 0.5, %v11091_v58  ;;  %v11093_v20 = vpop.eup %11092 }
 0xdbc   :  { %v4128_v8 = vmul.f32 %v11089_v4, %v4120_v52  ;;  %v4116_v22 = vmul.f32 0.5, %v11093_v20 }
 0xdbd   :  { %11094 = vtanh.f32 %v13090_v1  ;;  %v4126_v10 = vmul.f32 %v4121_v6, %v13036_v17  ;;  %v4119_v57 = vadd.f32 0.5, %v4113_v53 }
 0xdbe   :  { %v4122_v9 = vadd.f32 0.5, %v4116_v22 }
 0xdbf   :  { %v13094_v19 = vadd.f32 %v4128_v8, %v4126_v10 }
 0xdc1   :  { %11096 = vtanh.f32 %v13094_v19 }
 0xdc7   :  { %v11095_v29 = vpop.eup %11094 }
 0xdc8   :  { %v4133_v7 = vmul.f32 %v11095_v29, %v4119_v57 }
 0xdca   :  { %8173 = vst [vmem:[%s14181_s6 + $0xc0] sm:$0xff] %v4133_v7  ;;  %4212 = vmatmul.mubr.f32.vlgmr.msra.gmra.mrb[52].mxu0 %v4133_v7  ;;  %4289 = vmatmul.mubr.f32.vlgmr.msra.gmra.mrb[52].mxu1 %v4133_v7 }
 0xdcb   :  { %v11097_v15 = vpop.eup %11096  ;;  %4217 = vmatprep.mubr.f32.mxu0 %v11478_v3  ;;  %4294 = vmatprep.mubr.f32.mxu1 %v11478_v3 }
 0xdcc   :  { %v4134_v17 = vmul.f32 %v11097_v15, %v4122_v9  ;;  %9176 = vmatpush1.bf16.msra.mxu0 %v11755_v47  ;;  %9208 = vmatpush1.bf16.msra.mxu1 %v11765_v50 }
 0xdcd   :  { %9178 = vmatprep.subr.bf16.mxu0 %v11767_v51  ;;  %9210 = vmatprep.subr.bf16.mxu1 %v11778_v55 }
 0xdce   :  { %8174 = vst [vmem:[%s14181_s6 + $0xc8] sm:$0xff] %v4134_v17  ;;  %4218 = vmatmul.mubr.f32.gmra.mrb[54].mxu0 %v4134_v17  ;;  %4295 = vmatmul.mubr.f32.gmra.mrb[54].mxu1 %v4134_v17 }
 0xdcf   :  { %4421 = vmatprep.mubr.f32.mxu0 %v11478_v3  ;;  %4498 = vmatprep.mubr.f32.mxu1 %v11478_v3 }
 0xdd0   :  { %9180 = vmatpush1.bf16.msra.mxu0 %v11801_v62  ;;  %9212 = vmatpush1.bf16.msra.mxu1 %v11805_v63 }
 0xdd1   :  { %9182 = vmatprep.subr.bf16.mxu0 %v11807_v0  ;;  %9214 = vmatprep.subr.bf16.mxu1 %v11819_v5 }
 0xdd4   :  { %9184 = vmatpush1.bf16.msra.mxu0 %v11842_v12  ;;  %9216 = vmatpush1.bf16.msra.mxu1 %v11846_v13 }
 0xdd5   :  { %9186 = vmatprep.subr.bf16.mxu0 %v11848_v14  ;;  %9218 = vmatprep.subr.bf16.mxu1 %v11860_v18 }
 0xdd8   :  { %9188 = vmatpush1.bf16.msra.mxu0 %v11880_v24  ;;  %9220 = vmatpush1.bf16.msra.mxu1 %v11887_v26 }
 0xdd9   :  { %9190 = vmatprep.subr.bf16.mxu0 %v11889_v27  ;;  %9222 = vmatprep.subr.bf16.mxu1 %v11898_v30 }
 0xddc   :  { %9192 = vmatpush1.bf16.msra.mxu0 %v11912_v34  ;;  %9224 = vmatpush1.bf16.msra.mxu1 %v11916_v35 }
 0xddd   :  { %9194 = vmatprep.subr.bf16.mxu0 %v11955_v46  ;;  %9226 = vmatprep.subr.bf16.mxu1 %v11975_v56 }
 0xde0   :  { %9196 = vmatpush1.bf16.msra.mxu0 %v11960_v49  ;;  %9228 = vmatpush1.bf16.msra.mxu1 %v11983_v59 }
 0xde1   :  { %9198 = vmatprep.subr.bf16.mxu0 %v12031_v11  ;;  %9230 = vmatprep.subr.bf16.mxu1 %v12051_v21 }
 0xde4   :  { %9200 = vmatpush1.bf16.msra.mxu0 %v12036_v16  ;;  %9232 = vmatpush1.bf16.msra.mxu1 %v12059_v25 }
 0xde5   :  { %9202 = vmatprep.subr.bf16.mxu0 %v12107_v43  ;;  %9234 = vmatprep.subr.bf16.mxu1 %v12127_v54 }
 0xde8   :  { %9204 = vmatpush1.bf16.msra.mxu0 %v12112_v45  ;;  %9236 = vmatpush1.bf16.msra.mxu1 %v12135_v60 }
 0xde9   :  { %9238 = vmatprep.subr.bf16.mxu0 %v11730_v38  ;;  %9270 = vmatprep.subr.bf16.mxu1 %v11738_v41 }
 0xe9d   :  { %v4213_v32 = vpop.f32.mrb[52].mxu0  ;;  %v4290_v40 = vpop.f32.mrb[52].mxu1 }
 0xe9e   :  { %v10377_v42 = vadd.f32 %v4213_v32, %v12373_v23  ;;  %v4215_v44 = vpop.f32.mrb[53].mxu0  ;;  %v4292_v48 = vpop.f32.mrb[53].mxu1  ;;  %v10505_v57 = vadd.f32 %v4290_v40, %v12383_v61 }
 0xe9f   :  { %v10378_v36 = vadd.f32 %v4215_v44, %v12375_v28  ;;  %v10506_v33 = vadd.f32 %v4292_v48, %v12377_v31 }
 0xea0   :  { %v4309_v37 = vmul.f32 0.5, %v10377_v42  ;;  %v4311_v22 = vmul.f32 0.5, %v10505_v57 }
 0xea1   :  { %v4310_v39 = vmul.f32 0.5, %v10378_v36  ;;  %v4219_v52 = vpop.f32.mrb[54].mxu0  ;;  %v4296_v2 = vpop.f32.mrb[54].mxu1 }
 0xea2   :  { %11098 = vtanh.f32 %v4309_v37  ;;  %v10379_v4 = vadd.f32 %v4219_v52, %v12373_v23  ;;  %v4221_v6 = vpop.f32.mrb[55].mxu0  ;;  %v4298_v8 = vpop.f32.mrb[55].mxu1  ;;  %v10507_v29 = vadd.f32 %v4296_v2, %v12383_v61 }
 0xea3   :  { %v10380_v10 = vadd.f32 %v4221_v6, %v12375_v28  ;;  %11100 = vtanh.f32 %v4310_v39  ;;  %v10508_v20 = vadd.f32 %v4298_v8, %v12377_v31 }
 0xea4   :  { %v4312_v58 = vmul.f32 0.5, %v10379_v4  ;;  %11102 = vtanh.f32 %v10506_v33  ;;  %v4314_v44 = vmul.f32 0.5, %v10507_v29 }
 0xea5   :  { %v4313_v53 = vmul.f32 0.5, %v10380_v10 }
 0xea6   :  { %11104 = vtanh.f32 %v4312_v58 }
 0xea7   :  { %11106 = vtanh.f32 %v4313_v53 }
 0xea8   :  { %11108 = vtanh.f32 %v10508_v20 }
 0xea9   :  { %11110 = vtanh.f32 %v4311_v22 }
 0xeaa   :  { %11112 = vtanh.f32 %v4314_v44 }
 0xeac   :  { %v11099_v7 = vpop.eup %11098 }
 0xead   :  { %v4321_v9 = vmul.f32 0.5, %v11099_v7  ;;  %v11101_v15 = vpop.eup %11100 }
 0xeae   :  { %v11103_v17 = vpop.eup %11102  ;;  %v4322_v42 = vmul.f32 0.5, %v11101_v15 }
 0xeaf   :  { %v4327_v32 = vadd.f32 0.5, %v4321_v9 }
 0xeb0   :  { %v11105_v48 = vpop.eup %11104  ;;  %v4328_v36 = vadd.f32 0.5, %v4322_v42 }
 0xeb1   :  { %v4337_v37 = vmul.f32 %v11103_v17, %v4327_v32  ;;  %v4324_v39 = vmul.f32 0.5, %v11105_v48  ;;  %v11107_v33 = vpop.eup %11106 }
 0xeb2   :  { %v4335_v40 = vmul.f32 %v4328_v36, %v13090_v1  ;;  %v4325_v4 = vmul.f32 0.5, %v11107_v33  ;;  %v11109_v6 = vpop.eup %11108 }
 0xeb3   :  { %v4330_v52 = vadd.f32 0.5, %v4324_v39  ;;  %v11111_v53 = vpop.eup %11110 }
 0xeb4   :  { %v13148_v2 = vadd.f32 %v4337_v37, %v4335_v40  ;;  %v4331_v8 = vadd.f32 0.5, %v4325_v4  ;;  %v4323_v57 = vmul.f32 0.5, %v11111_v53  ;;  %v11113_v22 = vpop.eup %11112 }
 0xeb5   :  { %v4338_v10 = vmul.f32 %v11109_v6, %v4330_v52  ;;  %v4326_v29 = vmul.f32 0.5, %v11113_v22 }
 0xeb6   :  { %11114 = vtanh.f32 %v13148_v2  ;;  %v4336_v58 = vmul.f32 %v4331_v8, %v13094_v19  ;;  %v4329_v1 = vadd.f32 0.5, %v4323_v57 }
 0xeb7   :  { %v4332_v15 = vadd.f32 0.5, %v4326_v29 }
 0xeb8   :  { %v13152_v20 = vadd.f32 %v4338_v10, %v4336_v58 }
 0xeba   :  { %11116 = vtanh.f32 %v13152_v20 }
 0xec0   :  { %v11115_v7 = vpop.eup %11114 }
 0xec1   :  { %v4343_v9 = vmul.f32 %v11115_v7, %v4329_v1 }
 0xec3   :  { %8175 = vst [vmem:[%s14181_s6 + $0xd0] sm:$0xff] %v4343_v9  ;;  %4422 = vmatmul.mubr.f32.vlgmr.msra.gmra.mrb[56].mxu0 %v4343_v9  ;;  %4499 = vmatmul.mubr.f32.vlgmr.msra.gmra.mrb[56].mxu1 %v4343_v9 }
 0xec4   :  { %v11117_v17 = vpop.eup %11116  ;;  %4427 = vmatprep.mubr.f32.mxu0 %v11478_v3  ;;  %4504 = vmatprep.mubr.f32.mxu1 %v11478_v3 }
 0xec5   :  { %v4344_v19 = vmul.f32 %v11117_v17, %v4332_v15  ;;  %9240 = vmatpush1.bf16.msra.mxu0 %v11755_v47  ;;  %9272 = vmatpush1.bf16.msra.mxu1 %v11765_v50 }
 0xec6   :  { %9242 = vmatprep.subr.bf16.mxu0 %v11767_v51  ;;  %9274 = vmatprep.subr.bf16.mxu1 %v11778_v55 }
 0xec7   :  { %8176 = vst [vmem:[%s14181_s6 + $0xd8] sm:$0xff] %v4344_v19  ;;  %4428 = vmatmul.mubr.f32.gmra.mrb[58].mxu0 %v4344_v19  ;;  %4505 = vmatmul.mubr.f32.gmra.mrb[58].mxu1 %v4344_v19 }
 0xec8   :  { %4631 = vmatprep.mubr.f32.mxu0 %v11478_v3  ;;  %4708 = vmatprep.mubr.f32.mxu1 %v11478_v3 }
 0xec9   :  { %9244 = vmatpush1.bf16.msra.mxu0 %v11801_v62  ;;  %9276 = vmatpush1.bf16.msra.mxu1 %v11805_v63 }
 0xeca   :  { %9246 = vmatprep.subr.bf16.mxu0 %v11807_v0  ;;  %9278 = vmatprep.subr.bf16.mxu1 %v11819_v5 }
 0xecd   :  { %9248 = vmatpush1.bf16.msra.mxu0 %v11842_v12  ;;  %9280 = vmatpush1.bf16.msra.mxu1 %v11846_v13 }
 0xece   :  { %9250 = vmatprep.subr.bf16.mxu0 %v11848_v14  ;;  %9282 = vmatprep.subr.bf16.mxu1 %v11860_v18 }
 0xed1   :  { %9252 = vmatpush1.bf16.msra.mxu0 %v11880_v24  ;;  %9284 = vmatpush1.bf16.msra.mxu1 %v11887_v26 }
 0xed2   :  { %9254 = vmatprep.subr.bf16.mxu0 %v11889_v27  ;;  %9286 = vmatprep.subr.bf16.mxu1 %v11898_v30 }
 0xed5   :  { %9256 = vmatpush1.bf16.msra.mxu0 %v11912_v34  ;;  %9288 = vmatpush1.bf16.msra.mxu1 %v11916_v35 }
 0xed6   :  { %9258 = vmatprep.subr.bf16.mxu0 %v11955_v46  ;;  %9290 = vmatprep.subr.bf16.mxu1 %v11975_v56 }
 0xed9   :  { %9260 = vmatpush1.bf16.msra.mxu0 %v11960_v49  ;;  %9292 = vmatpush1.bf16.msra.mxu1 %v11983_v59 }
 0xeda   :  { %9262 = vmatprep.subr.bf16.mxu0 %v12031_v11  ;;  %9294 = vmatprep.subr.bf16.mxu1 %v12051_v21 }
 0xedd   :  { %9264 = vmatpush1.bf16.msra.mxu0 %v12036_v16  ;;  %9296 = vmatpush1.bf16.msra.mxu1 %v12059_v25 }
 0xede   :  { %9266 = vmatprep.subr.bf16.mxu0 %v12107_v43  ;;  %9298 = vmatprep.subr.bf16.mxu1 %v12127_v54 }
 0xee1   :  { %9268 = vmatpush1.bf16.msra.mxu0 %v12112_v45  ;;  %9300 = vmatpush1.bf16.msra.mxu1 %v12135_v60 }
 0xee2   :  { %9302 = vmatprep.subr.bf16.mxu0 %v11730_v38  ;;  %9334 = vmatprep.subr.bf16.mxu1 %v11738_v41 }
 0xf96   :  { %v4423_v32 = vpop.f32.mrb[56].mxu0  ;;  %v4500_v42 = vpop.f32.mrb[56].mxu1 }
 0xf97   :  { %v10381_v44 = vadd.f32 %v4423_v32, %v12373_v23  ;;  %v4425_v48 = vpop.f32.mrb[57].mxu0  ;;  %v4502_v36 = vpop.f32.mrb[57].mxu1  ;;  %v10509_v1 = vadd.f32 %v4500_v42, %v12383_v61 }
 0xf98   :  { %v10382_v37 = vadd.f32 %v4425_v48, %v12375_v28  ;;  %v10510_v40 = vadd.f32 %v4502_v36, %v12377_v31 }
 0xf99   :  { %v4519_v39 = vmul.f32 0.5, %v10381_v44  ;;  %v4521_v29 = vmul.f32 0.5, %v10509_v1 }
 0xf9a   :  { %v4520_v33 = vmul.f32 0.5, %v10382_v37  ;;  %v4429_v52 = vpop.f32.mrb[58].mxu0  ;;  %v4506_v4 = vpop.f32.mrb[58].mxu1 }
 0xf9b   :  { %11118 = vtanh.f32 %v4519_v39  ;;  %v10383_v6 = vadd.f32 %v4429_v52, %v12373_v23  ;;  %v4431_v8 = vpop.f32.mrb[59].mxu0  ;;  %v4508_v10 = vpop.f32.mrb[59].mxu1  ;;  %v10511_v7 = vadd.f32 %v4506_v4, %v12383_v61 }
 0xf9c   :  { %v10384_v58 = vadd.f32 %v4431_v8, %v12375_v28  ;;  %11120 = vtanh.f32 %v4520_v33  ;;  %v10512_v22 = vadd.f32 %v4508_v10, %v12377_v31 }
 0xf9d   :  { %v4522_v53 = vmul.f32 0.5, %v10383_v6  ;;  %11122 = vtanh.f32 %v10510_v40  ;;  %v4524_v48 = vmul.f32 0.5, %v10511_v7 }
 0xf9e   :  { %v4523_v57 = vmul.f32 0.5, %v10384_v58 }
 0xf9f   :  { %11124 = vtanh.f32 %v4522_v53 }
 0xfa0   :  { %11126 = vtanh.f32 %v4523_v57 }
 0xfa1   :  { %11128 = vtanh.f32 %v10512_v22 }
 0xfa2   :  { %11130 = vtanh.f32 %v4521_v29 }
 0xfa3   :  { %11132 = vtanh.f32 %v4524_v48 }
 0xfa5   :  { %v11119_v9 = vpop.eup %11118 }
 0xfa6   :  { %v4531_v15 = vmul.f32 0.5, %v11119_v9  ;;  %v11121_v17 = vpop.eup %11120 }
 0xfa7   :  { %v11123_v19 = vpop.eup %11122  ;;  %v4532_v44 = vmul.f32 0.5, %v11121_v17 }
 0xfa8   :  { %v4537_v32 = vadd.f32 0.5, %v4531_v15 }
 0xfa9   :  { %v11125_v36 = vpop.eup %11124  ;;  %v4538_v37 = vadd.f32 0.5, %v4532_v44 }
 0xfaa   :  { %v4547_v39 = vmul.f32 %v11123_v19, %v4537_v32  ;;  %v4534_v33 = vmul.f32 0.5, %v11125_v36  ;;  %v11127_v40 = vpop.eup %11126 }
 0xfab   :  { %v4545_v42 = vmul.f32 %v4538_v37, %v13148_v2  ;;  %v4535_v6 = vmul.f32 0.5, %v11127_v40  ;;  %v11129_v8 = vpop.eup %11128 }
 0xfac   :  { %v4540_v52 = vadd.f32 0.5, %v4534_v33  ;;  %v11131_v57 = vpop.eup %11130 }
 0xfad   :  { %v13206_v4 = vadd.f32 %v4547_v39, %v4545_v42  ;;  %v4541_v10 = vadd.f32 0.5, %v4535_v6  ;;  %v4533_v1 = vmul.f32 0.5, %v11131_v57  ;;  %v11133_v29 = vpop.eup %11132 }
 0xfae   :  { %v4548_v58 = vmul.f32 %v11129_v8, %v4540_v52  ;;  %v4536_v7 = vmul.f32 0.5, %v11133_v29 }
 0xfaf   :  { %11134 = vtanh.f32 %v13206_v4  ;;  %v4546_v53 = vmul.f32 %v4541_v10, %v13152_v20  ;;  %v4539_v2 = vadd.f32 0.5, %v4533_v1 }
 0xfb0   :  { %v4542_v17 = vadd.f32 0.5, %v4536_v7 }
 0xfb1   :  { %v13210_v22 = vadd.f32 %v4548_v58, %v4546_v53 }
 0xfb3   :  { %11136 = vtanh.f32 %v13210_v22 }
 0xfb9   :  { %v11135_v9 = vpop.eup %11134 }
 0xfba   :  { %v4553_v15 = vmul.f32 %v11135_v9, %v4539_v2 }
 0xfbc   :  { %8177 = vst [vmem:[%s14181_s6 + $0xe0] sm:$0xff] %v4553_v15  ;;  %4632 = vmatmul.mubr.f32.vlgmr.msra.gmra.mrb[60].mxu0 %v4553_v15  ;;  %4709 = vmatmul.mubr.f32.vlgmr.msra.gmra.mrb[60].mxu1 %v4553_v15 }
 0xfbd   :  { %v11137_v19 = vpop.eup %11136  ;;  %4637 = vmatprep.mubr.f32.mxu0 %v11478_v3  ;;  %4714 = vmatprep.mubr.f32.mxu1 %v11478_v3 }
 0xfbe   :  { %v4554_v20 = vmul.f32 %v11137_v19, %v4542_v17  ;;  %9304 = vmatpush1.bf16.msra.mxu0 %v11755_v47  ;;  %9336 = vmatpush1.bf16.msra.mxu1 %v11765_v50 }
 0xfbf   :  { %9306 = vmatprep.subr.bf16.mxu0 %v11767_v51  ;;  %9338 = vmatprep.subr.bf16.mxu1 %v11778_v55 }
 0xfc0   :  { %8178 = vst [vmem:[%s14181_s6 + $0xe8] sm:$0xff] %v4554_v20  ;;  %4638 = vmatmul.mubr.f32.gmra.mrb[62].mxu0 %v4554_v20  ;;  %4715 = vmatmul.mubr.f32.gmra.mrb[62].mxu1 %v4554_v20 }
 0xfc1   :  { %4841 = vmatprep.mubr.f32.mxu0 %v11478_v3  ;;  %4918 = vmatprep.mubr.f32.mxu1 %v11478_v3 }
 0xfc2   :  { %9308 = vmatpush1.bf16.msra.mxu0 %v11801_v62  ;;  %9340 = vmatpush1.bf16.msra.mxu1 %v11805_v63 }
 0xfc3   :  { %9310 = vmatprep.subr.bf16.mxu0 %v11807_v0  ;;  %9342 = vmatprep.subr.bf16.mxu1 %v11819_v5 }
 0xfc6   :  { %9312 = vmatpush1.bf16.msra.mxu0 %v11842_v12  ;;  %9344 = vmatpush1.bf16.msra.mxu1 %v11846_v13 }
 0xfc7   :  { %9314 = vmatprep.subr.bf16.mxu0 %v11848_v14  ;;  %9346 = vmatprep.subr.bf16.mxu1 %v11860_v18 }
 0xfca   :  { %9316 = vmatpush1.bf16.msra.mxu0 %v11880_v24  ;;  %9348 = vmatpush1.bf16.msra.mxu1 %v11887_v26 }
 0xfcb   :  { %9318 = vmatprep.subr.bf16.mxu0 %v11889_v27  ;;  %9350 = vmatprep.subr.bf16.mxu1 %v11898_v30 }
 0xfce   :  { %9320 = vmatpush1.bf16.msra.mxu0 %v11912_v34  ;;  %9352 = vmatpush1.bf16.msra.mxu1 %v11916_v35 }
 0xfcf   :  { %9322 = vmatprep.subr.bf16.mxu0 %v11955_v46  ;;  %9354 = vmatprep.subr.bf16.mxu1 %v11975_v56 }
 0xfd2   :  { %9324 = vmatpush1.bf16.msra.mxu0 %v11960_v49  ;;  %9356 = vmatpush1.bf16.msra.mxu1 %v11983_v59 }
 0xfd3   :  { %9326 = vmatprep.subr.bf16.mxu0 %v12031_v11  ;;  %9358 = vmatprep.subr.bf16.mxu1 %v12051_v21 }
 0xfd6   :  { %9328 = vmatpush1.bf16.msra.mxu0 %v12036_v16  ;;  %9360 = vmatpush1.bf16.msra.mxu1 %v12059_v25 }
 0xfd7   :  { %9330 = vmatprep.subr.bf16.mxu0 %v12107_v43  ;;  %9362 = vmatprep.subr.bf16.mxu1 %v12127_v54 }
 0xfda   :  { %9332 = vmatpush1.bf16.msra.mxu0 %v12112_v45  ;;  %9364 = vmatpush1.bf16.msra.mxu1 %v12135_v60 }
 0xfdb   :  { %9366 = vmatprep.subr.bf16.mxu0 %v11730_v38  ;;  %9398 = vmatprep.subr.bf16.mxu1 %v11738_v41 }
0x108f   :  { %v4633_v32 = vpop.f32.mrb[60].mxu0  ;;  %v4710_v44 = vpop.f32.mrb[60].mxu1 }
0x1090   :  { %v10385_v48 = vadd.f32 %v4633_v32, %v12373_v23  ;;  %v4635_v36 = vpop.f32.mrb[61].mxu0  ;;  %v4712_v37 = vpop.f32.mrb[61].mxu1  ;;  %v10513_v2 = vadd.f32 %v4710_v44, %v12383_v61 }
0x1091   :  { %v10386_v39 = vadd.f32 %v4635_v36, %v12375_v28  ;;  %v10514_v42 = vadd.f32 %v4712_v37, %v12377_v31 }
0x1092   :  { %v4729_v33 = vmul.f32 0.5, %v10385_v48  ;;  %v4731_v7 = vmul.f32 0.5, %v10513_v2 }
0x1093   :  { %v4730_v40 = vmul.f32 0.5, %v10386_v39  ;;  %v4639_v52 = vpop.f32.mrb[62].mxu0  ;;  %v4716_v6 = vpop.f32.mrb[62].mxu1 }
0x1094   :  { %11138 = vtanh.f32 %v4729_v33  ;;  %v10387_v8 = vadd.f32 %v4639_v52, %v12373_v23  ;;  %v4641_v10 = vpop.f32.mrb[63].mxu0  ;;  %v4718_v58 = vpop.f32.mrb[63].mxu1  ;;  %v10515_v9 = vadd.f32 %v4716_v6, %v12383_v61 }
0x1095   :  { %v10388_v53 = vadd.f32 %v4641_v10, %v12375_v28  ;;  %11140 = vtanh.f32 %v4730_v40  ;;  %v10516_v29 = vadd.f32 %v4718_v58, %v12377_v31 }
0x1096   :  { %v4732_v57 = vmul.f32 0.5, %v10387_v8  ;;  %11142 = vtanh.f32 %v10514_v42  ;;  %v4734_v36 = vmul.f32 0.5, %v10515_v9 }
0x1097   :  { %v4733_v1 = vmul.f32 0.5, %v10388_v53 }
0x1098   :  { %11144 = vtanh.f32 %v4732_v57 }
0x1099   :  { %11146 = vtanh.f32 %v4733_v1 }
0x109a   :  { %11148 = vtanh.f32 %v10516_v29 }
0x109b   :  { %11150 = vtanh.f32 %v4731_v7 }
0x109c   :  { %11152 = vtanh.f32 %v4734_v36 }
0x109e   :  { %v11139_v15 = vpop.eup %11138 }
0x109f   :  { %v4741_v17 = vmul.f32 0.5, %v11139_v15  ;;  %v11141_v19 = vpop.eup %11140 }
0x10a0   :  { %v11143_v20 = vpop.eup %11142  ;;  %v4742_v48 = vmul.f32 0.5, %v11141_v19 }
0x10a1   :  { %v4747_v32 = vadd.f32 0.5, %v4741_v17 }
0x10a2   :  { %v11145_v37 = vpop.eup %11144  ;;  %v4748_v39 = vadd.f32 0.5, %v4742_v48 }
0x10a3   :  { %v4757_v33 = vmul.f32 %v11143_v20, %v4747_v32  ;;  %v4744_v40 = vmul.f32 0.5, %v11145_v37  ;;  %v11147_v42 = vpop.eup %11146 }
0x10a4   :  { %v4755_v44 = vmul.f32 %v4748_v39, %v13206_v4  ;;  %v4745_v8 = vmul.f32 0.5, %v11147_v42  ;;  %v11149_v10 = vpop.eup %11148 }
0x10a5   :  { %v4750_v52 = vadd.f32 0.5, %v4744_v40  ;;  %v11151_v1 = vpop.eup %11150 }
0x10a6   :  { %v13264_v6 = vadd.f32 %v4757_v33, %v4755_v44  ;;  %v4751_v58 = vadd.f32 0.5, %v4745_v8  ;;  %v4743_v2 = vmul.f32 0.5, %v11151_v1  ;;  %v11153_v7 = vpop.eup %11152 }
0x10a7   :  { %v4758_v53 = vmul.f32 %v11149_v10, %v4750_v52  ;;  %v4746_v9 = vmul.f32 0.5, %v11153_v7 }
0x10a8   :  { %11154 = vtanh.f32 %v13264_v6  ;;  %v4756_v57 = vmul.f32 %v4751_v58, %v13210_v22  ;;  %v4749_v4 = vadd.f32 0.5, %v4743_v2 }
0x10a9   :  { %v4752_v19 = vadd.f32 0.5, %v4746_v9 }
0x10aa   :  { %v13268_v29 = vadd.f32 %v4758_v53, %v4756_v57 }
0x10ac   :  { %11156 = vtanh.f32 %v13268_v29 }
0x10b2   :  { %v11155_v15 = vpop.eup %11154 }
0x10b3   :  { %v4763_v17 = vmul.f32 %v11155_v15, %v4749_v4 }
0x10b5   :  { %8179 = vst [vmem:[%s14181_s6 + $0xf0] sm:$0xff] %v4763_v17  ;;  %4842 = vmatmul.mubr.f32.vlgmr.msra.gmra.mrb[64].mxu0 %v4763_v17  ;;  %4919 = vmatmul.mubr.f32.vlgmr.msra.gmra.mrb[64].mxu1 %v4763_v17 }
0x10b6   :  { %v11157_v20 = vpop.eup %11156  ;;  %4847 = vmatprep.mubr.f32.mxu0 %v11478_v3  ;;  %4924 = vmatprep.mubr.f32.mxu1 %v11478_v3 }
0x10b7   :  { %v4764_v22 = vmul.f32 %v11157_v20, %v4752_v19  ;;  %9368 = vmatpush1.bf16.msra.mxu0 %v11755_v47  ;;  %9400 = vmatpush1.bf16.msra.mxu1 %v11765_v50 }
0x10b8   :  { %9370 = vmatprep.subr.bf16.mxu0 %v11767_v51  ;;  %9402 = vmatprep.subr.bf16.mxu1 %v11778_v55 }
0x10b9   :  { %8180 = vst [vmem:[%s14181_s6 + $0xf8] sm:$0xff] %v4764_v22  ;;  %4848 = vmatmul.mubr.f32.gmra.mrb[66].mxu0 %v4764_v22  ;;  %4925 = vmatmul.mubr.f32.gmra.mrb[66].mxu1 %v4764_v22 }
0x10ba   :  { %5051 = vmatprep.mubr.f32.mxu0 %v11478_v3  ;;  %5128 = vmatprep.mubr.f32.mxu1 %v11478_v3 }
0x10bb   :  { %9372 = vmatpush1.bf16.msra.mxu0 %v11801_v62  ;;  %9404 = vmatpush1.bf16.msra.mxu1 %v11805_v63 }
0x10bc   :  { %9374 = vmatprep.subr.bf16.mxu0 %v11807_v0  ;;  %9406 = vmatprep.subr.bf16.mxu1 %v11819_v5 }
0x10bf   :  { %9376 = vmatpush1.bf16.msra.mxu0 %v11842_v12  ;;  %9408 = vmatpush1.bf16.msra.mxu1 %v11846_v13 }
0x10c0   :  { %9378 = vmatprep.subr.bf16.mxu0 %v11848_v14  ;;  %9410 = vmatprep.subr.bf16.mxu1 %v11860_v18 }
0x10c3   :  { %9380 = vmatpush1.bf16.msra.mxu0 %v11880_v24  ;;  %9412 = vmatpush1.bf16.msra.mxu1 %v11887_v26 }
0x10c4   :  { %9382 = vmatprep.subr.bf16.mxu0 %v11889_v27  ;;  %9414 = vmatprep.subr.bf16.mxu1 %v11898_v30 }
0x10c7   :  { %9384 = vmatpush1.bf16.msra.mxu0 %v11912_v34  ;;  %9416 = vmatpush1.bf16.msra.mxu1 %v11916_v35 }
0x10c8   :  { %9386 = vmatprep.subr.bf16.mxu0 %v11955_v46  ;;  %9418 = vmatprep.subr.bf16.mxu1 %v11975_v56 }
0x10cb   :  { %9388 = vmatpush1.bf16.msra.mxu0 %v11960_v49  ;;  %9420 = vmatpush1.bf16.msra.mxu1 %v11983_v59 }
0x10cc   :  { %9390 = vmatprep.subr.bf16.mxu0 %v12031_v11  ;;  %9422 = vmatprep.subr.bf16.mxu1 %v12051_v21 }
0x10cf   :  { %9392 = vmatpush1.bf16.msra.mxu0 %v12036_v16  ;;  %9424 = vmatpush1.bf16.msra.mxu1 %v12059_v25 }
0x10d0   :  { %9394 = vmatprep.subr.bf16.mxu0 %v12107_v43  ;;  %9426 = vmatprep.subr.bf16.mxu1 %v12127_v54 }
0x10d3   :  { %9396 = vmatpush1.bf16.msra.mxu0 %v12112_v45  ;;  %9428 = vmatpush1.bf16.msra.mxu1 %v12135_v60 }
0x10d4   :  { %9430 = vmatprep.subr.bf16.mxu0 %v11730_v38  ;;  %9462 = vmatprep.subr.bf16.mxu1 %v11738_v41 }
0x1188   :  { %v4843_v32 = vpop.f32.mrb[64].mxu0  ;;  %v4920_v48 = vpop.f32.mrb[64].mxu1 }
0x1189   :  { %v10389_v36 = vadd.f32 %v4843_v32, %v12373_v23  ;;  %v4845_v37 = vpop.f32.mrb[65].mxu0  ;;  %v4922_v39 = vpop.f32.mrb[65].mxu1  ;;  %v10517_v4 = vadd.f32 %v4920_v48, %v12383_v61 }
0x118a   :  { %v10390_v33 = vadd.f32 %v4845_v37, %v12375_v28  ;;  %v10518_v44 = vadd.f32 %v4922_v39, %v12377_v31 }
0x118b   :  { %v4939_v40 = vmul.f32 0.5, %v10389_v36  ;;  %v4941_v9 = vmul.f32 0.5, %v10517_v4 }
0x118c   :  { %v4940_v42 = vmul.f32 0.5, %v10390_v33  ;;  %v4849_v52 = vpop.f32.mrb[66].mxu0  ;;  %v4926_v8 = vpop.f32.mrb[66].mxu1 }
0x118d   :  { %11158 = vtanh.f32 %v4939_v40  ;;  %v10391_v10 = vadd.f32 %v4849_v52, %v12373_v23  ;;  %v4851_v58 = vpop.f32.mrb[67].mxu0  ;;  %v4928_v53 = vpop.f32.mrb[67].mxu1  ;;  %v10519_v15 = vadd.f32 %v4926_v8, %v12383_v61 }
0x118e   :  { %v10392_v57 = vadd.f32 %v4851_v58, %v12375_v28  ;;  %11160 = vtanh.f32 %v4940_v42  ;;  %v10520_v7 = vadd.f32 %v4928_v53, %v12377_v31 }
0x118f   :  { %v4942_v1 = vmul.f32 0.5, %v10391_v10  ;;  %11162 = vtanh.f32 %v10518_v44  ;;  %v4944_v37 = vmul.f32 0.5, %v10519_v15 }
0x1190   :  { %v4943_v2 = vmul.f32 0.5, %v10392_v57 }
0x1191   :  { %11164 = vtanh.f32 %v4942_v1 }
0x1192   :  { %11166 = vtanh.f32 %v4943_v2 }
0x1193   :  { %11168 = vtanh.f32 %v10520_v7 }
0x1194   :  { %11170 = vtanh.f32 %v4941_v9 }
0x1195   :  { %11172 = vtanh.f32 %v4944_v37 }
0x1197   :  { %v11159_v17 = vpop.eup %11158 }
0x1198   :  { %v4951_v19 = vmul.f32 0.5, %v11159_v17  ;;  %v11161_v20 = vpop.eup %11160 }
0x1199   :  { %v11163_v22 = vpop.eup %11162  ;;  %v4952_v36 = vmul.f32 0.5, %v11161_v20 }
0x119a   :  { %v4957_v32 = vadd.f32 0.5, %v4951_v19 }
0x119b   :  { %v11165_v39 = vpop.eup %11164  ;;  %v4958_v33 = vadd.f32 0.5, %v4952_v36 }
0x119c   :  { %v4967_v40 = vmul.f32 %v11163_v22, %v4957_v32  ;;  %v4954_v42 = vmul.f32 0.5, %v11165_v39  ;;  %v11167_v44 = vpop.eup %11166 }
0x119d   :  { %v4965_v48 = vmul.f32 %v4958_v33, %v13264_v6  ;;  %v4955_v10 = vmul.f32 0.5, %v11167_v44  ;;  %v11169_v58 = vpop.eup %11168 }
0x119e   :  { %v4960_v52 = vadd.f32 0.5, %v4954_v42  ;;  %v11171_v2 = vpop.eup %11170 }
0x119f   :  { %v13322_v8 = vadd.f32 %v4967_v40, %v4965_v48  ;;  %v4961_v53 = vadd.f32 0.5, %v4955_v10  ;;  %v4953_v4 = vmul.f32 0.5, %v11171_v2  ;;  %v11173_v9 = vpop.eup %11172 }
0x11a0   :  { %v4968_v57 = vmul.f32 %v11169_v58, %v4960_v52  ;;  %v4956_v15 = vmul.f32 0.5, %v11173_v9 }
0x11a1   :  { %11174 = vtanh.f32 %v13322_v8  ;;  %v4966_v1 = vmul.f32 %v4961_v53, %v13268_v29  ;;  %v4959_v6 = vadd.f32 0.5, %v4953_v4 }
0x11a2   :  { %v4962_v20 = vadd.f32 0.5, %v4956_v15 }
0x11a3   :  { %v13326_v7 = vadd.f32 %v4968_v57, %v4966_v1 }
0x11a5   :  { %11176 = vtanh.f32 %v13326_v7 }
0x11ab   :  { %v11175_v17 = vpop.eup %11174 }
0x11ac   :  { %v4973_v19 = vmul.f32 %v11175_v17, %v4959_v6 }
0x11ae   :  { %8181 = vst [vmem:[%s14181_s6 + $0x100] sm:$0xff] %v4973_v19  ;;  %5052 = vmatmul.mubr.f32.vlgmr.msra.gmra.mrb[68].mxu0 %v4973_v19  ;;  %5129 = vmatmul.mubr.f32.vlgmr.msra.gmra.mrb[68].mxu1 %v4973_v19 }
0x11af   :  { %v11177_v22 = vpop.eup %11176  ;;  %5057 = vmatprep.mubr.f32.mxu0 %v11478_v3  ;;  %5134 = vmatprep.mubr.f32.mxu1 %v11478_v3 }
0x11b0   :  { %v4974_v29 = vmul.f32 %v11177_v22, %v4962_v20  ;;  %9432 = vmatpush1.bf16.msra.mxu0 %v11755_v47  ;;  %9464 = vmatpush1.bf16.msra.mxu1 %v11765_v50 }
0x11b1   :  { %9434 = vmatprep.subr.bf16.mxu0 %v11767_v51  ;;  %9466 = vmatprep.subr.bf16.mxu1 %v11778_v55 }
0x11b2   :  { %8182 = vst [vmem:[%s14181_s6 + $0x108] sm:$0xff] %v4974_v29  ;;  %5058 = vmatmul.mubr.f32.gmra.mrb[70].mxu0 %v4974_v29  ;;  %5135 = vmatmul.mubr.f32.gmra.mrb[70].mxu1 %v4974_v29 }
0x11b3   :  { %5261 = vmatprep.mubr.f32.mxu0 %v11478_v3  ;;  %5338 = vmatprep.mubr.f32.mxu1 %v11478_v3 }
0x11b4   :  { %9436 = vmatpush1.bf16.msra.mxu0 %v11801_v62  ;;  %9468 = vmatpush1.bf16.msra.mxu1 %v11805_v63 }
0x11b5   :  { %9438 = vmatprep.subr.bf16.mxu0 %v11807_v0  ;;  %9470 = vmatprep.subr.bf16.mxu1 %v11819_v5 }
0x11b8   :  { %9440 = vmatpush1.bf16.msra.mxu0 %v11842_v12  ;;  %9472 = vmatpush1.bf16.msra.mxu1 %v11846_v13 }
0x11b9   :  { %9442 = vmatprep.subr.bf16.mxu0 %v11848_v14  ;;  %9474 = vmatprep.subr.bf16.mxu1 %v11860_v18 }
0x11bc   :  { %9444 = vmatpush1.bf16.msra.mxu0 %v11880_v24  ;;  %9476 = vmatpush1.bf16.msra.mxu1 %v11887_v26 }
0x11bd   :  { %9446 = vmatprep.subr.bf16.mxu0 %v11889_v27  ;;  %9478 = vmatprep.subr.bf16.mxu1 %v11898_v30 }
0x11c0   :  { %9448 = vmatpush1.bf16.msra.mxu0 %v11912_v34  ;;  %9480 = vmatpush1.bf16.msra.mxu1 %v11916_v35 }
0x11c1   :  { %9450 = vmatprep.subr.bf16.mxu0 %v11955_v46  ;;  %9482 = vmatprep.subr.bf16.mxu1 %v11975_v56 }
0x11c4   :  { %9452 = vmatpush1.bf16.msra.mxu0 %v11960_v49  ;;  %9484 = vmatpush1.bf16.msra.mxu1 %v11983_v59 }
0x11c5   :  { %9454 = vmatprep.subr.bf16.mxu0 %v12031_v11  ;;  %9486 = vmatprep.subr.bf16.mxu1 %v12051_v21 }
0x11c8   :  { %9456 = vmatpush1.bf16.msra.mxu0 %v12036_v16  ;;  %9488 = vmatpush1.bf16.msra.mxu1 %v12059_v25 }
0x11c9   :  { %9458 = vmatprep.subr.bf16.mxu0 %v12107_v43  ;;  %9490 = vmatprep.subr.bf16.mxu1 %v12127_v54 }
0x11cc   :  { %9460 = vmatpush1.bf16.msra.mxu0 %v12112_v45  ;;  %9492 = vmatpush1.bf16.msra.mxu1 %v12135_v60 }
0x11cd   :  { %9494 = vmatprep.subr.bf16.mxu0 %v11730_v38  ;;  %9526 = vmatprep.subr.bf16.mxu1 %v11738_v41 }
0x1281   :  { %v5053_v32 = vpop.f32.mrb[68].mxu0  ;;  %v5130_v36 = vpop.f32.mrb[68].mxu1 }
0x1282   :  { %v10393_v37 = vadd.f32 %v5053_v32, %v12373_v23  ;;  %v5055_v39 = vpop.f32.mrb[69].mxu0  ;;  %v5132_v33 = vpop.f32.mrb[69].mxu1  ;;  %v10521_v6 = vadd.f32 %v5130_v36, %v12383_v61 }
0x1283   :  { %v10394_v40 = vadd.f32 %v5055_v39, %v12375_v28  ;;  %v10522_v48 = vadd.f32 %v5132_v33, %v12377_v31 }
0x1284   :  { %v5149_v42 = vmul.f32 0.5, %v10393_v37  ;;  %v5151_v15 = vmul.f32 0.5, %v10521_v6 }
0x1285   :  { %v5150_v44 = vmul.f32 0.5, %v10394_v40  ;;  %v5059_v52 = vpop.f32.mrb[70].mxu0  ;;  %v5136_v10 = vpop.f32.mrb[70].mxu1 }
0x1286   :  { %11178 = vtanh.f32 %v5149_v42  ;;  %v10395_v58 = vadd.f32 %v5059_v52, %v12373_v23  ;;  %v5061_v53 = vpop.f32.mrb[71].mxu0  ;;  %v5138_v57 = vpop.f32.mrb[71].mxu1  ;;  %v10523_v17 = vadd.f32 %v5136_v10, %v12383_v61 }
0x1287   :  { %v10396_v1 = vadd.f32 %v5061_v53, %v12375_v28  ;;  %11180 = vtanh.f32 %v5150_v44  ;;  %v10524_v9 = vadd.f32 %v5138_v57, %v12377_v31 }
0x1288   :  { %v5152_v2 = vmul.f32 0.5, %v10395_v58  ;;  %11182 = vtanh.f32 %v10522_v48  ;;  %v5154_v39 = vmul.f32 0.5, %v10523_v17 }
0x1289   :  { %v5153_v4 = vmul.f32 0.5, %v10396_v1 }
0x128a   :  { %11184 = vtanh.f32 %v5152_v2 }
0x128b   :  { %11186 = vtanh.f32 %v5153_v4 }
0x128c   :  { %11188 = vtanh.f32 %v10524_v9 }
0x128d   :  { %11190 = vtanh.f32 %v5151_v15 }
0x128e   :  { %11192 = vtanh.f32 %v5154_v39 }
0x1290   :  { %v11179_v19 = vpop.eup %11178 }
0x1291   :  { %v5161_v20 = vmul.f32 0.5, %v11179_v19  ;;  %v11181_v22 = vpop.eup %11180 }
0x1292   :  { %v11183_v29 = vpop.eup %11182  ;;  %v5162_v37 = vmul.f32 0.5, %v11181_v22 }
0x1293   :  { %v5167_v32 = vadd.f32 0.5, %v5161_v20 }
0x1294   :  { %v11185_v33 = vpop.eup %11184  ;;  %v5168_v40 = vadd.f32 0.5, %v5162_v37 }
0x1295   :  { %v5177_v42 = vmul.f32 %v11183_v29, %v5167_v32  ;;  %v5164_v44 = vmul.f32 0.5, %v11185_v33  ;;  %v11187_v48 = vpop.eup %11186 }
0x1296   :  { %v5175_v36 = vmul.f32 %v5168_v40, %v13322_v8  ;;  %v5165_v58 = vmul.f32 0.5, %v11187_v48  ;;  %v11189_v53 = vpop.eup %11188 }
0x1297   :  { %v5170_v52 = vadd.f32 0.5, %v5164_v44  ;;  %v11191_v4 = vpop.eup %11190 }
0x1298   :  { %v13380_v10 = vadd.f32 %v5177_v42, %v5175_v36  ;;  %v5171_v57 = vadd.f32 0.5, %v5165_v58  ;;  %v5163_v6 = vmul.f32 0.5, %v11191_v4  ;;  %v11193_v15 = vpop.eup %11192 }
0x1299   :  { %v5178_v1 = vmul.f32 %v11189_v53, %v5170_v52  ;;  %v5166_v17 = vmul.f32 0.5, %v11193_v15 }
0x129a   :  { %11194 = vtanh.f32 %v13380_v10  ;;  %v5176_v2 = vmul.f32 %v5171_v57, %v13326_v7  ;;  %v5169_v8 = vadd.f32 0.5, %v5163_v6 }
0x129b   :  { %v5172_v22 = vadd.f32 0.5, %v5166_v17 }
0x129c   :  { %v13384_v9 = vadd.f32 %v5178_v1, %v5176_v2 }
0x129e   :  { %11196 = vtanh.f32 %v13384_v9 }
0x12a4   :  { %v11195_v19 = vpop.eup %11194 }
0x12a5   :  { %v5183_v20 = vmul.f32 %v11195_v19, %v5169_v8 }
0x12a7   :  { %8183 = vst [vmem:[%s14181_s6 + $0x110] sm:$0xff] %v5183_v20  ;;  %5262 = vmatmul.mubr.f32.vlgmr.msra.gmra.mrb[72].mxu0 %v5183_v20  ;;  %5339 = vmatmul.mubr.f32.vlgmr.msra.gmra.mrb[72].mxu1 %v5183_v20 }
0x12a8   :  { %v11197_v29 = vpop.eup %11196  ;;  %5267 = vmatprep.mubr.f32.mxu0 %v11478_v3  ;;  %5344 = vmatprep.mubr.f32.mxu1 %v11478_v3 }
0x12a9   :  { %v5184_v7 = vmul.f32 %v11197_v29, %v5172_v22  ;;  %9496 = vmatpush1.bf16.msra.mxu0 %v11755_v47  ;;  %9528 = vmatpush1.bf16.msra.mxu1 %v11765_v50 }
0x12aa   :  { %9498 = vmatprep.subr.bf16.mxu0 %v11767_v51  ;;  %9530 = vmatprep.subr.bf16.mxu1 %v11778_v55 }
0x12ab   :  { %8184 = vst [vmem:[%s14181_s6 + $0x118] sm:$0xff] %v5184_v7  ;;  %5268 = vmatmul.mubr.f32.gmra.mrb[74].mxu0 %v5184_v7  ;;  %5345 = vmatmul.mubr.f32.gmra.mrb[74].mxu1 %v5184_v7 }
0x12ac   :  { %5471 = vmatprep.mubr.f32.mxu0 %v11478_v3  ;;  %5548 = vmatprep.mubr.f32.mxu1 %v11478_v3 }
0x12ad   :  { %9500 = vmatpush1.bf16.msra.mxu0 %v11801_v62  ;;  %9532 = vmatpush1.bf16.msra.mxu1 %v11805_v63 }
0x12ae   :  { %9502 = vmatprep.subr.bf16.mxu0 %v11807_v0  ;;  %9534 = vmatprep.subr.bf16.mxu1 %v11819_v5 }
0x12b1   :  { %9504 = vmatpush1.bf16.msra.mxu0 %v11842_v12  ;;  %9536 = vmatpush1.bf16.msra.mxu1 %v11846_v13 }
0x12b2   :  { %9506 = vmatprep.subr.bf16.mxu0 %v11848_v14  ;;  %9538 = vmatprep.subr.bf16.mxu1 %v11860_v18 }
0x12b5   :  { %9508 = vmatpush1.bf16.msra.mxu0 %v11880_v24  ;;  %9540 = vmatpush1.bf16.msra.mxu1 %v11887_v26 }
0x12b6   :  { %9510 = vmatprep.subr.bf16.mxu0 %v11889_v27  ;;  %9542 = vmatprep.subr.bf16.mxu1 %v11898_v30 }
0x12b9   :  { %9512 = vmatpush1.bf16.msra.mxu0 %v11912_v34  ;;  %9544 = vmatpush1.bf16.msra.mxu1 %v11916_v35 }
0x12ba   :  { %9514 = vmatprep.subr.bf16.mxu0 %v11955_v46  ;;  %9546 = vmatprep.subr.bf16.mxu1 %v11975_v56 }
0x12bd   :  { %9516 = vmatpush1.bf16.msra.mxu0 %v11960_v49  ;;  %9548 = vmatpush1.bf16.msra.mxu1 %v11983_v59 }
0x12be   :  { %9518 = vmatprep.subr.bf16.mxu0 %v12031_v11  ;;  %9550 = vmatprep.subr.bf16.mxu1 %v12051_v21 }
0x12c1   :  { %9520 = vmatpush1.bf16.msra.mxu0 %v12036_v16  ;;  %9552 = vmatpush1.bf16.msra.mxu1 %v12059_v25 }
0x12c2   :  { %9522 = vmatprep.subr.bf16.mxu0 %v12107_v43  ;;  %9554 = vmatprep.subr.bf16.mxu1 %v12127_v54 }
0x12c5   :  { %9524 = vmatpush1.bf16.msra.mxu0 %v12112_v45  ;;  %9556 = vmatpush1.bf16.msra.mxu1 %v12135_v60 }
0x12c6   :  { %9558 = vmatprep.subr.bf16.mxu0 %v11730_v38  ;;  %9590 = vmatprep.subr.bf16.mxu1 %v11738_v41 }
0x137a   :  { %v5263_v32 = vpop.f32.mrb[72].mxu0  ;;  %v5340_v37 = vpop.f32.mrb[72].mxu1 }
0x137b   :  { %v10397_v39 = vadd.f32 %v5263_v32, %v12373_v23  ;;  %v5265_v33 = vpop.f32.mrb[73].mxu0  ;;  %v5342_v40 = vpop.f32.mrb[73].mxu1  ;;  %v10525_v8 = vadd.f32 %v5340_v37, %v12383_v61 }
0x137c   :  { %v10398_v42 = vadd.f32 %v5265_v33, %v12375_v28  ;;  %v10526_v36 = vadd.f32 %v5342_v40, %v12377_v31 }
0x137d   :  { %v5359_v44 = vmul.f32 0.5, %v10397_v39  ;;  %v5361_v17 = vmul.f32 0.5, %v10525_v8 }
0x137e   :  { %v5360_v48 = vmul.f32 0.5, %v10398_v42  ;;  %v5269_v52 = vpop.f32.mrb[74].mxu0  ;;  %v5346_v58 = vpop.f32.mrb[74].mxu1 }
0x137f   :  { %11198 = vtanh.f32 %v5359_v44  ;;  %v10399_v53 = vadd.f32 %v5269_v52, %v12373_v23  ;;  %v5271_v57 = vpop.f32.mrb[75].mxu0  ;;  %v5348_v1 = vpop.f32.mrb[75].mxu1  ;;  %v10527_v19 = vadd.f32 %v5346_v58, %v12383_v61 }
0x1380   :  { %v10400_v2 = vadd.f32 %v5271_v57, %v12375_v28  ;;  %11200 = vtanh.f32 %v5360_v48  ;;  %v10528_v15 = vadd.f32 %v5348_v1, %v12377_v31 }
0x1381   :  { %v5362_v4 = vmul.f32 0.5, %v10399_v53  ;;  %11202 = vtanh.f32 %v10526_v36  ;;  %v5364_v33 = vmul.f32 0.5, %v10527_v19 }
0x1382   :  { %v5363_v6 = vmul.f32 0.5, %v10400_v2 }
0x1383   :  { %11204 = vtanh.f32 %v5362_v4 }
0x1384   :  { %11206 = vtanh.f32 %v5363_v6 }
0x1385   :  { %11208 = vtanh.f32 %v10528_v15 }
0x1386   :  { %11210 = vtanh.f32 %v5361_v17 }
0x1387   :  { %11212 = vtanh.f32 %v5364_v33 }
0x1389   :  { %v11199_v20 = vpop.eup %11198 }
0x138a   :  { %v5371_v22 = vmul.f32 0.5, %v11199_v20  ;;  %v11201_v29 = vpop.eup %11200 }
0x138b   :  { %v11203_v7 = vpop.eup %11202  ;;  %v5372_v39 = vmul.f32 0.5, %v11201_v29 }
0x138c   :  { %v5377_v32 = vadd.f32 0.5, %v5371_v22 }
0x138d   :  { %v11205_v40 = vpop.eup %11204  ;;  %v5378_v42 = vadd.f32 0.5, %v5372_v39 }
0x138e   :  { %v5387_v44 = vmul.f32 %v11203_v7, %v5377_v32  ;;  %v5374_v48 = vmul.f32 0.5, %v11205_v40  ;;  %v11207_v36 = vpop.eup %11206 }
0x138f   :  { %v5385_v37 = vmul.f32 %v5378_v42, %v13380_v10  ;;  %v5375_v53 = vmul.f32 0.5, %v11207_v36  ;;  %v11209_v57 = vpop.eup %11208 }
0x1390   :  { %v5380_v52 = vadd.f32 0.5, %v5374_v48  ;;  %v11211_v6 = vpop.eup %11210 }
0x1391   :  { %v13438_v58 = vadd.f32 %v5387_v44, %v5385_v37  ;;  %v5381_v1 = vadd.f32 0.5, %v5375_v53  ;;  %v5373_v8 = vmul.f32 0.5, %v11211_v6  ;;  %v11213_v17 = vpop.eup %11212 }
0x1392   :  { %v5388_v2 = vmul.f32 %v11209_v57, %v5380_v52  ;;  %v5376_v19 = vmul.f32 0.5, %v11213_v17 }
0x1393   :  { %11214 = vtanh.f32 %v13438_v58  ;;  %v5386_v4 = vmul.f32 %v5381_v1, %v13384_v9  ;;  %v5379_v10 = vadd.f32 0.5, %v5373_v8 }
0x1394   :  { %v5382_v29 = vadd.f32 0.5, %v5376_v19 }
0x1395   :  { %v13442_v15 = vadd.f32 %v5388_v2, %v5386_v4 }
0x1397   :  { %11216 = vtanh.f32 %v13442_v15 }
0x139d   :  { %v11215_v20 = vpop.eup %11214 }
0x139e   :  { %v5393_v22 = vmul.f32 %v11215_v20, %v5379_v10 }
0x13a0   :  { %8185 = vst [vmem:[%s14181_s6 + $0x120] sm:$0xff] %v5393_v22  ;;  %5472 = vmatmul.mubr.f32.vlgmr.msra.gmra.mrb[76].mxu0 %v5393_v22  ;;  %5549 = vmatmul.mubr.f32.vlgmr.msra.gmra.mrb[76].mxu1 %v5393_v22 }
0x13a1   :  { %v11217_v7 = vpop.eup %11216  ;;  %5477 = vmatprep.mubr.f32.mxu0 %v11478_v3  ;;  %5554 = vmatprep.mubr.f32.mxu1 %v11478_v3 }
0x13a2   :  { %v5394_v9 = vmul.f32 %v11217_v7, %v5382_v29  ;;  %9560 = vmatpush1.bf16.msra.mxu0 %v11755_v47  ;;  %9592 = vmatpush1.bf16.msra.mxu1 %v11765_v50 }
0x13a3   :  { %9562 = vmatprep.subr.bf16.mxu0 %v11767_v51  ;;  %9594 = vmatprep.subr.bf16.mxu1 %v11778_v55 }
0x13a4   :  { %8186 = vst [vmem:[%s14181_s6 + $0x128] sm:$0xff] %v5394_v9  ;;  %5478 = vmatmul.mubr.f32.gmra.mrb[78].mxu0 %v5394_v9  ;;  %5555 = vmatmul.mubr.f32.gmra.mrb[78].mxu1 %v5394_v9 }
0x13a5   :  { %5681 = vmatprep.mubr.f32.mxu0 %v11478_v3  ;;  %5758 = vmatprep.mubr.f32.mxu1 %v11478_v3 }
0x13a6   :  { %9564 = vmatpush1.bf16.msra.mxu0 %v11801_v62  ;;  %9596 = vmatpush1.bf16.msra.mxu1 %v11805_v63 }
0x13a7   :  { %9566 = vmatprep.subr.bf16.mxu0 %v11807_v0  ;;  %9598 = vmatprep.subr.bf16.mxu1 %v11819_v5 }
0x13aa   :  { %9568 = vmatpush1.bf16.msra.mxu0 %v11842_v12  ;;  %9600 = vmatpush1.bf16.msra.mxu1 %v11846_v13 }
0x13ab   :  { %9570 = vmatprep.subr.bf16.mxu0 %v11848_v14  ;;  %9602 = vmatprep.subr.bf16.mxu1 %v11860_v18 }
0x13ae   :  { %9572 = vmatpush1.bf16.msra.mxu0 %v11880_v24  ;;  %9604 = vmatpush1.bf16.msra.mxu1 %v11887_v26 }
0x13af   :  { %9574 = vmatprep.subr.bf16.mxu0 %v11889_v27  ;;  %9606 = vmatprep.subr.bf16.mxu1 %v11898_v30 }
0x13b2   :  { %9576 = vmatpush1.bf16.msra.mxu0 %v11912_v34  ;;  %9608 = vmatpush1.bf16.msra.mxu1 %v11916_v35 }
0x13b3   :  { %9578 = vmatprep.subr.bf16.mxu0 %v11955_v46  ;;  %9610 = vmatprep.subr.bf16.mxu1 %v11975_v56 }
0x13b6   :  { %9580 = vmatpush1.bf16.msra.mxu0 %v11960_v49  ;;  %9612 = vmatpush1.bf16.msra.mxu1 %v11983_v59 }
0x13b7   :  { %9582 = vmatprep.subr.bf16.mxu0 %v12031_v11  ;;  %9614 = vmatprep.subr.bf16.mxu1 %v12051_v21 }
0x13ba   :  { %9584 = vmatpush1.bf16.msra.mxu0 %v12036_v16  ;;  %9616 = vmatpush1.bf16.msra.mxu1 %v12059_v25 }
0x13bb   :  { %9586 = vmatprep.subr.bf16.mxu0 %v12107_v43  ;;  %9618 = vmatprep.subr.bf16.mxu1 %v12127_v54 }
0x13be   :  { %9588 = vmatpush1.bf16.msra.mxu0 %v12112_v45  ;;  %9620 = vmatpush1.bf16.msra.mxu1 %v12135_v60 }
0x13bf   :  { %9622 = vmatprep.subr.bf16.mxu0 %v11730_v38  ;;  %9654 = vmatprep.subr.bf16.mxu1 %v11738_v41 }
0x1473   :  { %v5473_v32 = vpop.f32.mrb[76].mxu0  ;;  %v5550_v39 = vpop.f32.mrb[76].mxu1 }
0x1474   :  { %v10401_v33 = vadd.f32 %v5473_v32, %v12373_v23  ;;  %v5475_v40 = vpop.f32.mrb[77].mxu0  ;;  %v5552_v42 = vpop.f32.mrb[77].mxu1  ;;  %v10529_v10 = vadd.f32 %v5550_v39, %v12383_v61 }
0x1475   :  { %v10402_v44 = vadd.f32 %v5475_v40, %v12375_v28  ;;  %v10530_v37 = vadd.f32 %v5552_v42, %v12377_v31 }
0x1476   :  { %v5569_v48 = vmul.f32 0.5, %v10401_v33  ;;  %v5571_v19 = vmul.f32 0.5, %v10529_v10 }
0x1477   :  { %v5570_v36 = vmul.f32 0.5, %v10402_v44  ;;  %v5479_v52 = vpop.f32.mrb[78].mxu0  ;;  %v5556_v53 = vpop.f32.mrb[78].mxu1 }
0x1478   :  { %11218 = vtanh.f32 %v5569_v48  ;;  %v10403_v57 = vadd.f32 %v5479_v52, %v12373_v23  ;;  %v5481_v1 = vpop.f32.mrb[79].mxu0  ;;  %v5558_v2 = vpop.f32.mrb[79].mxu1  ;;  %v10531_v20 = vadd.f32 %v5556_v53, %v12383_v61 }
0x1479   :  { %v10404_v4 = vadd.f32 %v5481_v1, %v12375_v28  ;;  %11220 = vtanh.f32 %v5570_v36  ;;  %v10532_v17 = vadd.f32 %v5558_v2, %v12377_v31 }
0x147a   :  { %v5572_v6 = vmul.f32 0.5, %v10403_v57  ;;  %11222 = vtanh.f32 %v10530_v37  ;;  %v5574_v40 = vmul.f32 0.5, %v10531_v20 }
0x147b   :  { %v5573_v8 = vmul.f32 0.5, %v10404_v4 }
0x147c   :  { %11224 = vtanh.f32 %v5572_v6 }
0x147d   :  { %11226 = vtanh.f32 %v5573_v8 }
0x147e   :  { %11228 = vtanh.f32 %v10532_v17 }
0x147f   :  { %11230 = vtanh.f32 %v5571_v19 }
0x1480   :  { %11232 = vtanh.f32 %v5574_v40 }
0x1482   :  { %v11219_v22 = vpop.eup %11218 }
0x1483   :  { %v5581_v29 = vmul.f32 0.5, %v11219_v22  ;;  %v11221_v7 = vpop.eup %11220 }
0x1484   :  { %v11223_v9 = vpop.eup %11222  ;;  %v5582_v33 = vmul.f32 0.5, %v11221_v7 }
0x1485   :  { %v5587_v32 = vadd.f32 0.5, %v5581_v29 }
0x1486   :  { %v11225_v42 = vpop.eup %11224  ;;  %v5588_v44 = vadd.f32 0.5, %v5582_v33 }
0x1487   :  { %v5597_v48 = vmul.f32 %v11223_v9, %v5587_v32  ;;  %v5584_v36 = vmul.f32 0.5, %v11225_v42  ;;  %v11227_v37 = vpop.eup %11226 }
0x1488   :  { %v5595_v39 = vmul.f32 %v5588_v44, %v13438_v58  ;;  %v5585_v57 = vmul.f32 0.5, %v11227_v37  ;;  %v11229_v1 = vpop.eup %11228 }
0x1489   :  { %v5590_v52 = vadd.f32 0.5, %v5584_v36  ;;  %v11231_v8 = vpop.eup %11230 }
0x148a   :  { %v13496_v53 = vadd.f32 %v5597_v48, %v5595_v39  ;;  %v5591_v2 = vadd.f32 0.5, %v5585_v57  ;;  %v5583_v10 = vmul.f32 0.5, %v11231_v8  ;;  %v11233_v19 = vpop.eup %11232 }
0x148b   :  { %v5598_v4 = vmul.f32 %v11229_v1, %v5590_v52  ;;  %v5586_v20 = vmul.f32 0.5, %v11233_v19 }
0x148c   :  { %11234 = vtanh.f32 %v13496_v53  ;;  %v5596_v6 = vmul.f32 %v5591_v2, %v13442_v15  ;;  %v5589_v58 = vadd.f32 0.5, %v5583_v10 }
0x148d   :  { %v5592_v7 = vadd.f32 0.5, %v5586_v20 }
0x148e   :  { %v13500_v17 = vadd.f32 %v5598_v4, %v5596_v6 }
0x1490   :  { %11236 = vtanh.f32 %v13500_v17 }
0x1496   :  { %v11235_v22 = vpop.eup %11234 }
0x1497   :  { %v5603_v29 = vmul.f32 %v11235_v22, %v5589_v58 }
0x1499   :  { %8187 = vst [vmem:[%s14181_s6 + $0x130] sm:$0xff] %v5603_v29  ;;  %5682 = vmatmul.mubr.f32.vlgmr.msra.gmra.mrb[80].mxu0 %v5603_v29  ;;  %5759 = vmatmul.mubr.f32.vlgmr.msra.gmra.mrb[80].mxu1 %v5603_v29 }
0x149a   :  { %v11237_v9 = vpop.eup %11236  ;;  %5687 = vmatprep.mubr.f32.mxu0 %v11478_v3  ;;  %5764 = vmatprep.mubr.f32.mxu1 %v11478_v3 }
0x149b   :  { %v5604_v15 = vmul.f32 %v11237_v9, %v5592_v7  ;;  %9624 = vmatpush1.bf16.msra.mxu0 %v11755_v47  ;;  %9656 = vmatpush1.bf16.msra.mxu1 %v11765_v50 }
0x149c   :  { %9626 = vmatprep.subr.bf16.mxu0 %v11767_v51  ;;  %9658 = vmatprep.subr.bf16.mxu1 %v11778_v55 }
0x149d   :  { %8188 = vst [vmem:[%s14181_s6 + $0x138] sm:$0xff] %v5604_v15  ;;  %5688 = vmatmul.mubr.f32.gmra.mrb[82].mxu0 %v5604_v15  ;;  %5765 = vmatmul.mubr.f32.gmra.mrb[82].mxu1 %v5604_v15 }
0x149e   :  { %5891 = vmatprep.mubr.f32.mxu0 %v11478_v3  ;;  %5968 = vmatprep.mubr.f32.mxu1 %v11478_v3 }
0x149f   :  { %9628 = vmatpush1.bf16.msra.mxu0 %v11801_v62  ;;  %9660 = vmatpush1.bf16.msra.mxu1 %v11805_v63 }
0x14a0   :  { %9630 = vmatprep.subr.bf16.mxu0 %v11807_v0  ;;  %9662 = vmatprep.subr.bf16.mxu1 %v11819_v5 }
0x14a3   :  { %9632 = vmatpush1.bf16.msra.mxu0 %v11842_v12  ;;  %9664 = vmatpush1.bf16.msra.mxu1 %v11846_v13 }
0x14a4   :  { %9634 = vmatprep.subr.bf16.mxu0 %v11848_v14  ;;  %9666 = vmatprep.subr.bf16.mxu1 %v11860_v18 }
0x14a7   :  { %9636 = vmatpush1.bf16.msra.mxu0 %v11880_v24  ;;  %9668 = vmatpush1.bf16.msra.mxu1 %v11887_v26 }
0x14a8   :  { %9638 = vmatprep.subr.bf16.mxu0 %v11889_v27  ;;  %9670 = vmatprep.subr.bf16.mxu1 %v11898_v30 }
0x14ab   :  { %9640 = vmatpush1.bf16.msra.mxu0 %v11912_v34  ;;  %9672 = vmatpush1.bf16.msra.mxu1 %v11916_v35 }
0x14ac   :  { %9642 = vmatprep.subr.bf16.mxu0 %v11955_v46  ;;  %9674 = vmatprep.subr.bf16.mxu1 %v11975_v56 }
0x14af   :  { %9644 = vmatpush1.bf16.msra.mxu0 %v11960_v49  ;;  %9676 = vmatpush1.bf16.msra.mxu1 %v11983_v59 }
0x14b0   :  { %9646 = vmatprep.subr.bf16.mxu0 %v12031_v11  ;;  %9678 = vmatprep.subr.bf16.mxu1 %v12051_v21 }
0x14b3   :  { %9648 = vmatpush1.bf16.msra.mxu0 %v12036_v16  ;;  %9680 = vmatpush1.bf16.msra.mxu1 %v12059_v25 }
0x14b4   :  { %9650 = vmatprep.subr.bf16.mxu0 %v12107_v43  ;;  %9682 = vmatprep.subr.bf16.mxu1 %v12127_v54 }
0x14b7   :  { %9652 = vmatpush1.bf16.msra.mxu0 %v12112_v45  ;;  %9684 = vmatpush1.bf16.msra.mxu1 %v12135_v60 }
0x14b8   :  { %9686 = vmatprep.subr.bf16.mxu0 %v11730_v38  ;;  %9718 = vmatprep.subr.bf16.mxu1 %v11738_v41 }
0x156c   :  { %v5683_v32 = vpop.f32.mrb[80].mxu0  ;;  %v5760_v33 = vpop.f32.mrb[80].mxu1 }
0x156d   :  { %v10405_v40 = vadd.f32 %v5683_v32, %v12373_v23  ;;  %v5685_v42 = vpop.f32.mrb[81].mxu0  ;;  %v5762_v44 = vpop.f32.mrb[81].mxu1  ;;  %v10533_v58 = vadd.f32 %v5760_v33, %v12383_v61 }
0x156e   :  { %v10406_v48 = vadd.f32 %v5685_v42, %v12375_v28  ;;  %v10534_v39 = vadd.f32 %v5762_v44, %v12377_v31 }
0x156f   :  { %v5779_v36 = vmul.f32 0.5, %v10405_v40  ;;  %v5781_v20 = vmul.f32 0.5, %v10533_v58 }
0x1570   :  { %v5780_v37 = vmul.f32 0.5, %v10406_v48  ;;  %v5689_v52 = vpop.f32.mrb[82].mxu0  ;;  %v5766_v57 = vpop.f32.mrb[82].mxu1 }
0x1571   :  { %11238 = vtanh.f32 %v5779_v36  ;;  %v10407_v1 = vadd.f32 %v5689_v52, %v12373_v23  ;;  %v5691_v2 = vpop.f32.mrb[83].mxu0  ;;  %v5768_v4 = vpop.f32.mrb[83].mxu1  ;;  %v10535_v22 = vadd.f32 %v5766_v57, %v12383_v61 }
0x1572   :  { %v10408_v6 = vadd.f32 %v5691_v2, %v12375_v28  ;;  %11240 = vtanh.f32 %v5780_v37  ;;  %v10536_v19 = vadd.f32 %v5768_v4, %v12377_v31 }
0x1573   :  { %v5782_v8 = vmul.f32 0.5, %v10407_v1  ;;  %11242 = vtanh.f32 %v10534_v39  ;;  %v5784_v42 = vmul.f32 0.5, %v10535_v22 }
0x1574   :  { %v5783_v10 = vmul.f32 0.5, %v10408_v6 }
0x1575   :  { %11244 = vtanh.f32 %v5782_v8 }
0x1576   :  { %11246 = vtanh.f32 %v5783_v10 }
0x1577   :  { %11248 = vtanh.f32 %v10536_v19 }
0x1578   :  { %11250 = vtanh.f32 %v5781_v20 }
0x1579   :  { %11252 = vtanh.f32 %v5784_v42 }
0x157b   :  { %v11239_v29 = vpop.eup %11238 }
0x157c   :  { %v5791_v7 = vmul.f32 0.5, %v11239_v29  ;;  %v11241_v9 = vpop.eup %11240 }
0x157d   :  { %v11243_v15 = vpop.eup %11242  ;;  %v5792_v40 = vmul.f32 0.5, %v11241_v9 }
0x157e   :  { %v5797_v32 = vadd.f32 0.5, %v5791_v7 }
0x157f   :  { %v11245_v44 = vpop.eup %11244  ;;  %v5798_v48 = vadd.f32 0.5, %v5792_v40 }
0x1580   :  { %v5807_v36 = vmul.f32 %v11243_v15, %v5797_v32  ;;  %v5794_v37 = vmul.f32 0.5, %v11245_v44  ;;  %v11247_v39 = vpop.eup %11246 }
0x1581   :  { %v5805_v33 = vmul.f32 %v5798_v48, %v13496_v53  ;;  %v5795_v1 = vmul.f32 0.5, %v11247_v39  ;;  %v11249_v2 = vpop.eup %11248 }
0x1582   :  { %v5800_v52 = vadd.f32 0.5, %v5794_v37  ;;  %v11251_v10 = vpop.eup %11250 }
0x1583   :  { %v13554_v57 = vadd.f32 %v5807_v36, %v5805_v33  ;;  %v5801_v4 = vadd.f32 0.5, %v5795_v1  ;;  %v5793_v58 = vmul.f32 0.5, %v11251_v10  ;;  %v11253_v20 = vpop.eup %11252 }
0x1584   :  { %v5808_v6 = vmul.f32 %v11249_v2, %v5800_v52  ;;  %v5796_v22 = vmul.f32 0.5, %v11253_v20 }
0x1585   :  { %11254 = vtanh.f32 %v13554_v57  ;;  %v5806_v8 = vmul.f32 %v5801_v4, %v13500_v17  ;;  %v5799_v53 = vadd.f32 0.5, %v5793_v58 }
0x1586   :  { %v5802_v9 = vadd.f32 0.5, %v5796_v22 }
0x1587   :  { %v13558_v19 = vadd.f32 %v5808_v6, %v5806_v8 }
0x1589   :  { %11256 = vtanh.f32 %v13558_v19 }
0x158f   :  { %v11255_v29 = vpop.eup %11254 }
0x1590   :  { %v5813_v7 = vmul.f32 %v11255_v29, %v5799_v53 }
0x1592   :  { %8189 = vst [vmem:[%s14181_s6 + $0x140] sm:$0xff] %v5813_v7  ;;  %5892 = vmatmul.mubr.f32.vlgmr.msra.gmra.mrb[84].mxu0 %v5813_v7  ;;  %5969 = vmatmul.mubr.f32.vlgmr.msra.gmra.mrb[84].mxu1 %v5813_v7 }
0x1593   :  { %v11257_v15 = vpop.eup %11256  ;;  %5897 = vmatprep.mubr.f32.mxu0 %v11478_v3  ;;  %5974 = vmatprep.mubr.f32.mxu1 %v11478_v3 }
0x1594   :  { %v5814_v17 = vmul.f32 %v11257_v15, %v5802_v9  ;;  %9688 = vmatpush1.bf16.msra.mxu0 %v11755_v47  ;;  %9720 = vmatpush1.bf16.msra.mxu1 %v11765_v50 }
0x1595   :  { %9690 = vmatprep.subr.bf16.mxu0 %v11767_v51  ;;  %9722 = vmatprep.subr.bf16.mxu1 %v11778_v55 }
0x1596   :  { %8190 = vst [vmem:[%s14181_s6 + $0x148] sm:$0xff] %v5814_v17  ;;  %5898 = vmatmul.mubr.f32.gmra.mrb[86].mxu0 %v5814_v17  ;;  %5975 = vmatmul.mubr.f32.gmra.mrb[86].mxu1 %v5814_v17 }
0x1597   :  { %6101 = vmatprep.mubr.f32.mxu0 %v11478_v3  ;;  %6178 = vmatprep.mubr.f32.mxu1 %v11478_v3 }
0x1598   :  { %9692 = vmatpush1.bf16.msra.mxu0 %v11801_v62  ;;  %9724 = vmatpush1.bf16.msra.mxu1 %v11805_v63 }
0x1599   :  { %9694 = vmatprep.subr.bf16.mxu0 %v11807_v0  ;;  %9726 = vmatprep.subr.bf16.mxu1 %v11819_v5 }
0x159c   :  { %9696 = vmatpush1.bf16.msra.mxu0 %v11842_v12  ;;  %9728 = vmatpush1.bf16.msra.mxu1 %v11846_v13 }
0x159d   :  { %9698 = vmatprep.subr.bf16.mxu0 %v11848_v14  ;;  %9730 = vmatprep.subr.bf16.mxu1 %v11860_v18 }
0x15a0   :  { %9700 = vmatpush1.bf16.msra.mxu0 %v11880_v24  ;;  %9732 = vmatpush1.bf16.msra.mxu1 %v11887_v26 }
0x15a1   :  { %9702 = vmatprep.subr.bf16.mxu0 %v11889_v27  ;;  %9734 = vmatprep.subr.bf16.mxu1 %v11898_v30 }
0x15a4   :  { %9704 = vmatpush1.bf16.msra.mxu0 %v11912_v34  ;;  %9736 = vmatpush1.bf16.msra.mxu1 %v11916_v35 }
0x15a5   :  { %9706 = vmatprep.subr.bf16.mxu0 %v11955_v46  ;;  %9738 = vmatprep.subr.bf16.mxu1 %v11975_v56 }
0x15a8   :  { %9708 = vmatpush1.bf16.msra.mxu0 %v11960_v49  ;;  %9740 = vmatpush1.bf16.msra.mxu1 %v11983_v59 }
0x15a9   :  { %9710 = vmatprep.subr.bf16.mxu0 %v12031_v11  ;;  %9742 = vmatprep.subr.bf16.mxu1 %v12051_v21 }
0x15ac   :  { %9712 = vmatpush1.bf16.msra.mxu0 %v12036_v16  ;;  %9744 = vmatpush1.bf16.msra.mxu1 %v12059_v25 }
0x15ad   :  { %9714 = vmatprep.subr.bf16.mxu0 %v12107_v43  ;;  %9746 = vmatprep.subr.bf16.mxu1 %v12127_v54 }
0x15b0   :  { %9716 = vmatpush1.bf16.msra.mxu0 %v12112_v45  ;;  %9748 = vmatpush1.bf16.msra.mxu1 %v12135_v60 }
0x15b1   :  { %9750 = vmatprep.subr.bf16.mxu0 %v11730_v38  ;;  %9782 = vmatprep.subr.bf16.mxu1 %v11738_v41 }
0x1665   :  { %v5893_v32 = vpop.f32.mrb[84].mxu0  ;;  %v5970_v40 = vpop.f32.mrb[84].mxu1 }
0x1666   :  { %v10409_v42 = vadd.f32 %v5893_v32, %v12373_v23  ;;  %v5895_v44 = vpop.f32.mrb[85].mxu0  ;;  %v5972_v48 = vpop.f32.mrb[85].mxu1  ;;  %v10537_v53 = vadd.f32 %v5970_v40, %v12383_v61 }
0x1667   :  { %v10410_v36 = vadd.f32 %v5895_v44, %v12375_v28  ;;  %v10538_v33 = vadd.f32 %v5972_v48, %v12377_v31 }
0x1668   :  { %v5989_v37 = vmul.f32 0.5, %v10409_v42  ;;  %v5991_v22 = vmul.f32 0.5, %v10537_v53 }
0x1669   :  { %v5990_v39 = vmul.f32 0.5, %v10410_v36  ;;  %v5899_v52 = vpop.f32.mrb[86].mxu0  ;;  %v5976_v1 = vpop.f32.mrb[86].mxu1 }
0x166a   :  { %11258 = vtanh.f32 %v5989_v37  ;;  %v10411_v2 = vadd.f32 %v5899_v52, %v12373_v23  ;;  %v5901_v4 = vpop.f32.mrb[87].mxu0  ;;  %v5978_v6 = vpop.f32.mrb[87].mxu1  ;;  %v10539_v29 = vadd.f32 %v5976_v1, %v12383_v61 }
0x166b   :  { %v10412_v8 = vadd.f32 %v5901_v4, %v12375_v28  ;;  %11260 = vtanh.f32 %v5990_v39  ;;  %v10540_v20 = vadd.f32 %v5978_v6, %v12377_v31 }
0x166c   :  { %v5992_v10 = vmul.f32 0.5, %v10411_v2  ;;  %11262 = vtanh.f32 %v10538_v33  ;;  %v5994_v44 = vmul.f32 0.5, %v10539_v29 }
0x166d   :  { %v5993_v58 = vmul.f32 0.5, %v10412_v8 }
0x166e   :  { %11264 = vtanh.f32 %v5992_v10 }
0x166f   :  { %11266 = vtanh.f32 %v5993_v58 }
0x1670   :  { %11268 = vtanh.f32 %v10540_v20 }
0x1671   :  { %11270 = vtanh.f32 %v5991_v22 }
0x1672   :  { %11272 = vtanh.f32 %v5994_v44 }
0x1674   :  { %v11259_v7 = vpop.eup %11258 }
0x1675   :  { %v6001_v9 = vmul.f32 0.5, %v11259_v7  ;;  %v11261_v15 = vpop.eup %11260 }
0x1676   :  { %v11263_v17 = vpop.eup %11262  ;;  %v6002_v42 = vmul.f32 0.5, %v11261_v15 }
0x1677   :  { %v6007_v32 = vadd.f32 0.5, %v6001_v9 }
0x1678   :  { %v11265_v48 = vpop.eup %11264  ;;  %v6008_v36 = vadd.f32 0.5, %v6002_v42 }
0x1679   :  { %v6017_v37 = vmul.f32 %v11263_v17, %v6007_v32  ;;  %v6004_v39 = vmul.f32 0.5, %v11265_v48  ;;  %v11267_v33 = vpop.eup %11266 }
0x167a   :  { %v6015_v40 = vmul.f32 %v6008_v36, %v13554_v57  ;;  %v6005_v2 = vmul.f32 0.5, %v11267_v33  ;;  %v11269_v4 = vpop.eup %11268 }
0x167b   :  { %v6010_v52 = vadd.f32 0.5, %v6004_v39  ;;  %v11271_v58 = vpop.eup %11270 }
0x167c   :  { %v13612_v1 = vadd.f32 %v6017_v37, %v6015_v40  ;;  %v6011_v6 = vadd.f32 0.5, %v6005_v2  ;;  %v6003_v53 = vmul.f32 0.5, %v11271_v58  ;;  %v11273_v22 = vpop.eup %11272 }
0x167d   :  { %v6018_v8 = vmul.f32 %v11269_v4, %v6010_v52  ;;  %v6006_v29 = vmul.f32 0.5, %v11273_v22 }
0x167e   :  { %11274 = vtanh.f32 %v13612_v1  ;;  %v6016_v10 = vmul.f32 %v6011_v6, %v13558_v19  ;;  %v6009_v57 = vadd.f32 0.5, %v6003_v53 }
0x167f   :  { %v6012_v15 = vadd.f32 0.5, %v6006_v29 }
0x1680   :  { %v13616_v20 = vadd.f32 %v6018_v8, %v6016_v10 }
0x1682   :  { %11276 = vtanh.f32 %v13616_v20 }
0x1688   :  { %v11275_v7 = vpop.eup %11274 }
0x1689   :  { %v6023_v9 = vmul.f32 %v11275_v7, %v6009_v57 }
0x168b   :  { %8191 = vst [vmem:[%s14181_s6 + $0x150] sm:$0xff] %v6023_v9  ;;  %6102 = vmatmul.mubr.f32.vlgmr.msra.gmra.mrb[88].mxu0 %v6023_v9  ;;  %6179 = vmatmul.mubr.f32.vlgmr.msra.gmra.mrb[88].mxu1 %v6023_v9 }
0x168c   :  { %v11277_v17 = vpop.eup %11276  ;;  %6107 = vmatprep.mubr.f32.mxu0 %v11478_v3  ;;  %6184 = vmatprep.mubr.f32.mxu1 %v11478_v3 }
0x168d   :  { %v6024_v19 = vmul.f32 %v11277_v17, %v6012_v15  ;;  %9752 = vmatpush1.bf16.msra.mxu0 %v11755_v47  ;;  %9784 = vmatpush1.bf16.msra.mxu1 %v11765_v50 }
0x168e   :  { %9754 = vmatprep.subr.bf16.mxu0 %v11767_v51  ;;  %9786 = vmatprep.subr.bf16.mxu1 %v11778_v55 }
0x168f   :  { %8192 = vst [vmem:[%s14181_s6 + $0x158] sm:$0xff] %v6024_v19  ;;  %6108 = vmatmul.mubr.f32.gmra.mrb[90].mxu0 %v6024_v19  ;;  %6185 = vmatmul.mubr.f32.gmra.mrb[90].mxu1 %v6024_v19 }
0x1690   :  { %6311 = vmatprep.mubr.f32.mxu0 %v11478_v3  ;;  %6388 = vmatprep.mubr.f32.mxu1 %v11478_v3 }
0x1691   :  { %9756 = vmatpush1.bf16.msra.mxu0 %v11801_v62  ;;  %9788 = vmatpush1.bf16.msra.mxu1 %v11805_v63 }
0x1692   :  { %9758 = vmatprep.subr.bf16.mxu0 %v11807_v0  ;;  %9790 = vmatprep.subr.bf16.mxu1 %v11819_v5 }
0x1695   :  { %9760 = vmatpush1.bf16.msra.mxu0 %v11842_v12  ;;  %9792 = vmatpush1.bf16.msra.mxu1 %v11846_v13 }
0x1696   :  { %9762 = vmatprep.subr.bf16.mxu0 %v11848_v14  ;;  %9794 = vmatprep.subr.bf16.mxu1 %v11860_v18 }
0x1699   :  { %9764 = vmatpush1.bf16.msra.mxu0 %v11880_v24  ;;  %9796 = vmatpush1.bf16.msra.mxu1 %v11887_v26 }
0x169a   :  { %9766 = vmatprep.subr.bf16.mxu0 %v11889_v27  ;;  %9798 = vmatprep.subr.bf16.mxu1 %v11898_v30 }
0x169d   :  { %9768 = vmatpush1.bf16.msra.mxu0 %v11912_v34  ;;  %9800 = vmatpush1.bf16.msra.mxu1 %v11916_v35 }
0x169e   :  { %9770 = vmatprep.subr.bf16.mxu0 %v11955_v46  ;;  %9802 = vmatprep.subr.bf16.mxu1 %v11975_v56 }
0x16a1   :  { %9772 = vmatpush1.bf16.msra.mxu0 %v11960_v49  ;;  %9804 = vmatpush1.bf16.msra.mxu1 %v11983_v59 }
0x16a2   :  { %9774 = vmatprep.subr.bf16.mxu0 %v12031_v11  ;;  %9806 = vmatprep.subr.bf16.mxu1 %v12051_v21 }
0x16a5   :  { %9776 = vmatpush1.bf16.msra.mxu0 %v12036_v16  ;;  %9808 = vmatpush1.bf16.msra.mxu1 %v12059_v25 }
0x16a6   :  { %9778 = vmatprep.subr.bf16.mxu0 %v12107_v43  ;;  %9810 = vmatprep.subr.bf16.mxu1 %v12127_v54 }
0x16a9   :  { %9780 = vmatpush1.bf16.msra.mxu0 %v12112_v45  ;;  %9812 = vmatpush1.bf16.msra.mxu1 %v12135_v60 }
0x16aa   :  { %9814 = vmatprep.subr.bf16.mxu0 %v11730_v38  ;;  %9846 = vmatprep.subr.bf16.mxu1 %v11738_v41 }
0x175e   :  { %v6103_v32 = vpop.f32.mrb[88].mxu0  ;;  %v6180_v42 = vpop.f32.mrb[88].mxu1 }
0x175f   :  { %v10413_v44 = vadd.f32 %v6103_v32, %v12373_v23  ;;  %v6105_v48 = vpop.f32.mrb[89].mxu0  ;;  %v6182_v36 = vpop.f32.mrb[89].mxu1  ;;  %v10541_v57 = vadd.f32 %v6180_v42, %v12383_v61 }
0x1760   :  { %v10414_v37 = vadd.f32 %v6105_v48, %v12375_v28  ;;  %v10542_v40 = vadd.f32 %v6182_v36, %v12377_v31 }
0x1761   :  { %v6199_v39 = vmul.f32 0.5, %v10413_v44  ;;  %v6201_v29 = vmul.f32 0.5, %v10541_v57 }
0x1762   :  { %v6200_v33 = vmul.f32 0.5, %v10414_v37  ;;  %v6109_v52 = vpop.f32.mrb[90].mxu0  ;;  %v6186_v2 = vpop.f32.mrb[90].mxu1 }
0x1763   :  { %11278 = vtanh.f32 %v6199_v39  ;;  %v10415_v4 = vadd.f32 %v6109_v52, %v12373_v23  ;;  %v6111_v6 = vpop.f32.mrb[91].mxu0  ;;  %v6188_v8 = vpop.f32.mrb[91].mxu1  ;;  %v10543_v7 = vadd.f32 %v6186_v2, %v12383_v61 }
0x1764   :  { %v10416_v10 = vadd.f32 %v6111_v6, %v12375_v28  ;;  %11280 = vtanh.f32 %v6200_v33  ;;  %v10544_v22 = vadd.f32 %v6188_v8, %v12377_v31 }
0x1765   :  { %v6202_v58 = vmul.f32 0.5, %v10415_v4  ;;  %11282 = vtanh.f32 %v10542_v40  ;;  %v6204_v48 = vmul.f32 0.5, %v10543_v7 }
0x1766   :  { %v6203_v53 = vmul.f32 0.5, %v10416_v10 }
0x1767   :  { %11284 = vtanh.f32 %v6202_v58 }
0x1768   :  { %11286 = vtanh.f32 %v6203_v53 }
0x1769   :  { %11288 = vtanh.f32 %v10544_v22 }
0x176a   :  { %11290 = vtanh.f32 %v6201_v29 }
0x176b   :  { %11292 = vtanh.f32 %v6204_v48 }
0x176d   :  { %v11279_v9 = vpop.eup %11278 }
0x176e   :  { %v6211_v15 = vmul.f32 0.5, %v11279_v9  ;;  %v11281_v17 = vpop.eup %11280 }
0x176f   :  { %v11283_v19 = vpop.eup %11282  ;;  %v6212_v44 = vmul.f32 0.5, %v11281_v17 }
0x1770   :  { %v6217_v32 = vadd.f32 0.5, %v6211_v15 }
0x1771   :  { %v11285_v36 = vpop.eup %11284  ;;  %v6218_v37 = vadd.f32 0.5, %v6212_v44 }
0x1772   :  { %v6227_v39 = vmul.f32 %v11283_v19, %v6217_v32  ;;  %v6214_v33 = vmul.f32 0.5, %v11285_v36  ;;  %v11287_v40 = vpop.eup %11286 }
0x1773   :  { %v6225_v42 = vmul.f32 %v6218_v37, %v13612_v1  ;;  %v6215_v4 = vmul.f32 0.5, %v11287_v40  ;;  %v11289_v6 = vpop.eup %11288 }
0x1774   :  { %v6220_v52 = vadd.f32 0.5, %v6214_v33  ;;  %v11291_v53 = vpop.eup %11290 }
0x1775   :  { %v13670_v2 = vadd.f32 %v6227_v39, %v6225_v42  ;;  %v6221_v8 = vadd.f32 0.5, %v6215_v4  ;;  %v6213_v57 = vmul.f32 0.5, %v11291_v53  ;;  %v11293_v29 = vpop.eup %11292 }
0x1776   :  { %v6228_v10 = vmul.f32 %v11289_v6, %v6220_v52  ;;  %v6216_v7 = vmul.f32 0.5, %v11293_v29 }
0x1777   :  { %11294 = vtanh.f32 %v13670_v2  ;;  %v6226_v58 = vmul.f32 %v6221_v8, %v13616_v20  ;;  %v6219_v1 = vadd.f32 0.5, %v6213_v57 }
0x1778   :  { %v6222_v17 = vadd.f32 0.5, %v6216_v7 }
0x1779   :  { %v13674_v22 = vadd.f32 %v6228_v10, %v6226_v58 }
0x177b   :  { %11296 = vtanh.f32 %v13674_v22 }
0x1781   :  { %v11295_v9 = vpop.eup %11294 }
0x1782   :  { %v6233_v15 = vmul.f32 %v11295_v9, %v6219_v1 }
0x1784   :  { %8193 = vst [vmem:[%s14181_s6 + $0x160] sm:$0xff] %v6233_v15  ;;  %6312 = vmatmul.mubr.f32.vlgmr.msra.gmra.mrb[92].mxu0 %v6233_v15  ;;  %6389 = vmatmul.mubr.f32.vlgmr.msra.gmra.mrb[92].mxu1 %v6233_v15 }
0x1785   :  { %v11297_v19 = vpop.eup %11296  ;;  %6317 = vmatprep.mubr.f32.mxu0 %v11478_v3  ;;  %6394 = vmatprep.mubr.f32.mxu1 %v11478_v3 }
0x1786   :  { %v6234_v20 = vmul.f32 %v11297_v19, %v6222_v17  ;;  %9816 = vmatpush1.bf16.msra.mxu0 %v11755_v47  ;;  %9848 = vmatpush1.bf16.msra.mxu1 %v11765_v50 }
0x1787   :  { %9818 = vmatprep.subr.bf16.mxu0 %v11767_v51  ;;  %9850 = vmatprep.subr.bf16.mxu1 %v11778_v55 }
0x1788   :  { %8194 = vst [vmem:[%s14181_s6 + $0x168] sm:$0xff] %v6234_v20  ;;  %6318 = vmatmul.mubr.f32.gmra.mrb[94].mxu0 %v6234_v20  ;;  %6395 = vmatmul.mubr.f32.gmra.mrb[94].mxu1 %v6234_v20 }
0x1789   :  { %6521 = vmatprep.mubr.f32.mxu0 %v11478_v3  ;;  %6598 = vmatprep.mubr.f32.mxu1 %v11478_v3 }
0x178a   :  { %9820 = vmatpush1.bf16.msra.mxu0 %v11801_v62  ;;  %9852 = vmatpush1.bf16.msra.mxu1 %v11805_v63 }
0x178b   :  { %9822 = vmatprep.subr.bf16.mxu0 %v11807_v0  ;;  %9854 = vmatprep.subr.bf16.mxu1 %v11819_v5 }
0x178e   :  { %9824 = vmatpush1.bf16.msra.mxu0 %v11842_v12  ;;  %9856 = vmatpush1.bf16.msra.mxu1 %v11846_v13 }
0x178f   :  { %9826 = vmatprep.subr.bf16.mxu0 %v11848_v14  ;;  %9858 = vmatprep.subr.bf16.mxu1 %v11860_v18 }
0x1792   :  { %9828 = vmatpush1.bf16.msra.mxu0 %v11880_v24  ;;  %9860 = vmatpush1.bf16.msra.mxu1 %v11887_v26 }
0x1793   :  { %9830 = vmatprep.subr.bf16.mxu0 %v11889_v27  ;;  %9862 = vmatprep.subr.bf16.mxu1 %v11898_v30 }
0x1796   :  { %9832 = vmatpush1.bf16.msra.mxu0 %v11912_v34  ;;  %9864 = vmatpush1.bf16.msra.mxu1 %v11916_v35 }
0x1797   :  { %9834 = vmatprep.subr.bf16.mxu0 %v11955_v46  ;;  %9866 = vmatprep.subr.bf16.mxu1 %v11975_v56 }
0x179a   :  { %9836 = vmatpush1.bf16.msra.mxu0 %v11960_v49  ;;  %9868 = vmatpush1.bf16.msra.mxu1 %v11983_v59 }
0x179b   :  { %9838 = vmatprep.subr.bf16.mxu0 %v12031_v11  ;;  %9870 = vmatprep.subr.bf16.mxu1 %v12051_v21 }
0x179e   :  { %9840 = vmatpush1.bf16.msra.mxu0 %v12036_v16  ;;  %9872 = vmatpush1.bf16.msra.mxu1 %v12059_v25 }
0x179f   :  { %9842 = vmatprep.subr.bf16.mxu0 %v12107_v43  ;;  %9874 = vmatprep.subr.bf16.mxu1 %v12127_v54 }
0x17a2   :  { %9844 = vmatpush1.bf16.msra.mxu0 %v12112_v45  ;;  %9876 = vmatpush1.bf16.msra.mxu1 %v12135_v60 }
0x17a3   :  { %9878 = vmatprep.subr.bf16.mxu0 %v11730_v38  ;;  %9910 = vmatprep.subr.bf16.mxu1 %v11738_v41 }
0x1857   :  { %v6313_v32 = vpop.f32.mrb[92].mxu0  ;;  %v6390_v44 = vpop.f32.mrb[92].mxu1 }
0x1858   :  { %v10417_v48 = vadd.f32 %v6313_v32, %v12373_v23  ;;  %v6315_v36 = vpop.f32.mrb[93].mxu0  ;;  %v6392_v37 = vpop.f32.mrb[93].mxu1  ;;  %v10545_v1 = vadd.f32 %v6390_v44, %v12383_v61 }
0x1859   :  { %v10418_v39 = vadd.f32 %v6315_v36, %v12375_v28  ;;  %v10546_v42 = vadd.f32 %v6392_v37, %v12377_v31 }
0x185a   :  { %v6409_v33 = vmul.f32 0.5, %v10417_v48  ;;  %v6411_v7 = vmul.f32 0.5, %v10545_v1 }
0x185b   :  { %v6410_v40 = vmul.f32 0.5, %v10418_v39  ;;  %v6319_v52 = vpop.f32.mrb[94].mxu0  ;;  %v6396_v4 = vpop.f32.mrb[94].mxu1 }
0x185c   :  { %11298 = vtanh.f32 %v6409_v33  ;;  %v10419_v6 = vadd.f32 %v6319_v52, %v12373_v23  ;;  %v6321_v8 = vpop.f32.mrb[95].mxu0  ;;  %v6398_v10 = vpop.f32.mrb[95].mxu1  ;;  %v10547_v9 = vadd.f32 %v6396_v4, %v12383_v61 }
0x185d   :  { %v10420_v58 = vadd.f32 %v6321_v8, %v12375_v28  ;;  %11300 = vtanh.f32 %v6410_v40  ;;  %v10548_v29 = vadd.f32 %v6398_v10, %v12377_v31 }
0x185e   :  { %v6412_v53 = vmul.f32 0.5, %v10419_v6  ;;  %11302 = vtanh.f32 %v10546_v42  ;;  %v6414_v36 = vmul.f32 0.5, %v10547_v9 }
0x185f   :  { %v6413_v57 = vmul.f32 0.5, %v10420_v58 }
0x1860   :  { %11304 = vtanh.f32 %v6412_v53 }
0x1861   :  { %11306 = vtanh.f32 %v6413_v57 }
0x1862   :  { %11308 = vtanh.f32 %v10548_v29 }
0x1863   :  { %11310 = vtanh.f32 %v6411_v7 }
0x1864   :  { %11312 = vtanh.f32 %v6414_v36 }
0x1866   :  { %v11299_v15 = vpop.eup %11298 }
0x1867   :  { %v6421_v17 = vmul.f32 0.5, %v11299_v15  ;;  %v11301_v19 = vpop.eup %11300 }
0x1868   :  { %v11303_v20 = vpop.eup %11302  ;;  %v6422_v48 = vmul.f32 0.5, %v11301_v19 }
0x1869   :  { %v6427_v32 = vadd.f32 0.5, %v6421_v17 }
0x186a   :  { %v11305_v37 = vpop.eup %11304  ;;  %v6428_v39 = vadd.f32 0.5, %v6422_v48 }
0x186b   :  { %v6437_v33 = vmul.f32 %v11303_v20, %v6427_v32  ;;  %v6424_v40 = vmul.f32 0.5, %v11305_v37  ;;  %v11307_v42 = vpop.eup %11306 }
0x186c   :  { %v6435_v44 = vmul.f32 %v6428_v39, %v13670_v2  ;;  %v6425_v6 = vmul.f32 0.5, %v11307_v42  ;;  %v11309_v8 = vpop.eup %11308 }
0x186d   :  { %v6430_v52 = vadd.f32 0.5, %v6424_v40  ;;  %v11311_v57 = vpop.eup %11310 }
0x186e   :  { %v13728_v4 = vadd.f32 %v6437_v33, %v6435_v44  ;;  %v6431_v10 = vadd.f32 0.5, %v6425_v6  ;;  %v6423_v1 = vmul.f32 0.5, %v11311_v57  ;;  %v11313_v7 = vpop.eup %11312 }
0x186f   :  { %v6438_v58 = vmul.f32 %v11309_v8, %v6430_v52  ;;  %v6426_v9 = vmul.f32 0.5, %v11313_v7 }
0x1870   :  { %11314 = vtanh.f32 %v13728_v4  ;;  %v6436_v53 = vmul.f32 %v6431_v10, %v13674_v22  ;;  %v6429_v2 = vadd.f32 0.5, %v6423_v1 }
0x1871   :  { %v6432_v19 = vadd.f32 0.5, %v6426_v9 }
0x1872   :  { %v13732_v29 = vadd.f32 %v6438_v58, %v6436_v53 }
0x1874   :  { %11316 = vtanh.f32 %v13732_v29 }
0x187a   :  { %v11315_v15 = vpop.eup %11314 }
0x187b   :  { %v6443_v17 = vmul.f32 %v11315_v15, %v6429_v2 }
0x187d   :  { %8195 = vst [vmem:[%s14181_s6 + $0x170] sm:$0xff] %v6443_v17  ;;  %6522 = vmatmul.mubr.f32.vlgmr.msra.gmra.mrb[96].mxu0 %v6443_v17  ;;  %6599 = vmatmul.mubr.f32.vlgmr.msra.gmra.mrb[96].mxu1 %v6443_v17 }
0x187e   :  { %v11317_v20 = vpop.eup %11316  ;;  %6527 = vmatprep.mubr.f32.mxu0 %v11478_v3  ;;  %6604 = vmatprep.mubr.f32.mxu1 %v11478_v3 }
0x187f   :  { %v6444_v22 = vmul.f32 %v11317_v20, %v6432_v19  ;;  %9880 = vmatpush1.bf16.msra.mxu0 %v11755_v47  ;;  %9912 = vmatpush1.bf16.msra.mxu1 %v11765_v50 }
0x1880   :  { %9882 = vmatprep.subr.bf16.mxu0 %v11767_v51  ;;  %9914 = vmatprep.subr.bf16.mxu1 %v11778_v55 }
0x1881   :  { %8196 = vst [vmem:[%s14181_s6 + $0x178] sm:$0xff] %v6444_v22  ;;  %6528 = vmatmul.mubr.f32.gmra.mrb[98].mxu0 %v6444_v22  ;;  %6605 = vmatmul.mubr.f32.gmra.mrb[98].mxu1 %v6444_v22 }
0x1882   :  { %6731 = vmatprep.mubr.f32.mxu0 %v11478_v3  ;;  %6808 = vmatprep.mubr.f32.mxu1 %v11478_v3 }
0x1883   :  { %9884 = vmatpush1.bf16.msra.mxu0 %v11801_v62  ;;  %9916 = vmatpush1.bf16.msra.mxu1 %v11805_v63 }
0x1884   :  { %9886 = vmatprep.subr.bf16.mxu0 %v11807_v0  ;;  %9918 = vmatprep.subr.bf16.mxu1 %v11819_v5 }
0x1887   :  { %9888 = vmatpush1.bf16.msra.mxu0 %v11842_v12  ;;  %9920 = vmatpush1.bf16.msra.mxu1 %v11846_v13 }
0x1888   :  { %9890 = vmatprep.subr.bf16.mxu0 %v11848_v14  ;;  %9922 = vmatprep.subr.bf16.mxu1 %v11860_v18 }
0x188b   :  { %9892 = vmatpush1.bf16.msra.mxu0 %v11880_v24  ;;  %9924 = vmatpush1.bf16.msra.mxu1 %v11887_v26 }
0x188c   :  { %9894 = vmatprep.subr.bf16.mxu0 %v11889_v27  ;;  %9926 = vmatprep.subr.bf16.mxu1 %v11898_v30 }
0x188f   :  { %9896 = vmatpush1.bf16.msra.mxu0 %v11912_v34  ;;  %9928 = vmatpush1.bf16.msra.mxu1 %v11916_v35 }
0x1890   :  { %9898 = vmatprep.subr.bf16.mxu0 %v11955_v46  ;;  %9930 = vmatprep.subr.bf16.mxu1 %v11975_v56 }
0x1893   :  { %9900 = vmatpush1.bf16.msra.mxu0 %v11960_v49  ;;  %9932 = vmatpush1.bf16.msra.mxu1 %v11983_v59 }
0x1894   :  { %9902 = vmatprep.subr.bf16.mxu0 %v12031_v11  ;;  %9934 = vmatprep.subr.bf16.mxu1 %v12051_v21 }
0x1897   :  { %9904 = vmatpush1.bf16.msra.mxu0 %v12036_v16  ;;  %9936 = vmatpush1.bf16.msra.mxu1 %v12059_v25 }
0x1898   :  { %9906 = vmatprep.subr.bf16.mxu0 %v12107_v43  ;;  %9938 = vmatprep.subr.bf16.mxu1 %v12127_v54 }
0x189b   :  { %9908 = vmatpush1.bf16.msra.mxu0 %v12112_v45  ;;  %9940 = vmatpush1.bf16.msra.mxu1 %v12135_v60 }
0x189c   :  { %9942 = vmatprep.subr.bf16.mxu0 %v11730_v38  ;;  %9974 = vmatprep.subr.bf16.mxu1 %v11738_v41 }
0x1950   :  { %v6523_v32 = vpop.f32.mrb[96].mxu0  ;;  %v6600_v48 = vpop.f32.mrb[96].mxu1 }
0x1951   :  { %v10421_v36 = vadd.f32 %v6523_v32, %v12373_v23  ;;  %v6525_v37 = vpop.f32.mrb[97].mxu0  ;;  %v6602_v39 = vpop.f32.mrb[97].mxu1  ;;  %v10549_v2 = vadd.f32 %v6600_v48, %v12383_v61 }
0x1952   :  { %v10422_v33 = vadd.f32 %v6525_v37, %v12375_v28  ;;  %v10550_v44 = vadd.f32 %v6602_v39, %v12377_v31 }
0x1953   :  { %v6619_v40 = vmul.f32 0.5, %v10421_v36  ;;  %v6621_v9 = vmul.f32 0.5, %v10549_v2 }
0x1954   :  { %v6620_v42 = vmul.f32 0.5, %v10422_v33  ;;  %v6529_v52 = vpop.f32.mrb[98].mxu0  ;;  %v6606_v6 = vpop.f32.mrb[98].mxu1 }
0x1955   :  { %11318 = vtanh.f32 %v6619_v40  ;;  %v10423_v8 = vadd.f32 %v6529_v52, %v12373_v23  ;;  %v6531_v10 = vpop.f32.mrb[99].mxu0  ;;  %v6608_v58 = vpop.f32.mrb[99].mxu1  ;;  %v10551_v15 = vadd.f32 %v6606_v6, %v12383_v61 }
0x1956   :  { %v10424_v53 = vadd.f32 %v6531_v10, %v12375_v28  ;;  %11320 = vtanh.f32 %v6620_v42  ;;  %v10552_v7 = vadd.f32 %v6608_v58, %v12377_v31 }
0x1957   :  { %v6622_v57 = vmul.f32 0.5, %v10423_v8  ;;  %11322 = vtanh.f32 %v10550_v44  ;;  %v6624_v37 = vmul.f32 0.5, %v10551_v15 }
0x1958   :  { %v6623_v1 = vmul.f32 0.5, %v10424_v53 }
0x1959   :  { %11324 = vtanh.f32 %v6622_v57 }
0x195a   :  { %11326 = vtanh.f32 %v6623_v1 }
0x195b   :  { %11328 = vtanh.f32 %v10552_v7 }
0x195c   :  { %11330 = vtanh.f32 %v6621_v9 }
0x195d   :  { %11332 = vtanh.f32 %v6624_v37 }
0x195f   :  { %v11319_v17 = vpop.eup %11318 }
0x1960   :  { %v6631_v19 = vmul.f32 0.5, %v11319_v17  ;;  %v11321_v20 = vpop.eup %11320 }
0x1961   :  { %v11323_v22 = vpop.eup %11322  ;;  %v6632_v36 = vmul.f32 0.5, %v11321_v20 }
0x1962   :  { %v6637_v32 = vadd.f32 0.5, %v6631_v19 }
0x1963   :  { %v11325_v39 = vpop.eup %11324  ;;  %v6638_v33 = vadd.f32 0.5, %v6632_v36 }
0x1964   :  { %v6647_v40 = vmul.f32 %v11323_v22, %v6637_v32  ;;  %v6634_v42 = vmul.f32 0.5, %v11325_v39  ;;  %v11327_v44 = vpop.eup %11326 }
0x1965   :  { %v6645_v48 = vmul.f32 %v6638_v33, %v13728_v4  ;;  %v6635_v8 = vmul.f32 0.5, %v11327_v44  ;;  %v11329_v10 = vpop.eup %11328 }
0x1966   :  { %v6640_v52 = vadd.f32 0.5, %v6634_v42  ;;  %v11331_v1 = vpop.eup %11330 }
0x1967   :  { %v13786_v6 = vadd.f32 %v6647_v40, %v6645_v48  ;;  %v6641_v58 = vadd.f32 0.5, %v6635_v8  ;;  %v6633_v2 = vmul.f32 0.5, %v11331_v1  ;;  %v11333_v9 = vpop.eup %11332 }
0x1968   :  { %v6648_v53 = vmul.f32 %v11329_v10, %v6640_v52  ;;  %v6636_v15 = vmul.f32 0.5, %v11333_v9 }
0x1969   :  { %11334 = vtanh.f32 %v13786_v6  ;;  %v6646_v57 = vmul.f32 %v6641_v58, %v13732_v29  ;;  %v6639_v4 = vadd.f32 0.5, %v6633_v2 }
0x196a   :  { %v6642_v20 = vadd.f32 0.5, %v6636_v15 }
0x196b   :  { %v13790_v7 = vadd.f32 %v6648_v53, %v6646_v57 }
0x196d   :  { %11336 = vtanh.f32 %v13790_v7 }
0x1973   :  { %v11335_v17 = vpop.eup %11334 }
0x1974   :  { %v6653_v19 = vmul.f32 %v11335_v17, %v6639_v4 }
0x1976   :  { %8197 = vst [vmem:[%s14181_s6 + $0x180] sm:$0xff] %v6653_v19  ;;  %6732 = vmatmul.mubr.f32.vlgmr.msra.gmra.mrb[100].mxu0 %v6653_v19  ;;  %6809 = vmatmul.mubr.f32.vlgmr.msra.gmra.mrb[100].mxu1 %v6653_v19 }
0x1977   :  { %v11337_v22 = vpop.eup %11336  ;;  %6737 = vmatprep.mubr.f32.mxu0 %v11478_v3  ;;  %6814 = vmatprep.mubr.f32.mxu1 %v11478_v3 }
0x1978   :  { %v6654_v29 = vmul.f32 %v11337_v22, %v6642_v20  ;;  %9944 = vmatpush1.bf16.msra.mxu0 %v11755_v47  ;;  %9976 = vmatpush1.bf16.msra.mxu1 %v11765_v50 }
0x1979   :  { %9946 = vmatprep.subr.bf16.mxu0 %v11767_v51  ;;  %9978 = vmatprep.subr.bf16.mxu1 %v11778_v55 }
0x197a   :  { %8198 = vst [vmem:[%s14181_s6 + $0x188] sm:$0xff] %v6654_v29  ;;  %6738 = vmatmul.mubr.f32.gmra.mrb[102].mxu0 %v6654_v29  ;;  %6815 = vmatmul.mubr.f32.gmra.mrb[102].mxu1 %v6654_v29 }
0x197b   :  { %6941 = vmatprep.mubr.f32.mxu0 %v11478_v3  ;;  %7018 = vmatprep.mubr.f32.mxu1 %v11478_v3 }
0x197c   :  { %9948 = vmatpush1.bf16.msra.mxu0 %v11801_v62  ;;  %9980 = vmatpush1.bf16.msra.mxu1 %v11805_v63 }
0x197d   :  { %9950 = vmatprep.subr.bf16.mxu0 %v11807_v0  ;;  %9982 = vmatprep.subr.bf16.mxu1 %v11819_v5 }
0x1980   :  { %9952 = vmatpush1.bf16.msra.mxu0 %v11842_v12  ;;  %9984 = vmatpush1.bf16.msra.mxu1 %v11846_v13 }
0x1981   :  { %9954 = vmatprep.subr.bf16.mxu0 %v11848_v14  ;;  %9986 = vmatprep.subr.bf16.mxu1 %v11860_v18 }
0x1984   :  { %9956 = vmatpush1.bf16.msra.mxu0 %v11880_v24  ;;  %9988 = vmatpush1.bf16.msra.mxu1 %v11887_v26 }
0x1985   :  { %9958 = vmatprep.subr.bf16.mxu0 %v11889_v27  ;;  %9990 = vmatprep.subr.bf16.mxu1 %v11898_v30 }
0x1988   :  { %9960 = vmatpush1.bf16.msra.mxu0 %v11912_v34  ;;  %9992 = vmatpush1.bf16.msra.mxu1 %v11916_v35 }
0x1989   :  { %9962 = vmatprep.subr.bf16.mxu0 %v11955_v46  ;;  %9994 = vmatprep.subr.bf16.mxu1 %v11975_v56 }
0x198c   :  { %9964 = vmatpush1.bf16.msra.mxu0 %v11960_v49  ;;  %9996 = vmatpush1.bf16.msra.mxu1 %v11983_v59 }
0x198d   :  { %9966 = vmatprep.subr.bf16.mxu0 %v12031_v11  ;;  %9998 = vmatprep.subr.bf16.mxu1 %v12051_v21 }
0x1990   :  { %9968 = vmatpush1.bf16.msra.mxu0 %v12036_v16  ;;  %10000 = vmatpush1.bf16.msra.mxu1 %v12059_v25 }
0x1991   :  { %9970 = vmatprep.subr.bf16.mxu0 %v12107_v43  ;;  %10002 = vmatprep.subr.bf16.mxu1 %v12127_v54 }
0x1994   :  { %9972 = vmatpush1.bf16.msra.mxu0 %v12112_v45  ;;  %10004 = vmatpush1.bf16.msra.mxu1 %v12135_v60 }
0x1995   :  { %10006 = vmatprep.subr.bf16.mxu0 %v11730_v38  ;;  %10038 = vmatprep.subr.bf16.mxu1 %v11738_v41 }
0x1a49   :  { %v6733_v32 = vpop.f32.mrb[100].mxu0  ;;  %v6810_v36 = vpop.f32.mrb[100].mxu1 }
0x1a4a   :  { %v10425_v37 = vadd.f32 %v6733_v32, %v12373_v23  ;;  %v6735_v39 = vpop.f32.mrb[101].mxu0  ;;  %v6812_v33 = vpop.f32.mrb[101].mxu1  ;;  %v10553_v4 = vadd.f32 %v6810_v36, %v12383_v61 }
0x1a4b   :  { %v10426_v40 = vadd.f32 %v6735_v39, %v12375_v28  ;;  %v10554_v48 = vadd.f32 %v6812_v33, %v12377_v31 }
0x1a4c   :  { %v6829_v42 = vmul.f32 0.5, %v10425_v37  ;;  %v6831_v15 = vmul.f32 0.5, %v10553_v4 }
0x1a4d   :  { %v6830_v44 = vmul.f32 0.5, %v10426_v40  ;;  %v6739_v52 = vpop.f32.mrb[102].mxu0  ;;  %v6816_v8 = vpop.f32.mrb[102].mxu1 }
0x1a4e   :  { %11338 = vtanh.f32 %v6829_v42  ;;  %v10427_v10 = vadd.f32 %v6739_v52, %v12373_v23  ;;  %v6741_v58 = vpop.f32.mrb[103].mxu0  ;;  %v6818_v53 = vpop.f32.mrb[103].mxu1  ;;  %v10555_v17 = vadd.f32 %v6816_v8, %v12383_v61 }
0x1a4f   :  { %v10428_v57 = vadd.f32 %v6741_v58, %v12375_v28  ;;  %11340 = vtanh.f32 %v6830_v44  ;;  %v10556_v9 = vadd.f32 %v6818_v53, %v12377_v31 }
0x1a50   :  { %v6832_v1 = vmul.f32 0.5, %v10427_v10  ;;  %11342 = vtanh.f32 %v10554_v48  ;;  %v6834_v39 = vmul.f32 0.5, %v10555_v17 }
0x1a51   :  { %v6833_v2 = vmul.f32 0.5, %v10428_v57 }
0x1a52   :  { %11344 = vtanh.f32 %v6832_v1 }
0x1a53   :  { %11346 = vtanh.f32 %v6833_v2 }
0x1a54   :  { %11348 = vtanh.f32 %v10556_v9 }
0x1a55   :  { %11350 = vtanh.f32 %v6831_v15 }
0x1a56   :  { %11352 = vtanh.f32 %v6834_v39 }
0x1a58   :  { %v11339_v19 = vpop.eup %11338 }
0x1a59   :  { %v6841_v20 = vmul.f32 0.5, %v11339_v19  ;;  %v11341_v22 = vpop.eup %11340 }
0x1a5a   :  { %v11343_v29 = vpop.eup %11342  ;;  %v6842_v37 = vmul.f32 0.5, %v11341_v22 }
0x1a5b   :  { %v6847_v32 = vadd.f32 0.5, %v6841_v20 }
0x1a5c   :  { %v11345_v33 = vpop.eup %11344  ;;  %v6848_v40 = vadd.f32 0.5, %v6842_v37 }
0x1a5d   :  { %v6857_v42 = vmul.f32 %v11343_v29, %v6847_v32  ;;  %v6844_v44 = vmul.f32 0.5, %v11345_v33  ;;  %v11347_v48 = vpop.eup %11346 }
0x1a5e   :  { %v6855_v36 = vmul.f32 %v6848_v40, %v13786_v6  ;;  %v6845_v10 = vmul.f32 0.5, %v11347_v48  ;;  %v11349_v58 = vpop.eup %11348 }
0x1a5f   :  { %v6850_v52 = vadd.f32 0.5, %v6844_v44  ;;  %v11351_v2 = vpop.eup %11350 }
0x1a60   :  { %v13844_v8 = vadd.f32 %v6857_v42, %v6855_v36  ;;  %v6851_v53 = vadd.f32 0.5, %v6845_v10  ;;  %v6843_v4 = vmul.f32 0.5, %v11351_v2  ;;  %v11353_v15 = vpop.eup %11352 }
0x1a61   :  { %v6858_v57 = vmul.f32 %v11349_v58, %v6850_v52  ;;  %v6846_v17 = vmul.f32 0.5, %v11353_v15 }
0x1a62   :  { %11354 = vtanh.f32 %v13844_v8  ;;  %v6856_v1 = vmul.f32 %v6851_v53, %v13790_v7  ;;  %v6849_v6 = vadd.f32 0.5, %v6843_v4 }
0x1a63   :  { %v6852_v22 = vadd.f32 0.5, %v6846_v17 }
0x1a64   :  { %v13848_v9 = vadd.f32 %v6858_v57, %v6856_v1 }
0x1a66   :  { %11356 = vtanh.f32 %v13848_v9 }
0x1a6c   :  { %v11355_v19 = vpop.eup %11354 }
0x1a6d   :  { %v6863_v20 = vmul.f32 %v11355_v19, %v6849_v6 }
0x1a6f   :  { %8199 = vst [vmem:[%s14181_s6 + $0x190] sm:$0xff] %v6863_v20  ;;  %6942 = vmatmul.mubr.f32.vlgmr.msra.gmra.mrb[104].mxu0 %v6863_v20  ;;  %7019 = vmatmul.mubr.f32.vlgmr.msra.gmra.mrb[104].mxu1 %v6863_v20 }
0x1a70   :  { %v11357_v29 = vpop.eup %11356  ;;  %6947 = vmatprep.mubr.f32.mxu0 %v11478_v3  ;;  %7024 = vmatprep.mubr.f32.mxu1 %v11478_v3 }
0x1a71   :  { %v6864_v7 = vmul.f32 %v11357_v29, %v6852_v22  ;;  %10008 = vmatpush1.bf16.msra.mxu0 %v11755_v47  ;;  %10040 = vmatpush1.bf16.msra.mxu1 %v11765_v50 }
0x1a72   :  { %10010 = vmatprep.subr.bf16.mxu0 %v11767_v51  ;;  %10042 = vmatprep.subr.bf16.mxu1 %v11778_v55 }
0x1a73   :  { %8200 = vst [vmem:[%s14181_s6 + $0x198] sm:$0xff] %v6864_v7  ;;  %6948 = vmatmul.mubr.f32.gmra.mrb[106].mxu0 %v6864_v7  ;;  %7025 = vmatmul.mubr.f32.gmra.mrb[106].mxu1 %v6864_v7 }
0x1a74   :  { %7151 = vmatprep.mubr.f32.mxu0 %v11478_v3  ;;  %7228 = vmatprep.mubr.f32.mxu1 %v11478_v3 }
0x1a75   :  { %10012 = vmatpush1.bf16.msra.mxu0 %v11801_v62  ;;  %10044 = vmatpush1.bf16.msra.mxu1 %v11805_v63 }
0x1a76   :  { %10014 = vmatprep.subr.bf16.mxu0 %v11807_v0  ;;  %10046 = vmatprep.subr.bf16.mxu1 %v11819_v5 }
0x1a79   :  { %10016 = vmatpush1.bf16.msra.mxu0 %v11842_v12  ;;  %10048 = vmatpush1.bf16.msra.mxu1 %v11846_v13 }
0x1a7a   :  { %10018 = vmatprep.subr.bf16.mxu0 %v11848_v14  ;;  %10050 = vmatprep.subr.bf16.mxu1 %v11860_v18 }
0x1a7d   :  { %10020 = vmatpush1.bf16.msra.mxu0 %v11880_v24  ;;  %10052 = vmatpush1.bf16.msra.mxu1 %v11887_v26 }
0x1a7e   :  { %10022 = vmatprep.subr.bf16.mxu0 %v11889_v27  ;;  %10054 = vmatprep.subr.bf16.mxu1 %v11898_v30 }
0x1a81   :  { %10024 = vmatpush1.bf16.msra.mxu0 %v11912_v34  ;;  %10056 = vmatpush1.bf16.msra.mxu1 %v11916_v35 }
0x1a82   :  { %10026 = vmatprep.subr.bf16.mxu0 %v11955_v46  ;;  %10058 = vmatprep.subr.bf16.mxu1 %v11975_v56 }
0x1a85   :  { %10028 = vmatpush1.bf16.msra.mxu0 %v11960_v49  ;;  %10060 = vmatpush1.bf16.msra.mxu1 %v11983_v59 }
0x1a86   :  { %10030 = vmatprep.subr.bf16.mxu0 %v12031_v11  ;;  %10062 = vmatprep.subr.bf16.mxu1 %v12051_v21 }
0x1a89   :  { %10032 = vmatpush1.bf16.msra.mxu0 %v12036_v16  ;;  %10064 = vmatpush1.bf16.msra.mxu1 %v12059_v25 }
0x1a8a   :  { %10034 = vmatprep.subr.bf16.mxu0 %v12107_v43  ;;  %10066 = vmatprep.subr.bf16.mxu1 %v12127_v54 }
0x1a8d   :  { %10036 = vmatpush1.bf16.msra.mxu0 %v12112_v45  ;;  %10068 = vmatpush1.bf16.msra.mxu1 %v12135_v60 }
0x1a8e   :  { %10070 = vmatprep.subr.bf16.mxu0 %v11730_v38  ;;  %10102 = vmatprep.subr.bf16.mxu1 %v11738_v41 }
0x1b42   :  { %v6943_v32 = vpop.f32.mrb[104].mxu0  ;;  %v7020_v37 = vpop.f32.mrb[104].mxu1 }
0x1b43   :  { %v10429_v39 = vadd.f32 %v6943_v32, %v12373_v23  ;;  %v6945_v33 = vpop.f32.mrb[105].mxu0  ;;  %v7022_v40 = vpop.f32.mrb[105].mxu1  ;;  %v10557_v6 = vadd.f32 %v7020_v37, %v12383_v61 }
0x1b44   :  { %v10430_v42 = vadd.f32 %v6945_v33, %v12375_v28  ;;  %v10558_v36 = vadd.f32 %v7022_v40, %v12377_v31 }
0x1b45   :  { %v7039_v44 = vmul.f32 0.5, %v10429_v39  ;;  %v7041_v17 = vmul.f32 0.5, %v10557_v6 }
0x1b46   :  { %v7040_v48 = vmul.f32 0.5, %v10430_v42  ;;  %v6949_v52 = vpop.f32.mrb[106].mxu0  ;;  %v7026_v10 = vpop.f32.mrb[106].mxu1 }
0x1b47   :  { %11358 = vtanh.f32 %v7039_v44  ;;  %v10431_v58 = vadd.f32 %v6949_v52, %v12373_v23  ;;  %v6951_v53 = vpop.f32.mrb[107].mxu0  ;;  %v7028_v57 = vpop.f32.mrb[107].mxu1  ;;  %v10559_v19 = vadd.f32 %v7026_v10, %v12383_v61 }
0x1b48   :  { %v10432_v1 = vadd.f32 %v6951_v53, %v12375_v28  ;;  %11360 = vtanh.f32 %v7040_v48  ;;  %v10560_v15 = vadd.f32 %v7028_v57, %v12377_v31 }
0x1b49   :  { %v7042_v2 = vmul.f32 0.5, %v10431_v58  ;;  %11362 = vtanh.f32 %v10558_v36  ;;  %v7044_v33 = vmul.f32 0.5, %v10559_v19 }
0x1b4a   :  { %v7043_v4 = vmul.f32 0.5, %v10432_v1 }
0x1b4b   :  { %11364 = vtanh.f32 %v7042_v2 }
0x1b4c   :  { %11366 = vtanh.f32 %v7043_v4 }
0x1b4d   :  { %11368 = vtanh.f32 %v10560_v15 }
0x1b4e   :  { %11370 = vtanh.f32 %v7041_v17 }
0x1b4f   :  { %11372 = vtanh.f32 %v7044_v33 }
0x1b51   :  { %v11359_v20 = vpop.eup %11358 }
0x1b52   :  { %v7051_v22 = vmul.f32 0.5, %v11359_v20  ;;  %v11361_v29 = vpop.eup %11360 }
0x1b53   :  { %v11363_v7 = vpop.eup %11362  ;;  %v7052_v39 = vmul.f32 0.5, %v11361_v29 }
0x1b54   :  { %v7057_v32 = vadd.f32 0.5, %v7051_v22 }
0x1b55   :  { %v11365_v40 = vpop.eup %11364  ;;  %v7058_v42 = vadd.f32 0.5, %v7052_v39 }
0x1b56   :  { %v7067_v44 = vmul.f32 %v11363_v7, %v7057_v32  ;;  %v7054_v48 = vmul.f32 0.5, %v11365_v40  ;;  %v11367_v36 = vpop.eup %11366 }
0x1b57   :  { %v7065_v37 = vmul.f32 %v7058_v42, %v13844_v8  ;;  %v7055_v58 = vmul.f32 0.5, %v11367_v36  ;;  %v11369_v53 = vpop.eup %11368 }
0x1b58   :  { %v7060_v52 = vadd.f32 0.5, %v7054_v48  ;;  %v11371_v4 = vpop.eup %11370 }
0x1b59   :  { %v13902_v10 = vadd.f32 %v7067_v44, %v7065_v37  ;;  %v7061_v57 = vadd.f32 0.5, %v7055_v58  ;;  %v7053_v6 = vmul.f32 0.5, %v11371_v4  ;;  %v11373_v17 = vpop.eup %11372 }
0x1b5a   :  { %v7068_v1 = vmul.f32 %v11369_v53, %v7060_v52  ;;  %v7056_v19 = vmul.f32 0.5, %v11373_v17 }
0x1b5b   :  { %11374 = vtanh.f32 %v13902_v10  ;;  %v7066_v2 = vmul.f32 %v7061_v57, %v13848_v9  ;;  %v7059_v8 = vadd.f32 0.5, %v7053_v6 }
0x1b5c   :  { %v7062_v29 = vadd.f32 0.5, %v7056_v19 }
0x1b5d   :  { %v13906_v15 = vadd.f32 %v7068_v1, %v7066_v2 }
0x1b5f   :  { %11376 = vtanh.f32 %v13906_v15 }
0x1b65   :  { %v11375_v20 = vpop.eup %11374 }
0x1b66   :  { %v7073_v22 = vmul.f32 %v11375_v20, %v7059_v8 }
0x1b68   :  { %8201 = vst [vmem:[%s14181_s6 + $0x1a0] sm:$0xff] %v7073_v22  ;;  %7152 = vmatmul.mubr.f32.vlgmr.msra.gmra.mrb[108].mxu0 %v7073_v22  ;;  %7229 = vmatmul.mubr.f32.vlgmr.msra.gmra.mrb[108].mxu1 %v7073_v22 }
0x1b69   :  { %v11377_v7 = vpop.eup %11376  ;;  %7157 = vmatprep.mubr.f32.mxu0 %v11478_v3  ;;  %7234 = vmatprep.mubr.f32.mxu1 %v11478_v3 }
0x1b6a   :  { %v7074_v9 = vmul.f32 %v11377_v7, %v7062_v29  ;;  %10072 = vmatpush1.bf16.msra.mxu0 %v11755_v47  ;;  %10104 = vmatpush1.bf16.msra.mxu1 %v11765_v50 }
0x1b6b   :  { %10074 = vmatprep.subr.bf16.mxu0 %v11767_v51  ;;  %10106 = vmatprep.subr.bf16.mxu1 %v11778_v55 }
0x1b6c   :  { %8202 = vst [vmem:[%s14181_s6 + $0x1a8] sm:$0xff] %v7074_v9  ;;  %7158 = vmatmul.mubr.f32.gmra.mrb[110].mxu0 %v7074_v9  ;;  %7235 = vmatmul.mubr.f32.gmra.mrb[110].mxu1 %v7074_v9 }
0x1b6d   :  { %7361 = vmatprep.mubr.f32.mxu0 %v11478_v3  ;;  %7438 = vmatprep.mubr.f32.mxu1 %v11478_v3 }
0x1b6e   :  { %10076 = vmatpush1.bf16.msra.mxu0 %v11801_v62  ;;  %10108 = vmatpush1.bf16.msra.mxu1 %v11805_v63 }
0x1b6f   :  { %10078 = vmatprep.subr.bf16.mxu0 %v11807_v0  ;;  %10110 = vmatprep.subr.bf16.mxu1 %v11819_v5 }
0x1b72   :  { %10080 = vmatpush1.bf16.msra.mxu0 %v11842_v12  ;;  %10112 = vmatpush1.bf16.msra.mxu1 %v11846_v13 }
0x1b73   :  { %10082 = vmatprep.subr.bf16.mxu0 %v11848_v14  ;;  %10114 = vmatprep.subr.bf16.mxu1 %v11860_v18 }
0x1b76   :  { %10084 = vmatpush1.bf16.msra.mxu0 %v11880_v24  ;;  %10116 = vmatpush1.bf16.msra.mxu1 %v11887_v26 }
0x1b77   :  { %10086 = vmatprep.subr.bf16.mxu0 %v11889_v27  ;;  %10118 = vmatprep.subr.bf16.mxu1 %v11898_v30 }
0x1b7a   :  { %10088 = vmatpush1.bf16.msra.mxu0 %v11912_v34  ;;  %10120 = vmatpush1.bf16.msra.mxu1 %v11916_v35 }
0x1b7b   :  { %10090 = vmatprep.subr.bf16.mxu0 %v11955_v46  ;;  %10122 = vmatprep.subr.bf16.mxu1 %v11975_v56 }
0x1b7e   :  { %10092 = vmatpush1.bf16.msra.mxu0 %v11960_v49  ;;  %10124 = vmatpush1.bf16.msra.mxu1 %v11983_v59 }
0x1b7f   :  { %10094 = vmatprep.subr.bf16.mxu0 %v12031_v11  ;;  %10126 = vmatprep.subr.bf16.mxu1 %v12051_v21 }
0x1b82   :  { %10096 = vmatpush1.bf16.msra.mxu0 %v12036_v16  ;;  %10128 = vmatpush1.bf16.msra.mxu1 %v12059_v25 }
0x1b83   :  { %10098 = vmatprep.subr.bf16.mxu0 %v12107_v43  ;;  %10130 = vmatprep.subr.bf16.mxu1 %v12127_v54 }
0x1b86   :  { %10100 = vmatpush1.bf16.msra.mxu0 %v12112_v45  ;;  %10132 = vmatpush1.bf16.msra.mxu1 %v12135_v60 }
0x1b87   :  { %10134 = vmatprep.subr.bf16.mxu0 %v11730_v38  ;;  %10166 = vmatprep.subr.bf16.mxu1 %v11738_v41 }
0x1c3b   :  { %v7153_v32 = vpop.f32.mrb[108].mxu0  ;;  %v7230_v39 = vpop.f32.mrb[108].mxu1 }
0x1c3c   :  { %v10433_v33 = vadd.f32 %v7153_v32, %v12373_v23  ;;  %v7155_v40 = vpop.f32.mrb[109].mxu0  ;;  %v7232_v42 = vpop.f32.mrb[109].mxu1  ;;  %v10561_v8 = vadd.f32 %v7230_v39, %v12383_v61 }
0x1c3d   :  { %v10434_v44 = vadd.f32 %v7155_v40, %v12375_v28  ;;  %v10562_v37 = vadd.f32 %v7232_v42, %v12377_v31 }
0x1c3e   :  { %v7249_v48 = vmul.f32 0.5, %v10433_v33  ;;  %v7251_v19 = vmul.f32 0.5, %v10561_v8 }
0x1c3f   :  { %v7250_v36 = vmul.f32 0.5, %v10434_v44  ;;  %v7159_v52 = vpop.f32.mrb[110].mxu0  ;;  %v7236_v58 = vpop.f32.mrb[110].mxu1 }
0x1c40   :  { %11378 = vtanh.f32 %v7249_v48  ;;  %v10435_v53 = vadd.f32 %v7159_v52, %v12373_v23  ;;  %v7161_v57 = vpop.f32.mrb[111].mxu0  ;;  %v7238_v1 = vpop.f32.mrb[111].mxu1  ;;  %v10563_v20 = vadd.f32 %v7236_v58, %v12383_v61 }
0x1c41   :  { %v10436_v2 = vadd.f32 %v7161_v57, %v12375_v28  ;;  %11380 = vtanh.f32 %v7250_v36  ;;  %v10564_v17 = vadd.f32 %v7238_v1, %v12377_v31 }
0x1c42   :  { %v7252_v4 = vmul.f32 0.5, %v10435_v53  ;;  %11382 = vtanh.f32 %v10562_v37  ;;  %v7254_v40 = vmul.f32 0.5, %v10563_v20 }
0x1c43   :  { %v7253_v6 = vmul.f32 0.5, %v10436_v2 }
0x1c44   :  { %11384 = vtanh.f32 %v7252_v4 }
0x1c45   :  { %11386 = vtanh.f32 %v7253_v6 }
0x1c46   :  { %11388 = vtanh.f32 %v10564_v17 }
0x1c47   :  { %11390 = vtanh.f32 %v7251_v19 }
0x1c48   :  { %11392 = vtanh.f32 %v7254_v40 }
0x1c4a   :  { %v11379_v22 = vpop.eup %11378 }
0x1c4b   :  { %v7261_v29 = vmul.f32 0.5, %v11379_v22  ;;  %v11381_v7 = vpop.eup %11380 }
0x1c4c   :  { %v11383_v9 = vpop.eup %11382  ;;  %v7262_v33 = vmul.f32 0.5, %v11381_v7 }
0x1c4d   :  { %v7267_v32 = vadd.f32 0.5, %v7261_v29 }
0x1c4e   :  { %v11385_v42 = vpop.eup %11384  ;;  %v7268_v44 = vadd.f32 0.5, %v7262_v33 }
0x1c4f   :  { %v7277_v48 = vmul.f32 %v11383_v9, %v7267_v32  ;;  %v7264_v36 = vmul.f32 0.5, %v11385_v42  ;;  %v11387_v37 = vpop.eup %11386 }
0x1c50   :  { %v7275_v39 = vmul.f32 %v7268_v44, %v13902_v10  ;;  %v7265_v53 = vmul.f32 0.5, %v11387_v37  ;;  %v11389_v57 = vpop.eup %11388 }
0x1c51   :  { %v7270_v52 = vadd.f32 0.5, %v7264_v36  ;;  %v11391_v6 = vpop.eup %11390 }
0x1c52   :  { %v13960_v58 = vadd.f32 %v7277_v48, %v7275_v39  ;;  %v7271_v1 = vadd.f32 0.5, %v7265_v53  ;;  %v7263_v8 = vmul.f32 0.5, %v11391_v6  ;;  %v11393_v19 = vpop.eup %11392 }
0x1c53   :  { %v7278_v2 = vmul.f32 %v11389_v57, %v7270_v52  ;;  %v7266_v20 = vmul.f32 0.5, %v11393_v19 }
0x1c54   :  { %11394 = vtanh.f32 %v13960_v58  ;;  %v7276_v4 = vmul.f32 %v7271_v1, %v13906_v15  ;;  %v7269_v10 = vadd.f32 0.5, %v7263_v8 }
0x1c55   :  { %v7272_v7 = vadd.f32 0.5, %v7266_v20 }
0x1c56   :  { %v13964_v17 = vadd.f32 %v7278_v2, %v7276_v4 }
0x1c58   :  { %11396 = vtanh.f32 %v13964_v17 }
0x1c5e   :  { %v11395_v22 = vpop.eup %11394 }
0x1c5f   :  { %v7283_v29 = vmul.f32 %v11395_v22, %v7269_v10 }
0x1c61   :  { %8203 = vst [vmem:[%s14181_s6 + $0x1b0] sm:$0xff] %v7283_v29  ;;  %7362 = vmatmul.mubr.f32.vlgmr.msra.gmra.mrb[112].mxu0 %v7283_v29  ;;  %7439 = vmatmul.mubr.f32.vlgmr.msra.gmra.mrb[112].mxu1 %v7283_v29 }
0x1c62   :  { %v11397_v9 = vpop.eup %11396  ;;  %7367 = vmatprep.mubr.f32.mxu0 %v11478_v3  ;;  %7444 = vmatprep.mubr.f32.mxu1 %v11478_v3 }
0x1c63   :  { %v7284_v15 = vmul.f32 %v11397_v9, %v7272_v7  ;;  %10136 = vmatpush1.bf16.msra.mxu0 %v11755_v47  ;;  %10168 = vmatpush1.bf16.msra.mxu1 %v11765_v50 }
0x1c64   :  { %10138 = vmatprep.subr.bf16.mxu0 %v11767_v51  ;;  %10170 = vmatprep.subr.bf16.mxu1 %v11778_v55 }
0x1c65   :  { %8204 = vst [vmem:[%s14181_s6 + $0x1b8] sm:$0xff] %v7284_v15  ;;  %7368 = vmatmul.mubr.f32.gmra.mrb[114].mxu0 %v7284_v15  ;;  %7445 = vmatmul.mubr.f32.gmra.mrb[114].mxu1 %v7284_v15 }
0x1c66   :  { %7571 = vmatprep.mubr.f32.mxu0 %v11478_v3  ;;  %7648 = vmatprep.mubr.f32.mxu1 %v11478_v3 }
0x1c67   :  { %10140 = vmatpush1.bf16.msra.mxu0 %v11801_v62  ;;  %10172 = vmatpush1.bf16.msra.mxu1 %v11805_v63 }
0x1c68   :  { %10142 = vmatprep.subr.bf16.mxu0 %v11807_v0  ;;  %10174 = vmatprep.subr.bf16.mxu1 %v11819_v5 }
0x1c6b   :  { %10144 = vmatpush1.bf16.msra.mxu0 %v11842_v12  ;;  %10176 = vmatpush1.bf16.msra.mxu1 %v11846_v13 }
0x1c6c   :  { %10146 = vmatprep.subr.bf16.mxu0 %v11848_v14  ;;  %10178 = vmatprep.subr.bf16.mxu1 %v11860_v18 }
0x1c6f   :  { %10148 = vmatpush1.bf16.msra.mxu0 %v11880_v24  ;;  %10180 = vmatpush1.bf16.msra.mxu1 %v11887_v26 }
0x1c70   :  { %10150 = vmatprep.subr.bf16.mxu0 %v11889_v27  ;;  %10182 = vmatprep.subr.bf16.mxu1 %v11898_v30 }
0x1c73   :  { %10152 = vmatpush1.bf16.msra.mxu0 %v11912_v34  ;;  %10184 = vmatpush1.bf16.msra.mxu1 %v11916_v35 }
0x1c74   :  { %10154 = vmatprep.subr.bf16.mxu0 %v11955_v46  ;;  %10186 = vmatprep.subr.bf16.mxu1 %v11975_v56 }
0x1c77   :  { %10156 = vmatpush1.bf16.msra.mxu0 %v11960_v49  ;;  %10188 = vmatpush1.bf16.msra.mxu1 %v11983_v59 }
0x1c78   :  { %10158 = vmatprep.subr.bf16.mxu0 %v12031_v11  ;;  %10190 = vmatprep.subr.bf16.mxu1 %v12051_v21 }
0x1c7b   :  { %10160 = vmatpush1.bf16.msra.mxu0 %v12036_v16  ;;  %10192 = vmatpush1.bf16.msra.mxu1 %v12059_v25 }
0x1c7c   :  { %10162 = vmatprep.subr.bf16.mxu0 %v12107_v43  ;;  %10194 = vmatprep.subr.bf16.mxu1 %v12127_v54 }
0x1c7f   :  { %10164 = vmatpush1.bf16.msra.mxu0 %v12112_v45  ;;  %10196 = vmatpush1.bf16.msra.mxu1 %v12135_v60 }
0x1c80   :  { %10198 = vmatprep.subr.bf16.mxu0 %v11730_v38  ;;  %10230 = vmatprep.subr.bf16.mxu1 %v11738_v41 }
0x1d34   :  { %v7363_v32 = vpop.f32.mrb[112].mxu0  ;;  %v7440_v33 = vpop.f32.mrb[112].mxu1 }
0x1d35   :  { %v10437_v40 = vadd.f32 %v7363_v32, %v12373_v23  ;;  %v7365_v42 = vpop.f32.mrb[113].mxu0  ;;  %v7442_v44 = vpop.f32.mrb[113].mxu1  ;;  %v10565_v10 = vadd.f32 %v7440_v33, %v12383_v61 }
0x1d36   :  { %v10438_v48 = vadd.f32 %v7365_v42, %v12375_v28  ;;  %v10566_v39 = vadd.f32 %v7442_v44, %v12377_v31 }
0x1d37   :  { %v7459_v36 = vmul.f32 0.5, %v10437_v40  ;;  %v7461_v20 = vmul.f32 0.5, %v10565_v10 }
0x1d38   :  { %v7460_v37 = vmul.f32 0.5, %v10438_v48  ;;  %v7369_v52 = vpop.f32.mrb[114].mxu0  ;;  %v7446_v53 = vpop.f32.mrb[114].mxu1 }
0x1d39   :  { %11398 = vtanh.f32 %v7459_v36  ;;  %v10439_v57 = vadd.f32 %v7369_v52, %v12373_v23  ;;  %v7371_v1 = vpop.f32.mrb[115].mxu0  ;;  %v7448_v2 = vpop.f32.mrb[115].mxu1  ;;  %v10567_v22 = vadd.f32 %v7446_v53, %v12383_v61 }
0x1d3a   :  { %v10440_v4 = vadd.f32 %v7371_v1, %v12375_v28  ;;  %11400 = vtanh.f32 %v7460_v37  ;;  %v10568_v19 = vadd.f32 %v7448_v2, %v12377_v31 }
0x1d3b   :  { %v7462_v6 = vmul.f32 0.5, %v10439_v57  ;;  %11402 = vtanh.f32 %v10566_v39  ;;  %v7464_v42 = vmul.f32 0.5, %v10567_v22 }
0x1d3c   :  { %v7463_v8 = vmul.f32 0.5, %v10440_v4 }
0x1d3d   :  { %11404 = vtanh.f32 %v7462_v6 }
0x1d3e   :  { %11406 = vtanh.f32 %v7463_v8 }
0x1d3f   :  { %11408 = vtanh.f32 %v10568_v19 }
0x1d40   :  { %11410 = vtanh.f32 %v7461_v20 }
0x1d41   :  { %11412 = vtanh.f32 %v7464_v42 }
0x1d43   :  { %v11399_v29 = vpop.eup %11398 }
0x1d44   :  { %v7471_v7 = vmul.f32 0.5, %v11399_v29  ;;  %v11401_v9 = vpop.eup %11400 }
0x1d45   :  { %v11403_v15 = vpop.eup %11402  ;;  %v7472_v40 = vmul.f32 0.5, %v11401_v9 }
0x1d46   :  { %v7477_v32 = vadd.f32 0.5, %v7471_v7 }
0x1d47   :  { %v11405_v44 = vpop.eup %11404  ;;  %v7478_v48 = vadd.f32 0.5, %v7472_v40 }
0x1d48   :  { %v7487_v36 = vmul.f32 %v11403_v15, %v7477_v32  ;;  %v7474_v37 = vmul.f32 0.5, %v11405_v44  ;;  %v11407_v39 = vpop.eup %11406 }
0x1d49   :  { %v7485_v33 = vmul.f32 %v7478_v48, %v13960_v58  ;;  %v7475_v57 = vmul.f32 0.5, %v11407_v39  ;;  %v11409_v1 = vpop.eup %11408 }
0x1d4a   :  { %v7480_v52 = vadd.f32 0.5, %v7474_v37  ;;  %v11411_v8 = vpop.eup %11410 }
0x1d4b   :  { %v14018_v53 = vadd.f32 %v7487_v36, %v7485_v33  ;;  %v7481_v2 = vadd.f32 0.5, %v7475_v57  ;;  %v7473_v10 = vmul.f32 0.5, %v11411_v8  ;;  %v11413_v20 = vpop.eup %11412 }
0x1d4c   :  { %v7488_v4 = vmul.f32 %v11409_v1, %v7480_v52  ;;  %v7476_v22 = vmul.f32 0.5, %v11413_v20 }
0x1d4d   :  { %11414 = vtanh.f32 %v14018_v53  ;;  %v7486_v6 = vmul.f32 %v7481_v2, %v13964_v17  ;;  %v7479_v58 = vadd.f32 0.5, %v7473_v10 }
0x1d4e   :  { %v7482_v9 = vadd.f32 0.5, %v7476_v22 }
0x1d4f   :  { %v14022_v19 = vadd.f32 %v7488_v4, %v7486_v6 }
0x1d51   :  { %11416 = vtanh.f32 %v14022_v19 }
0x1d57   :  { %v11415_v29 = vpop.eup %11414 }
0x1d58   :  { %v7493_v7 = vmul.f32 %v11415_v29, %v7479_v58 }
0x1d5a   :  { %8205 = vst [vmem:[%s14181_s6 + $0x1c0] sm:$0xff] %v7493_v7  ;;  %7572 = vmatmul.mubr.f32.vlgmr.msra.gmra.mrb[116].mxu0 %v7493_v7  ;;  %7649 = vmatmul.mubr.f32.vlgmr.msra.gmra.mrb[116].mxu1 %v7493_v7 }
0x1d5b   :  { %v11417_v15 = vpop.eup %11416  ;;  %7577 = vmatprep.mubr.f32.mxu0 %v11478_v3  ;;  %7654 = vmatprep.mubr.f32.mxu1 %v11478_v3 }
0x1d5c   :  { %v7494_v17 = vmul.f32 %v11417_v15, %v7482_v9  ;;  %10200 = vmatpush1.bf16.msra.mxu0 %v11755_v47  ;;  %10232 = vmatpush1.bf16.msra.mxu1 %v11765_v50 }
0x1d5d   :  { %10202 = vmatprep.subr.bf16.mxu0 %v11767_v51  ;;  %10234 = vmatprep.subr.bf16.mxu1 %v11778_v55 }
0x1d5e   :  { %8206 = vst [vmem:[%s14181_s6 + $0x1c8] sm:$0xff] %v7494_v17  ;;  %7578 = vmatmul.mubr.f32.gmra.mrb[118].mxu0 %v7494_v17  ;;  %7655 = vmatmul.mubr.f32.gmra.mrb[118].mxu1 %v7494_v17 }
0x1d5f   :  { %7781 = vmatprep.mubr.f32.mxu0 %v11478_v3  ;;  %7858 = vmatprep.mubr.f32.mxu1 %v11478_v3 }
0x1d60   :  { %10204 = vmatpush1.bf16.msra.mxu0 %v11801_v62  ;;  %10236 = vmatpush1.bf16.msra.mxu1 %v11805_v63 }
0x1d61   :  { %10206 = vmatprep.subr.bf16.mxu0 %v11807_v0  ;;  %10238 = vmatprep.subr.bf16.mxu1 %v11819_v5 }
0x1d64   :  { %10208 = vmatpush1.bf16.msra.mxu0 %v11842_v12  ;;  %10240 = vmatpush1.bf16.msra.mxu1 %v11846_v13 }
0x1d65   :  { %10210 = vmatprep.subr.bf16.mxu0 %v11848_v14  ;;  %10242 = vmatprep.subr.bf16.mxu1 %v11860_v18 }
0x1d68   :  { %10212 = vmatpush1.bf16.msra.mxu0 %v11880_v24  ;;  %10244 = vmatpush1.bf16.msra.mxu1 %v11887_v26 }
0x1d69   :  { %10214 = vmatprep.subr.bf16.mxu0 %v11889_v27  ;;  %10246 = vmatprep.subr.bf16.mxu1 %v11898_v30 }
0x1d6c   :  { %10216 = vmatpush1.bf16.msra.mxu0 %v11912_v34  ;;  %10248 = vmatpush1.bf16.msra.mxu1 %v11916_v35 }
0x1d6d   :  { %10218 = vmatprep.subr.bf16.mxu0 %v11955_v46  ;;  %10250 = vmatprep.subr.bf16.mxu1 %v11975_v56 }
0x1d70   :  { %10220 = vmatpush1.bf16.msra.mxu0 %v11960_v49  ;;  %10252 = vmatpush1.bf16.msra.mxu1 %v11983_v59 }
0x1d71   :  { %10222 = vmatprep.subr.bf16.mxu0 %v12031_v11  ;;  %10254 = vmatprep.subr.bf16.mxu1 %v12051_v21 }
0x1d74   :  { %10224 = vmatpush1.bf16.msra.mxu0 %v12036_v16  ;;  %10256 = vmatpush1.bf16.msra.mxu1 %v12059_v25 }
0x1d75   :  { %10226 = vmatprep.subr.bf16.mxu0 %v12107_v43  ;;  %10258 = vmatprep.subr.bf16.mxu1 %v12127_v54 }
0x1d78   :  { %10228 = vmatpush1.bf16.msra.mxu0 %v12112_v45  ;;  %10260 = vmatpush1.bf16.msra.mxu1 %v12135_v60 }
0x1d79   :  { %10262 = vmatprep.subr.bf16.mxu0 %v11730_v38  ;;  %10294 = vmatprep.subr.bf16.mxu1 %v11738_v41 }
0x1e2d   :  { %v7573_v32 = vpop.f32.mrb[116].mxu0  ;;  %v7650_v40 = vpop.f32.mrb[116].mxu1 }
0x1e2e   :  { %v10441_v42 = vadd.f32 %v7573_v32, %v12373_v23  ;;  %v7575_v44 = vpop.f32.mrb[117].mxu0  ;;  %v7652_v48 = vpop.f32.mrb[117].mxu1  ;;  %v10569_v10 = vadd.f32 %v7650_v40, %v12383_v61 }
0x1e2f   :  { %v10442_v36 = vadd.f32 %v7575_v44, %v12375_v28  ;;  %v10570_v33 = vadd.f32 %v7652_v48, %v12377_v31 }
0x1e30   :  { %v7669_v37 = vmul.f32 0.5, %v10441_v42  ;;  %v7671_v20 = vmul.f32 0.5, %v10569_v10 }
0x1e31   :  { %v7670_v39 = vmul.f32 0.5, %v10442_v36  ;;  %v7579_v52 = vpop.f32.mrb[118].mxu0  ;;  %v7656_v57 = vpop.f32.mrb[118].mxu1 }
0x1e32   :  { %11418 = vtanh.f32 %v7669_v37  ;;  %v10443_v1 = vadd.f32 %v7579_v52, %v12373_v23  ;;  %v7581_v38 = vpop.f32.mrb[119].mxu0  ;;  %v7658_v2 = vpop.f32.mrb[119].mxu1  ;;  %v10571_v58 = vadd.f32 %v7656_v57, %v12383_v61 }
0x1e33   :  { %v10444_v41 = vadd.f32 %v7581_v38, %v12375_v28  ;;  %11420 = vtanh.f32 %v7670_v39  ;;  %v10572_v8 = vadd.f32 %v7658_v2, %v12377_v31 }
0x1e34   :  { %v7672_v4 = vmul.f32 0.5, %v10443_v1  ;;  %11422 = vtanh.f32 %v10570_v33  ;;  %v7674_v32 = vmul.f32 0.5, %v10571_v58 }
0x1e35   :  { %v7673_v6 = vmul.f32 0.5, %v10444_v41 }
0x1e36   :  { %11424 = vtanh.f32 %v7672_v4 }
0x1e37   :  { %11426 = vtanh.f32 %v7673_v6 }
0x1e38   :  { %11428 = vtanh.f32 %v10572_v8 }
0x1e39   :  { %11430 = vtanh.f32 %v7671_v20 }
0x1e3a   :  { %11432 = vtanh.f32 %v7674_v32 }
0x1e3c   :  { %v11419_v22 = vpop.eup %11418 }
0x1e3d   :  { %v7681_v29 = vmul.f32 0.5, %v11419_v22  ;;  %v11421_v7 = vpop.eup %11420 }
0x1e3e   :  { %v11423_v9 = vpop.eup %11422  ;;  %v7682_v17 = vmul.f32 0.5, %v11421_v7 }
0x1e3f   :  { %v7687_v15 = vadd.f32 0.5, %v7681_v29 }
0x1e40   :  { %v11425_v42 = vpop.eup %11424  ;;  %v7688_v44 = vadd.f32 0.5, %v7682_v17 }
0x1e41   :  { %v7697_v48 = vmul.f32 %v11423_v9, %v7687_v15  ;;  %v7684_v36 = vmul.f32 0.5, %v11425_v42  ;;  %v11427_v37 = vpop.eup %11426 }
0x1e42   :  { %v7695_v40 = vmul.f32 %v7688_v44, %v14018_v53  ;;  %v7685_v33 = vmul.f32 0.5, %v11427_v37  ;;  %v11429_v52 = vpop.eup %11428 }
0x1e43   :  { %v7690_v39 = vadd.f32 0.5, %v7684_v36  ;;  %v11431_v41 = vpop.eup %11430 }
0x1e44   :  { %v14076_v57 = vadd.f32 %v7697_v48, %v7695_v40  ;;  %v7691_v1 = vadd.f32 0.5, %v7685_v33  ;;  %v7683_v6 = vmul.f32 0.5, %v11431_v41  ;;  %v11433_v8 = vpop.eup %11432 }
0x1e45   :  { %v7698_v38 = vmul.f32 %v11429_v52, %v7690_v39  ;;  %v7686_v10 = vmul.f32 0.5, %v11433_v8 }
0x1e46   :  { %11434 = vtanh.f32 %v14076_v57  ;;  %v7696_v2 = vmul.f32 %v7691_v1, %v14022_v19  ;;  %v7689_v53 = vadd.f32 0.5, %v7683_v6 }
0x1e47   :  { %v7692_v22 = vadd.f32 0.5, %v7686_v10 }
0x1e48   :  { %v14080_v4 = vadd.f32 %v7698_v38, %v7696_v2 }
0x1e4a   :  { %11436 = vtanh.f32 %v14080_v4 }
0x1e50   :  { %v11435_v20 = vpop.eup %11434 }
0x1e51   :  { %v7703_v58 = vmul.f32 %v11435_v20, %v7689_v53 }
0x1e53   :  { %8207 = vst [vmem:[%s14181_s6 + $0x1d0] sm:$0xff] %v7703_v58  ;;  %7782 = vmatmul.mubr.f32.vlgmr.msra.gmra.mrb[120].mxu0 %v7703_v58  ;;  %7859 = vmatmul.mubr.f32.vlgmr.msra.gmra.mrb[120].mxu1 %v7703_v58 }
0x1e54   :  { %v11437_v29 = vpop.eup %11436  ;;  %7787 = vmatprep.mubr.f32.mxu0 %v11478_v3  ;;  %7864 = vmatprep.mubr.f32.mxu1 %v11478_v3 }
0x1e55   :  { %v7704_v19 = vmul.f32 %v11437_v29, %v7692_v22  ;;  %10264 = vmatpush1.bf16.msra.mxu0 %v11755_v47  ;;  %10296 = vmatpush1.bf16.msra.mxu1 %v11765_v50 }
0x1e56   :  { %10266 = vmatprep.subr.bf16.mxu0 %v11767_v51  ;;  %10298 = vmatprep.subr.bf16.mxu1 %v11778_v55 }
0x1e57   :  { %8208 = vst [vmem:[%s14181_s6 + $0x1d8] sm:$0xff] %v7704_v19  ;;  %7788 = vmatmul.mubr.f32.gmra.mrb[122].mxu0 %v7704_v19  ;;  %7865 = vmatmul.mubr.f32.gmra.mrb[122].mxu1 %v7704_v19 }
0x1e58   :  { %7991 = vmatprep.mubr.f32.mxu0 %v11478_v3  ;;  %8068 = vmatprep.mubr.f32.mxu1 %v11478_v3 }
0x1e59   :  { %10268 = vmatpush1.bf16.msra.mxu0 %v11801_v62  ;;  %10300 = vmatpush1.bf16.msra.mxu1 %v11805_v63 }
0x1e5a   :  { %10270 = vmatprep.subr.bf16.mxu0 %v11807_v0  ;;  %10302 = vmatprep.subr.bf16.mxu1 %v11819_v5 }
0x1e5d   :  { %10272 = vmatpush1.bf16.msra.mxu0 %v11842_v12  ;;  %10304 = vmatpush1.bf16.msra.mxu1 %v11846_v13 }
0x1e5e   :  { %10274 = vmatprep.subr.bf16.mxu0 %v11848_v14  ;;  %10306 = vmatprep.subr.bf16.mxu1 %v11860_v18 }
0x1e61   :  { %10276 = vmatpush1.bf16.msra.mxu0 %v11880_v24  ;;  %10308 = vmatpush1.bf16.msra.mxu1 %v11887_v26 }
0x1e62   :  { %10278 = vmatprep.subr.bf16.mxu0 %v11889_v27  ;;  %10310 = vmatprep.subr.bf16.mxu1 %v11898_v30 }
0x1e65   :  { %10280 = vmatpush1.bf16.msra.mxu0 %v11912_v34  ;;  %10312 = vmatpush1.bf16.msra.mxu1 %v11916_v35 }
0x1e66   :  { %10282 = vmatprep.subr.bf16.mxu0 %v11955_v46  ;;  %10314 = vmatprep.subr.bf16.mxu1 %v11975_v56 }
0x1e69   :  { %10284 = vmatpush1.bf16.msra.mxu0 %v11960_v49  ;;  %10316 = vmatpush1.bf16.msra.mxu1 %v11983_v59 }
0x1e6a   :  { %10286 = vmatprep.subr.bf16.mxu0 %v12031_v11  ;;  %10318 = vmatprep.subr.bf16.mxu1 %v12051_v21 }
0x1e6d   :  { %10288 = vmatpush1.bf16.msra.mxu0 %v12036_v16  ;;  %10320 = vmatpush1.bf16.msra.mxu1 %v12059_v25 }
0x1e6e   :  { %10290 = vmatprep.subr.bf16.mxu0 %v12107_v43  ;;  %10322 = vmatprep.subr.bf16.mxu1 %v12127_v54 }
0x1e71   :  { %10292 = vmatpush1.bf16.msra.mxu0 %v12112_v45  ;;  %10324 = vmatpush1.bf16.msra.mxu1 %v12135_v60 }
0x1f26   :  { %v7783_v47 = vpop.f32.mrb[120].mxu0  ;;  %v7860_v50 = vpop.f32.mrb[120].mxu1 }
0x1f27   :  { %v10445_v51 = vadd.f32 %v7783_v47, %v12373_v23  ;;  %v7785_v55 = vpop.f32.mrb[121].mxu0  ;;  %v7862_v62 = vpop.f32.mrb[121].mxu1  ;;  %v10573_v46 = vadd.f32 %v7860_v50, %v12383_v61 }
0x1f28   :  { %v10446_v63 = vadd.f32 %v7785_v55, %v12375_v28  ;;  %v10574_v12 = vadd.f32 %v7862_v62, %v12377_v31 }
0x1f29   :  { %v7879_v0 = vmul.f32 0.5, %v10445_v51  ;;  %v7881_v49 = vmul.f32 0.5, %v10573_v46 }
0x1f2a   :  { %v7880_v5 = vmul.f32 0.5, %v10446_v63  ;;  %v7789_v13 = vpop.f32.mrb[122].mxu0  ;;  %v7866_v14 = vpop.f32.mrb[122].mxu1 }
0x1f2b   :  { %11438 = vtanh.f32 %v7879_v0  ;;  %v10447_v18 = vadd.f32 %v7789_v13, %v12373_v23  ;;  %v7791_v24 = vpop.f32.mrb[123].mxu0  ;;  %v7868_v26 = vpop.f32.mrb[123].mxu1  ;;  %v10575_v56 = vadd.f32 %v7866_v14, %v12383_v61 }
0x1f2c   :  { %v10448_v27 = vadd.f32 %v7791_v24, %v12375_v28  ;;  %11440 = vtanh.f32 %v7880_v5  ;;  %v10576_v35 = vadd.f32 %v7868_v26, %v12377_v31 }
0x1f2d   :  { %v7882_v30 = vmul.f32 0.5, %v10447_v18  ;;  %11442 = vtanh.f32 %v10574_v12  ;;  %v7884_v45 = vmul.f32 0.5, %v10575_v56 }
0x1f2e   :  { %v7883_v34 = vmul.f32 0.5, %v10448_v27 }
0x1f2f   :  { %11444 = vtanh.f32 %v7882_v30 }
0x1f30   :  { %11446 = vtanh.f32 %v7883_v34 }
0x1f31   :  { %11448 = vtanh.f32 %v10576_v35 }
0x1f32   :  { %11450 = vtanh.f32 %v7881_v49 }
0x1f33   :  { %11452 = vtanh.f32 %v7884_v45 }
0x1f35   :  { %v11439_v59 = vpop.eup %11438 }
0x1f36   :  { %v7891_v11 = vmul.f32 0.5, %v11439_v59  ;;  %v11441_v16 = vpop.eup %11440 }
0x1f37   :  { %v11443_v21 = vpop.eup %11442  ;;  %v7892_v43 = vmul.f32 0.5, %v11441_v16 }
0x1f38   :  { %v7897_v25 = vadd.f32 0.5, %v7891_v11 }
0x1f39   :  { %v11445_v54 = vpop.eup %11444  ;;  %v7898_v60 = vadd.f32 0.5, %v7892_v43 }
0x1f3a   :  { %v7907_v7 = vmul.f32 %v11443_v21, %v7897_v25  ;;  %v7894_v9 = vmul.f32 0.5, %v11445_v54  ;;  %v11447_v15 = vpop.eup %11446 }
0x1f3b   :  { %v7905_v17 = vmul.f32 %v7898_v60, %v14076_v57  ;;  %v7895_v42 = vmul.f32 0.5, %v11447_v15  ;;  %v11449_v44 = vpop.eup %11448 }
0x1f3c   :  { %v7900_v32 = vadd.f32 0.5, %v7894_v9  ;;  %v11451_v39 = vpop.eup %11450 }
0x1f3d   :  { %v14132_v48 = vadd.f32 %v7907_v7, %v7905_v17  ;;  %v7901_v36 = vadd.f32 0.5, %v7895_v42  ;;  %v7893_v52 = vmul.f32 0.5, %v11451_v39  ;;  %v11453_v1 = vpop.eup %11452 }
0x1f3e   :  { %v7908_v37 = vmul.f32 %v11449_v44, %v7900_v32  ;;  %v7896_v38 = vmul.f32 0.5, %v11453_v1 }
0x1f3f   :  { %11454 = vtanh.f32 %v14132_v48  ;;  %v7906_v40 = vmul.f32 %v7901_v36, %v14080_v4  ;;  %v7899_v57 = vadd.f32 0.5, %v7893_v52 }
0x1f40   :  { %v7902_v6 = vadd.f32 0.5, %v7896_v38 }
0x1f41   :  { %v14136_v33 = vadd.f32 %v7908_v37, %v7906_v40 }
0x1f43   :  { %11456 = vtanh.f32 %v14136_v33 }
0x1f49   :  { %v11455_v2 = vpop.eup %11454 }
0x1f4a   :  { %v7913_v41 = vmul.f32 %v11455_v2, %v7899_v57 }
0x1f4c   :  { %8209 = vst [vmem:[%s14181_s6 + $0x1e0] sm:$0xff] %v7913_v41  ;;  %7992 = vmatmul.mubr.f32.vlgmr.msra.gmra.mrb[124].mxu0 %v7913_v41  ;;  %8069 = vmatmul.mubr.f32.vlgmr.msra.gmra.mrb[124].mxu1 %v7913_v41 }
0x1f4d   :  { %v11457_v8 = vpop.eup %11456  ;;  %7997 = vmatprep.mubr.f32.mxu0 %v11478_v3  ;;  %8074 = vmatprep.mubr.f32.mxu1 %v11478_v3 }
0x1f4e   :  { %v7914_v4 = vmul.f32 %v11457_v8, %v7902_v6 }
0x1f50   :  { %8210 = vst [vmem:[%s14181_s6 + $0x1e8] sm:$0xff] %v7914_v4  ;;  %7998 = vmatmul.mubr.f32.gmra.mrb[126].mxu0 %v7914_v4  ;;  %8075 = vmatmul.mubr.f32.gmra.mrb[126].mxu1 %v7914_v4 }
0x201f   :  { %v7993_v53 = vpop.f32.mrb[124].mxu0  ;;  %v8070_v10 = vpop.f32.mrb[124].mxu1 }
0x2020   :  { %v10449_v20 = vadd.f32 %v7993_v53, %v12373_v23  ;;  %v7995_v58 = vpop.f32.mrb[125].mxu0  ;;  %v8072_v22 = vpop.f32.mrb[125].mxu1  ;;  %v10577_v14 = vadd.f32 %v8070_v10, %v12383_v61 }
0x2021   :  { %v10450_v29 = vadd.f32 %v7995_v58, %v12375_v28  ;;  %v10578_v50 = vadd.f32 %v8072_v22, %v12377_v31 }
0x2022   :  { %v8089_v19 = vmul.f32 0.5, %v10449_v20  ;;  %v8091_v18 = vmul.f32 0.5, %v10577_v14 }
0x2023   :  { %v8090_v47 = vmul.f32 0.5, %v10450_v29  ;;  %v7999_v3 = vpop.f32.mrb[126].mxu0  ;;  %v8076_v51 = vpop.f32.mrb[126].mxu1 }
0x2024   :  { %11458 = vtanh.f32 %v8089_v19  ;;  %v10451_v55 = vadd.f32 %v7999_v3, %v12373_v23  ;;  %v8001_v62 = vpop.f32.mrb[127].mxu0  ;;  %v8078_v63 = vpop.f32.mrb[127].mxu1  ;;  %v10579_v24 = vadd.f32 %v8076_v51, %v12383_v61 }
0x2025   :  { %v10452_v0 = vadd.f32 %v8001_v62, %v12375_v28  ;;  %11460 = vtanh.f32 %v8090_v47  ;;  %v10580_v13 = vadd.f32 %v8078_v63, %v12377_v31 }
0x2026   :  { %v8092_v5 = vmul.f32 0.5, %v10451_v55  ;;  %11462 = vtanh.f32 %v10578_v50  ;;  %v8094_v35 = vmul.f32 0.5, %v10579_v24 }
0x2027   :  { %v8093_v12 = vmul.f32 0.5, %v10452_v0 }
0x2028   :  { %11464 = vtanh.f32 %v8092_v5 }
0x2029   :  { %11466 = vtanh.f32 %v8093_v12 }
0x202a   :  { %11468 = vtanh.f32 %v10580_v13 }
0x202b   :  { %11470 = vtanh.f32 %v8091_v18 }
0x202c   :  { %11472 = vtanh.f32 %v8094_v35 }
0x202e   :  { %v11459_v26 = vpop.eup %11458 }
0x202f   :  { %v8101_v23 = vmul.f32 0.5, %v11459_v26  ;;  %v11461_v27 = vpop.eup %11460 }
0x2030   :  { %v11463_v30 = vpop.eup %11462  ;;  %v8102_v28 = vmul.f32 0.5, %v11461_v27 }
0x2031   :  { %v8107_v34 = vadd.f32 0.5, %v8101_v23 }
0x2032   :  { %v11465_v46 = vpop.eup %11464  ;;  %v8108_v49 = vadd.f32 0.5, %v8102_v28 }
0x2033   :  { %v8117_v56 = vmul.f32 %v11463_v30, %v8107_v34  ;;  %v8104_v59 = vmul.f32 0.5, %v11465_v46  ;;  %v11467_v31 = vpop.eup %11466 }
0x2034   :  { %v8115_v11 = vmul.f32 %v8108_v49, %v14132_v48  ;;  %v8105_v21 = vmul.f32 0.5, %v11467_v31  ;;  %v11469_v25 = vpop.eup %11468 }
0x2035   :  { %v8110_v16 = vadd.f32 0.5, %v8104_v59  ;;  %v11471_v60 = vpop.eup %11470 }
0x2036   :  { %v8119_v61 = vadd.f32 %v8117_v56, %v8115_v11  ;;  %v8111_v43 = vadd.f32 0.5, %v8105_v21  ;;  %v8103_v9 = vmul.f32 0.5, %v11471_v60  ;;  %v11473_v15 = vpop.eup %11472 }
0x2037   :  { %v8118_v45 = vmul.f32 %v11469_v25, %v8110_v16  ;;  %v8106_v32 = vmul.f32 0.5, %v11473_v15 }
0x2038   :  { %11474 = vtanh.f32 %v8119_v61  ;;  %8137 = vst [vmem:[%s14182_s8] sm:$0xff] %v8119_v61  ;;  %v8116_v54 = vmul.f32 %v8111_v43, %v14136_v33  ;;  %v8109_v17 = vadd.f32 0.5, %v8103_v9 }
0x2039   :  { %v8112_v48 = vadd.f32 0.5, %v8106_v32 }
0x203a   :  { %v8120_v7 = vadd.f32 %v8118_v45, %v8116_v54 }
0x203c   :  { %11476 = vtanh.f32 %v8120_v7  ;;  %8138 = vst [vmem:[%s14182_s8 + $0x8] sm:$0xff] %v8120_v7 }
0x2042   :  { %v11475_v42 = vpop.eup %11474 }
0x2043   :  { %v8123_v44 = vmul.f32 %v11475_v42, %v8109_v17 }
0x2045   :  { %8211 = vst [vmem:[%s14181_s6 + $0x1f0] sm:$0xff] %v8123_v44  ;;  %8135 = vst [vmem:[%s14183_s7] sm:$0xff] %v8123_v44 }
0x2046   :  { %v11477_v36 = vpop.eup %11476 }
0x2047   :  { %v8124_v37 = vmul.f32 %v11477_v36, %v8112_v48 }
0x2049   :  { %8212 = vst [vmem:[%s14181_s6 + $0x1f8] sm:$0xff] %v8124_v37  ;;  %8136 = vst [vmem:[%s14183_s7 + $0x8] sm:$0xff] %v8124_v37 }

</bundles_post_ra>
